<compile_context>
chip_gen: v6e
topology: v6e:2x2x1
jax: 0.10.0
libtpu: 0.0.40
codegen_flags: <defaults>
</compile_context>

<pallas_src>
import functools
import math

import numpy as np
import jax
import jax.numpy as jnp
from jax.experimental import pallas as pl
from jax.experimental.pallas import tpu as pltpu


# ----------------------------------------------------------------------------
# Fused ResBlock kernel: one grid step processes one batch element.
# ----------------------------------------------------------------------------
def _resblock_kernel(x_ref,
                     s1_wsp_ref, s1_wt1_ref, s1_wt2_ref, s1_bn_ref,
                     s2_wsp_ref, s2_wt1_ref, s2_wt2_ref, s2_bn_ref,
                     o_ref,
                     pad_ref, cols_ref,
                     *, T, H, W, K, C, Cm):
    p = K // 2
    HW = H * W
    C2 = C + 2

    def spatial_attention(inp, w_sp):
        """SpatialAttention: concat([mean_c, max_c, x]) -> (1,K,K) conv -> x*sigmoid(x).

        inp: (T, H, W, C) f32.  w_sp: (K*K*(C+2), Cm) bf16 (im2col-flattened).
        Returns (T*H*W, Cm) f32.
        """
        avg = jnp.mean(inp, axis=-1, keepdims=True)              # (T, H, W, 1)
        mx = jnp.max(inp, axis=-1, keepdims=True)                # (T, H, W, 1)
        # Zero-padded, channel-concatenated [avg, max, x] assembled in a VMEM scratch.
        # Padding is applied AFTER the concat, matching Conv3d's zero padding.
        pad_ref[...] = jnp.zeros_like(pad_ref)
        pad_ref[:, p:p + H, p:p + W, 0:1] = avg
        pad_ref[:, p:p + H, p:p + W, 1:2] = mx
        pad_ref[:, p:p + H, p:p + W, 2:] = inp
        # im2col: gather all K*K taps so the whole spatial conv is a single MXU matmul
        # (T*HW, K*K*C2) @ (K*K*C2, Cm).
        for dy in range(K):
            for dx in range(K):
                c0 = (dy * K + dx) * C2
                cols_ref[:, c0:c0 + C2] = pad_ref[:, dy:dy + H, dx:dx + W, :].reshape(
                    T * HW, C2)
        s = jnp.dot(cols_ref[...].astype(jnp.bfloat16), w_sp,
                    preferred_element_type=jnp.float32)           # (T*HW, Cm) f32
        return s * jax.nn.sigmoid(s)

    def temporal_conv(z, w):
        """(K,1,1) temporal conv with zero padding p, batched over all (t, h, w) rows.

        z: (T, HW, Ci) f32.  w: (K, Ci, Co) bf16.  Returns (T*HW, Co) f32.
        """
        Ci = z.shape[-1]
        Co = w.shape[-1]
        acc = jnp.zeros((T * HW, Co), jnp.float32)
        for dt in range(K):                                       # K shifted batched matmuls
            off = dt - p
            if off < 0:
                zs = jnp.concatenate(
                    [jnp.zeros((-off, HW, Ci), z.dtype), z[:T + off]], axis=0)
            elif off > 0:
                zs = jnp.concatenate(
                    [z[off:], jnp.zeros((off, HW, Ci), z.dtype)], axis=0)
            else:
                zs = z
            acc = acc + jnp.dot(zs.reshape(T * HW, Ci).astype(jnp.bfloat16), w[dt],
                                preferred_element_type=jnp.float32)
        return acc

    def spatio_temporal_conv(inp, w_sp, w_t1, w_t2, bn):
        """SpatioTemporalConv.forward followed by the corresponding ResBlock BatchNorm.

        = ResBlockBN( relu( STC.bn2( ChannelAttention( SpatialAttention(inp) ) ) ) )
        Returns (T*HW, C) f32 (no trailing ReLU / residual add).
        """
        y = spatial_attention(inp, w_sp)                          # (T*HW, Cm)
        # ChannelAttention: the channel-wise AdaptiveAvgPool (Cm -> C) is folded into w_t1
        # host-side (w_t1[dt] = P @ fc1[dt]).  The AdaptiveMaxPool branch pools an already
        # C-channel tensor (window size 1 == identity), so max_out == avg_out and
        #   out = avg_out + max_out = 2 * fc2(relu(fc1(avgpool(y)))).
        a = jnp.maximum(temporal_conv(y.reshape(T, HW, Cm), w_t1), 0.0)   # relu(fc1(.))
        b = temporal_conv(a.reshape(T, HW, C), w_t2)                      # fc2(.)
        o = 2.0 * b
        o = jax.nn.sigmoid(o) * o
        # SpatioTemporalConv.bn2 (eval-mode folded scale/shift) + ReLU.
        o = jnp.maximum(o * bn[0:1] + bn[1:2], 0.0)
        # ResBlock.bn1 / bn2 (eval-mode folded scale/shift).
        return o * bn[2:3] + bn[3:4]

    x = x_ref[0]                                                  # (T, H, W, C) f32
    # res = relu(bn1(conv1(x)))
    res = jnp.maximum(
        spatio_temporal_conv(x, s1_wsp_ref[...], s1_wt1_ref[...],
                             s1_wt2_ref[...], s1_bn_ref[...]), 0.0)
    # res = bn2(conv2(res))
    res = spatio_temporal_conv(res.reshape(T, H, W, C),
                               s2_wsp_ref[...], s2_wt1_ref[...],
                               s2_wt2_ref[...], s2_bn_ref[...])
    # return relu(x + res)
    out = jnp.maximum(x.reshape(T * HW, C) + res, 0.0)
    o_ref[0] = out.reshape(T, H, W, C).astype(o_ref.dtype)


def resblock_pallas(x_nthwc, params):
    """x_nthwc: (N, T, H, W, C) f32 -> (N, T, H, W, C) f32 (full ResBlock, fused)."""
    N, T, H, W, C = x_nthwc.shape
    st1, st2 = params["stc1"], params["stc2"]
    K = st1["w_t1"].shape[0]
    Cm = st1["w_sp"].shape[1]
    KK2 = st1["w_sp"].shape[0]
    assert KK2 == K * K * (C + 2)
    assert st2["w_sp"].shape == st1["w_sp"].shape
    p = K // 2

    kernel = functools.partial(_resblock_kernel, T=T, H=H, W=W, K=K, C=C, Cm=Cm)
    return pl.pallas_call(
        kernel,
        out_shape=jax.ShapeDtypeStruct((N, T, H, W, C), jnp.float32),
        grid=(N,),
        in_specs=[
            pl.BlockSpec((1, T, H, W, C), lambda n: (n, 0, 0, 0, 0)),   # x (f32)
            pl.BlockSpec((KK2, Cm), lambda n: (0, 0)),                  # stc1 spatial weight (bf16)
            pl.BlockSpec((K, Cm, C), lambda n: (0, 0, 0)),              # stc1 fc1 (pool-folded, bf16)
            pl.BlockSpec((K, C, C), lambda n: (0, 0, 0)),               # stc1 fc2 (bf16)
            pl.BlockSpec((4, C), lambda n: (0, 0)),                     # stc1 folded BNs (f32)
            pl.BlockSpec((KK2, Cm), lambda n: (0, 0)),                  # stc2 spatial weight
            pl.BlockSpec((K, Cm, C), lambda n: (0, 0, 0)),              # stc2 fc1
            pl.BlockSpec((K, C, C), lambda n: (0, 0, 0)),               # stc2 fc2
            pl.BlockSpec((4, C), lambda n: (0, 0)),                     # stc2 folded BNs
        ],
        out_specs=pl.BlockSpec((1, T, H, W, C), lambda n: (n, 0, 0, 0, 0)),
        scratch_shapes=[
            pltpu.VMEM((T, H + 2 * p, W + 2 * p, C + 2), jnp.float32),  # padded [avg,max,x]
            pltpu.VMEM((T * H * W, KK2), jnp.float32),                  # spatial im2col matrix
        ],
        compiler_params=pltpu.CompilerParams(dimension_semantics=("parallel",)),
    )(x_nthwc,
      st1["w_sp"], st1["w_t1"], st1["w_t2"], st1["bn"],
      st2["w_sp"], st2["w_t1"], st2["w_t2"], st2["bn"])


# ----------------------------------------------------------------------------
# Parameter construction (deterministic) & ResBlock forward wrapper
# ----------------------------------------------------------------------------
def adaptive_avg_pool_matrix(cin, cout):
    """P (cin, cout) s.t. x @ P == adaptive average pooling cin -> cout over channels."""
    P = np.zeros((cin, cout), np.float32)
    for j in range(cout):
        s = (j * cin) // cout
        e = -((-(j + 1) * cin) // cout)     # ceil((j+1)*cin/cout)
        P[s:e, j] = 1.0 / float(e - s)
    return jnp.asarray(P)


def _bn_fold(key, c):
    """Eval-mode BatchNorm3d folded to per-channel (scale, shift)."""
    k1, k2, k3, k4 = jax.random.split(key, 4)
    gamma = 1.0 + 0.1 * jax.random.normal(k1, (c,), jnp.float32)
    beta = 0.1 * jax.random.normal(k2, (c,), jnp.float32)
    rmean = 0.05 * jax.random.normal(k3, (c,), jnp.float32)
    rvar = 1.0 + 0.1 * jnp.abs(jax.random.normal(k4, (c,), jnp.float32))
    scale = gamma / jnp.sqrt(rvar + 1e-5)
    shift = beta - rmean * scale
    return scale, shift


def make_resblock_params(key, in_channels, out_channels, kernel_size):
    # downsample=False: the residual add x + res requires in_channels == out_channels.
    assert in_channels == out_channels
    K = kernel_size
    keys = jax.random.split(key, 4)
    bn1_s, bn1_b = _bn_fold(keys[0], out_channels)   # ResBlock.bn1
    bn2_s, bn2_b = _bn_fold(keys[1], out_channels)   # ResBlock.bn2

    def stc(k, cin, cout, res_bn_scale, res_bn_shift):
        # intermed channels formula from SpatioTemporalConv.__init__ (first_conv=False)
        cm = int(math.floor(K * K * K * cin * cout / (K * K * cin + K * cout)))
        k1, k2, k3, k4 = jax.random.split(k, 4)
        # SpatialAttention.conv1 weight (torch (cm, cin+2, 1, K, K)) stored im2col-flattened
        # as (K*K*(cin+2), cm), input-channel order [avg, max, x...].
        w_sp = (jax.random.normal(k1, (K, K, cin + 2, cm), jnp.float32)
                / math.sqrt((cin + 2) * K * K)).reshape(K * K * (cin + 2), cm)
        # ChannelAttention.fc1 / fc2 weights (torch (cout, cout, K, 1, 1)) stored as (K, cout, cout).
        w_fc1 = jax.random.normal(k2, (K, cout, cout), jnp.float32) / math.sqrt(cout * K)
        w_fc2 = jax.random.normal(k3, (K, cout, cout), jnp.float32) / math.sqrt(cout * K)
        pool = adaptive_avg_pool_matrix(cm, cout)                 # channel-wise avg pool cm -> cout
        w_t1 = jnp.einsum("mc,kcd->kmd", pool, w_fc1)             # fold pool into fc1: (K, cm, cout)
        bnA_s, bnA_b = _bn_fold(k4, cout)                         # SpatioTemporalConv.bn2
        bn = jnp.stack([bnA_s, bnA_b, res_bn_scale, res_bn_shift]).astype(jnp.float32)
        return dict(w_sp=w_sp.astype(jnp.bfloat16),
                    w_t1=w_t1.astype(jnp.bfloat16),
                    w_t2=w_fc2.astype(jnp.bfloat16),
                    bn=bn)

    return dict(stc1=stc(keys[2], in_channels, out_channels, bn1_s, bn1_b),
                stc2=stc(keys[3], out_channels, out_channels, bn2_s, bn2_b))


@jax.jit
def resblock_forward(x_ncdhw, params):
    """ResBlock forward (downsample=False).  x_ncdhw: (N, C, T, H, W) -> (N, C, T, H, W)."""
    x = jnp.transpose(x_ncdhw, (0, 2, 3, 4, 1)).astype(jnp.float32)   # NCDHW -> NTHWC
    out = resblock_pallas(x, params)
    return jnp.transpose(out, (0, 4, 1, 2, 3))                        # back to NCDHW


if __name__ == "__main__":
    key = jax.random.PRNGKey(0)
    kx, kp = jax.random.split(key)
    # Small shapes: batch=2, channels=8 (in==out, downsample=False), T=4, H=W=8, kernel=3
    N, C, T, H, W = 2, 8, 4, 8, 8
    x = jax.random.normal(kx, (N, C, T, H, W), jnp.float32)
    params = make_resblock_params(kp, in_channels=C, out_channels=C, kernel_size=3)

    out = resblock_forward(x, params)
    out = jax.block_until_ready(out)
    assert out.shape == (N, C, T, H, W), out.shape
    assert bool(jnp.all(jnp.isfinite(out)))
    print("KERNEL_OK")
</pallas_src>

<mosaic_0001>
module attributes {stable_mosaic.version = 11 : i64} {
  func.func @_resblock_kernel(%arg0: i32, %arg1: memref<1x4x8x8x8xf32, #tpu.memory_space<vmem>>, %arg2: memref<90x18xbf16, #tpu.memory_space<vmem>>, %arg3: memref<3x18x8xbf16, #tpu.memory_space<vmem>>, %arg4: memref<3x8x8xbf16, #tpu.memory_space<vmem>>, %arg5: memref<4x8xf32, #tpu.memory_space<vmem>>, %arg6: memref<90x18xbf16, #tpu.memory_space<vmem>>, %arg7: memref<3x18x8xbf16, #tpu.memory_space<vmem>>, %arg8: memref<3x8x8xbf16, #tpu.memory_space<vmem>>, %arg9: memref<4x8xf32, #tpu.memory_space<vmem>>, %arg10: memref<1x4x8x8x8xf32, #tpu.memory_space<vmem>>, %arg11: memref<4x10x10x10xf32, #tpu.memory_space<vmem>>, %arg12: memref<256x90xf32, #tpu.memory_space<vmem>>) attributes {dimension_semantics = [#tpu.dimension_semantics<parallel>], iteration_bounds = array<i64: 2>, scalar_prefetch = 0 : i64, scratch_operands = 2 : i64, tpu.core_type = #tpu.core_type<tc>, window_params = [{transform_indices = @transform_0, window_bounds = array<i64: 1, 4, 8, 8, 8>}, {pipeline_mode = #tpu.pipeline_mode<synchronous>, transform_indices = @transform_1, window_bounds = array<i64: 90, 18>}, {pipeline_mode = #tpu.pipeline_mode<synchronous>, transform_indices = @transform_2, window_bounds = array<i64: 3, 18, 8>}, {pipeline_mode = #tpu.pipeline_mode<synchronous>, transform_indices = @transform_3, window_bounds = array<i64: 3, 8, 8>}, {pipeline_mode = #tpu.pipeline_mode<synchronous>, transform_indices = @transform_4, window_bounds = array<i64: 4, 8>}, {pipeline_mode = #tpu.pipeline_mode<synchronous>, transform_indices = @transform_5, window_bounds = array<i64: 90, 18>}, {pipeline_mode = #tpu.pipeline_mode<synchronous>, transform_indices = @transform_6, window_bounds = array<i64: 3, 18, 8>}, {pipeline_mode = #tpu.pipeline_mode<synchronous>, transform_indices = @transform_7, window_bounds = array<i64: 3, 8, 8>}, {pipeline_mode = #tpu.pipeline_mode<synchronous>, transform_indices = @transform_8, window_bounds = array<i64: 4, 8>}, {transform_indices = @transform_9, window_bounds = array<i64: 1, 4, 8, 8, 8>}]} {
    %c0 = arith.constant 0 : index
    %c0_0 = arith.constant 0 : index
    %c0_1 = arith.constant 0 : index
    %c0_2 = arith.constant 0 : index
    %c0_3 = arith.constant 0 : index
    %0 = vector.load %arg1[%c0, %c0_0, %c0_1, %c0_2, %c0_3] : memref<1x4x8x8x8xf32, #tpu.memory_space<vmem>>, vector<1x4x8x8x8xf32>
    %1 = vector.shape_cast %0 : vector<1x4x8x8x8xf32> to vector<4x8x8x8xf32>
    %c0_4 = arith.constant 0 : index
    %c0_5 = arith.constant 0 : index
    %2 = vector.load %arg2[%c0_4, %c0_5] : memref<90x18xbf16, #tpu.memory_space<vmem>>, vector<90x18xbf16>
    %c0_6 = arith.constant 0 : index
    %c0_7 = arith.constant 0 : index
    %c0_8 = arith.constant 0 : index
    %3 = vector.load %arg3[%c0_6, %c0_7, %c0_8] : memref<3x18x8xbf16, #tpu.memory_space<vmem>>, vector<3x18x8xbf16>
    %c0_9 = arith.constant 0 : index
    %c0_10 = arith.constant 0 : index
    %c0_11 = arith.constant 0 : index
    %4 = vector.load %arg4[%c0_9, %c0_10, %c0_11] : memref<3x8x8xbf16, #tpu.memory_space<vmem>>, vector<3x8x8xbf16>
    %c0_12 = arith.constant 0 : index
    %c0_13 = arith.constant 0 : index
    %5 = vector.load %arg5[%c0_12, %c0_13] : memref<4x8xf32, #tpu.memory_space<vmem>>, vector<4x8xf32>
    %cst = arith.constant dense<0.000000e+00> : vector<4x8x8xf32>
    %6 = vector.multi_reduction <add>, %1, %cst [3] : vector<4x8x8x8xf32> to vector<4x8x8xf32>
    %7 = vector.shape_cast %6 : vector<4x8x8xf32> to vector<4x8x8x1xf32>
    %cst_14 = arith.constant 8.000000e+00 : f32
    %8 = vector.broadcast %cst_14 : f32 to vector<4x8x8x1xf32>
    %9 = arith.divf %7, %8 : vector<4x8x8x1xf32>
    %cst_15 = arith.constant dense<0xFF800000> : vector<4x8x8xf32>
    %10 = vector.multi_reduction <maximumf>, %1, %cst_15 [3] : vector<4x8x8x8xf32> to vector<4x8x8xf32>
    %11 = vector.shape_cast %10 : vector<4x8x8xf32> to vector<4x8x8x1xf32>
    %cst_16 = arith.constant 0.000000e+00 : f32
    %12 = vector.broadcast %cst_16 : f32 to vector<4x10x10x10xf32>
    %c0_17 = arith.constant 0 : index
    %c0_18 = arith.constant 0 : index
    %c0_19 = arith.constant 0 : index
    %c0_20 = arith.constant 0 : index
    %13 = vector.load %arg11[%c0_17, %c0_18, %c0_19, %c0_20] : memref<4x10x10x10xf32, #tpu.memory_space<vmem>>, vector<4x10x10x10xf32>
    tpu.vector_store %arg11[%c0_17, %c0_18, %c0_19, %c0_20], %12 {strides = array<i32>} : memref<4x10x10x10xf32, #tpu.memory_space<vmem>>, vector<4x10x10x10xf32>,
    %c0_21 = arith.constant 0 : index
    %c1 = arith.constant 1 : index
    %c1_22 = arith.constant 1 : index
    %c0_23 = arith.constant 0 : index
    %14 = vector.load %arg11[%c0_21, %c1, %c1_22, %c0_23] : memref<4x10x10x10xf32, #tpu.memory_space<vmem>>, vector<4x8x8x1xf32>
    tpu.vector_store %arg11[%c0_21, %c1, %c1_22, %c0_23], %9 {strides = array<i32>} : memref<4x10x10x10xf32, #tpu.memory_space<vmem>>, vector<4x8x8x1xf32>,
    %c0_24 = arith.constant 0 : index
    %c1_25 = arith.constant 1 : index
    %c1_26 = arith.constant 1 : index
    %c1_27 = arith.constant 1 : index
    %15 = vector.load %arg11[%c0_24, %c1_25, %c1_26, %c1_27] : memref<4x10x10x10xf32, #tpu.memory_space<vmem>>, vector<4x8x8x1xf32>
    tpu.vector_store %arg11[%c0_24, %c1_25, %c1_26, %c1_27], %11 {strides = array<i32>} : memref<4x10x10x10xf32, #tpu.memory_space<vmem>>, vector<4x8x8x1xf32>,
    %c0_28 = arith.constant 0 : index
    %c1_29 = arith.constant 1 : index
    %c1_30 = arith.constant 1 : index
    %c2 = arith.constant 2 : index
    %16 = vector.load %arg11[%c0_28, %c1_29, %c1_30, %c2] : memref<4x10x10x10xf32, #tpu.memory_space<vmem>>, vector<4x8x8x8xf32>
    tpu.vector_store %arg11[%c0_28, %c1_29, %c1_30, %c2], %1 {strides = array<i32>} : memref<4x10x10x10xf32, #tpu.memory_space<vmem>>, vector<4x8x8x8xf32>,
    %c0_31 = arith.constant 0 : index
    %c0_32 = arith.constant 0 : index
    %c0_33 = arith.constant 0 : index
    %c0_34 = arith.constant 0 : index
    %17 = vector.load %arg11[%c0_31, %c0_32, %c0_33, %c0_34] : memref<4x10x10x10xf32, #tpu.memory_space<vmem>>, vector<4x8x8x10xf32>
    %18 = vector.shape_cast %17 : vector<4x8x8x10xf32> to vector<256x10xf32>
    %c0_35 = arith.constant 0 : index
    %c0_36 = arith.constant 0 : index
    %19 = vector.load %arg12[%c0_35, %c0_36] : memref<256x90xf32, #tpu.memory_space<vmem>>, vector<256x10xf32>
    tpu.vector_store %arg12[%c0_35, %c0_36], %18 {strides = array<i32>} : memref<256x90xf32, #tpu.memory_space<vmem>>, vector<256x10xf32>,
    %c0_37 = arith.constant 0 : index
    %c0_38 = arith.constant 0 : index
    %c1_39 = arith.constant 1 : index
    %c0_40 = arith.constant 0 : index
    %20 = vector.load %arg11[%c0_37, %c0_38, %c1_39, %c0_40] : memref<4x10x10x10xf32, #tpu.memory_space<vmem>>, vector<4x8x8x10xf32>
    %21 = vector.shape_cast %20 : vector<4x8x8x10xf32> to vector<256x10xf32>
    %c0_41 = arith.constant 0 : index
    %c10 = arith.constant 10 : index
    %22 = vector.load %arg12[%c0_41, %c10] : memref<256x90xf32, #tpu.memory_space<vmem>>, vector<256x10xf32>
    tpu.vector_store %arg12[%c0_41, %c10], %21 {strides = array<i32>} : memref<256x90xf32, #tpu.memory_space<vmem>>, vector<256x10xf32>,
    %c0_42 = arith.constant 0 : index
    %c0_43 = arith.constant 0 : index
    %c2_44 = arith.constant 2 : index
    %c0_45 = arith.constant 0 : index
    %23 = vector.load %arg11[%c0_42, %c0_43, %c2_44, %c0_45] : memref<4x10x10x10xf32, #tpu.memory_space<vmem>>, vector<4x8x8x10xf32>
    %24 = vector.shape_cast %23 : vector<4x8x8x10xf32> to vector<256x10xf32>
    %c0_46 = arith.constant 0 : index
    %c20 = arith.constant 20 : index
    %25 = vector.load %arg12[%c0_46, %c20] : memref<256x90xf32, #tpu.memory_space<vmem>>, vector<256x10xf32>
    tpu.vector_store %arg12[%c0_46, %c20], %24 {strides = array<i32>} : memref<256x90xf32, #tpu.memory_space<vmem>>, vector<256x10xf32>,
    %c0_47 = arith.constant 0 : index
    %c1_48 = arith.constant 1 : index
    %c0_49 = arith.constant 0 : index
    %c0_50 = arith.constant 0 : index
    %26 = vector.load %arg11[%c0_47, %c1_48, %c0_49, %c0_50] : memref<4x10x10x10xf32, #tpu.memory_space<vmem>>, vector<4x8x8x10xf32>
    %27 = vector.shape_cast %26 : vector<4x8x8x10xf32> to vector<256x10xf32>
    %c0_51 = arith.constant 0 : index
    %c30 = arith.constant 30 : index
    %28 = vector.load %arg12[%c0_51, %c30] : memref<256x90xf32, #tpu.memory_space<vmem>>, vector<256x10xf32>
    tpu.vector_store %arg12[%c0_51, %c30], %27 {strides = array<i32>} : memref<256x90xf32, #tpu.memory_space<vmem>>, vector<256x10xf32>,
    %c0_52 = arith.constant 0 : index
    %c1_53 = arith.constant 1 : index
    %c1_54 = arith.constant 1 : index
    %c0_55 = arith.constant 0 : index
    %29 = vector.load %arg11[%c0_52, %c1_53, %c1_54, %c0_55] : memref<4x10x10x10xf32, #tpu.memory_space<vmem>>, vector<4x8x8x10xf32>
    %30 = vector.shape_cast %29 : vector<4x8x8x10xf32> to vector<256x10xf32>
    %c0_56 = arith.constant 0 : index
    %c40 = arith.constant 40 : index
    %31 = vector.load %arg12[%c0_56, %c40] : memref<256x90xf32, #tpu.memory_space<vmem>>, vector<256x10xf32>
    tpu.vector_store %arg12[%c0_56, %c40], %30 {strides = array<i32>} : memref<256x90xf32, #tpu.memory_space<vmem>>, vector<256x10xf32>,
    %c0_57 = arith.constant 0 : index
    %c1_58 = arith.constant 1 : index
    %c2_59 = arith.constant 2 : index
    %c0_60 = arith.constant 0 : index
    %32 = vector.load %arg11[%c0_57, %c1_58, %c2_59, %c0_60] : memref<4x10x10x10xf32, #tpu.memory_space<vmem>>, vector<4x8x8x10xf32>
    %33 = vector.shape_cast %32 : vector<4x8x8x10xf32> to vector<256x10xf32>
    %c0_61 = arith.constant 0 : index
    %c50 = arith.constant 50 : index
    %34 = vector.load %arg12[%c0_61, %c50] : memref<256x90xf32, #tpu.memory_space<vmem>>, vector<256x10xf32>
    tpu.vector_store %arg12[%c0_61, %c50], %33 {strides = array<i32>} : memref<256x90xf32, #tpu.memory_space<vmem>>, vector<256x10xf32>,
    %c0_62 = arith.constant 0 : index
    %c2_63 = arith.constant 2 : index
    %c0_64 = arith.constant 0 : index
    %c0_65 = arith.constant 0 : index
    %35 = vector.load %arg11[%c0_62, %c2_63, %c0_64, %c0_65] : memref<4x10x10x10xf32, #tpu.memory_space<vmem>>, vector<4x8x8x10xf32>
    %36 = vector.shape_cast %35 : vector<4x8x8x10xf32> to vector<256x10xf32>
    %c0_66 = arith.constant 0 : index
    %c60 = arith.constant 60 : index
    %37 = vector.load %arg12[%c0_66, %c60] : memref<256x90xf32, #tpu.memory_space<vmem>>, vector<256x10xf32>
    tpu.vector_store %arg12[%c0_66, %c60], %36 {strides = array<i32>} : memref<256x90xf32, #tpu.memory_space<vmem>>, vector<256x10xf32>,
    %c0_67 = arith.constant 0 : index
    %c2_68 = arith.constant 2 : index
    %c1_69 = arith.constant 1 : index
    %c0_70 = arith.constant 0 : index
    %38 = vector.load %arg11[%c0_67, %c2_68, %c1_69, %c0_70] : memref<4x10x10x10xf32, #tpu.memory_space<vmem>>, vector<4x8x8x10xf32>
    %39 = vector.shape_cast %38 : vector<4x8x8x10xf32> to vector<256x10xf32>
    %c0_71 = arith.constant 0 : index
    %c70 = arith.constant 70 : index
    %40 = vector.load %arg12[%c0_71, %c70] : memref<256x90xf32, #tpu.memory_space<vmem>>, vector<256x10xf32>
    tpu.vector_store %arg12[%c0_71, %c70], %39 {strides = array<i32>} : memref<256x90xf32, #tpu.memory_space<vmem>>, vector<256x10xf32>,
    %c0_72 = arith.constant 0 : index
    %c2_73 = arith.constant 2 : index
    %c2_74 = arith.constant 2 : index
    %c0_75 = arith.constant 0 : index
    %41 = vector.load %arg11[%c0_72, %c2_73, %c2_74, %c0_75] : memref<4x10x10x10xf32, #tpu.memory_space<vmem>>, vector<4x8x8x10xf32>
    %42 = vector.shape_cast %41 : vector<4x8x8x10xf32> to vector<256x10xf32>
    %c0_76 = arith.constant 0 : index
    %c80 = arith.constant 80 : index
    %43 = vector.load %arg12[%c0_76, %c80] : memref<256x90xf32, #tpu.memory_space<vmem>>, vector<256x10xf32>
    tpu.vector_store %arg12[%c0_76, %c80], %42 {strides = array<i32>} : memref<256x90xf32, #tpu.memory_space<vmem>>, vector<256x10xf32>,
    %c0_77 = arith.constant 0 : index
    %c0_78 = arith.constant 0 : index
    %44 = vector.load %arg12[%c0_77, %c0_78] : memref<256x90xf32, #tpu.memory_space<vmem>>, vector<256x90xf32>
    %45 = arith.truncf %44 : vector<256x90xf32> to vector<256x90xbf16>
    %cst_79 = arith.constant dense<0.000000e+00> : vector<256x18xf32>
    %46 = tpu.matmul %45, %2, %cst_79 {dimension_numbers = #tpu.dot_dimension_numbers<[1], [0], [0], [1], [0, 0, 1, 1], [], []>} : vector<256x90xbf16>, vector<90x18xbf16>, vector<256x18xf32> -> vector<256x18xf32>
    %47 = arith.negf %46 : vector<256x18xf32>
    %48 = math.exp %47 : vector<256x18xf32>
    %cst_80 = arith.constant 1.000000e+00 : f32
    %49 = vector.broadcast %cst_80 : f32 to vector<256x18xf32>
    %50 = arith.addf %49, %48 : vector<256x18xf32>
    %51 = arith.divf %49, %50 : vector<256x18xf32>
    %52 = arith.mulf %46, %51 : vector<256x18xf32>
    %53 = vector.shape_cast %52 : vector<256x18xf32> to vector<4x64x18xf32>
    %cst_81 = arith.constant 0.000000e+00 : f32
    %54 = vector.broadcast %cst_81 : f32 to vector<256x8xf32>
    %cst_82 = arith.constant 0.000000e+00 : f32
    %55 = vector.broadcast %cst_82 : f32 to vector<1x64x18xf32>
    %56 = vector.extract_strided_slice %53 {offsets = [0, 0, 0], sizes = [3, 64, 18], strides = [1, 1, 1]} : vector<4x64x18xf32> to vector<3x64x18xf32>
    %57 = tpu.concatenate %55, %56 in 0 : vector<1x64x18xf32>, vector<3x64x18xf32> -> vector<4x64x18xf32>
    %58 = vector.shape_cast %57 : vector<4x64x18xf32> to vector<256x18xf32>
    %59 = arith.truncf %58 : vector<256x18xf32> to vector<256x18xbf16>
    %60 = vector.extract_strided_slice %3 {offsets = [0, 0, 0], sizes = [1, 18, 8], strides = [1, 1, 1]} : vector<3x18x8xbf16> to vector<1x18x8xbf16>
    %61 = vector.shape_cast %60 : vector<1x18x8xbf16> to vector<18x8xbf16>
    %cst_83 = arith.constant dense<0.000000e+00> : vector<256x8xf32>
    %62 = tpu.matmul %59, %61, %cst_83 {dimension_numbers = #tpu.dot_dimension_numbers<[1], [0], [0], [1], [0, 0, 1, 1], [], []>} : vector<256x18xbf16>, vector<18x8xbf16>, vector<256x8xf32> -> vector<256x8xf32>
    %63 = arith.addf %54, %62 : vector<256x8xf32>
    %64 = vector.shape_cast %53 : vector<4x64x18xf32> to vector<256x18xf32>
    %65 = arith.truncf %64 : vector<256x18xf32> to vector<256x18xbf16>
    %66 = vector.extract_strided_slice %3 {offsets = [1, 0, 0], sizes = [1, 18, 8], strides = [1, 1, 1]} : vector<3x18x8xbf16> to vector<1x18x8xbf16>
    %67 = vector.shape_cast %66 : vector<1x18x8xbf16> to vector<18x8xbf16>
    %cst_84 = arith.constant dense<0.000000e+00> : vector<256x8xf32>
    %68 = tpu.matmul %65, %67, %cst_84 {dimension_numbers = #tpu.dot_dimension_numbers<[1], [0], [0], [1], [0, 0, 1, 1], [], []>} : vector<256x18xbf16>, vector<18x8xbf16>, vector<256x8xf32> -> vector<256x8xf32>
    %69 = arith.addf %63, %68 : vector<256x8xf32>
    %70 = vector.extract_strided_slice %53 {offsets = [1, 0, 0], sizes = [3, 64, 18], strides = [1, 1, 1]} : vector<4x64x18xf32> to vector<3x64x18xf32>
    %cst_85 = arith.constant 0.000000e+00 : f32
    %71 = vector.broadcast %cst_85 : f32 to vector<1x64x18xf32>
    %72 = tpu.concatenate %70, %71 in 0 : vector<3x64x18xf32>, vector<1x64x18xf32> -> vector<4x64x18xf32>
    %73 = vector.shape_cast %72 : vector<4x64x18xf32> to vector<256x18xf32>
    %74 = arith.truncf %73 : vector<256x18xf32> to vector<256x18xbf16>
    %75 = vector.extract_strided_slice %3 {offsets = [2, 0, 0], sizes = [1, 18, 8], strides = [1, 1, 1]} : vector<3x18x8xbf16> to vector<1x18x8xbf16>
    %76 = vector.shape_cast %75 : vector<1x18x8xbf16> to vector<18x8xbf16>
    %cst_86 = arith.constant dense<0.000000e+00> : vector<256x8xf32>
    %77 = tpu.matmul %74, %76, %cst_86 {dimension_numbers = #tpu.dot_dimension_numbers<[1], [0], [0], [1], [0, 0, 1, 1], [], []>} : vector<256x18xbf16>, vector<18x8xbf16>, vector<256x8xf32> -> vector<256x8xf32>
    %78 = arith.addf %69, %77 : vector<256x8xf32>
    %cst_87 = arith.constant 0.000000e+00 : f32
    %79 = vector.broadcast %cst_87 : f32 to vector<256x8xf32>
    %80 = arith.maximumf %78, %79 : vector<256x8xf32>
    %81 = vector.shape_cast %80 : vector<256x8xf32> to vector<4x64x8xf32>
    %cst_88 = arith.constant 0.000000e+00 : f32
    %82 = vector.broadcast %cst_88 : f32 to vector<256x8xf32>
    %cst_89 = arith.constant 0.000000e+00 : f32
    %83 = vector.broadcast %cst_89 : f32 to vector<1x64x8xf32>
    %84 = vector.extract_strided_slice %81 {offsets = [0, 0, 0], sizes = [3, 64, 8], strides = [1, 1, 1]} : vector<4x64x8xf32> to vector<3x64x8xf32>
    %85 = tpu.concatenate %83, %84 in 0 : vector<1x64x8xf32>, vector<3x64x8xf32> -> vector<4x64x8xf32>
    %86 = vector.shape_cast %85 : vector<4x64x8xf32> to vector<256x8xf32>
    %87 = arith.truncf %86 : vector<256x8xf32> to vector<256x8xbf16>
    %88 = vector.extract_strided_slice %4 {offsets = [0, 0, 0], sizes = [1, 8, 8], strides = [1, 1, 1]} : vector<3x8x8xbf16> to vector<1x8x8xbf16>
    %89 = vector.shape_cast %88 : vector<1x8x8xbf16> to vector<8x8xbf16>
    %cst_90 = arith.constant dense<0.000000e+00> : vector<256x8xf32>
    %90 = tpu.matmul %87, %89, %cst_90 {dimension_numbers = #tpu.dot_dimension_numbers<[1], [0], [0], [1], [0, 0, 1, 1], [], []>} : vector<256x8xbf16>, vector<8x8xbf16>, vector<256x8xf32> -> vector<256x8xf32>
    %91 = arith.addf %82, %90 : vector<256x8xf32>
    %92 = vector.shape_cast %81 : vector<4x64x8xf32> to vector<256x8xf32>
    %93 = arith.truncf %92 : vector<256x8xf32> to vector<256x8xbf16>
    %94 = vector.extract_strided_slice %4 {offsets = [1, 0, 0], sizes = [1, 8, 8], strides = [1, 1, 1]} : vector<3x8x8xbf16> to vector<1x8x8xbf16>
    %95 = vector.shape_cast %94 : vector<1x8x8xbf16> to vector<8x8xbf16>
    %cst_91 = arith.constant dense<0.000000e+00> : vector<256x8xf32>
    %96 = tpu.matmul %93, %95, %cst_91 {dimension_numbers = #tpu.dot_dimension_numbers<[1], [0], [0], [1], [0, 0, 1, 1], [], []>} : vector<256x8xbf16>, vector<8x8xbf16>, vector<256x8xf32> -> vector<256x8xf32>
    %97 = arith.addf %91, %96 : vector<256x8xf32>
    %98 = vector.extract_strided_slice %81 {offsets = [1, 0, 0], sizes = [3, 64, 8], strides = [1, 1, 1]} : vector<4x64x8xf32> to vector<3x64x8xf32>
    %cst_92 = arith.constant 0.000000e+00 : f32
    %99 = vector.broadcast %cst_92 : f32 to vector<1x64x8xf32>
    %100 = tpu.concatenate %98, %99 in 0 : vector<3x64x8xf32>, vector<1x64x8xf32> -> vector<4x64x8xf32>
    %101 = vector.shape_cast %100 : vector<4x64x8xf32> to vector<256x8xf32>
    %102 = arith.truncf %101 : vector<256x8xf32> to vector<256x8xbf16>
    %103 = vector.extract_strided_slice %4 {offsets = [2, 0, 0], sizes = [1, 8, 8], strides = [1, 1, 1]} : vector<3x8x8xbf16> to vector<1x8x8xbf16>
    %104 = vector.shape_cast %103 : vector<1x8x8xbf16> to vector<8x8xbf16>
    %cst_93 = arith.constant dense<0.000000e+00> : vector<256x8xf32>
    %105 = tpu.matmul %102, %104, %cst_93 {dimension_numbers = #tpu.dot_dimension_numbers<[1], [0], [0], [1], [0, 0, 1, 1], [], []>} : vector<256x8xbf16>, vector<8x8xbf16>, vector<256x8xf32> -> vector<256x8xf32>
    %106 = arith.addf %97, %105 : vector<256x8xf32>
    %cst_94 = arith.constant 2.000000e+00 : f32
    %107 = vector.broadcast %cst_94 : f32 to vector<256x8xf32>
    %108 = arith.mulf %107, %106 : vector<256x8xf32>
    %109 = arith.negf %108 : vector<256x8xf32>
    %110 = math.exp %109 : vector<256x8xf32>
    %cst_95 = arith.constant 1.000000e+00 : f32
    %111 = vector.broadcast %cst_95 : f32 to vector<256x8xf32>
    %112 = arith.addf %111, %110 : vector<256x8xf32>
    %113 = arith.divf %111, %112 : vector<256x8xf32>
    %114 = arith.mulf %113, %108 : vector<256x8xf32>
    %115 = vector.extract_strided_slice %5 {offsets = [0, 0], sizes = [1, 8], strides = [1, 1]} : vector<4x8xf32> to vector<1x8xf32>
    %116 = vector.broadcast %115 : vector<1x8xf32> to vector<256x8xf32>
    %117 = arith.mulf %114, %116 : vector<256x8xf32>
    %118 = vector.extract_strided_slice %5 {offsets = [1, 0], sizes = [1, 8], strides = [1, 1]} : vector<4x8xf32> to vector<1x8xf32>
    %119 = vector.broadcast %118 : vector<1x8xf32> to vector<256x8xf32>
    %120 = arith.addf %117, %119 : vector<256x8xf32>
    %cst_96 = arith.constant 0.000000e+00 : f32
    %121 = vector.broadcast %cst_96 : f32 to vector<256x8xf32>
    %122 = arith.maximumf %120, %121 : vector<256x8xf32>
    %123 = vector.extract_strided_slice %5 {offsets = [2, 0], sizes = [1, 8], strides = [1, 1]} : vector<4x8xf32> to vector<1x8xf32>
    %124 = vector.broadcast %123 : vector<1x8xf32> to vector<256x8xf32>
    %125 = arith.mulf %122, %124 : vector<256x8xf32>
    %126 = vector.extract_strided_slice %5 {offsets = [3, 0], sizes = [1, 8], strides = [1, 1]} : vector<4x8xf32> to vector<1x8xf32>
    %127 = vector.broadcast %126 : vector<1x8xf32> to vector<256x8xf32>
    %128 = arith.addf %125, %127 : vector<256x8xf32>
    %cst_97 = arith.constant 0.000000e+00 : f32
    %129 = vector.broadcast %cst_97 : f32 to vector<256x8xf32>
    %130 = arith.maximumf %128, %129 : vector<256x8xf32>
    %131 = vector.shape_cast %130 : vector<256x8xf32> to vector<4x8x8x8xf32>
    %c0_98 = arith.constant 0 : index
    %c0_99 = arith.constant 0 : index
    %132 = vector.load %arg6[%c0_98, %c0_99] : memref<90x18xbf16, #tpu.memory_space<vmem>>, vector<90x18xbf16>
    %c0_100 = arith.constant 0 : index
    %c0_101 = arith.constant 0 : index
    %c0_102 = arith.constant 0 : index
    %133 = vector.load %arg7[%c0_100, %c0_101, %c0_102] : memref<3x18x8xbf16, #tpu.memory_space<vmem>>, vector<3x18x8xbf16>
    %c0_103 = arith.constant 0 : index
    %c0_104 = arith.constant 0 : index
    %c0_105 = arith.constant 0 : index
    %134 = vector.load %arg8[%c0_103, %c0_104, %c0_105] : memref<3x8x8xbf16, #tpu.memory_space<vmem>>, vector<3x8x8xbf16>
    %c0_106 = arith.constant 0 : index
    %c0_107 = arith.constant 0 : index
    %135 = vector.load %arg9[%c0_106, %c0_107] : memref<4x8xf32, #tpu.memory_space<vmem>>, vector<4x8xf32>
    %cst_108 = arith.constant dense<0.000000e+00> : vector<4x8x8xf32>
    %136 = vector.multi_reduction <add>, %131, %cst_108 [3] : vector<4x8x8x8xf32> to vector<4x8x8xf32>
    %137 = vector.shape_cast %136 : vector<4x8x8xf32> to vector<4x8x8x1xf32>
    %cst_109 = arith.constant 8.000000e+00 : f32
    %138 = vector.broadcast %cst_109 : f32 to vector<4x8x8x1xf32>
    %139 = arith.divf %137, %138 : vector<4x8x8x1xf32>
    %cst_110 = arith.constant dense<0xFF800000> : vector<4x8x8xf32>
    %140 = vector.multi_reduction <maximumf>, %131, %cst_110 [3] : vector<4x8x8x8xf32> to vector<4x8x8xf32>
    %141 = vector.shape_cast %140 : vector<4x8x8xf32> to vector<4x8x8x1xf32>
    %cst_111 = arith.constant 0.000000e+00 : f32
    %142 = vector.broadcast %cst_111 : f32 to vector<4x10x10x10xf32>
    %c0_112 = arith.constant 0 : index
    %c0_113 = arith.constant 0 : index
    %c0_114 = arith.constant 0 : index
    %c0_115 = arith.constant 0 : index
    %143 = vector.load %arg11[%c0_112, %c0_113, %c0_114, %c0_115] : memref<4x10x10x10xf32, #tpu.memory_space<vmem>>, vector<4x10x10x10xf32>
    tpu.vector_store %arg11[%c0_112, %c0_113, %c0_114, %c0_115], %142 {strides = array<i32>} : memref<4x10x10x10xf32, #tpu.memory_space<vmem>>, vector<4x10x10x10xf32>,
    %c0_116 = arith.constant 0 : index
    %c1_117 = arith.constant 1 : index
    %c1_118 = arith.constant 1 : index
    %c0_119 = arith.constant 0 : index
    %144 = vector.load %arg11[%c0_116, %c1_117, %c1_118, %c0_119] : memref<4x10x10x10xf32, #tpu.memory_space<vmem>>, vector<4x8x8x1xf32>
    tpu.vector_store %arg11[%c0_116, %c1_117, %c1_118, %c0_119], %139 {strides = array<i32>} : memref<4x10x10x10xf32, #tpu.memory_space<vmem>>, vector<4x8x8x1xf32>,
    %c0_120 = arith.constant 0 : index
    %c1_121 = arith.constant 1 : index
    %c1_122 = arith.constant 1 : index
    %c1_123 = arith.constant 1 : index
    %145 = vector.load %arg11[%c0_120, %c1_121, %c1_122, %c1_123] : memref<4x10x10x10xf32, #tpu.memory_space<vmem>>, vector<4x8x8x1xf32>
    tpu.vector_store %arg11[%c0_120, %c1_121, %c1_122, %c1_123], %141 {strides = array<i32>} : memref<4x10x10x10xf32, #tpu.memory_space<vmem>>, vector<4x8x8x1xf32>,
    %c0_124 = arith.constant 0 : index
    %c1_125 = arith.constant 1 : index
    %c1_126 = arith.constant 1 : index
    %c2_127 = arith.constant 2 : index
    %146 = vector.load %arg11[%c0_124, %c1_125, %c1_126, %c2_127] : memref<4x10x10x10xf32, #tpu.memory_space<vmem>>, vector<4x8x8x8xf32>
    tpu.vector_store %arg11[%c0_124, %c1_125, %c1_126, %c2_127], %131 {strides = array<i32>} : memref<4x10x10x10xf32, #tpu.memory_space<vmem>>, vector<4x8x8x8xf32>,
    %c0_128 = arith.constant 0 : index
    %c0_129 = arith.constant 0 : index
    %c0_130 = arith.constant 0 : index
    %c0_131 = arith.constant 0 : index
    %147 = vector.load %arg11[%c0_128, %c0_129, %c0_130, %c0_131] : memref<4x10x10x10xf32, #tpu.memory_space<vmem>>, vector<4x8x8x10xf32>
    %148 = vector.shape_cast %147 : vector<4x8x8x10xf32> to vector<256x10xf32>
    %c0_132 = arith.constant 0 : index
    %c0_133 = arith.constant 0 : index
    %149 = vector.load %arg12[%c0_132, %c0_133] : memref<256x90xf32, #tpu.memory_space<vmem>>, vector<256x10xf32>
    tpu.vector_store %arg12[%c0_132, %c0_133], %148 {strides = array<i32>} : memref<256x90xf32, #tpu.memory_space<vmem>>, vector<256x10xf32>,
    %c0_134 = arith.constant 0 : index
    %c0_135 = arith.constant 0 : index
    %c1_136 = arith.constant 1 : index
    %c0_137 = arith.constant 0 : index
    %150 = vector.load %arg11[%c0_134, %c0_135, %c1_136, %c0_137] : memref<4x10x10x10xf32, #tpu.memory_space<vmem>>, vector<4x8x8x10xf32>
    %151 = vector.shape_cast %150 : vector<4x8x8x10xf32> to vector<256x10xf32>
    %c0_138 = arith.constant 0 : index
    %c10_139 = arith.constant 10 : index
    %152 = vector.load %arg12[%c0_138, %c10_139] : memref<256x90xf32, #tpu.memory_space<vmem>>, vector<256x10xf32>
    tpu.vector_store %arg12[%c0_138, %c10_139], %151 {strides = array<i32>} : memref<256x90xf32, #tpu.memory_space<vmem>>, vector<256x10xf32>,
    %c0_140 = arith.constant 0 : index
    %c0_141 = arith.constant 0 : index
    %c2_142 = arith.constant 2 : index
    %c0_143 = arith.constant 0 : index
    %153 = vector.load %arg11[%c0_140, %c0_141, %c2_142, %c0_143] : memref<4x10x10x10xf32, #tpu.memory_space<vmem>>, vector<4x8x8x10xf32>
    %154 = vector.shape_cast %153 : vector<4x8x8x10xf32> to vector<256x10xf32>
    %c0_144 = arith.constant 0 : index
    %c20_145 = arith.constant 20 : index
    %155 = vector.load %arg12[%c0_144, %c20_145] : memref<256x90xf32, #tpu.memory_space<vmem>>, vector<256x10xf32>
    tpu.vector_store %arg12[%c0_144, %c20_145], %154 {strides = array<i32>} : memref<256x90xf32, #tpu.memory_space<vmem>>, vector<256x10xf32>,
    %c0_146 = arith.constant 0 : index
    %c1_147 = arith.constant 1 : index
    %c0_148 = arith.constant 0 : index
    %c0_149 = arith.constant 0 : index
    %156 = vector.load %arg11[%c0_146, %c1_147, %c0_148, %c0_149] : memref<4x10x10x10xf32, #tpu.memory_space<vmem>>, vector<4x8x8x10xf32>
    %157 = vector.shape_cast %156 : vector<4x8x8x10xf32> to vector<256x10xf32>
    %c0_150 = arith.constant 0 : index
    %c30_151 = arith.constant 30 : index
    %158 = vector.load %arg12[%c0_150, %c30_151] : memref<256x90xf32, #tpu.memory_space<vmem>>, vector<256x10xf32>
    tpu.vector_store %arg12[%c0_150, %c30_151], %157 {strides = array<i32>} : memref<256x90xf32, #tpu.memory_space<vmem>>, vector<256x10xf32>,
    %c0_152 = arith.constant 0 : index
    %c1_153 = arith.constant 1 : index
    %c1_154 = arith.constant 1 : index
    %c0_155 = arith.constant 0 : index
    %159 = vector.load %arg11[%c0_152, %c1_153, %c1_154, %c0_155] : memref<4x10x10x10xf32, #tpu.memory_space<vmem>>, vector<4x8x8x10xf32>
    %160 = vector.shape_cast %159 : vector<4x8x8x10xf32> to vector<256x10xf32>
    %c0_156 = arith.constant 0 : index
    %c40_157 = arith.constant 40 : index
    %161 = vector.load %arg12[%c0_156, %c40_157] : memref<256x90xf32, #tpu.memory_space<vmem>>, vector<256x10xf32>
    tpu.vector_store %arg12[%c0_156, %c40_157], %160 {strides = array<i32>} : memref<256x90xf32, #tpu.memory_space<vmem>>, vector<256x10xf32>,
    %c0_158 = arith.constant 0 : index
    %c1_159 = arith.constant 1 : index
    %c2_160 = arith.constant 2 : index
    %c0_161 = arith.constant 0 : index
    %162 = vector.load %arg11[%c0_158, %c1_159, %c2_160, %c0_161] : memref<4x10x10x10xf32, #tpu.memory_space<vmem>>, vector<4x8x8x10xf32>
    %163 = vector.shape_cast %162 : vector<4x8x8x10xf32> to vector<256x10xf32>
    %c0_162 = arith.constant 0 : index
    %c50_163 = arith.constant 50 : index
    %164 = vector.load %arg12[%c0_162, %c50_163] : memref<256x90xf32, #tpu.memory_space<vmem>>, vector<256x10xf32>
    tpu.vector_store %arg12[%c0_162, %c50_163], %163 {strides = array<i32>} : memref<256x90xf32, #tpu.memory_space<vmem>>, vector<256x10xf32>,
    %c0_164 = arith.constant 0 : index
    %c2_165 = arith.constant 2 : index
    %c0_166 = arith.constant 0 : index
    %c0_167 = arith.constant 0 : index
    %165 = vector.load %arg11[%c0_164, %c2_165, %c0_166, %c0_167] : memref<4x10x10x10xf32, #tpu.memory_space<vmem>>, vector<4x8x8x10xf32>
    %166 = vector.shape_cast %165 : vector<4x8x8x10xf32> to vector<256x10xf32>
    %c0_168 = arith.constant 0 : index
    %c60_169 = arith.constant 60 : index
    %167 = vector.load %arg12[%c0_168, %c60_169] : memref<256x90xf32, #tpu.memory_space<vmem>>, vector<256x10xf32>
    tpu.vector_store %arg12[%c0_168, %c60_169], %166 {strides = array<i32>} : memref<256x90xf32, #tpu.memory_space<vmem>>, vector<256x10xf32>,
    %c0_170 = arith.constant 0 : index
    %c2_171 = arith.constant 2 : index
    %c1_172 = arith.constant 1 : index
    %c0_173 = arith.constant 0 : index
    %168 = vector.load %arg11[%c0_170, %c2_171, %c1_172, %c0_173] : memref<4x10x10x10xf32, #tpu.memory_space<vmem>>, vector<4x8x8x10xf32>
    %169 = vector.shape_cast %168 : vector<4x8x8x10xf32> to vector<256x10xf32>
    %c0_174 = arith.constant 0 : index
    %c70_175 = arith.constant 70 : index
    %170 = vector.load %arg12[%c0_174, %c70_175] : memref<256x90xf32, #tpu.memory_space<vmem>>, vector<256x10xf32>
    tpu.vector_store %arg12[%c0_174, %c70_175], %169 {strides = array<i32>} : memref<256x90xf32, #tpu.memory_space<vmem>>, vector<256x10xf32>,
    %c0_176 = arith.constant 0 : index
    %c2_177 = arith.constant 2 : index
    %c2_178 = arith.constant 2 : index
    %c0_179 = arith.constant 0 : index
    %171 = vector.load %arg11[%c0_176, %c2_177, %c2_178, %c0_179] : memref<4x10x10x10xf32, #tpu.memory_space<vmem>>, vector<4x8x8x10xf32>
    %172 = vector.shape_cast %171 : vector<4x8x8x10xf32> to vector<256x10xf32>
    %c0_180 = arith.constant 0 : index
    %c80_181 = arith.constant 80 : index
    %173 = vector.load %arg12[%c0_180, %c80_181] : memref<256x90xf32, #tpu.memory_space<vmem>>, vector<256x10xf32>
    tpu.vector_store %arg12[%c0_180, %c80_181], %172 {strides = array<i32>} : memref<256x90xf32, #tpu.memory_space<vmem>>, vector<256x10xf32>,
    %c0_182 = arith.constant 0 : index
    %c0_183 = arith.constant 0 : index
    %174 = vector.load %arg12[%c0_182, %c0_183] : memref<256x90xf32, #tpu.memory_space<vmem>>, vector<256x90xf32>
    %175 = arith.truncf %174 : vector<256x90xf32> to vector<256x90xbf16>
    %cst_184 = arith.constant dense<0.000000e+00> : vector<256x18xf32>
    %176 = tpu.matmul %175, %132, %cst_184 {dimension_numbers = #tpu.dot_dimension_numbers<[1], [0], [0], [1], [0, 0, 1, 1], [], []>} : vector<256x90xbf16>, vector<90x18xbf16>, vector<256x18xf32> -> vector<256x18xf32>
    %177 = arith.negf %176 : vector<256x18xf32>
    %178 = math.exp %177 : vector<256x18xf32>
    %cst_185 = arith.constant 1.000000e+00 : f32
    %179 = vector.broadcast %cst_185 : f32 to vector<256x18xf32>
    %180 = arith.addf %179, %178 : vector<256x18xf32>
    %181 = arith.divf %179, %180 : vector<256x18xf32>
    %182 = arith.mulf %176, %181 : vector<256x18xf32>
    %183 = vector.shape_cast %182 : vector<256x18xf32> to vector<4x64x18xf32>
    %cst_186 = arith.constant 0.000000e+00 : f32
    %184 = vector.broadcast %cst_186 : f32 to vector<256x8xf32>
    %cst_187 = arith.constant 0.000000e+00 : f32
    %185 = vector.broadcast %cst_187 : f32 to vector<1x64x18xf32>
    %186 = vector.extract_strided_slice %183 {offsets = [0, 0, 0], sizes = [3, 64, 18], strides = [1, 1, 1]} : vector<4x64x18xf32> to vector<3x64x18xf32>
    %187 = tpu.concatenate %185, %186 in 0 : vector<1x64x18xf32>, vector<3x64x18xf32> -> vector<4x64x18xf32>
    %188 = vector.shape_cast %187 : vector<4x64x18xf32> to vector<256x18xf32>
    %189 = arith.truncf %188 : vector<256x18xf32> to vector<256x18xbf16>
    %190 = vector.extract_strided_slice %133 {offsets = [0, 0, 0], sizes = [1, 18, 8], strides = [1, 1, 1]} : vector<3x18x8xbf16> to vector<1x18x8xbf16>
    %191 = vector.shape_cast %190 : vector<1x18x8xbf16> to vector<18x8xbf16>
    %cst_188 = arith.constant dense<0.000000e+00> : vector<256x8xf32>
    %192 = tpu.matmul %189, %191, %cst_188 {dimension_numbers = #tpu.dot_dimension_numbers<[1], [0], [0], [1], [0, 0, 1, 1], [], []>} : vector<256x18xbf16>, vector<18x8xbf16>, vector<256x8xf32> -> vector<256x8xf32>
    %193 = arith.addf %184, %192 : vector<256x8xf32>
    %194 = vector.shape_cast %183 : vector<4x64x18xf32> to vector<256x18xf32>
    %195 = arith.truncf %194 : vector<256x18xf32> to vector<256x18xbf16>
    %196 = vector.extract_strided_slice %133 {offsets = [1, 0, 0], sizes = [1, 18, 8], strides = [1, 1, 1]} : vector<3x18x8xbf16> to vector<1x18x8xbf16>
    %197 = vector.shape_cast %196 : vector<1x18x8xbf16> to vector<18x8xbf16>
    %cst_189 = arith.constant dense<0.000000e+00> : vector<256x8xf32>
    %198 = tpu.matmul %195, %197, %cst_189 {dimension_numbers = #tpu.dot_dimension_numbers<[1], [0], [0], [1], [0, 0, 1, 1], [], []>} : vector<256x18xbf16>, vector<18x8xbf16>, vector<256x8xf32> -> vector<256x8xf32>
    %199 = arith.addf %193, %198 : vector<256x8xf32>
    %200 = vector.extract_strided_slice %183 {offsets = [1, 0, 0], sizes = [3, 64, 18], strides = [1, 1, 1]} : vector<4x64x18xf32> to vector<3x64x18xf32>
    %cst_190 = arith.constant 0.000000e+00 : f32
    %201 = vector.broadcast %cst_190 : f32 to vector<1x64x18xf32>
    %202 = tpu.concatenate %200, %201 in 0 : vector<3x64x18xf32>, vector<1x64x18xf32> -> vector<4x64x18xf32>
    %203 = vector.shape_cast %202 : vector<4x64x18xf32> to vector<256x18xf32>
    %204 = arith.truncf %203 : vector<256x18xf32> to vector<256x18xbf16>
    %205 = vector.extract_strided_slice %133 {offsets = [2, 0, 0], sizes = [1, 18, 8], strides = [1, 1, 1]} : vector<3x18x8xbf16> to vector<1x18x8xbf16>
    %206 = vector.shape_cast %205 : vector<1x18x8xbf16> to vector<18x8xbf16>
    %cst_191 = arith.constant dense<0.000000e+00> : vector<256x8xf32>
    %207 = tpu.matmul %204, %206, %cst_191 {dimension_numbers = #tpu.dot_dimension_numbers<[1], [0], [0], [1], [0, 0, 1, 1], [], []>} : vector<256x18xbf16>, vector<18x8xbf16>, vector<256x8xf32> -> vector<256x8xf32>
    %208 = arith.addf %199, %207 : vector<256x8xf32>
    %cst_192 = arith.constant 0.000000e+00 : f32
    %209 = vector.broadcast %cst_192 : f32 to vector<256x8xf32>
    %210 = arith.maximumf %208, %209 : vector<256x8xf32>
    %211 = vector.shape_cast %210 : vector<256x8xf32> to vector<4x64x8xf32>
    %cst_193 = arith.constant 0.000000e+00 : f32
    %212 = vector.broadcast %cst_193 : f32 to vector<256x8xf32>
    %cst_194 = arith.constant 0.000000e+00 : f32
    %213 = vector.broadcast %cst_194 : f32 to vector<1x64x8xf32>
    %214 = vector.extract_strided_slice %211 {offsets = [0, 0, 0], sizes = [3, 64, 8], strides = [1, 1, 1]} : vector<4x64x8xf32> to vector<3x64x8xf32>
    %215 = tpu.concatenate %213, %214 in 0 : vector<1x64x8xf32>, vector<3x64x8xf32> -> vector<4x64x8xf32>
    %216 = vector.shape_cast %215 : vector<4x64x8xf32> to vector<256x8xf32>
    %217 = arith.truncf %216 : vector<256x8xf32> to vector<256x8xbf16>
    %218 = vector.extract_strided_slice %134 {offsets = [0, 0, 0], sizes = [1, 8, 8], strides = [1, 1, 1]} : vector<3x8x8xbf16> to vector<1x8x8xbf16>
    %219 = vector.shape_cast %218 : vector<1x8x8xbf16> to vector<8x8xbf16>
    %cst_195 = arith.constant dense<0.000000e+00> : vector<256x8xf32>
    %220 = tpu.matmul %217, %219, %cst_195 {dimension_numbers = #tpu.dot_dimension_numbers<[1], [0], [0], [1], [0, 0, 1, 1], [], []>} : vector<256x8xbf16>, vector<8x8xbf16>, vector<256x8xf32> -> vector<256x8xf32>
    %221 = arith.addf %212, %220 : vector<256x8xf32>
    %222 = vector.shape_cast %211 : vector<4x64x8xf32> to vector<256x8xf32>
    %223 = arith.truncf %222 : vector<256x8xf32> to vector<256x8xbf16>
    %224 = vector.extract_strided_slice %134 {offsets = [1, 0, 0], sizes = [1, 8, 8], strides = [1, 1, 1]} : vector<3x8x8xbf16> to vector<1x8x8xbf16>
    %225 = vector.shape_cast %224 : vector<1x8x8xbf16> to vector<8x8xbf16>
    %cst_196 = arith.constant dense<0.000000e+00> : vector<256x8xf32>
    %226 = tpu.matmul %223, %225, %cst_196 {dimension_numbers = #tpu.dot_dimension_numbers<[1], [0], [0], [1], [0, 0, 1, 1], [], []>} : vector<256x8xbf16>, vector<8x8xbf16>, vector<256x8xf32> -> vector<256x8xf32>
    %227 = arith.addf %221, %226 : vector<256x8xf32>
    %228 = vector.extract_strided_slice %211 {offsets = [1, 0, 0], sizes = [3, 64, 8], strides = [1, 1, 1]} : vector<4x64x8xf32> to vector<3x64x8xf32>
    %cst_197 = arith.constant 0.000000e+00 : f32
    %229 = vector.broadcast %cst_197 : f32 to vector<1x64x8xf32>
    %230 = tpu.concatenate %228, %229 in 0 : vector<3x64x8xf32>, vector<1x64x8xf32> -> vector<4x64x8xf32>
    %231 = vector.shape_cast %230 : vector<4x64x8xf32> to vector<256x8xf32>
    %232 = arith.truncf %231 : vector<256x8xf32> to vector<256x8xbf16>
    %233 = vector.extract_strided_slice %134 {offsets = [2, 0, 0], sizes = [1, 8, 8], strides = [1, 1, 1]} : vector<3x8x8xbf16> to vector<1x8x8xbf16>
    %234 = vector.shape_cast %233 : vector<1x8x8xbf16> to vector<8x8xbf16>
    %cst_198 = arith.constant dense<0.000000e+00> : vector<256x8xf32>
    %235 = tpu.matmul %232, %234, %cst_198 {dimension_numbers = #tpu.dot_dimension_numbers<[1], [0], [0], [1], [0, 0, 1, 1], [], []>} : vector<256x8xbf16>, vector<8x8xbf16>, vector<256x8xf32> -> vector<256x8xf32>
    %236 = arith.addf %227, %235 : vector<256x8xf32>
    %cst_199 = arith.constant 2.000000e+00 : f32
    %237 = vector.broadcast %cst_199 : f32 to vector<256x8xf32>
    %238 = arith.mulf %237, %236 : vector<256x8xf32>
    %239 = arith.negf %238 : vector<256x8xf32>
    %240 = math.exp %239 : vector<256x8xf32>
    %cst_200 = arith.constant 1.000000e+00 : f32
    %241 = vector.broadcast %cst_200 : f32 to vector<256x8xf32>
    %242 = arith.addf %241, %240 : vector<256x8xf32>
    %243 = arith.divf %241, %242 : vector<256x8xf32>
    %244 = arith.mulf %243, %238 : vector<256x8xf32>
    %245 = vector.extract_strided_slice %135 {offsets = [0, 0], sizes = [1, 8], strides = [1, 1]} : vector<4x8xf32> to vector<1x8xf32>
    %246 = vector.broadcast %245 : vector<1x8xf32> to vector<256x8xf32>
    %247 = arith.mulf %244, %246 : vector<256x8xf32>
    %248 = vector.extract_strided_slice %135 {offsets = [1, 0], sizes = [1, 8], strides = [1, 1]} : vector<4x8xf32> to vector<1x8xf32>
    %249 = vector.broadcast %248 : vector<1x8xf32> to vector<256x8xf32>
    %250 = arith.addf %247, %249 : vector<256x8xf32>
    %cst_201 = arith.constant 0.000000e+00 : f32
    %251 = vector.broadcast %cst_201 : f32 to vector<256x8xf32>
    %252 = arith.maximumf %250, %251 : vector<256x8xf32>
    %253 = vector.extract_strided_slice %135 {offsets = [2, 0], sizes = [1, 8], strides = [1, 1]} : vector<4x8xf32> to vector<1x8xf32>
    %254 = vector.broadcast %253 : vector<1x8xf32> to vector<256x8xf32>
    %255 = arith.mulf %252, %254 : vector<256x8xf32>
    %256 = vector.extract_strided_slice %135 {offsets = [3, 0], sizes = [1, 8], strides = [1, 1]} : vector<4x8xf32> to vector<1x8xf32>
    %257 = vector.broadcast %256 : vector<1x8xf32> to vector<256x8xf32>
    %258 = arith.addf %255, %257 : vector<256x8xf32>
    %259 = vector.shape_cast %1 : vector<4x8x8x8xf32> to vector<256x8xf32>
    %260 = arith.addf %259, %258 : vector<256x8xf32>
    %cst_202 = arith.constant 0.000000e+00 : f32
    %261 = vector.broadcast %cst_202 : f32 to vector<256x8xf32>
    %262 = arith.maximumf %260, %261 : vector<256x8xf32>
    %263 = vector.shape_cast %262 : vector<256x8xf32> to vector<4x8x8x8xf32>
    %c0_203 = arith.constant 0 : index
    %c0_204 = arith.constant 0 : index
    %c0_205 = arith.constant 0 : index
    %c0_206 = arith.constant 0 : index
    %c0_207 = arith.constant 0 : index
    %264 = vector.load %arg10[%c0_203, %c0_204, %c0_205, %c0_206, %c0_207] : memref<1x4x8x8x8xf32, #tpu.memory_space<vmem>>, vector<1x4x8x8x8xf32>
    %265 = vector.shape_cast %264 : vector<1x4x8x8x8xf32> to vector<4x8x8x8xf32>
    %266 = vector.shape_cast %263 : vector<4x8x8x8xf32> to vector<1x4x8x8x8xf32>
    tpu.vector_store %arg10[%c0_203, %c0_204, %c0_205, %c0_206, %c0_207], %266 {strides = array<i32>} : memref<1x4x8x8x8xf32, #tpu.memory_space<vmem>>, vector<1x4x8x8x8xf32>,
    return
  }
  func.func @transform_0(%arg0: i32) -> (i32, i32, i32, i32, i32) {
    %c0_i32 = arith.constant 0 : i32
    %c0_i32_0 = arith.constant 0 : i32
    %c0_i32_1 = arith.constant 0 : i32
    %c0_i32_2 = arith.constant 0 : i32
    %c0_i32_3 = arith.constant 0 : i32
    return %arg0, %c0_i32, %c0_i32_0, %c0_i32_1, %c0_i32_2 : i32, i32, i32, i32, i32
  }
  func.func @transform_1(%arg0: i32) -> (i32, i32) {
    %c0_i32 = arith.constant 0 : i32
    %c0_i32_0 = arith.constant 0 : i32
    %c0_i32_1 = arith.constant 0 : i32
    return %c0_i32, %c0_i32_0 : i32, i32
  }
  func.func @transform_2(%arg0: i32) -> (i32, i32, i32) {
    %c0_i32 = arith.constant 0 : i32
    %c0_i32_0 = arith.constant 0 : i32
    %c0_i32_1 = arith.constant 0 : i32
    %c0_i32_2 = arith.constant 0 : i32
    return %c0_i32, %c0_i32_0, %c0_i32_1 : i32, i32, i32
  }
  func.func @transform_3(%arg0: i32) -> (i32, i32, i32) {
    %c0_i32 = arith.constant 0 : i32
    %c0_i32_0 = arith.constant 0 : i32
    %c0_i32_1 = arith.constant 0 : i32
    %c0_i32_2 = arith.constant 0 : i32
    return %c0_i32, %c0_i32_0, %c0_i32_1 : i32, i32, i32
  }
  func.func @transform_4(%arg0: i32) -> (i32, i32) {
    %c0_i32 = arith.constant 0 : i32
    %c0_i32_0 = arith.constant 0 : i32
    %c0_i32_1 = arith.constant 0 : i32
    return %c0_i32, %c0_i32_0 : i32, i32
  }
  func.func @transform_5(%arg0: i32) -> (i32, i32) {
    %c0_i32 = arith.constant 0 : i32
    %c0_i32_0 = arith.constant 0 : i32
    %c0_i32_1 = arith.constant 0 : i32
    return %c0_i32, %c0_i32_0 : i32, i32
  }
  func.func @transform_6(%arg0: i32) -> (i32, i32, i32) {
    %c0_i32 = arith.constant 0 : i32
    %c0_i32_0 = arith.constant 0 : i32
    %c0_i32_1 = arith.constant 0 : i32
    %c0_i32_2 = arith.constant 0 : i32
    return %c0_i32, %c0_i32_0, %c0_i32_1 : i32, i32, i32
  }
  func.func @transform_7(%arg0: i32) -> (i32, i32, i32) {
    %c0_i32 = arith.constant 0 : i32
    %c0_i32_0 = arith.constant 0 : i32
    %c0_i32_1 = arith.constant 0 : i32
    %c0_i32_2 = arith.constant 0 : i32
    return %c0_i32, %c0_i32_0, %c0_i32_1 : i32, i32, i32
  }
  func.func @transform_8(%arg0: i32) -> (i32, i32) {
    %c0_i32 = arith.constant 0 : i32
    %c0_i32_0 = arith.constant 0 : i32
    %c0_i32_1 = arith.constant 0 : i32
    return %c0_i32, %c0_i32_0 : i32, i32
  }
  func.func @transform_9(%arg0: i32) -> (i32, i32, i32, i32, i32) {
    %c0_i32 = arith.constant 0 : i32
    %c0_i32_0 = arith.constant 0 : i32
    %c0_i32_1 = arith.constant 0 : i32
    %c0_i32_2 = arith.constant 0 : i32
    %c0_i32_3 = arith.constant 0 : i32
    return %arg0, %c0_i32, %c0_i32_0, %c0_i32_1, %c0_i32_2 : i32, i32, i32, i32, i32
  }
}

</mosaic_0001>

<bundles_post_ra>
// kernel: resblock_forward.1
= control target key start
LH: loop header
LB: loop body
LE: loop exit
PB: predicated region body
PF: predicated region fallthrough
CT: control target
= control target key end

     0   :  { %s11049_s30 = smov 0   ;;  %s15853_s0 = inlined_call_operand.vmem [shape: f32[2,4,8,8,8], index: 0, kind: input, shape index: {}]   ;;  %s15854_s1 = inlined_call_operand.vmem [shape: bf16[90,18], index: 1, kind: input, shape index: {}]   ;;  %s15855_s2 = inlined_call_operand.vmem [shape: bf16[3,18,8], index: 2, kind: input, shape index: {}]   ;;  %s15856_s3 = inlined_call_operand.vmem [shape: bf16[3,8,8], index: 3, kind: input, shape index: {}]   ;;  %s15857_s4 = inlined_call_operand.vmem [shape: f32[4,8], index: 4, kind: input, shape index: {}]   ;;  %s15858_s5 = inlined_call_operand.vmem [shape: bf16[90,18], index: 5, kind: input, shape index: {}]   ;;  %s15859_s6 = inlined_call_operand.vmem [shape: bf16[3,18,8], index: 6, kind: input, shape index: {}]   ;;  %s15860_s7 = inlined_call_operand.vmem [shape: bf16[3,8,8], index: 7, kind: input, shape index: {}]   ;;  %s15861_s8 = inlined_call_operand.vmem [shape: f32[4,8], index: 8, kind: input, shape index: {}]   ;;  %s15862_s9 = inlined_call_operand.vmem [shape: f32[2,4,8,8,8], index: 9, kind: output, shape index: {}]  }
   0x1 LB: > { %s9255_s10 = sadd.s32 4294967295, %s10986_s30   ;;  %p9259_p0 = scmp.ge.s32.totalorder %s10986_s30, 1  ;;  %s10986_s30 = sphi %s11049_s30, %s19_s30  }
   0x2   : > { %p287_p1 = scmp.lt.s32.totalorder %s10986_s30, 3 }
   0x4   : > { %p288_p2 = pnand %p9259_p0, %p287_p1 }
   0x6   : > { %291 = sbr.rel (%p288_p2) target bundleno = 4159 (0x103f), region = 56 }
   0xb   : > { %p323_p3 = scmp.lt.s32.totalorder %s9255_s10, 1  ;;  %vm15894_vm0 = vcmask 64512   ;;  %vm617_vm1 = vcmask 80896   ;;  %vm619_vm2 = vcmask 74752   ;;  %v15865_v14 = vmov 0.0   ;;  %s10989_s15 = smov 2  }
   0xc   : > { %623 = vst.msk [vmem:[#allocation2 + $0x20] sm:$0xff] %vm617_vm1, %v15865_v14  ;;  %618 = vst.msk [vmem:[#allocation2] sm:$0xff] %vm617_vm1, %v15865_v14  ;;  %vm700_vm3 = vcmask 7168   ;;  %vm733_vm4 = vcmask 15368   ;;  %vm894_vm5 = vcmask 80912   ;;  %s10990_s16 = smov 10  }
   0xd   : > { %s16051_s10 = smov (!%p323_p3, %s9255_s10), 1  ;;  %624 = vst.msk [vmem:[#allocation2 + $0x28] sm:$0x3] %vm619_vm2, %v15865_v14  ;;  %620 = vst.msk [vmem:[#allocation2 + $0x8] sm:$0x3] %vm619_vm2, %v15865_v14  ;;  %s10991_s17 = smov 20  }
   0xe   : > { %s9610_s11 = sshll.u32 %s16051_s10, 8  ;;  %621 = vst.msk [vmem:[#allocation2 + $0x10] sm:$0xff] %vm617_vm1, %v15865_v14  ;;  %625 = vst.msk [vmem:[#allocation2 + $0x30] sm:$0xff] %vm617_vm1, %v15865_v14  ;;  %s10992_s18 = smov 30   ;;  %vm15890_vm6 = vcmask 1044480   ;;  %vm1151_vm7 = vcmask 162896  }
   0xf   : > { %s11065_s14 = scalar_lea.vmem %s15853_s0, %s9610_s11  ;;  %622 = vst.msk [vmem:[#allocation2 + $0x18] sm:$0x3] %vm619_vm2, %v15865_v14  ;;  %626 = vst.msk [vmem:[#allocation2 + $0x38] sm:$0x3] %vm619_vm2, %v15865_v14  ;;  %s10993_s19 = smov 40   ;;  %vm1344_vm8 = vcmask 244896  }
  0x10   : > { %v11068_v0 = vld [vmem:[%s11065_s14 + $0x10] sm:$0xff]  ;;  %v11071_v1 = vld [vmem:[%s11065_s14] sm:$0xff]  ;;  %v11074_v2 = vld [vmem:[%s11065_s14 + $0x18] sm:$0xff]  ;;  %627 = vst.msk [vmem:[#allocation2 + $0x40] sm:$0xff] %vm617_vm1, %v15865_v14  ;;  %s10994_s20 = smov 50   ;;  %s10995_s21 = smov 60  }
  0x11   : > { %v398_v3 = vsel %vm15894_vm0, %v11068_v0, 0.0  ;;  %v392_v4 = vsel %vm15894_vm0, %v11071_v1, 0.0  ;;  %v11081_v5 = vld [vmem:[%s11065_s14 + $0x8] sm:$0xff]  ;;  %v401_v6 = vsel %vm15894_vm0, %v11074_v2, 0.0  ;;  %v521_v9 = vsel %vm15894_vm0, %v11071_v1, -inf  ;;  %v11092_v10 = vld [vmem:[%s11065_s14 + $0x20] sm:$0xff] }
  0x12   : > { %399 = vadd.xlane.f32.xlu1 %v398_v3  ;;  %393 = vadd.xlane.f32.xlu0 %v392_v4  ;;  %v395_v7 = vsel %vm15894_vm0, %v11081_v5, 0.0  ;;  %v524_v8 = vsel %vm15894_vm0, %v11081_v5, -inf  ;;  %v11096_v11 = vsel %vm15894_vm0, %v11092_v10, 0.0  ;;  %v11100_v12 = vsel %vm15894_vm0, %v11068_v0, -inf  ;;  %v11103_v13 = vld [vmem:[%s11065_s14 + $0x28] sm:$0xff]  ;;  %629 = vst.msk [vmem:[#allocation2 + $0x50] sm:$0xff] %vm617_vm1, %v15865_v14 }
  0x13   : > { %628 = vst.msk [vmem:[#allocation2 + $0x48] sm:$0x3] %vm619_vm2, %v15865_v14  ;;  %630 = vst.msk [vmem:[#allocation2 + $0x58] sm:$0x3] %vm619_vm2, %v15865_v14  ;;  %v407_v15 = vsel %vm15894_vm0, %v11103_v13, 0.0  ;;  %v530_v16 = vsel %vm15894_vm0, %v11074_v2, -inf }
  0x14   : > { %631 = vst.msk [vmem:[#allocation2 + $0x60] sm:$0xff] %vm617_vm1, %v15865_v14  ;;  %633 = vst.msk [vmem:[#allocation2 + $0x70] sm:$0xff] %vm617_vm1, %v15865_v14  ;;  %v11272_v17 = vld [vmem:[%s11065_s14 + $0x30] sm:$0xff]  ;;  %v533_v18 = vsel %vm15894_vm0, %v11092_v10, -inf  ;;  %v11279_v20 = vld [vmem:[%s11065_s14 + $0x38] sm:$0xff]  ;;  %v536_v21 = vsel %vm15894_vm0, %v11103_v13, -inf }
  0x15   : > { %632 = vst.msk [vmem:[#allocation2 + $0x68] sm:$0x3] %vm619_vm2, %v15865_v14  ;;  %634 = vst.msk [vmem:[#allocation2 + $0x78] sm:$0x3] %vm619_vm2, %v15865_v14  ;;  %v410_v19 = vsel %vm15894_vm0, %v11272_v17, 0.0  ;;  %v413_v22 = vsel %vm15894_vm0, %v11279_v20, 0.0 }
  0x16   : > { %402 = vadd.xlane.f32.xlu1 %v401_v6  ;;  %396 = vadd.xlane.f32.xlu0 %v395_v7  ;;  %635 = vst.msk [vmem:[#allocation2 + $0x80] sm:$0xff] %vm617_vm1, %v15865_v14  ;;  %637 = vst.msk [vmem:[#allocation2 + $0x90] sm:$0xff] %vm617_vm1, %v15865_v14  ;;  %v542_v23 = vsel %vm15894_vm0, %v11279_v20, -inf  ;;  %v539_v24 = vsel %vm15894_vm0, %v11272_v17, -inf  ;;  %v11290_v25 = vld [vmem:[%s11065_s14 + $0x40] sm:$0xff]  ;;  %v11295_v27 = vld [vmem:[%s11065_s14 + $0x48] sm:$0xff] }
  0x17   : > { %636 = vst.msk [vmem:[#allocation2 + $0x88] sm:$0x3] %vm619_vm2, %v15865_v14  ;;  %638 = vst.msk [vmem:[#allocation2 + $0x98] sm:$0x3] %vm619_vm2, %v15865_v14  ;;  %v416_v26 = vsel %vm15894_vm0, %v11290_v25, 0.0  ;;  %v419_v28 = vsel %vm15894_vm0, %v11295_v27, 0.0 }
  0x18   : > { %639 = vst.msk [vmem:[#allocation2 + $0xa0] sm:$0xff] %vm617_vm1, %v15865_v14  ;;  %641 = vst.msk [vmem:[#allocation2 + $0xb0] sm:$0xff] %vm617_vm1, %v15865_v14  ;;  %v11300_v29 = vld [vmem:[%s11065_s14 + $0x50] sm:$0xff]  ;;  %v11311_v31 = vld [vmem:[%s11065_s14 + $0x58] sm:$0xff]  ;;  %v545_v33 = vsel %vm15894_vm0, %v11290_v25, -inf  ;;  %v548_v34 = vsel %vm15894_vm0, %v11295_v27, -inf }
  0x19   : > { %640 = vst.msk [vmem:[#allocation2 + $0xa8] sm:$0x3] %vm619_vm2, %v15865_v14  ;;  %642 = vst.msk [vmem:[#allocation2 + $0xb8] sm:$0x3] %vm619_vm2, %v15865_v14  ;;  %v422_v30 = vsel %vm15894_vm0, %v11300_v29, 0.0  ;;  %v425_v32 = vsel %vm15894_vm0, %v11311_v31, 0.0 }
  0x1a   : > { %525 = vmax.xlane.f32.xlu1 %v524_v8  ;;  %522 = vmax.xlane.f32.xlu0 %v521_v9  ;;  %643 = vst.msk [vmem:[#allocation2 + $0xc0] sm:$0xff] %vm617_vm1, %v15865_v14  ;;  %645 = vst.msk [vmem:[#allocation2 + $0xd0] sm:$0xff] %vm617_vm1, %v15865_v14  ;;  %v551_v35 = vsel %vm15894_vm0, %v11300_v29, -inf  ;;  %v11322_v36 = vld [vmem:[%s11065_s14 + $0x60] sm:$0xff]  ;;  %v554_v38 = vsel %vm15894_vm0, %v11311_v31, -inf  ;;  %v11333_v39 = vld [vmem:[%s11065_s14 + $0x70] sm:$0xff] }
  0x1b   : > { %644 = vst.msk [vmem:[#allocation2 + $0xc8] sm:$0x3] %vm619_vm2, %v15865_v14  ;;  %646 = vst.msk [vmem:[#allocation2 + $0xd8] sm:$0x3] %vm619_vm2, %v15865_v14  ;;  %v428_v37 = vsel %vm15894_vm0, %v11322_v36, 0.0  ;;  %v434_v44 = vsel %vm15894_vm0, %v11333_v39, 0.0 }
  0x1c   : > { %647 = vst.msk [vmem:[#allocation2 + $0xe0] sm:$0xff] %vm617_vm1, %v15865_v14  ;;  %649 = vst.msk [vmem:[#allocation2 + $0xf0] sm:$0xff] %vm617_vm1, %v15865_v14  ;;  %v557_v49 = vsel %vm15894_vm0, %v11322_v36, -inf  ;;  %v11348_v55 = vld [vmem:[%s11065_s14 + $0x68] sm:$0xff]  ;;  %s10996_s22 = smov 70   ;;  %s10997_s27 = smov 80  }
  0x1d   : > { %648 = vst.msk [vmem:[#allocation2 + $0xe8] sm:$0x3] %vm619_vm2, %v15865_v14  ;;  %650 = vst.msk [vmem:[#allocation2 + $0xf8] sm:$0x3] %vm619_vm2, %v15865_v14  ;;  %v431_v59 = vsel %vm15894_vm0, %v11348_v55, 0.0  ;;  %vm1537_vm9 = vcmask 326896  }
  0x1e   : > { %651 = vst.msk [vmem:[#allocation2 + $0x100] sm:$0xff] %vm617_vm1, %v15865_v14  ;;  %653 = vst.msk [vmem:[#allocation2 + $0x110] sm:$0xff] %vm617_vm1, %v15865_v14  ;;  %405 = vadd.xlane.f32.xlu1 %v11096_v11  ;;  %528 = vmax.xlane.f32.xlu0 %v11100_v12  ;;  %vm1730_vm10 = vcmask 408896   ;;  %vm1923_vm11 = vcmask 490896   ;;  %vm2117_vm12 = vcmask 572896   ;;  %vm2310_vm13 = vcmask 654896  }
  0x1f   : > { %652 = vst.msk [vmem:[#allocation2 + $0x108] sm:$0x3] %vm619_vm2, %v15865_v14  ;;  %654 = vst.msk [vmem:[#allocation2 + $0x118] sm:$0x3] %vm619_vm2, %v15865_v14  ;;  %vm2503_vm14 = vcmask 736896   ;;  %vm2619_vm15 = vcmask 736256  }
  0x20   : > { %655 = vst.msk [vmem:[#allocation2 + $0x120] sm:$0xff] %vm617_vm1, %v15865_v14  ;;  %657 = vst.msk [vmem:[#allocation2 + $0x130] sm:$0xff] %vm617_vm1, %v15865_v14 }
  0x21   : > { %656 = vst.msk [vmem:[#allocation2 + $0x128] sm:$0x3] %vm619_vm2, %v15865_v14  ;;  %658 = vst.msk [vmem:[#allocation2 + $0x138] sm:$0x3] %vm619_vm2, %v15865_v14 }
  0x22   : > { %659 = vst.msk [vmem:[#allocation2 + $0x140] sm:$0xff] %vm617_vm1, %v15865_v14  ;;  %661 = vst.msk [vmem:[#allocation2 + $0x150] sm:$0xff] %vm617_vm1, %v15865_v14  ;;  %408 = vadd.xlane.f32.xlu1 %v407_v15  ;;  %531 = vmax.xlane.f32.xlu0 %v530_v16 }
  0x23   : > { %660 = vst.msk [vmem:[#allocation2 + $0x148] sm:$0x3] %vm619_vm2, %v15865_v14  ;;  %662 = vst.msk [vmem:[#allocation2 + $0x158] sm:$0x3] %vm619_vm2, %v15865_v14 }
  0x24   : > { %663 = vst.msk [vmem:[#allocation2 + $0x160] sm:$0xff] %vm617_vm1, %v15865_v14  ;;  %665 = vst.msk [vmem:[#allocation2 + $0x170] sm:$0xff] %vm617_vm1, %v15865_v14 }
  0x25   : > { %664 = vst.msk [vmem:[#allocation2 + $0x168] sm:$0x3] %vm619_vm2, %v15865_v14  ;;  %666 = vst.msk [vmem:[#allocation2 + $0x178] sm:$0x3] %vm619_vm2, %v15865_v14 }
  0x26   : > { %667 = vst.msk [vmem:[#allocation2 + $0x180] sm:$0xff] %vm617_vm1, %v15865_v14  ;;  %669 = vst.msk [vmem:[#allocation2 + $0x190] sm:$0xff] %vm617_vm1, %v15865_v14  ;;  %534 = vmax.xlane.f32.xlu1 %v533_v18  ;;  %411 = vadd.xlane.f32.xlu0 %v410_v19 }
  0x27   : > { %668 = vst.msk [vmem:[#allocation2 + $0x188] sm:$0x3] %vm619_vm2, %v15865_v14  ;;  %670 = vst.msk [vmem:[#allocation2 + $0x198] sm:$0x3] %vm619_vm2, %v15865_v14 }
  0x28   : > { %671 = vst.msk [vmem:[#allocation2 + $0x1a0] sm:$0xff] %vm617_vm1, %v15865_v14  ;;  %673 = vst.msk [vmem:[#allocation2 + $0x1b0] sm:$0xff] %vm617_vm1, %v15865_v14 }
  0x29   : > { %672 = vst.msk [vmem:[#allocation2 + $0x1a8] sm:$0x3] %vm619_vm2, %v15865_v14  ;;  %674 = vst.msk [vmem:[#allocation2 + $0x1b8] sm:$0x3] %vm619_vm2, %v15865_v14 }
  0x2a   : > { %675 = vst.msk [vmem:[#allocation2 + $0x1c0] sm:$0xff] %vm617_vm1, %v15865_v14  ;;  %677 = vst.msk [vmem:[#allocation2 + $0x1d0] sm:$0xff] %vm617_vm1, %v15865_v14  ;;  %537 = vmax.xlane.f32.xlu1 %v536_v21  ;;  %414 = vadd.xlane.f32.xlu0 %v413_v22 }
  0x2b   : > { %676 = vst.msk [vmem:[#allocation2 + $0x1c8] sm:$0x3] %vm619_vm2, %v15865_v14  ;;  %678 = vst.msk [vmem:[#allocation2 + $0x1d8] sm:$0x3] %vm619_vm2, %v15865_v14 }
  0x2c   : > { %679 = vst.msk [vmem:[#allocation2 + $0x1e0] sm:$0xff] %vm617_vm1, %v15865_v14  ;;  %681 = vst.msk [vmem:[#allocation2 + $0x1f0] sm:$0xff] %vm617_vm1, %v15865_v14 }
  0x2d   : > { %680 = vst.msk [vmem:[#allocation2 + $0x1e8] sm:$0x3] %vm619_vm2, %v15865_v14  ;;  %682 = vst.msk [vmem:[#allocation2 + $0x1f8] sm:$0x3] %vm619_vm2, %v15865_v14 }
  0x2e   : > { %683 = vst.msk [vmem:[#allocation2 + $0x200] sm:$0xff] %vm617_vm1, %v15865_v14  ;;  %685 = vst.msk [vmem:[#allocation2 + $0x210] sm:$0xff] %vm617_vm1, %v15865_v14  ;;  %543 = vmax.xlane.f32.xlu1 %v542_v23  ;;  %540 = vmax.xlane.f32.xlu0 %v539_v24  ;;  %v11409_v24 = vld [vmem:[%s11065_s14 + $0x78] sm:$0xff] }
  0x2f   : > { %684 = vst.msk [vmem:[#allocation2 + $0x208] sm:$0x3] %vm619_vm2, %v15865_v14  ;;  %686 = vst.msk [vmem:[#allocation2 + $0x218] sm:$0x3] %vm619_vm2, %v15865_v14 }
  0x30   : > { %687 = vst.msk [vmem:[#allocation2 + $0x220] sm:$0xff] %vm617_vm1, %v15865_v14  ;;  %689 = vst.msk [vmem:[#allocation2 + $0x230] sm:$0xff] %vm617_vm1, %v15865_v14 }
  0x31   : > { %688 = vst.msk [vmem:[#allocation2 + $0x228] sm:$0x3] %vm619_vm2, %v15865_v14  ;;  %690 = vst.msk [vmem:[#allocation2 + $0x238] sm:$0x3] %vm619_vm2, %v15865_v14 }
  0x32   : > { %691 = vst.msk [vmem:[#allocation2 + $0x240] sm:$0xff] %vm617_vm1, %v15865_v14  ;;  %693 = vst.msk [vmem:[#allocation2 + $0x250] sm:$0xff] %vm617_vm1, %v15865_v14  ;;  %417 = vadd.xlane.f32.xlu0 %v416_v26  ;;  %v563_v26 = vsel %vm15894_vm0, %v11333_v39, -inf }
  0x33   : > { %692 = vst.msk [vmem:[#allocation2 + $0x248] sm:$0x3] %vm619_vm2, %v15865_v14  ;;  %694 = vst.msk [vmem:[#allocation2 + $0x258] sm:$0x3] %vm619_vm2, %v15865_v14 }
  0x34   : > { %695 = vst.msk [vmem:[#allocation2 + $0x260] sm:$0xff] %vm617_vm1, %v15865_v14  ;;  %697 = vst.msk [vmem:[#allocation2 + $0x270] sm:$0xff] %vm617_vm1, %v15865_v14 }
  0x35   : > { %696 = vst.msk [vmem:[#allocation2 + $0x268] sm:$0x3] %vm619_vm2, %v15865_v14  ;;  %698 = vst.msk [vmem:[#allocation2 + $0x278] sm:$0x3] %vm619_vm2, %v15865_v14 }
  0x36   : > { %420 = vadd.xlane.f32.xlu0 %v419_v28  ;;  %v566_v28 = vsel %vm15894_vm0, %v11409_v24, -inf }
  0x3a   : > { %423 = vadd.xlane.f32.xlu0 %v422_v30  ;;  %v11418_v30 = vld [vmem:[%s11065_s14 + $0x80] sm:$0xff] }
  0x3f   : > { %798 = vrot.lane.b32.xlu1 %v11071_v1, %s10989_s15 }
  0x43   : > { %802 = vrot.lane.b32.xlu1 %v11068_v0, %s10989_s15 }
  0x50   : > { %800 = vrot.lane.b32.xlu0 %v11081_v5, %s10989_s15 }
  0x67   : > { %426 = vadd.xlane.f32.xlu1 %v425_v32  ;;  %v440_v32 = vsel %vm15894_vm0, %v11418_v30, 0.0 }
  0x6f   : > { %546 = vmax.xlane.f32.xlu0 %v545_v33  ;;  %v560_v33 = vsel %vm15894_vm0, %v11348_v55, -inf }
  0x73   : > { %549 = vmax.xlane.f32.xlu0 %v548_v34  ;;  %v11425_v34 = vld [vmem:[%s11065_s14 + $0x88] sm:$0xff] }
  0x77   : > { %552 = vmax.xlane.f32.xlu0 %v551_v35  ;;  %v443_v35 = vsel %vm15894_vm0, %v11425_v34, 0.0 }
  0x78   : > { %804 = vrot.lane.b32.xlu1 %v11074_v2, %s10989_s15 }
  0x7b   : > { %429 = vadd.xlane.f32.xlu0 %v428_v37  ;;  %v11430_v37 = vld [vmem:[%s11065_s14 + $0x90] sm:$0xff] }
  0x91   : > { %806 = vrot.lane.b32.xlu0 %v11092_v10, %s10989_s15 }
  0x9b   : > { %v400_v40 = vpop.xlane.xlu1 %399  ;;  %v394_v41 = vpop.xlane.xlu0 %393 }
  0x9c   : > { %v491_v42 = vmul.f32 0.125, %v400_v40  ;;  %555 = vmax.xlane.f32.xlu1 %v554_v38  ;;  %v489_v43 = vmul.f32 0.125, %v394_v41  ;;  %v446_v38 = vsel %vm15894_vm0, %v11430_v37, 0.0 }
  0x9e   : > { %701 = vst.msk [vmem:[#allocation2 + $0x11] sm:$0xff] %vm700_vm3, %v489_v43  ;;  %703 = vst.msk [vmem:[#allocation2 + $0x31] sm:$0xff] %vm700_vm3, %v491_v42 }
  0x9f   : > { %v403_v45 = vpop.xlane.xlu1 %402  ;;  %v397_v46 = vpop.xlane.xlu0 %396 }
  0xa0   : > { %v492_v47 = vmul.f32 0.125, %v403_v45  ;;  %435 = vadd.xlane.f32.xlu1 %v434_v44  ;;  %v490_v48 = vmul.f32 0.125, %v397_v46 }
  0xa2   : > { %702 = vst.msk [vmem:[#allocation2 + $0x21] sm:$0xff] %vm700_vm3, %v490_v48  ;;  %704 = vst.msk [vmem:[#allocation2 + $0x41] sm:$0xff] %vm700_vm3, %v492_v47 }
  0xa3   : > { %v526_v50 = vpop.xlane.xlu1 %525  ;;  %v523_v51 = vpop.xlane.xlu0 %522 }
  0xa4   : > { %735 = vst.msk [vmem:[#allocation2 + $0x21] sm:$0xff] %vm733_vm4, %v526_v50  ;;  %558 = vmax.xlane.f32.xlu1 %v557_v49  ;;  %734 = vst.msk [vmem:[#allocation2 + $0x11] sm:$0xff] %vm733_vm4, %v523_v51 }
  0xa7   : > { %v406_v52 = vpop.xlane.xlu1 %405  ;;  %v529_v53 = vpop.xlane.xlu0 %528 }
  0xa8   : > { %v493_v54 = vmul.f32 0.125, %v406_v52  ;;  %736 = vst.msk [vmem:[#allocation2 + $0x31] sm:$0xff] %vm733_vm4, %v529_v53 }
  0xaa   : > { %705 = vst.msk [vmem:[#allocation2 + $0x51] sm:$0xff] %vm700_vm3, %v493_v54  ;;  %v569_v54 = vsel %vm15894_vm0, %v11418_v30, -inf }
  0xab   : > { %v409_v56 = vpop.xlane.xlu1 %408  ;;  %v532_v57 = vpop.xlane.xlu0 %531 }
  0xac   : > { %v494_v58 = vmul.f32 0.125, %v409_v56  ;;  %737 = vst.msk [vmem:[#allocation2 + $0x41] sm:$0xff] %vm733_vm4, %v532_v57  ;;  %v572_v57 = vsel %vm15894_vm0, %v11425_v34, -inf }
  0xae   : > { %706 = vst.msk [vmem:[#allocation2 + $0x61] sm:$0xff] %vm700_vm3, %v494_v58 }
  0xaf   : > { %v535_v60 = vpop.xlane.xlu1 %534  ;;  %v412_v61 = vpop.xlane.xlu0 %411 }
  0xb0   : > { %738 = vst.msk [vmem:[#allocation2 + $0x51] sm:$0xff] %vm733_vm4, %v535_v60  ;;  %432 = vadd.xlane.f32.xlu0 %v431_v59  ;;  %v495_v62 = vmul.f32 0.125, %v412_v61  ;;  %v575_v60 = vsel %vm15894_vm0, %v11430_v37, -inf  ;;  %v11485_v61 = vld [vmem:[%s11065_s14 + $0xa0] sm:$0xff] }
  0xb2   : > { %707 = vst.msk [vmem:[#allocation2 + $0x71] sm:$0xff] %vm700_vm3, %v495_v62 }
  0xb3   : > { %v538_v63 = vpop.xlane.xlu1 %537  ;;  %v415_v0 = vpop.xlane.xlu0 %414 }
  0xb4   : > { %739 = vst.msk [vmem:[#allocation2 + $0x61] sm:$0xff] %vm733_vm4, %v538_v63  ;;  %v496_v1 = vmul.f32 0.125, %v415_v0  ;;  %v452_v63 = vsel %vm15894_vm0, %v11485_v61, 0.0 }
  0xb5   : > { %808 = vrot.lane.b32.xlu1 %v11103_v13, %s10989_s15 }
  0xb6   : > { %708 = vst.msk [vmem:[#allocation2 + $0x81] sm:$0xff] %vm700_vm3, %v496_v1 }
  0xb7   : > { %v544_v2 = vpop.xlane.xlu1 %543  ;;  %v541_v3 = vpop.xlane.xlu0 %540 }
  0xb8   : > { %741 = vst.msk [vmem:[#allocation2 + $0x81] sm:$0xff] %vm733_vm4, %v544_v2  ;;  %740 = vst.msk [vmem:[#allocation2 + $0x71] sm:$0xff] %vm733_vm4, %v541_v3 }
  0xbb   : > { %v799_v4 = vpop.permute.xlu1 %798  ;;  %v418_v5 = vpop.xlane.xlu0 %417 }
  0xbc   : > { %895 = vst.msk [vmem:[#allocation2 + $0x11] sm:$0xff] %vm894_vm5, %v799_v4  ;;  %v497_v6 = vmul.f32 0.125, %v418_v5 }
  0xbe   : > { %709 = vst.msk [vmem:[#allocation2 + $0xb1] sm:$0xff] %vm700_vm3, %v497_v6 }
  0xbf   : > { %v803_v7 = vpop.permute.xlu1 %802  ;;  %v421_v8 = vpop.xlane.xlu0 %420 }
  0xc0   : > { %897 = vst.msk [vmem:[#allocation2 + $0x31] sm:$0xff] %vm894_vm5, %v803_v7  ;;  %v498_v9 = vmul.f32 0.125, %v421_v8 }
  0xc2   : > { %710 = vst.msk [vmem:[#allocation2 + $0xc1] sm:$0xff] %vm700_vm3, %v498_v9 }
  0xc3   : > { %v424_v10 = vpop.xlane.xlu0 %423  ;;  %v11366_v11 = vld [vmem:[#allocation2 + $0x11] sm:$0xff] }
  0xc4   : > { %v11368_v12 = vld [vmem:[#allocation2 + $0x12] sm:$0xff]  ;;  %v499_v15 = vmul.f32 0.125, %v424_v10 }
  0xc5   : > { %v11370_v13 = vld [vmem:[#allocation2 + $0x10] sm:$0xff]  ;;  %5017 = vst.msk [vmem:[#allocation2 + $0x18] sm:$0x3] %vm619_vm2, %v15865_v14 }
  0xc6   : > { %960 = vst.msk [vmem:[#allocation3 + $0x8] sm:$0xff] %vm617_vm1, %v11370_v13  ;;  %5016 = vst.msk [vmem:[#allocation2 + $0x10] sm:$0xff] %vm617_vm1, %v15865_v14  ;;  %810 = vrot.lane.b32.xlu0 %v11272_v17, %s10989_s15 }
  0xc7   : > { %711 = vst.msk [vmem:[#allocation2 + $0xd1] sm:$0xff] %vm700_vm3, %v499_v15  ;;  %v801_v16 = vpop.permute.xlu0 %800  ;;  %v11381_v18 = vld [vmem:[#allocation2 + $0x31] sm:$0xff] }
  0xc8   : > { %v11383_v19 = vld [vmem:[#allocation2 + $0x32] sm:$0xff]  ;;  %896 = vst.msk [vmem:[#allocation2 + $0x21] sm:$0xff] %vm894_vm5, %v801_v16 }
  0xc9   : > { %v11385_v21 = vld [vmem:[#allocation2 + $0x30] sm:$0xff]  ;;  %5021 = vst.msk [vmem:[#allocation2 + $0x38] sm:$0x3] %vm619_vm2, %v15865_v14 }
  0xca   : > { %962 = vst.msk [vmem:[#allocation3 + $0x18] sm:$0xff] %vm617_vm1, %v11385_v21  ;;  %5020 = vst.msk [vmem:[#allocation2 + $0x30] sm:$0xff] %vm617_vm1, %v15865_v14  ;;  %812 = vrot.lane.b32.xlu0 %v11279_v20, %s10989_s15  ;;  %v437_v20 = vsel %vm15894_vm0, %v11409_v24, 0.0 }
  0xcf   : > { %v11396_v17 = vld [vmem:[#allocation2 + $0x21] sm:$0xff] }
  0xd0   : > { %v11398_v22 = vld [vmem:[#allocation2 + $0x22] sm:$0xff] }
  0xd1   : > { %v11400_v23 = vld [vmem:[#allocation2 + $0x20] sm:$0xff]  ;;  %5019 = vst.msk [vmem:[#allocation2 + $0x28] sm:$0x3] %vm619_vm2, %v15865_v14 }
  0xd2   : > { %961 = vst.msk [vmem:[#allocation3 + $0x10] sm:$0xff] %vm617_vm1, %v11400_v23  ;;  %5018 = vst.msk [vmem:[#allocation2 + $0x20] sm:$0xff] %vm617_vm1, %v15865_v14 }
  0xd9   : > { %438 = vadd.xlane.f32.xlu1 %v437_v20 }
  0xdd   : > { %564 = vmax.xlane.f32.xlu1 %v563_v26  ;;  %v11535_v26 = vld [vmem:[%s11065_s14 + $0xb0] sm:$0xff] }
  0xe1   : > { %567 = vmax.xlane.f32.xlu1 %v566_v28  ;;  %v581_v28 = vsel %vm15894_vm0, %v11485_v61, -inf }
  0xe5   : > { %441 = vadd.xlane.f32.xlu1 %v440_v32  ;;  %v11542_v32 = vld [vmem:[%s11065_s14 + $0xa8] sm:$0xff] }
  0xe9   : > { %561 = vmax.xlane.f32.xlu0 %v560_v33 }
  0xed   : > { %444 = vadd.xlane.f32.xlu0 %v443_v35 }
  0xf0   : > { %v427_v40 = vpop.xlane.xlu1 %426 }
  0xf1   : > { %v500_v41 = vmul.f32 0.125, %v427_v40  ;;  %447 = vadd.xlane.f32.xlu0 %v446_v38  ;;  %v455_v38 = vsel %vm15894_vm0, %v11542_v32, 0.0 }
  0xf3   : > { %712 = vst.msk [vmem:[#allocation2 + $0xe1] sm:$0xff] %vm700_vm3, %v500_v41 }
  0xf4   : > { %v805_v42 = vpop.permute.xlu1 %804 }
  0xf5   : > { %898 = vst.msk [vmem:[#allocation2 + $0x41] sm:$0xff] %vm894_vm5, %v805_v42 }
  0xf6   : > { %814 = vrot.lane.b32.xlu1 %v11290_v25, %s10989_s15 }
  0xf8   : > { %v547_v43 = vpop.xlane.xlu0 %546 }
  0xf9   : > { %742 = vst.msk [vmem:[#allocation2 + $0xb1] sm:$0xff] %vm733_vm4, %v547_v43 }
  0xfa   : > { %818 = vrot.lane.b32.xlu1 %v11300_v29, %s10989_s15 }
  0xfc   : > { %v550_v44 = vpop.xlane.xlu0 %549  ;;  %v11441_v45 = vld [vmem:[#allocation2 + $0x40] sm:$0xff] }
  0xfd   : > { %v11443_v46 = vld [vmem:[#allocation2 + $0x41] sm:$0xff]  ;;  %743 = vst.msk [vmem:[#allocation2 + $0xc1] sm:$0xff] %vm733_vm4, %v550_v44 }
  0xfe   : > { %v11445_v47 = vld [vmem:[#allocation2 + $0x42] sm:$0xff]  ;;  %963 = vst.msk [vmem:[#allocation3 + $0x20] sm:$0xff] %vm617_vm1, %v11441_v45 }
  0xff   : > { %5023 = vst.msk [vmem:[#allocation2 + $0x48] sm:$0x3] %vm619_vm2, %v15865_v14 }
 0x100   : > { %5022 = vst.msk [vmem:[#allocation2 + $0x40] sm:$0xff] %vm617_vm1, %v15865_v14  ;;  %v553_v25 = vpop.xlane.xlu0 %552 }
 0x101   : > { %744 = vst.msk [vmem:[#allocation2 + $0xd1] sm:$0xff] %vm733_vm4, %v553_v25 }
 0x104   : > { %v430_v29 = vpop.xlane.xlu0 %429 }
 0x105   : > { %v501_v48 = vmul.f32 0.125, %v430_v29 }
 0x107   : > { %816 = vrot.lane.b32.xlu0 %v11295_v27, %s10989_s15  ;;  %713 = vst.msk [vmem:[#allocation2 + $0xf1] sm:$0xff] %vm700_vm3, %v501_v48  ;;  %v11472_v27 = vld [vmem:[%s11065_s14 + $0x98] sm:$0xff] }
 0x108   : > { %v807_v49 = vpop.permute.xlu0 %806  ;;  %v449_v53 = vsel %vm15894_vm0, %v11472_v27, 0.0  ;;  %v578_v20 = vsel %vm15894_vm0, %v11472_v27, -inf }
 0x109   : > { %899 = vst.msk [vmem:[#allocation2 + $0x51] sm:$0xff] %vm894_vm5, %v807_v49 }
 0x110   : > { %v11459_v50 = vld [vmem:[#allocation2 + $0x50] sm:$0xff] }
 0x111   : > { %v11461_v51 = vld [vmem:[#allocation2 + $0x51] sm:$0xff]  ;;  %964 = vst.msk [vmem:[#allocation3 + $0x28] sm:$0xff] %vm617_vm1, %v11459_v50 }
 0x112   : > { %v11463_v52 = vld [vmem:[#allocation2 + $0x52] sm:$0xff] }
 0x113   : > { %5025 = vst.msk [vmem:[#allocation2 + $0x58] sm:$0x3] %vm619_vm2, %v15865_v14 }
 0x114   : > { %5024 = vst.msk [vmem:[#allocation2 + $0x50] sm:$0xff] %vm617_vm1, %v15865_v14 }
 0x11e   : > { %450 = vadd.xlane.f32.xlu1 %v449_v53 }
 0x125   : > { %v556_v56 = vpop.xlane.xlu1 %555 }
 0x126   : > { %745 = vst.msk [vmem:[#allocation2 + $0xe1] sm:$0xff] %vm733_vm4, %v556_v56  ;;  %570 = vmax.xlane.f32.xlu0 %v569_v54 }
 0x129   : > { %v436_v58 = vpop.xlane.xlu1 %435 }
 0x12a   : > { %v503_v59 = vmul.f32 0.125, %v436_v58  ;;  %573 = vmax.xlane.f32.xlu0 %v572_v57 }
 0x12c   : > { %715 = vst.msk [vmem:[#allocation2 + $0x111] sm:$0xff] %vm700_vm3, %v503_v59 }
 0x12d   : > { %v559_v62 = vpop.xlane.xlu1 %558 }
 0x12e   : > { %746 = vst.msk [vmem:[#allocation2 + $0xf1] sm:$0xff] %vm733_vm4, %v559_v62  ;;  %576 = vmax.xlane.f32.xlu0 %v575_v60 }
 0x12f   : > { %820 = vrot.lane.b32.xlu1 %v11311_v31, %s10989_s15 }
 0x131   : > { %v809_v0 = vpop.permute.xlu1 %808 }
 0x132   : > { %900 = vst.msk [vmem:[#allocation2 + $0x61] sm:$0xff] %vm894_vm5, %v809_v0  ;;  %453 = vadd.xlane.f32.xlu0 %v452_v63 }
 0x139   : > { %v433_v1 = vpop.xlane.xlu0 %432  ;;  %v11493_v2 = vld [vmem:[#allocation2 + $0x61] sm:$0xff] }
 0x13a   : > { %v11495_v3 = vld [vmem:[#allocation2 + $0x62] sm:$0xff]  ;;  %v502_v5 = vmul.f32 0.125, %v433_v1  ;;  %v11599_v1 = vld [vmem:[%s11065_s14 + $0xb8] sm:$0xff] }
 0x13b   : > { %v11497_v4 = vld [vmem:[#allocation2 + $0x60] sm:$0xff]  ;;  %5027 = vst.msk [vmem:[#allocation2 + $0x68] sm:$0x3] %vm619_vm2, %v15865_v14 }
 0x13c   : > { %965 = vst.msk [vmem:[#allocation3 + $0x30] sm:$0xff] %vm617_vm1, %v11497_v4  ;;  %5026 = vst.msk [vmem:[#allocation2 + $0x60] sm:$0xff] %vm617_vm1, %v15865_v14 }
 0x13d   : > { %714 = vst.msk [vmem:[#allocation2 + $0x101] sm:$0xff] %vm700_vm3, %v502_v5  ;;  %v811_v31 = vpop.permute.xlu0 %810  ;;  %v587_v5 = vsel %vm15894_vm0, %v11535_v26, -inf }
 0x13e   : > { %901 = vst.msk [vmem:[#allocation2 + $0x71] sm:$0xff] %vm894_vm5, %v811_v31  ;;  %v590_v31 = vsel %vm15894_vm0, %v11599_v1, -inf }
 0x141   : > { %v813_v6 = vpop.permute.xlu0 %812 }
 0x142   : > { %902 = vst.msk [vmem:[#allocation2 + $0x81] sm:$0xff] %vm894_vm5, %v813_v6  ;;  %v11608_v6 = vld [vmem:[%s11065_s14 + $0xc0] sm:$0xff] }
 0x145   : > { %v11508_v7 = vld [vmem:[#allocation2 + $0x71] sm:$0xff] }
 0x146   : > { %v11510_v8 = vld [vmem:[#allocation2 + $0x72] sm:$0xff] }
 0x147   : > { %v11512_v9 = vld [vmem:[#allocation2 + $0x70] sm:$0xff]  ;;  %5029 = vst.msk [vmem:[#allocation2 + $0x78] sm:$0x3] %vm619_vm2, %v15865_v14 }
 0x148   : > { %966 = vst.msk [vmem:[#allocation3 + $0x38] sm:$0xff] %vm617_vm1, %v11512_v9  ;;  %5028 = vst.msk [vmem:[#allocation2 + $0x70] sm:$0xff] %vm617_vm1, %v15865_v14  ;;  %822 = vrot.lane.b32.xlu0 %v11322_v36, %s10989_s15  ;;  %v458_v36 = vsel %vm15894_vm0, %v11535_v26, 0.0 }
 0x149   : > { %v11522_v10 = vld [vmem:[#allocation2 + $0x80] sm:$0xff] }
 0x14a   : > { %v11524_v15 = vld [vmem:[#allocation2 + $0x81] sm:$0xff] }
 0x14b   : > { %v11526_v16 = vld [vmem:[#allocation2 + $0x82] sm:$0xff] }
 0x14c   : > { %5031 = vst.msk [vmem:[#allocation2 + $0x88] sm:$0x3] %vm619_vm2, %v15865_v14 }
 0x14d   : > { %5030 = vst.msk [vmem:[#allocation2 + $0x80] sm:$0xff] %vm617_vm1, %v15865_v14 }
 0x153   : > { %579 = vmax.xlane.f32.xlu1 %v578_v20  ;;  %v464_v20 = vsel %vm15894_vm0, %v11608_v6, 0.0 }
 0x157   : > { %459 = vadd.xlane.f32.xlu1 %v458_v36  ;;  %v584_v36 = vsel %vm15894_vm0, %v11542_v32, -inf }
 0x15b   : > { %582 = vmax.xlane.f32.xlu1 %v581_v28  ;;  %v11615_v28 = vld [vmem:[%s11065_s14 + $0xc8] sm:$0xff] }
 0x162   : > { %v439_v33 = vpop.xlane.xlu1 %438 }
 0x163   : > { %v504_v35 = vmul.f32 0.125, %v439_v33  ;;  %v467_v33 = vsel %vm15894_vm0, %v11615_v28, 0.0 }
 0x165   : > { %716 = vst.msk [vmem:[#allocation2 + $0x121] sm:$0xff] %vm700_vm3, %v504_v35  ;;  %v11620_v35 = vld [vmem:[%s11065_s14 + $0xd0] sm:$0xff] }
 0x166   : > { %v565_v40 = vpop.xlane.xlu1 %564 }
 0x167   : > { %748 = vst.msk [vmem:[#allocation2 + $0x111] sm:$0xff] %vm733_vm4, %v565_v40  ;;  %456 = vadd.xlane.f32.xlu0 %v455_v38  ;;  %v470_v38 = vsel %vm15894_vm0, %v11620_v35, 0.0 }
 0x16a   : > { %v568_v41 = vpop.xlane.xlu1 %567 }
 0x16b   : > { %749 = vst.msk [vmem:[#allocation2 + $0x121] sm:$0xff] %vm733_vm4, %v568_v41 }
 0x16c   : > { %824 = vrot.lane.b32.xlu1 %v11348_v55, %s10989_s15 }
 0x16e   : > { %v442_v42 = vpop.xlane.xlu1 %441 }
 0x16f   : > { %v505_v43 = vmul.f32 0.125, %v442_v42 }
 0x171   : > { %717 = vst.msk [vmem:[#allocation2 + $0x151] sm:$0xff] %vm700_vm3, %v505_v43 }
 0x172   : > { %v815_v44 = vpop.permute.xlu1 %814  ;;  %v562_v25 = vpop.xlane.xlu0 %561 }
 0x173   : > { %903 = vst.msk [vmem:[#allocation2 + $0xb1] sm:$0xff] %vm894_vm5, %v815_v44 }
 0x174   : > { %747 = vst.msk [vmem:[#allocation2 + $0x101] sm:$0xff] %vm733_vm4, %v562_v25 }
 0x176   : > { %v819_v29 = vpop.permute.xlu1 %818  ;;  %v445_v48 = vpop.xlane.xlu0 %444 }
 0x177   : > { %905 = vst.msk [vmem:[#allocation2 + $0xd1] sm:$0xff] %vm894_vm5, %v819_v29  ;;  %v506_v49 = vmul.f32 0.125, %v445_v48 }
 0x179   : > { %718 = vst.msk [vmem:[#allocation2 + $0x161] sm:$0xff] %vm700_vm3, %v506_v49 }
 0x17a   : > { %v448_v53 = vpop.xlane.xlu0 %447  ;;  %v11556_v54 = vld [vmem:[#allocation2 + $0xb1] sm:$0xff] }
 0x17b   : > { %v11558_v55 = vld [vmem:[#allocation2 + $0xb2] sm:$0xff]  ;;  %v507_v57 = vmul.f32 0.125, %v448_v53 }
 0x17c   : > { %v11560_v56 = vld [vmem:[#allocation2 + $0xb0] sm:$0xff]  ;;  %5037 = vst.msk [vmem:[#allocation2 + $0xb8] sm:$0x3] %vm619_vm2, %v15865_v14 }
 0x17d   : > { %968 = vst.msk [vmem:[#allocation3 + $0x48] sm:$0xff] %vm617_vm1, %v11560_v56  ;;  %5036 = vst.msk [vmem:[#allocation2 + $0xb0] sm:$0xff] %vm617_vm1, %v15865_v14  ;;  %826 = vrot.lane.b32.xlu0 %v11333_v39, %s10989_s15 }
 0x17e   : > { %719 = vst.msk [vmem:[#allocation2 + $0x171] sm:$0xff] %vm700_vm3, %v507_v57  ;;  %v817_v58 = vpop.permute.xlu0 %816  ;;  %v11571_v59 = vld [vmem:[#allocation2 + $0xd1] sm:$0xff] }
 0x17f   : > { %v11573_v60 = vld [vmem:[#allocation2 + $0xd2] sm:$0xff]  ;;  %904 = vst.msk [vmem:[#allocation2 + $0xc1] sm:$0xff] %vm894_vm5, %v817_v58 }
 0x180   : > { %v11575_v62 = vld [vmem:[#allocation2 + $0xd0] sm:$0xff]  ;;  %5041 = vst.msk [vmem:[#allocation2 + $0xd8] sm:$0x3] %vm619_vm2, %v15865_v14 }
 0x181   : > { %970 = vst.msk [vmem:[#allocation3 + $0x58] sm:$0xff] %vm617_vm1, %v11575_v62  ;;  %5040 = vst.msk [vmem:[#allocation2 + $0xd0] sm:$0xff] %vm617_vm1, %v15865_v14  ;;  %828 = vrot.lane.b32.xlu0 %v11409_v24, %s10989_s15  ;;  %v461_v24 = vsel %vm15894_vm0, %v11599_v1, 0.0 }
 0x186   : > { %v11586_v39 = vld [vmem:[#allocation2 + $0xc1] sm:$0xff] }
 0x187   : > { %v11588_v63 = vld [vmem:[#allocation2 + $0xc2] sm:$0xff] }
 0x188   : > { %v11590_v0 = vld [vmem:[#allocation2 + $0xc0] sm:$0xff]  ;;  %5039 = vst.msk [vmem:[#allocation2 + $0xc8] sm:$0x3] %vm619_vm2, %v15865_v14 }
 0x189   : > { %969 = vst.msk [vmem:[#allocation3 + $0x50] sm:$0xff] %vm617_vm1, %v11590_v0  ;;  %5038 = vst.msk [vmem:[#allocation2 + $0xc0] sm:$0xff] %vm617_vm1, %v15865_v14 }
 0x190   : > { %462 = vadd.xlane.f32.xlu1 %v461_v24 }
 0x194   : > { %588 = vmax.xlane.f32.xlu1 %v587_v5 }
 0x198   : > { %591 = vmax.xlane.f32.xlu1 %v590_v31  ;;  %v593_v31 = vsel %vm15894_vm0, %v11608_v6, -inf }
 0x19c   : > { %465 = vadd.xlane.f32.xlu1 %v464_v20 }
 0x1a0   : > { %585 = vmax.xlane.f32.xlu0 %v584_v36  ;;  %v596_v36 = vsel %vm15894_vm0, %v11615_v28, -inf }
 0x1a4   : > { %468 = vadd.xlane.f32.xlu0 %v467_v33 }
 0x1a7   : > { %v451_v40 = vpop.xlane.xlu1 %450 }
 0x1a8   : > { %v508_v41 = vmul.f32 0.125, %v451_v40  ;;  %471 = vadd.xlane.f32.xlu0 %v470_v38  ;;  %v599_v40 = vsel %vm15894_vm0, %v11620_v35, -inf }
 0x1aa   : > { %720 = vst.msk [vmem:[#allocation2 + $0x181] sm:$0xff] %vm700_vm3, %v508_v41  ;;  %v11675_v41 = vld [vmem:[%s11065_s14 + $0xe0] sm:$0xff] }
 0x1ab   : > { %v821_v42 = vpop.permute.xlu1 %820 }
 0x1ac   : > { %906 = vst.msk [vmem:[#allocation2 + $0xe1] sm:$0xff] %vm894_vm5, %v821_v42 }
 0x1ad   : > { %830 = vrot.lane.b32.xlu1 %v11418_v30, %s10989_s15 }
 0x1af   : > { %v571_v43 = vpop.xlane.xlu0 %570 }
 0x1b0   : > { %750 = vst.msk [vmem:[#allocation2 + $0x151] sm:$0xff] %vm733_vm4, %v571_v43  ;;  %v476_v43 = vsel %vm15894_vm0, %v11675_v41, 0.0 }
 0x1b1   : > { %834 = vrot.lane.b32.xlu1 %v11430_v37, %s10989_s15 }
 0x1b3   : > { %v574_v44 = vpop.xlane.xlu0 %573  ;;  %v11631_v25 = vld [vmem:[#allocation2 + $0xe0] sm:$0xff] }
 0x1b4   : > { %v11633_v29 = vld [vmem:[#allocation2 + $0xe1] sm:$0xff]  ;;  %751 = vst.msk [vmem:[#allocation2 + $0x161] sm:$0xff] %vm733_vm4, %v574_v44 }
 0x1b5   : > { %v11635_v48 = vld [vmem:[#allocation2 + $0xe2] sm:$0xff]  ;;  %971 = vst.msk [vmem:[#allocation3 + $0x60] sm:$0xff] %vm617_vm1, %v11631_v25 }
 0x1b6   : > { %5043 = vst.msk [vmem:[#allocation2 + $0xe8] sm:$0x3] %vm619_vm2, %v15865_v14 }
 0x1b7   : > { %5042 = vst.msk [vmem:[#allocation2 + $0xe0] sm:$0xff] %vm617_vm1, %v15865_v14  ;;  %v577_v30 = vpop.xlane.xlu0 %576 }
 0x1b8   : > { %752 = vst.msk [vmem:[#allocation2 + $0x171] sm:$0xff] %vm733_vm4, %v577_v30 }
 0x1bb   : > { %v454_v37 = vpop.xlane.xlu0 %453 }
 0x1bc   : > { %v509_v49 = vmul.f32 0.125, %v454_v37 }
 0x1be   : > { %832 = vrot.lane.b32.xlu0 %v11425_v34, %s10989_s15  ;;  %721 = vst.msk [vmem:[#allocation2 + $0x191] sm:$0xff] %vm700_vm3, %v509_v49  ;;  %v11662_v34 = vld [vmem:[%s11065_s14 + $0xd8] sm:$0xff] }
 0x1bf   : > { %v823_v53 = vpop.permute.xlu0 %822  ;;  %v473_v5 = vsel %vm15894_vm0, %v11662_v34, 0.0 }
 0x1c0   : > { %907 = vst.msk [vmem:[#allocation2 + $0xf1] sm:$0xff] %vm894_vm5, %v823_v53 }
 0x1c7   : > { %v11649_v57 = vld [vmem:[#allocation2 + $0xf0] sm:$0xff] }
 0x1c8   : > { %v11651_v58 = vld [vmem:[#allocation2 + $0xf1] sm:$0xff]  ;;  %972 = vst.msk [vmem:[#allocation3 + $0x68] sm:$0xff] %vm617_vm1, %v11649_v57 }
 0x1c9   : > { %v11653_v24 = vld [vmem:[#allocation2 + $0xf2] sm:$0xff] }
 0x1ca   : > { %5045 = vst.msk [vmem:[#allocation2 + $0xf8] sm:$0x3] %vm619_vm2, %v15865_v14 }
 0x1cb   : > { %5044 = vst.msk [vmem:[#allocation2 + $0xf0] sm:$0xff] %vm617_vm1, %v15865_v14 }
 0x1d5   : > { %474 = vadd.xlane.f32.xlu1 %v473_v5 }
 0x1dc   : > { %v580_v20 = vpop.xlane.xlu1 %579 }
 0x1dd   : > { %753 = vst.msk [vmem:[#allocation2 + $0x181] sm:$0xff] %vm733_vm4, %v580_v20  ;;  %594 = vmax.xlane.f32.xlu0 %v593_v31  ;;  %v11698_v20 = vld [vmem:[#allocation2 + $0x1] sm:$0xff] }
 0x1e0   : > { %v460_v33 = vpop.xlane.xlu1 %459 }
 0x1e1   : > { %v511_v38 = vmul.f32 0.125, %v460_v33  ;;  %597 = vmax.xlane.f32.xlu0 %v596_v36  ;;  %v11700_v36 = vld [vmem:[#allocation2 + $0x2] sm:$0xff] }
 0x1e2   : > { %5015 = vst.msk [vmem:[#allocation2 + $0x8] sm:$0x3] %vm619_vm2, %v15865_v14 }
 0x1e3   : > { %723 = vst.msk [vmem:[#allocation2 + $0x1b1] sm:$0xff] %vm700_vm3, %v511_v38 }
 0x1e4   : > { %v583_v42 = vpop.xlane.xlu1 %582 }
 0x1e5   : > { %754 = vst.msk [vmem:[#allocation2 + $0x191] sm:$0xff] %vm733_vm4, %v583_v42  ;;  %600 = vmax.xlane.f32.xlu0 %v599_v40 }
 0x1e6   : > { %836 = vrot.lane.b32.xlu1 %v11472_v27, %s10989_s15 }
 0x1e8   : > { %v825_v44 = vpop.permute.xlu1 %824 }
 0x1e9   : > { %908 = vst.msk [vmem:[#allocation2 + $0x101] sm:$0xff] %vm894_vm5, %v825_v44  ;;  %477 = vadd.xlane.f32.xlu0 %v476_v43 }
 0x1f0   : > { %v457_v30 = vpop.xlane.xlu0 %456  ;;  %v11683_v37 = vld [vmem:[#allocation2 + $0x101] sm:$0xff] }
 0x1f1   : > { %v11685_v49 = vld [vmem:[#allocation2 + $0x102] sm:$0xff]  ;;  %v510_v5 = vmul.f32 0.125, %v457_v30  ;;  %v602_v30 = vsel %vm15894_vm0, %v11662_v34, -inf }
 0x1f2   : > { %v11687_v53 = vld [vmem:[#allocation2 + $0x100] sm:$0xff]  ;;  %5047 = vst.msk [vmem:[#allocation2 + $0x108] sm:$0x3] %vm619_vm2, %v15865_v14 }
 0x1f3   : > { %15903 = vst [vmem:[#allocation4_spill] sm:$0xff] %v11687_v53  ;;  %973 = vst.msk [vmem:[#allocation3 + $0x70] sm:$0xff] %vm617_vm1, %v11687_v53 }
 0x1f4   : > { %5046 = vst.msk [vmem:[#allocation2 + $0x100] sm:$0xff] %vm617_vm1, %v15865_v14  ;;  %v827_v27 = vpop.permute.xlu0 %826 }
 0x1f5   : > { %722 = vst.msk [vmem:[#allocation2 + $0x1a1] sm:$0xff] %vm700_vm3, %v510_v5  ;;  %v11731_v5 = vld [vmem:[%s11065_s14 + $0xf0] sm:$0xff] }
 0x1f6   : > { %909 = vst.msk [vmem:[#allocation2 + $0x111] sm:$0xff] %vm894_vm5, %v827_v27  ;;  %v605_v27 = vsel %vm15894_vm0, %v11675_v41, -inf }
 0x1f8   : > { %v829_v31 = vpop.permute.xlu0 %828 }
 0x1f9   : > { %910 = vst.msk [vmem:[#allocation2 + $0x121] sm:$0xff] %vm894_vm5, %v829_v31  ;;  %v11738_v31 = vld [vmem:[%s11065_s14 + $0xe8] sm:$0xff] }
 0x1fd   : > { %v11702_v33 = vld [vmem:[#allocation2 + $0x111] sm:$0xff] }
 0x1fe   : > { %v11704_v38 = vld [vmem:[#allocation2 + $0x112] sm:$0xff] }
 0x1ff   : > { %15904 = vst [vmem:[#allocation5_spill] sm:$0xff] %v11704_v38  ;;  %v11708_v40 = vld [vmem:[#allocation2 + $0x110] sm:$0xff]  ;;  %5049 = vst.msk [vmem:[#allocation2 + $0x118] sm:$0x3] %vm619_vm2, %v15865_v14  ;;  %838 = vrot.lane.b32.xlu0 %v11485_v61, %s10989_s15  ;;  %v482_v61 = vsel %vm15894_vm0, %v11731_v5, 0.0  ;;  %v15910_v38 = vmov 0.0  }
 0x200   : > { %15905 = vst [vmem:[#allocation6_spill] sm:$0xff] %v11708_v40  ;;  %974 = vst.msk [vmem:[#allocation3 + $0x78] sm:$0xff] %vm617_vm1, %v11708_v40  ;;  %v11718_v42 = vld [vmem:[#allocation2 + $0x120] sm:$0xff] }
 0x201   : > { %5048 = vst.msk [vmem:[#allocation2 + $0x110] sm:$0xff] %vm617_vm1, %v15865_v14  ;;  %15906 = vst [vmem:[#allocation7_spill] sm:$0xff] %v11718_v42  ;;  %v11720_v43 = vld [vmem:[#allocation2 + $0x121] sm:$0xff] }
 0x202   : > { %15907 = vst [vmem:[#allocation8_spill] sm:$0xff] %v11720_v43  ;;  %v11722_v44 = vld [vmem:[#allocation2 + $0x122] sm:$0xff] }
 0x203   : > { %15908 = vst [vmem:[#allocation9_spill] sm:$0xff] %v11722_v44  ;;  %5051 = vst.msk [vmem:[#allocation2 + $0x128] sm:$0x3] %vm619_vm2, %v15865_v14 }
 0x204   : > { %5050 = vst.msk [vmem:[#allocation2 + $0x120] sm:$0xff] %vm617_vm1, %v15865_v14  ;;  %v479_v14 = vsel %vm15894_vm0, %v11738_v31, 0.0 }
 0x20a   : > { %603 = vmax.xlane.f32.xlu1 %v602_v30 }
 0x20e   : > { %483 = vadd.xlane.f32.xlu1 %v482_v61 }
 0x212   : > { %606 = vmax.xlane.f32.xlu1 %v605_v27 }
 0x219   : > { %v463_v44 = vpop.xlane.xlu1 %462 }
 0x21a   : > { %v512_v43 = vmul.f32 0.125, %v463_v44 }
 0x21c   : > { %724 = vst.msk [vmem:[#allocation2 + $0x1c1] sm:$0xff] %vm700_vm3, %v512_v43 }
 0x21d   : > { %v589_v42 = vpop.xlane.xlu1 %588 }
 0x21e   : > { %756 = vst.msk [vmem:[#allocation2 + $0x1b1] sm:$0xff] %vm733_vm4, %v589_v42  ;;  %480 = vadd.xlane.f32.xlu0 %v479_v14 }
 0x221   : > { %v592_v30 = vpop.xlane.xlu1 %591 }
 0x222   : > { %757 = vst.msk [vmem:[#allocation2 + $0x1c1] sm:$0xff] %vm733_vm4, %v592_v30 }
 0x223   : > { %840 = vrot.lane.b32.xlu1 %v11542_v32, %s10989_s15 }
 0x225   : > { %v466_v61 = vpop.xlane.xlu1 %465 }
 0x226   : > { %v513_v27 = vmul.f32 0.125, %v466_v61 }
 0x228   : > { %725 = vst.msk [vmem:[#allocation2 + $0x1f1] sm:$0xff] %vm700_vm3, %v513_v27 }
 0x229   : > { %v831_v44 = vpop.permute.xlu1 %830  ;;  %v586_v40 = vpop.xlane.xlu0 %585 }
 0x22a   : > { %911 = vst.msk [vmem:[#allocation2 + $0x151] sm:$0xff] %vm894_vm5, %v831_v44 }
 0x22b   : > { %755 = vst.msk [vmem:[#allocation2 + $0x1a1] sm:$0xff] %vm733_vm4, %v586_v40 }
 0x22d   : > { %v835_v43 = vpop.permute.xlu1 %834  ;;  %v469_v53 = vpop.xlane.xlu0 %468 }
 0x22e   : > { %913 = vst.msk [vmem:[#allocation2 + $0x171] sm:$0xff] %vm894_vm5, %v835_v43  ;;  %v514_v14 = vmul.f32 0.125, %v469_v53 }
 0x230   : > { %726 = vst.msk [vmem:[#allocation2 + $0x201] sm:$0xff] %vm700_vm3, %v514_v14 }
 0x231   : > { %v472_v42 = vpop.xlane.xlu0 %471  ;;  %v11752_v30 = vld [vmem:[#allocation2 + $0x151] sm:$0xff] }
 0x232   : > { %v11754_v32 = vld [vmem:[#allocation2 + $0x152] sm:$0xff]  ;;  %v515_v27 = vmul.f32 0.125, %v472_v42 }
 0x233   : > { %v11756_v61 = vld [vmem:[#allocation2 + $0x150] sm:$0xff]  ;;  %5057 = vst.msk [vmem:[#allocation2 + $0x158] sm:$0x3] %vm619_vm2, %v15910_v38 }
 0x234   : > { %15909 = vst [vmem:[#allocation10_spill] sm:$0xff] %v11756_v61  ;;  %976 = vst.msk [vmem:[#allocation3 + $0x88] sm:$0xff] %vm617_vm1, %v11756_v61  ;;  %842 = vrot.lane.b32.xlu0 %v11535_v26, %s10989_s15  ;;  %v608_v61 = vsel %vm15894_vm0, %v11738_v31, -inf }
 0x235   : > { %5056 = vst.msk [vmem:[#allocation2 + $0x150] sm:$0xff] %vm617_vm1, %v15910_v38  ;;  %v833_v53 = vpop.permute.xlu0 %832  ;;  %v11767_v40 = vld [vmem:[#allocation2 + $0x171] sm:$0xff] }
 0x236   : > { %727 = vst.msk [vmem:[#allocation2 + $0x211] sm:$0xff] %vm700_vm3, %v515_v27  ;;  %v11769_v44 = vld [vmem:[#allocation2 + $0x172] sm:$0xff] }
 0x237   : > { %15911 = vst [vmem:[#allocation11_spill] sm:$0xff] %v11769_v44  ;;  %v11771_v43 = vld [vmem:[#allocation2 + $0x170] sm:$0xff]  ;;  %912 = vst.msk [vmem:[#allocation2 + $0x161] sm:$0xff] %vm894_vm5, %v833_v53  ;;  %v365_v27 = vld [vmem:[%s11065_s14 + $0xf8] sm:$0xff] }
 0x238   : > { %15912 = vst [vmem:[#allocation12_spill] sm:$0xff] %v11771_v43  ;;  %5061 = vst.msk [vmem:[#allocation2 + $0x178] sm:$0x3] %vm619_vm2, %v15910_v38  ;;  %844 = vrot.lane.b32.xlu0 %v11599_v1, %s10989_s15  ;;  %v485_v53 = vsel %vm15894_vm0, %v365_v27, 0.0  ;;  %v611_v1 = vsel %vm15894_vm0, %v11731_v5, -inf }
 0x239   : > { %978 = vst.msk [vmem:[#allocation3 + $0x98] sm:$0xff] %vm617_vm1, %v11771_v43  ;;  %5060 = vst.msk [vmem:[#allocation2 + $0x170] sm:$0xff] %vm617_vm1, %v15910_v38  ;;  %v614_v43 = vsel %vm15894_vm0, %v365_v27, -inf }
 0x23e   : > { %v11782_v26 = vld [vmem:[#allocation2 + $0x161] sm:$0xff] }
 0x23f   : > { %v11784_v14 = vld [vmem:[#allocation2 + $0x162] sm:$0xff] }
 0x240   : > { %15913 = vst [vmem:[#allocation13_spill] sm:$0xff] %v11784_v14  ;;  %v11786_v42 = vld [vmem:[#allocation2 + $0x160] sm:$0xff]  ;;  %5059 = vst.msk [vmem:[#allocation2 + $0x168] sm:$0x3] %vm619_vm2, %v15910_v38 }
 0x241   : > { %15914 = vst [vmem:[#allocation14_spill] sm:$0xff] %v11786_v42  ;;  %977 = vst.msk [vmem:[#allocation3 + $0x90] sm:$0xff] %vm617_vm1, %v11786_v42 }
 0x242   : > { %5058 = vst.msk [vmem:[#allocation2 + $0x160] sm:$0xff] %vm617_vm1, %v15910_v38 }
 0x247   : > { %486 = vadd.xlane.f32.xlu1 %v485_v53 }
 0x24b   : > { %612 = vmax.xlane.f32.xlu1 %v611_v1  ;;  %v11842_v1 = vld [vmem:[#allocation2 + $0x91] sm:$0xff] }
 0x24f   : > { %615 = vmax.xlane.f32.xlu1 %v614_v43 }
 0x257   : > { %609 = vmax.xlane.f32.xlu0 %v608_v61 }
 0x25e   : > { %v475_v44 = vpop.xlane.xlu1 %474 }
 0x25f   : > { %v516_v42 = vmul.f32 0.125, %v475_v44 }
 0x260   : > { %846 = vrot.lane.b32.xlu1 %v11608_v6, %s10989_s15 }
 0x261   : > { %728 = vst.msk [vmem:[#allocation2 + $0x221] sm:$0xff] %vm700_vm3, %v516_v42  ;;  %v11840_v42 = vld [vmem:[#allocation2 + $0x90] sm:$0xff] }
 0x262   : > { %v837_v14 = vpop.permute.xlu1 %836 }
 0x263   : > { %914 = vst.msk [vmem:[#allocation2 + $0x181] sm:$0xff] %vm894_vm5, %v837_v14 }
 0x264   : > { %850 = vrot.lane.b32.xlu1 %v11620_v35, %s10989_s15  ;;  %v927_v35 = vld [vmem:[#allocation2] sm:$0xff] }
 0x265   : > { %959 = vst.msk [vmem:[#allocation3] sm:$0xff] %vm617_vm1, %v927_v35  ;;  %5014 = vst.msk [vmem:[#allocation2] sm:$0xff] %vm617_vm1, %v15910_v38 }
 0x266   : > { %v595_v53 = vpop.xlane.xlu0 %594 }
 0x267   : > { %758 = vst.msk [vmem:[#allocation2 + $0x1f1] sm:$0xff] %vm733_vm4, %v595_v53 }
 0x268   : > { %852 = vrot.lane.b32.xlu1 %v11662_v34, %s10989_s15 }
 0x26a   : > { %v598_v61 = vpop.xlane.xlu0 %597  ;;  %v11810_v43 = vld [vmem:[#allocation2 + $0x180] sm:$0xff] }
 0x26b   : > { %v11812_v44 = vld [vmem:[#allocation2 + $0x181] sm:$0xff]  ;;  %759 = vst.msk [vmem:[#allocation2 + $0x201] sm:$0xff] %vm733_vm4, %v598_v61 }
 0x26c   : > { %v11814_v6 = vld [vmem:[#allocation2 + $0x182] sm:$0xff]  ;;  %979 = vst.msk [vmem:[#allocation3 + $0xa0] sm:$0xff] %vm617_vm1, %v11810_v43  ;;  %854 = vrot.lane.b32.xlu1 %v11675_v41, %s10989_s15 }
 0x26d   : > { %5063 = vst.msk [vmem:[#allocation2 + $0x188] sm:$0x3] %vm619_vm2, %v15910_v38  ;;  %848 = vrot.lane.b32.xlu0 %v11615_v28, %s10989_s15 }
 0x26e   : > { %5062 = vst.msk [vmem:[#allocation2 + $0x180] sm:$0xff] %vm617_vm1, %v15910_v38  ;;  %v601_v34 = vpop.xlane.xlu0 %600 }
 0x26f   : > { %760 = vst.msk [vmem:[#allocation2 + $0x211] sm:$0xff] %vm733_vm4, %v601_v34 }
 0x270   : > { %856 = vrot.lane.b32.xlu1 %v11738_v31, %s10989_s15  ;;  %v11844_v31 = vld [vmem:[#allocation2 + $0x92] sm:$0xff] }
 0x271   : > { %858 = vrot.lane.b32.xlu0 %v11731_v5, %s10989_s15  ;;  %5032 = vst.msk [vmem:[#allocation2 + $0x90] sm:$0xff] %vm617_vm1, %v15910_v38  ;;  %v11858_v5 = vld [vmem:[#allocation2 + $0xa2] sm:$0xff] }
 0x272   : > { %v478_v14 = vpop.xlane.xlu0 %477  ;;  %5033 = vst.msk [vmem:[#allocation2 + $0x98] sm:$0x3] %vm619_vm2, %v15910_v38 }
 0x273   : > { %v517_v41 = vmul.f32 0.125, %v478_v14 }
 0x274   : > { %860 = vrot.lane.b32.xlu1 %v365_v27, %s10989_s15 }
 0x275   : > { %1055 = vrot.lane.b32.xlu0 %v11698_v20, %s10990_s16  ;;  %729 = vst.msk [vmem:[#allocation2 + $0x231] sm:$0xff] %vm700_vm3, %v517_v41  ;;  %v11856_v20 = vld [vmem:[#allocation2 + $0xa1] sm:$0xff] }
 0x276   : > { %v839_v28 = vpop.permute.xlu0 %838  ;;  %5035 = vst.msk [vmem:[#allocation2 + $0xa8] sm:$0x3] %vm619_vm2, %v15910_v38 }
 0x277   : > { %915 = vst.msk [vmem:[#allocation2 + $0x191] sm:$0xff] %vm894_vm5, %v839_v28  ;;  %v10413_v28 = vld [vmem:[%s15854_s1 + $0x20] sm:$0xff]  }
 0x278   : > { %1057 = vrot.lane.b32.xlu1 %v11366_v11, %s10990_s16 }
 0x279   : > { %1059 = vrot.lane.b32.xlu0 %v11396_v17, %s10990_s16 }
 0x27c   : > { %1061 = vrot.lane.b32.xlu1 %v11381_v18, %s10990_s16 }
 0x27d   : > { %1248 = vrot.lane.b32.xlu0 %v11700_v36, %s10991_s17 }
 0x27e   : > { %v11864_v27 = vld [vmem:[#allocation2 + $0x190] sm:$0xff] }
 0x27f   : > { %v11866_v53 = vld [vmem:[#allocation2 + $0x191] sm:$0xff]  ;;  %980 = vst.msk [vmem:[#allocation3 + $0xa8] sm:$0xff] %vm617_vm1, %v11864_v27 }
 0x280   : > { %v11868_v61 = vld [vmem:[#allocation2 + $0x192] sm:$0xff]  ;;  %1250 = vrot.lane.b32.xlu1 %v11368_v12, %s10991_s17 }
 0x281   : > { %5065 = vst.msk [vmem:[#allocation2 + $0x198] sm:$0x3] %vm619_vm2, %v15910_v38  ;;  %1252 = vrot.lane.b32.xlu0 %v11398_v22, %s10991_s17 }
 0x282   : > { %5064 = vst.msk [vmem:[#allocation2 + $0x190] sm:$0xff] %vm617_vm1, %v15910_v38 }
 0x284   : > { %1254 = vrot.lane.b32.xlu1 %v11383_v19, %s10991_s17 }
 0x285   : > { %1441 = vrot.lane.b32.xlu0 %v11370_v13, %s10992_s18 }
 0x288   : > { %1443 = vrot.lane.b32.xlu1 %v11400_v23, %s10992_s18 }
 0x289   : > { %1445 = vrot.lane.b32.xlu0 %v11385_v21, %s10992_s18 }
 0x28c   : > { %1447 = vrot.lane.b32.xlu1 %v11441_v45, %s10992_s18 }
 0x28d   : > { %1634 = vrot.lane.b32.xlu0 %v11366_v11, %s10993_s19 }
 0x290   : > { %1636 = vrot.lane.b32.xlu1 %v11396_v17, %s10993_s19 }
 0x291   : > { %1638 = vrot.lane.b32.xlu0 %v11381_v18, %s10993_s19 }
 0x293   : > { %v604_v13 = vpop.xlane.xlu1 %603 }
 0x294   : > { %761 = vst.msk [vmem:[#allocation2 + $0x221] sm:$0xff] %vm733_vm4, %v604_v13  ;;  %1640 = vrot.lane.b32.xlu1 %v11443_v46, %s10993_s19  ;;  %v10414_v13 = vld [vmem:[%s15854_s1 + $0x18] sm:$0xff]  }
 0x295   : > { %1827 = vrot.lane.b32.xlu0 %v11368_v12, %s10994_s20 }
 0x297   : > { %v484_v36 = vpop.xlane.xlu1 %483 }
 0x298   : > { %v519_v35 = vmul.f32 0.125, %v484_v36  ;;  %1829 = vrot.lane.b32.xlu1 %v11398_v22, %s10994_s20 }
 0x299   : > { %1831 = vrot.lane.b32.xlu0 %v11383_v19, %s10994_s20 }
 0x29a   : > { %731 = vst.msk [vmem:[#allocation2 + $0x251] sm:$0xff] %vm700_vm3, %v519_v35  ;;  %v10415_v35 = vld [vmem:[%s15854_s1 + $0x10] sm:$0xff]  }
 0x29b   : > { %v607_v11 = vpop.xlane.xlu1 %606 }
 0x29c   : > { %762 = vst.msk [vmem:[#allocation2 + $0x231] sm:$0xff] %vm733_vm4, %v607_v11  ;;  %1833 = vrot.lane.b32.xlu1 %v11445_v47, %s10994_s20 }
 0x29d   : > { %2021 = vrot.lane.b32.xlu0 %v11400_v23, %s10995_s21  ;;  %v10412_v23 = vld [vmem:[%s15854_s1 + $0x28] sm:$0x1f]  }
 0x29e   : > { %10378 = vmatprep.subr.msk.bf16.mxu0 %vm15890_vm6, %v10412_v23 }
 0x29f   : > { %v841_v12 = vpop.permute.xlu1 %840 }
 0x2a0   : > { %916 = vst.msk [vmem:[#allocation2 + $0x1a1] sm:$0xff] %vm894_vm5, %v841_v12  ;;  %2023 = vrot.lane.b32.xlu1 %v11385_v21, %s10995_s21  ;;  %v2670_v21 = vsel %vm15890_vm6, %v10412_v23, 0  ;;  %vm15891_vm6 = vcmask 1040384  }
 0x2a1   : > { %2025 = vrot.lane.b32.xlu0 %v11441_v45, %s10995_s21  ;;  %9867 = vmatpush3.bf16.msra.mxu0 %v2670_v21  ;;  %v10417_v21 = vld [vmem:[%s15854_s1] sm:$0xff]  }
 0x2a2   : > { %9868 = vmatprep.subr.bf16.mxu0 %v10413_v28 }
 0x2a4   : > { %2027 = vrot.lane.b32.xlu1 %v11459_v50, %s10995_s21 }
 0x2a5   : > { %2214 = vrot.lane.b32.xlu0 %v11396_v17, %s10996_s22  ;;  %9869 = vmatpush3.bf16.msra.mxu0 %v10413_v28 }
 0x2a6   : > { %9870 = vmatprep.subr.bf16.mxu0 %v10414_v13 }
 0x2a7   : > { %v481_v34 = vpop.xlane.xlu0 %480  ;;  %v11925_v14 = vld [vmem:[#allocation2 + $0x1a1] sm:$0xff] }
 0x2a8   : > { %v11927_v45 = vld [vmem:[#allocation2 + $0x1a2] sm:$0xff]  ;;  %2216 = vrot.lane.b32.xlu1 %v11381_v18, %s10996_s22  ;;  %v518_v17 = vmul.f32 0.125, %v481_v34 }
 0x2a9   : > { %v11929_v41 = vld [vmem:[#allocation2 + $0x1a0] sm:$0xff]  ;;  %5067 = vst.msk [vmem:[#allocation2 + $0x1a8] sm:$0x3] %vm619_vm2, %v15910_v38  ;;  %2218 = vrot.lane.b32.xlu0 %v11443_v46, %s10996_s22  ;;  %9871 = vmatpush3.bf16.msra.mxu0 %v10414_v13 }
 0x2aa   : > { %981 = vst.msk [vmem:[#allocation3 + $0xb0] sm:$0xff] %vm617_vm1, %v11929_v41  ;;  %5066 = vst.msk [vmem:[#allocation2 + $0x1a0] sm:$0xff] %vm617_vm1, %v15910_v38  ;;  %9872 = vmatprep.subr.bf16.mxu0 %v10415_v35 }
 0x2ab   : > { %730 = vst.msk [vmem:[#allocation2 + $0x241] sm:$0xff] %vm700_vm3, %v518_v17  ;;  %v843_v18 = vpop.permute.xlu0 %842 }
 0x2ac   : > { %2220 = vrot.lane.b32.xlu1 %v11461_v51, %s10996_s22  ;;  %917 = vst.msk [vmem:[#allocation2 + $0x1b1] sm:$0xff] %vm894_vm5, %v843_v18 }
 0x2ad   : > { %2407 = vrot.lane.b32.xlu0 %v11398_v22, %s10997_s27  ;;  %9873 = vmatpush3.bf16.msra.mxu0 %v10415_v35 }
 0x2af   : > { %v845_v36 = vpop.permute.xlu0 %844 }
 0x2b0   : > { %2409 = vrot.lane.b32.xlu1 %v11383_v19, %s10997_s27  ;;  %918 = vst.msk [vmem:[#allocation2 + $0x1c1] sm:$0xff] %vm894_vm5, %v845_v36  ;;  %v10416_v19 = vld [vmem:[%s15854_s1 + $0x8] sm:$0xff]  }
 0x2b1   : > { %1063 = vrot.lane.b32.xlu0 %v11443_v46, %s10990_s16  ;;  %9874 = vmatprep.subr.bf16.mxu0 %v10416_v19 }
 0x2b2   : > { %9875 = vmatpush3.bf16.msra.mxu0 %v10416_v19 }
 0x2b3   : > { %v11961_v22 = vld [vmem:[#allocation2 + $0x1b1] sm:$0xff]  ;;  %9876 = vmatprep.subr.bf16.mxu0 %v10417_v21 }
 0x2b4   : > { %v11963_v11 = vld [vmem:[#allocation2 + $0x1b2] sm:$0xff]  ;;  %1065 = vrot.lane.b32.xlu1 %v11461_v51, %s10990_s16 }
 0x2b5   : > { %v11965_v12 = vld [vmem:[#allocation2 + $0x1b0] sm:$0xff]  ;;  %5069 = vst.msk [vmem:[#allocation2 + $0x1b8] sm:$0x3] %vm619_vm2, %v15910_v38  ;;  %2411 = vrot.lane.b32.xlu0 %v11445_v47, %s10997_s27 }
 0x2b6   : > { %982 = vst.msk [vmem:[#allocation3 + $0xb8] sm:$0xff] %vm617_vm1, %v11965_v12  ;;  %5068 = vst.msk [vmem:[#allocation2 + $0x1b0] sm:$0xff] %vm617_vm1, %v15910_v38  ;;  %9877 = vmatpush3.bf16.msra.mxu0 %v10417_v21 }
 0x2b7   : > { %v11980_v46 = vld [vmem:[#allocation2 + $0x1c0] sm:$0xff] }
 0x2b8   : > { %v11982_v23 = vld [vmem:[#allocation2 + $0x1c1] sm:$0xff]  ;;  %2413 = vrot.lane.b32.xlu1 %v11463_v52, %s10997_s27 }
 0x2b9   : > { %v11984_v34 = vld [vmem:[#allocation2 + $0x1c2] sm:$0xff]  ;;  %1067 = vrot.lane.b32.xlu0 %v11493_v2, %s10990_s16 }
 0x2ba   : > { %5071 = vst.msk [vmem:[#allocation2 + $0x1c8] sm:$0x3] %vm619_vm2, %v15910_v38 }
 0x2bb   : > { %5070 = vst.msk [vmem:[#allocation2 + $0x1c0] sm:$0xff] %vm617_vm1, %v15910_v38 }
 0x2bc   : > { %1069 = vrot.lane.b32.xlu1 %v11508_v7, %s10990_s16 }
 0x2bd   : > { %1256 = vrot.lane.b32.xlu0 %v11445_v47, %s10991_s17 }
 0x2c0   : > { %1258 = vrot.lane.b32.xlu1 %v11463_v52, %s10991_s17 }
 0x2c1   : > { %1260 = vrot.lane.b32.xlu0 %v11495_v3, %s10991_s17 }
 0x2c4   : > { %1262 = vrot.lane.b32.xlu1 %v11510_v8, %s10991_s17 }
 0x2c5   : > { %1449 = vrot.lane.b32.xlu0 %v11459_v50, %s10992_s18 }
 0x2c8   : > { %1451 = vrot.lane.b32.xlu1 %v11497_v4, %s10992_s18 }
 0x2c9   : > { %1453 = vrot.lane.b32.xlu0 %v11512_v9, %s10992_s18 }
 0x2cc   : > { %1455 = vrot.lane.b32.xlu1 %v11522_v10, %s10992_s18 }
 0x2cd   : > { %1642 = vrot.lane.b32.xlu0 %v11461_v51, %s10993_s19 }
 0x2d0   : > { %v487_v47 = vpop.xlane.xlu1 %486  ;;  %1644 = vrot.lane.b32.xlu1 %v11493_v2, %s10993_s19 }
 0x2d1   : > { %v520_v17 = vmul.f32 0.125, %v487_v47  ;;  %1646 = vrot.lane.b32.xlu0 %v11508_v7, %s10993_s19 }
 0x2d3   : > { %732 = vst.msk [vmem:[#allocation2 + $0x261] sm:$0xff] %vm700_vm3, %v520_v17 }
 0x2d4   : > { %v613_v50 = vpop.xlane.xlu1 %612  ;;  %1648 = vrot.lane.b32.xlu1 %v11524_v15, %s10993_s19 }
 0x2d5   : > { %764 = vst.msk [vmem:[#allocation2 + $0x251] sm:$0xff] %vm733_vm4, %v613_v50  ;;  %1835 = vrot.lane.b32.xlu0 %v11463_v52, %s10994_s20 }
 0x2d8   : > { %v616_v51 = vpop.xlane.xlu1 %615  ;;  %1837 = vrot.lane.b32.xlu1 %v11495_v3, %s10994_s20 }
 0x2d9   : > { %765 = vst.msk [vmem:[#allocation2 + $0x261] sm:$0xff] %vm733_vm4, %v616_v51  ;;  %1839 = vrot.lane.b32.xlu0 %v11510_v8, %s10994_s20 }
 0x2dc   : > { %v847_v28 = vpop.permute.xlu1 %846  ;;  %1841 = vrot.lane.b32.xlu1 %v11526_v16, %s10994_s20 }
 0x2dd   : > { %919 = vst.msk [vmem:[#allocation2 + $0x1f1] sm:$0xff] %vm894_vm5, %v847_v28  ;;  %2029 = vrot.lane.b32.xlu0 %v11497_v4, %s10995_s21 }
 0x2e0   : > { %v851_v18 = vpop.permute.xlu1 %850  ;;  %2031 = vrot.lane.b32.xlu1 %v11512_v9, %s10995_s21  ;;  %v610_v52 = vpop.xlane.xlu0 %609 }
 0x2e1   : > { %921 = vst.msk [vmem:[#allocation2 + $0x211] sm:$0xff] %vm894_vm5, %v851_v18  ;;  %2033 = vrot.lane.b32.xlu0 %v11522_v10, %s10995_s21 }
 0x2e2   : > { %763 = vst.msk [vmem:[#allocation2 + $0x241] sm:$0xff] %vm733_vm4, %v610_v52 }
 0x2e4   : > { %v853_v13 = vpop.permute.xlu1 %852  ;;  %2035 = vrot.lane.b32.xlu1 %v11840_v42, %s10995_s21  ;;  %v849_v36 = vpop.permute.xlu0 %848  ;;  %v12045_v35 = vld [vmem:[#allocation2 + $0x1f1] sm:$0xff] }
 0x2e5   : > { %v12047_v4 = vld [vmem:[#allocation2 + $0x1f2] sm:$0xff]  ;;  %922 = vst.msk [vmem:[#allocation2 + $0x221] sm:$0xff] %vm894_vm5, %v853_v13  ;;  %920 = vst.msk [vmem:[#allocation2 + $0x201] sm:$0xff] %vm894_vm5, %v849_v36  ;;  %2222 = vrot.lane.b32.xlu0 %v11493_v2, %s10996_s22  ;;  %v935_v2 = vld [vmem:[#allocation2 + $0xa0] sm:$0xff] }
 0x2e6   : > { %v12049_v19 = vld [vmem:[#allocation2 + $0x1f0] sm:$0xff]  ;;  %5077 = vst.msk [vmem:[#allocation2 + $0x1f8] sm:$0x3] %vm619_vm2, %v15910_v38 }
 0x2e7   : > { %984 = vst.msk [vmem:[#allocation3 + $0xc8] sm:$0xff] %vm617_vm1, %v12049_v19  ;;  %5076 = vst.msk [vmem:[#allocation2 + $0x1f0] sm:$0xff] %vm617_vm1, %v15910_v38 }
 0x2e8   : > { %v855_v9 = vpop.permute.xlu1 %854  ;;  %2224 = vrot.lane.b32.xlu1 %v11508_v7, %s10996_s22  ;;  %v859_v10 = vpop.permute.xlu0 %858  ;;  %v12063_v42 = vld [vmem:[#allocation2 + $0x211] sm:$0xff]  ;;  %967 = vst.msk [vmem:[#allocation3 + $0x40] sm:$0xff] %vm617_vm1, %v935_v2  ;;  %5034 = vst.msk [vmem:[#allocation2 + $0xa0] sm:$0xff] %vm617_vm1, %v15910_v38 }
 0x2e9   : > { %v12065_v21 = vld [vmem:[#allocation2 + $0x212] sm:$0xff]  ;;  %923 = vst.msk [vmem:[#allocation2 + $0x231] sm:$0xff] %vm894_vm5, %v855_v9  ;;  %925 = vst.msk [vmem:[#allocation2 + $0x251] sm:$0xff] %vm894_vm5, %v859_v10  ;;  %2226 = vrot.lane.b32.xlu0 %v11524_v15, %s10996_s22 }
 0x2ea   : > { %v12067_v47 = vld [vmem:[#allocation2 + $0x210] sm:$0xff]  ;;  %5081 = vst.msk [vmem:[#allocation2 + $0x218] sm:$0x3] %vm619_vm2, %v15910_v38 }
 0x2eb   : > { %986 = vst.msk [vmem:[#allocation3 + $0xd8] sm:$0xff] %vm617_vm1, %v12067_v47  ;;  %5080 = vst.msk [vmem:[#allocation2 + $0x210] sm:$0xff] %vm617_vm1, %v15910_v38 }
 0x2ec   : > { %v857_v7 = vpop.permute.xlu1 %856  ;;  %2228 = vrot.lane.b32.xlu1 %v11842_v1, %s10996_s22  ;;  %v1056_v15 = vpop.permute.xlu0 %1055  ;;  %v12084_v17 = vld [vmem:[#allocation2 + $0x201] sm:$0xff] }
 0x2ed   : > { %v12086_v50 = vld [vmem:[#allocation2 + $0x202] sm:$0xff]  ;;  %924 = vst.msk [vmem:[#allocation2 + $0x241] sm:$0xff] %vm894_vm5, %v857_v7  ;;  %2415 = vrot.lane.b32.xlu0 %v11495_v3, %s10997_s27 }
 0x2ee   : > { %v12088_v51 = vld [vmem:[#allocation2 + $0x200] sm:$0xff]  ;;  %1152 = vst.msk [vmem:[#allocation3] sm:$0xff] %vm1151_vm7, %v1056_v15 }
 0x2ef   : > { %v12094_v28 = vld [vmem:[#allocation2 + $0x220] sm:$0xff]  ;;  %5079 = vst.msk [vmem:[#allocation2 + $0x208] sm:$0x3] %vm619_vm2, %v15910_v38 }
 0x2f0   : > { %v12096_v18 = vld [vmem:[#allocation2 + $0x221] sm:$0xff]  ;;  %985 = vst.msk [vmem:[#allocation3 + $0xd0] sm:$0xff] %vm617_vm1, %v12088_v51  ;;  %5078 = vst.msk [vmem:[#allocation2 + $0x200] sm:$0xff] %vm617_vm1, %v15910_v38  ;;  %v861_v3 = vpop.permute.xlu1 %860  ;;  %2417 = vrot.lane.b32.xlu1 %v11510_v8, %s10997_s27  ;;  %v1060_v52 = vpop.permute.xlu0 %1059  ;;  %v12114_v13 = vld [vmem:[#allocation2 + $0x230] sm:$0xff] }
 0x2f1   : > { %v12098_v1 = vld [vmem:[#allocation2 + $0x222] sm:$0xff]  ;;  %987 = vst.msk [vmem:[#allocation3 + $0xe0] sm:$0xff] %vm617_vm1, %v12094_v28  ;;  %v12116_v36 = vld [vmem:[#allocation2 + $0x231] sm:$0xff]  ;;  %1071 = vrot.lane.b32.xlu0 %v11856_v20, %s10990_s16  ;;  %988 = vst.msk [vmem:[#allocation3 + $0xe8] sm:$0xff] %vm617_vm1, %v12114_v13 }
 0x2f2   : > { %5083 = vst.msk [vmem:[#allocation2 + $0x228] sm:$0x3] %vm619_vm2, %v15910_v38  ;;  %v12122_v9 = vld [vmem:[#allocation2 + $0x232] sm:$0xff] }
 0x2f3   : > { %5082 = vst.msk [vmem:[#allocation2 + $0x220] sm:$0xff] %vm617_vm1, %v15910_v38  ;;  %v12124_v10 = vld [vmem:[#allocation2 + $0x251] sm:$0xff]  ;;  %5084 = vst.msk [vmem:[#allocation2 + $0x230] sm:$0xff] %vm617_vm1, %v15910_v38 }
 0x2f4   : > { %926 = vst.msk [vmem:[#allocation2 + $0x261] sm:$0xff] %vm894_vm5, %v861_v3  ;;  %15915 = vst [vmem:[#allocation15_spill] sm:$0xff] %v12124_v10  ;;  %v12126_v2 = vld [vmem:[#allocation2 + $0x252] sm:$0xff]  ;;  %v1058_v20 = vpop.permute.xlu1 %1057  ;;  %1073 = vrot.lane.b32.xlu1 %v11556_v54, %s10990_s16  ;;  %v1249_v7 = vpop.permute.xlu0 %1248  ;;  %v12144_v15 = vld [vmem:[#allocation2 + $0x241] sm:$0xff] }
 0x2f5   : > { %1154 = vst.msk [vmem:[#allocation3 + $0x10] sm:$0xff] %vm1151_vm7, %v1060_v52  ;;  %15916 = vst [vmem:[#allocation16_spill] sm:$0xff] %v12126_v2  ;;  %v12130_v8 = vld [vmem:[#allocation2 + $0x250] sm:$0xff]  ;;  %v12146_v3 = vld [vmem:[#allocation2 + $0x242] sm:$0xff]  ;;  %2419 = vrot.lane.b32.xlu0 %v11526_v16, %s10997_s27 }
 0x2f6   : > { %15917 = vst [vmem:[#allocation17_spill] sm:$0xff] %v12130_v8  ;;  %5085 = vst.msk [vmem:[#allocation2 + $0x238] sm:$0x3] %vm619_vm2, %v15910_v38  ;;  %v12148_v52 = vld [vmem:[#allocation2 + $0x240] sm:$0xff]  ;;  %v12162_v2 = vld [vmem:[#allocation2 + $0x131] sm:$0xff] }
 0x2f7   : > { %5089 = vst.msk [vmem:[#allocation2 + $0x258] sm:$0x3] %vm619_vm2, %v15910_v38  ;;  %15918 = vst [vmem:[#allocation18_spill] sm:$0xff] %v12146_v3  ;;  %v12164_v3 = vld [vmem:[#allocation2 + $0x132] sm:$0xff] }
 0x2f8   : > { %990 = vst.msk [vmem:[#allocation3 + $0xf8] sm:$0xff] %vm617_vm1, %v12130_v8  ;;  %5088 = vst.msk [vmem:[#allocation2 + $0x250] sm:$0xff] %vm617_vm1, %v15910_v38  ;;  %v12160_v8 = vld [vmem:[#allocation2 + $0x130] sm:$0xff]  ;;  %2421 = vrot.lane.b32.xlu1 %v11844_v31, %s10997_s27  ;;  %v1253_v16 = vpop.permute.xlu0 %1252 }
 0x2f9   : > { %15919 = vst [vmem:[#allocation19_spill] sm:$0xff] %v12148_v52  ;;  %1153 = vst.msk [vmem:[#allocation3 + $0x8] sm:$0xff] %vm1151_vm7, %v1058_v20  ;;  %v1062_v20 = vpop.permute.xlu1 %1061  ;;  %1075 = vrot.lane.b32.xlu0 %v11586_v39, %s10990_s16 }
 0x2fa   : > { %1345 = vst.msk [vmem:[#allocation3] sm:$0xff] %vm1344_vm8, %v1249_v7  ;;  %1347 = vst.msk [vmem:[#allocation3 + $0x10] sm:$0xff] %vm1344_vm8, %v1253_v16 }
 0x2fb   : > { %5087 = vst.msk [vmem:[#allocation2 + $0x248] sm:$0x3] %vm619_vm2, %v15910_v38  ;;  %5053 = vst.msk [vmem:[#allocation2 + $0x138] sm:$0x3] %vm619_vm2, %v15910_v38  ;;  %v12172_v7 = vld [vmem:[#allocation2 + $0x260] sm:$0xff] }
 0x2fc   : > { %989 = vst.msk [vmem:[#allocation3 + $0xf0] sm:$0xff] %vm617_vm1, %v12148_v52  ;;  %5086 = vst.msk [vmem:[#allocation2 + $0x240] sm:$0xff] %vm617_vm1, %v15910_v38  ;;  %v12174_v52 = vld [vmem:[#allocation2 + $0x261] sm:$0xff]  ;;  %1077 = vrot.lane.b32.xlu1 %v11571_v59, %s10990_s16 }
 0x2fd   : > { %5052 = vst.msk [vmem:[#allocation2 + $0x130] sm:$0xff] %vm617_vm1, %v15910_v38  ;;  %15920 = vst [vmem:[#allocation20_spill] sm:$0xff] %v12172_v7  ;;  %v12176_v10 = vld [vmem:[#allocation2 + $0x262] sm:$0xff]  ;;  %v1251_v31 = vpop.permute.xlu1 %1250  ;;  %1264 = vrot.lane.b32.xlu0 %v11858_v5, %s10991_s17 }
 0x2fe   : > { %15921 = vst [vmem:[#allocation21_spill] sm:$0xff] %v12174_v52  ;;  %15922 = vst [vmem:[#allocation22_spill] sm:$0xff] %v12176_v10  ;;  %v1442_v52 = vpop.permute.xlu0 %1441  ;;  %v12188_v10 = vld [vmem:[#allocation2 + $0x141] sm:$0xff] }
 0x2ff   : > { %1155 = vst.msk [vmem:[#allocation3 + $0x18] sm:$0xff] %vm1151_vm7, %v1062_v20  ;;  %v12190_v20 = vld [vmem:[#allocation2 + $0x142] sm:$0xff] }
 0x300   : > { %5091 = vst.msk [vmem:[#allocation2 + $0x268] sm:$0x3] %vm619_vm2, %v15910_v38  ;;  %5055 = vst.msk [vmem:[#allocation2 + $0x148] sm:$0x3] %vm619_vm2, %v15910_v38  ;;  %1266 = vrot.lane.b32.xlu1 %v11558_v55, %s10991_s17 }
 0x301   : > { %5090 = vst.msk [vmem:[#allocation2 + $0x260] sm:$0xff] %vm617_vm1, %v15910_v38  ;;  %v1255_v16 = vpop.permute.xlu1 %1254  ;;  %1268 = vrot.lane.b32.xlu0 %v11588_v63, %s10991_s17 }
 0x302   : > { %1346 = vst.msk [vmem:[#allocation3 + $0x8] sm:$0xff] %vm1344_vm8, %v1251_v31  ;;  %v1446_v7 = vpop.permute.xlu0 %1445  ;;  %1348 = vst.msk [vmem:[#allocation3 + $0x18] sm:$0xff] %vm1344_vm8, %v1255_v16 }
 0x303   : > { %1538 = vst.msk [vmem:[#allocation3] sm:$0xff] %vm1537_vm9, %v1442_v52  ;;  %1540 = vst.msk [vmem:[#allocation3 + $0x10] sm:$0xff] %vm1537_vm9, %v1446_v7 }
 0x304   : > { %1270 = vrot.lane.b32.xlu1 %v11573_v60, %s10991_s17 }
 0x305   : > { %v1444_v52 = vpop.permute.xlu1 %1443  ;;  %1457 = vrot.lane.b32.xlu0 %v11560_v56, %s10992_s18 }
 0x306   : > { %v1635_v5 = vpop.permute.xlu0 %1634  ;;  %1539 = vst.msk [vmem:[#allocation3 + $0x8] sm:$0xff] %vm1537_vm9, %v1444_v52 }
 0x307   : > { %1731 = vst.msk [vmem:[#allocation3] sm:$0xff] %vm1730_vm10, %v1635_v5 }
 0x308   : > { %1459 = vrot.lane.b32.xlu1 %v11590_v0, %s10992_s18 }
 0x309   : > { %v1448_v31 = vpop.permute.xlu1 %1447  ;;  %1461 = vrot.lane.b32.xlu0 %v11575_v62, %s10992_s18 }
 0x30a   : > { %v1639_v7 = vpop.permute.xlu0 %1638  ;;  %1541 = vst.msk [vmem:[#allocation3 + $0x18] sm:$0xff] %vm1537_vm9, %v1448_v31 }
 0x30b   : > { %1733 = vst.msk [vmem:[#allocation3 + $0x10] sm:$0xff] %vm1730_vm10, %v1639_v7 }
 0x30c   : > { %1463 = vrot.lane.b32.xlu1 %v11631_v25, %s10992_s18 }
 0x30d   : > { %v1637_v16 = vpop.permute.xlu1 %1636  ;;  %1650 = vrot.lane.b32.xlu0 %v11556_v54, %s10993_s19 }
 0x30e   : > { %v1828_v52 = vpop.permute.xlu0 %1827  ;;  %1732 = vst.msk [vmem:[#allocation3 + $0x8] sm:$0xff] %vm1730_vm10, %v1637_v16 }
 0x30f   : > { %1924 = vst.msk [vmem:[#allocation3] sm:$0xff] %vm1923_vm11, %v1828_v52 }
 0x310   : > { %1652 = vrot.lane.b32.xlu1 %v11586_v39, %s10993_s19 }
 0x311   : > { %v1641_v56 = vpop.permute.xlu1 %1640  ;;  %1654 = vrot.lane.b32.xlu0 %v11571_v59, %s10993_s19 }
 0x312   : > { %v1832_v5 = vpop.permute.xlu0 %1831  ;;  %1734 = vst.msk [vmem:[#allocation3 + $0x18] sm:$0xff] %vm1730_vm10, %v1641_v56 }
 0x313   : > { %1926 = vst.msk [vmem:[#allocation3 + $0x10] sm:$0xff] %vm1923_vm11, %v1832_v5 }
 0x314   : > { %1656 = vrot.lane.b32.xlu1 %v11633_v29, %s10993_s19 }
 0x315   : > { %v1830_v31 = vpop.permute.xlu1 %1829  ;;  %1843 = vrot.lane.b32.xlu0 %v11558_v55, %s10994_s20 }
 0x316   : > { %v2022_v7 = vpop.permute.xlu0 %2021  ;;  %1925 = vst.msk [vmem:[#allocation3 + $0x8] sm:$0xff] %vm1923_vm11, %v1830_v31 }
 0x317   : > { %2118 = vst.msk [vmem:[#allocation3] sm:$0xff] %vm2117_vm12, %v2022_v7 }
 0x318   : > { %1845 = vrot.lane.b32.xlu1 %v11588_v63, %s10994_s20 }
 0x319   : > { %v1834_v54 = vpop.permute.xlu1 %1833  ;;  %1847 = vrot.lane.b32.xlu0 %v11573_v60, %s10994_s20 }
 0x31a   : > { %v2026_v16 = vpop.permute.xlu0 %2025  ;;  %1927 = vst.msk [vmem:[#allocation3 + $0x18] sm:$0xff] %vm1923_vm11, %v1834_v54 }
 0x31b   : > { %2120 = vst.msk [vmem:[#allocation3 + $0x10] sm:$0xff] %vm2117_vm12, %v2026_v16 }
 0x31c   : > { %1849 = vrot.lane.b32.xlu1 %v11635_v48, %s10994_s20 }
 0x31d   : > { %v2024_v52 = vpop.permute.xlu1 %2023  ;;  %2037 = vrot.lane.b32.xlu0 %v11590_v0, %s10995_s21 }
 0x31e   : > { %v2215_v56 = vpop.permute.xlu0 %2214  ;;  %2119 = vst.msk [vmem:[#allocation3 + $0x8] sm:$0xff] %vm2117_vm12, %v2024_v52 }
 0x31f   : > { %2311 = vst.msk [vmem:[#allocation3] sm:$0xff] %vm2310_vm13, %v2215_v56 }
 0x320   : > { %2039 = vrot.lane.b32.xlu1 %v11575_v62, %s10995_s21 }
 0x321   : > { %v2028_v55 = vpop.permute.xlu1 %2027  ;;  %2041 = vrot.lane.b32.xlu0 %v11631_v25, %s10995_s21 }
 0x322   : > { %v2219_v5 = vpop.permute.xlu0 %2218  ;;  %2121 = vst.msk [vmem:[#allocation3 + $0x18] sm:$0xff] %vm2117_vm12, %v2028_v55 }
 0x323   : > { %2313 = vst.msk [vmem:[#allocation3 + $0x10] sm:$0xff] %vm2310_vm13, %v2219_v5 }
 0x324   : > { %2043 = vrot.lane.b32.xlu1 %v11649_v57, %s10995_s21 }
 0x325   : > { %v2217_v31 = vpop.permute.xlu1 %2216  ;;  %2230 = vrot.lane.b32.xlu0 %v11586_v39, %s10996_s22 }
 0x326   : > { %v2408_v7 = vpop.permute.xlu0 %2407  ;;  %2312 = vst.msk [vmem:[#allocation3 + $0x8] sm:$0xff] %vm2310_vm13, %v2217_v31 }
 0x327   : > { %2504 = vst.msk [vmem:[#allocation3] sm:$0xff] %vm2503_vm14, %v2408_v7 }
 0x328   : > { %2232 = vrot.lane.b32.xlu1 %v11571_v59, %s10996_s22 }
 0x329   : > { %v2221_v62 = vpop.permute.xlu1 %2220  ;;  %2234 = vrot.lane.b32.xlu0 %v11633_v29, %s10996_s22 }
 0x32a   : > { %v1064_v0 = vpop.permute.xlu0 %1063  ;;  %2314 = vst.msk [vmem:[#allocation3 + $0x18] sm:$0xff] %vm2310_vm13, %v2221_v62 }
 0x32b   : > { %1156 = vst.msk [vmem:[#allocation3 + $0x20] sm:$0xff] %vm1151_vm7, %v1064_v0 }
 0x32c   : > { %2236 = vrot.lane.b32.xlu1 %v11651_v58, %s10996_s22 }
 0x32d   : > { %v2410_v25 = vpop.permute.xlu1 %2409  ;;  %2423 = vrot.lane.b32.xlu0 %v11588_v63, %s10997_s27 }
 0x32e   : > { %v2412_v54 = vpop.permute.xlu0 %2411  ;;  %2505 = vst.msk [vmem:[#allocation3 + $0x8] sm:$0xff] %vm2503_vm14, %v2410_v25  ;;  %v2536_v56 = vld [vmem:[#allocation3] sm:$0xff] }
 0x32f   : > { %2506 = vst.msk [vmem:[#allocation3 + $0x10] sm:$0xff] %vm2503_vm14, %v2412_v54 }
 0x330   : > { %2425 = vrot.lane.b32.xlu1 %v11573_v60, %s10997_s27 }
 0x331   : > { %v1066_v59 = vpop.permute.xlu1 %1065  ;;  %1079 = vrot.lane.b32.xlu0 %v11633_v29, %s10990_s16 }
 0x332   : > { %v1068_v39 = vpop.permute.xlu0 %1067  ;;  %1157 = vst.msk [vmem:[#allocation3 + $0x28] sm:$0xff] %vm1151_vm7, %v1066_v59 }
 0x333   : > { %1158 = vst.msk [vmem:[#allocation3 + $0x30] sm:$0xff] %vm1151_vm7, %v1068_v39  ;;  %v15923_v39 = vld [vmem:[#allocation5_spill] sm:$0xff] }
 0x334   : > { %1081 = vrot.lane.b32.xlu1 %v11651_v58, %s10990_s16 }
 0x335   : > { %v2414_v16 = vpop.permute.xlu1 %2413  ;;  %v2537_v55 = vld [vmem:[#allocation3 + $0x8] sm:$0xff]  ;;  %2427 = vrot.lane.b32.xlu0 %v11635_v48, %s10997_s27 }
 0x336   : > { %v1257_v52 = vpop.permute.xlu0 %1256  ;;  %2507 = vst.msk [vmem:[#allocation3 + $0x18] sm:$0xff] %vm2503_vm14, %v2414_v16  ;;  %v2568_v60 = vpack.c.bf16 %v2537_v55, %v2536_v56  ;;  %v2538_v7 = vld [vmem:[#allocation3 + $0x10] sm:$0xff] }
 0x337   : > { %1349 = vst.msk [vmem:[#allocation3 + $0x20] sm:$0xff] %vm1344_vm8, %v1257_v52  ;;  %v15924_v52 = vld [vmem:[#allocation4_spill] sm:$0xff]  ;;  %v15925_v55 = vld [vmem:[#allocation6_spill] sm:$0xff] }
 0x338   : > { %9878 = vmatprep.mubr.msk.bf16.mxu0 %vm2619_vm15, %v2568_v60  ;;  %2429 = vrot.lane.b32.xlu1 %v11653_v24, %s10997_s27 }
 0x339   : > { %v1070_v63 = vpop.permute.xlu1 %1069  ;;  %1083 = vrot.lane.b32.xlu0 %v11683_v37, %s10990_s16 }
 0x33a   : > { %v1261_v29 = vpop.permute.xlu0 %1260  ;;  %1159 = vst.msk [vmem:[#allocation3 + $0x38] sm:$0xff] %vm1151_vm7, %v1070_v63  ;;  %v15926_v63 = vld [vmem:[#allocation7_spill] sm:$0xff] }
 0x33b   : > { %1351 = vst.msk [vmem:[#allocation3 + $0x30] sm:$0xff] %vm1344_vm8, %v1261_v29 }
 0x33c   : > { %1085 = vrot.lane.b32.xlu1 %v11702_v33, %s10990_s16 }
 0x33d   : > { %v1259_v5 = vpop.permute.xlu1 %1258  ;;  %v2539_v62 = vld [vmem:[#allocation3 + $0x18] sm:$0xff]  ;;  %1272 = vrot.lane.b32.xlu0 %v11635_v48, %s10991_s17 }
 0x33e   : > { %v1450_v31 = vpop.permute.xlu0 %1449  ;;  %1350 = vst.msk [vmem:[#allocation3 + $0x28] sm:$0xff] %vm1344_vm8, %v1259_v5  ;;  %v2569_v0 = vpack.c.bf16 %v2539_v62, %v2538_v7  ;;  %v15927_v7 = vld [vmem:[#allocation8_spill] sm:$0xff] }
 0x33f   : > { %1542 = vst.msk [vmem:[#allocation3 + $0x20] sm:$0xff] %vm1537_vm9, %v1450_v31 }
 0x340   : > { %9879 = vmatmul.mubr.msk.bf16.vlgmr.msra.gmra.mxu0 %vm2619_vm15, %v2569_v0  ;;  %1274 = vrot.lane.b32.xlu1 %v11653_v24, %s10991_s17 }
 0x341   : > { %v1263_v25 = vpop.permute.xlu1 %1262  ;;  %1276 = vrot.lane.b32.xlu0 %v11685_v49, %s10991_s17 }
 0x342   : > { %v1454_v54 = vpop.permute.xlu0 %1453  ;;  %1352 = vst.msk [vmem:[#allocation3 + $0x38] sm:$0xff] %vm1344_vm8, %v1263_v25 }
 0x343   : > { %1544 = vst.msk [vmem:[#allocation3 + $0x30] sm:$0xff] %vm1537_vm9, %v1454_v54  ;;  %v15928_v54 = vld [vmem:[#allocation9_spill] sm:$0xff] }
 0x344   : > { %1278 = vrot.lane.b32.xlu1 %v15923_v39, %s10991_s17 }
 0x345   : > { %v1452_v59 = vpop.permute.xlu1 %1451  ;;  %1465 = vrot.lane.b32.xlu0 %v11649_v57, %s10992_s18 }
 0x346   : > { %v1643_v48 = vpop.permute.xlu0 %1642  ;;  %1543 = vst.msk [vmem:[#allocation3 + $0x28] sm:$0xff] %vm1537_vm9, %v1452_v59 }
 0x347   : > { %1735 = vst.msk [vmem:[#allocation3 + $0x20] sm:$0xff] %vm1730_vm10, %v1643_v48 }
 0x348   : > { %1467 = vrot.lane.b32.xlu1 %v15924_v52, %s10992_s18 }
 0x349   : > { %v1456_v16 = vpop.permute.xlu1 %1455  ;;  %1469 = vrot.lane.b32.xlu0 %v15925_v55, %s10992_s18 }
 0x34a   : > { %v1647_v56 = vpop.permute.xlu0 %1646  ;;  %1545 = vst.msk [vmem:[#allocation3 + $0x38] sm:$0xff] %vm1537_vm9, %v1456_v16 }
 0x34b   : > { %1737 = vst.msk [vmem:[#allocation3 + $0x30] sm:$0xff] %vm1730_vm10, %v1647_v56 }
 0x34c   : > { %1471 = vrot.lane.b32.xlu1 %v15926_v63, %s10992_s18 }
 0x34d   : > { %v1645_v60 = vpop.permute.xlu1 %1644  ;;  %1658 = vrot.lane.b32.xlu0 %v11651_v58, %s10993_s19 }
 0x34e   : > { %v1836_v29 = vpop.permute.xlu0 %1835  ;;  %1736 = vst.msk [vmem:[#allocation3 + $0x28] sm:$0xff] %vm1730_vm10, %v1645_v60 }
 0x34f   : > { %1928 = vst.msk [vmem:[#allocation3 + $0x20] sm:$0xff] %vm1923_vm11, %v1836_v29 }
 0x350   : > { %1660 = vrot.lane.b32.xlu1 %v11683_v37, %s10993_s19 }
 0x351   : > { %v1649_v57 = vpop.permute.xlu1 %1648  ;;  %1662 = vrot.lane.b32.xlu0 %v11702_v33, %s10993_s19 }
 0x352   : > { %v1840_v5 = vpop.permute.xlu0 %1839  ;;  %1738 = vst.msk [vmem:[#allocation3 + $0x38] sm:$0xff] %vm1730_vm10, %v1649_v57 }
 0x353   : > { %1930 = vst.msk [vmem:[#allocation3 + $0x30] sm:$0xff] %vm1923_vm11, %v1840_v5 }
 0x354   : > { %1664 = vrot.lane.b32.xlu1 %v15927_v7, %s10993_s19 }
 0x355   : > { %v1838_v31 = vpop.permute.xlu1 %1837  ;;  %1851 = vrot.lane.b32.xlu0 %v11653_v24, %s10994_s20 }
 0x356   : > { %v2030_v62 = vpop.permute.xlu0 %2029  ;;  %1929 = vst.msk [vmem:[#allocation3 + $0x28] sm:$0xff] %vm1923_vm11, %v1838_v31  ;;  %v12388_v31 = vld [vmem:[#allocation2 + $0x1d2] sm:$0xff] }
 0x357   : > { %2122 = vst.msk [vmem:[#allocation3 + $0x20] sm:$0xff] %vm2117_vm12, %v2030_v62 }
 0x358   : > { %1853 = vrot.lane.b32.xlu1 %v11685_v49, %s10994_s20 }
 0x359   : > { %v1842_v58 = vpop.permute.xlu1 %1841  ;;  %1855 = vrot.lane.b32.xlu0 %v15923_v39, %s10994_s20 }
 0x35a   : > { %v2034_v0 = vpop.permute.xlu0 %2033  ;;  %1931 = vst.msk [vmem:[#allocation3 + $0x38] sm:$0xff] %vm1923_vm11, %v1842_v58  ;;  %v12400_v58 = vld [vmem:[#allocation2 + $0x1e1] sm:$0xff] }
 0x35b   : > { %2124 = vst.msk [vmem:[#allocation3 + $0x30] sm:$0xff] %vm2117_vm12, %v2034_v0 }
 0x35c   : > { %1857 = vrot.lane.b32.xlu1 %v15928_v54, %s10994_s20 }
 0x35d   : > { %v2032_v25 = vpop.permute.xlu1 %2031  ;;  %2045 = vrot.lane.b32.xlu0 %v15924_v52, %s10995_s21 }
 0x35e   : > { %v2223_v59 = vpop.permute.xlu0 %2222  ;;  %2123 = vst.msk [vmem:[#allocation3 + $0x28] sm:$0xff] %vm2117_vm12, %v2032_v25 }
 0x35f   : > { %2315 = vst.msk [vmem:[#allocation3 + $0x20] sm:$0xff] %vm2310_vm13, %v2223_v59  ;;  %v12404_v59 = vld [vmem:[#allocation2 + $0x1e2] sm:$0xff] }
 0x360   : > { %2047 = vrot.lane.b32.xlu1 %v15925_v55, %s10995_s21  ;;  %5075 = vst.msk [vmem:[#allocation2 + $0x1e8] sm:$0x3] %vm619_vm2, %v15910_v38 }
 0x361   : > { %v2036_v24 = vpop.permute.xlu1 %2035  ;;  %2049 = vrot.lane.b32.xlu0 %v15926_v63, %s10995_s21 }
 0x362   : > { %v2227_v48 = vpop.permute.xlu0 %2226  ;;  %2125 = vst.msk [vmem:[#allocation3 + $0x38] sm:$0xff] %vm2117_vm12, %v2036_v24 }
 0x363   : > { %2317 = vst.msk [vmem:[#allocation3 + $0x30] sm:$0xff] %vm2310_vm13, %v2227_v48 }
 0x364   : > { %2051 = vrot.lane.b32.xlu1 %v12160_v8, %s10995_s21  ;;  %v943_v8 = vld [vmem:[#allocation2 + $0x140] sm:$0xff] }
 0x365   : > { %v2225_v16 = vpop.permute.xlu1 %2224  ;;  %2238 = vrot.lane.b32.xlu0 %v11683_v37, %s10996_s22  ;;  %975 = vst.msk [vmem:[#allocation3 + $0x80] sm:$0xff] %vm617_vm1, %v943_v8  ;;  %5054 = vst.msk [vmem:[#allocation2 + $0x140] sm:$0xff] %vm617_vm1, %v15910_v38  ;;  %v15931_v8 = vld [vmem:[#allocation10_spill] sm:$0xff] }
 0x366   : > { %v2416_v56 = vpop.permute.xlu0 %2415  ;;  %2316 = vst.msk [vmem:[#allocation3 + $0x28] sm:$0xff] %vm2310_vm13, %v2225_v16 }
 0x367   : > { %2508 = vst.msk [vmem:[#allocation3 + $0x20] sm:$0xff] %vm2503_vm14, %v2416_v56  ;;  %v15929_v56 = vld [vmem:[#allocation13_spill] sm:$0xff] }
 0x368   : > { %2240 = vrot.lane.b32.xlu1 %v11702_v33, %s10996_s22 }
 0x369   : > { %v2229_v52 = vpop.permute.xlu1 %2228  ;;  %2242 = vrot.lane.b32.xlu0 %v15927_v7, %s10996_s22 }
 0x36a   : > { %v1072_v55 = vpop.permute.xlu0 %1071  ;;  %2318 = vst.msk [vmem:[#allocation3 + $0x38] sm:$0xff] %vm2310_vm13, %v2229_v52 }
 0x36b   : > { %1160 = vst.msk [vmem:[#allocation3 + $0x40] sm:$0xff] %vm1151_vm7, %v1072_v55 }
 0x36c   : > { %2244 = vrot.lane.b32.xlu1 %v12162_v2, %s10996_s22 }
 0x36d   : > { %v2418_v60 = vpop.permute.xlu1 %2417  ;;  %2431 = vrot.lane.b32.xlu0 %v11685_v49, %s10997_s27 }
 0x36e   : > { %v2420_v37 = vpop.permute.xlu0 %2419  ;;  %2509 = vst.msk [vmem:[#allocation3 + $0x28] sm:$0xff] %vm2503_vm14, %v2418_v60  ;;  %v2540_v57 = vld [vmem:[#allocation3 + $0x20] sm:$0xff] }
 0x36f   : > { %2510 = vst.msk [vmem:[#allocation3 + $0x30] sm:$0xff] %vm2503_vm14, %v2420_v37  ;;  %v15932_v37 = vld [vmem:[#allocation14_spill] sm:$0xff] }
 0x370   : > { %2433 = vrot.lane.b32.xlu1 %v15923_v39, %s10997_s27  ;;  %v12384_v39 = vld [vmem:[#allocation2 + $0x1d0] sm:$0xff] }
 0x371   : > { %v1074_v33 = vpop.permute.xlu1 %1073  ;;  %1087 = vrot.lane.b32.xlu0 %v12188_v10, %s10990_s16  ;;  %v12386_v10 = vld [vmem:[#allocation2 + $0x1d1] sm:$0xff] }
 0x372   : > { %v1076_v63 = vpop.permute.xlu0 %1075  ;;  %1161 = vst.msk [vmem:[#allocation3 + $0x48] sm:$0xff] %vm1151_vm7, %v1074_v33 }
 0x373   : > { %1162 = vst.msk [vmem:[#allocation3 + $0x50] sm:$0xff] %vm1151_vm7, %v1076_v63  ;;  %v15933_v63 = vld [vmem:[#allocation12_spill] sm:$0xff] }
 0x374   : > { %1089 = vrot.lane.b32.xlu1 %v11752_v30, %s10990_s16  ;;  %5072 = vst.msk [vmem:[#allocation2 + $0x1d0] sm:$0xff] %vm617_vm1, %v15910_v38 }
 0x375   : > { %v2422_v2 = vpop.permute.xlu1 %2421  ;;  %v2541_v5 = vld [vmem:[#allocation3 + $0x28] sm:$0xff]  ;;  %2435 = vrot.lane.b32.xlu0 %v15928_v54, %s10997_s27  ;;  %5073 = vst.msk [vmem:[#allocation2 + $0x1d8] sm:$0x3] %vm619_vm2, %v15910_v38 }
 0x376   : > { %v1265_v29 = vpop.permute.xlu0 %1264  ;;  %2511 = vst.msk [vmem:[#allocation3 + $0x38] sm:$0xff] %vm2503_vm14, %v2422_v2  ;;  %v2570_v49 = vpack.c.bf16 %v2541_v5, %v2540_v57  ;;  %v2542_v25 = vld [vmem:[#allocation3 + $0x30] sm:$0xff] }
 0x377   : > { %1353 = vst.msk [vmem:[#allocation3 + $0x40] sm:$0xff] %vm1344_vm8, %v1265_v29 }
 0x378   : > { %9882 = vmatprep.mubr.msk.bf16.mxu0 %vm2619_vm15, %v2570_v49  ;;  %2437 = vrot.lane.b32.xlu1 %v12164_v3, %s10997_s27 }
 0x379   : > { %v1078_v7 = vpop.permute.xlu1 %1077  ;;  %1091 = vrot.lane.b32.xlu0 %v11782_v26, %s10990_s16 }
 0x37a   : > { %v1269_v62 = vpop.permute.xlu0 %1268  ;;  %1163 = vst.msk [vmem:[#allocation3 + $0x58] sm:$0xff] %vm1151_vm7, %v1078_v7 }
 0x37b   : > { %1355 = vst.msk [vmem:[#allocation3 + $0x50] sm:$0xff] %vm1344_vm8, %v1269_v62 }
 0x37c   : > { %1093 = vrot.lane.b32.xlu1 %v11767_v40, %s10990_s16 }
 0x37d   : > { %v1267_v0 = vpop.permute.xlu1 %1266  ;;  %v2543_v54 = vld [vmem:[#allocation3 + $0x38] sm:$0xff]  ;;  %1280 = vrot.lane.b32.xlu0 %v12190_v20, %s10991_s17 }
 0x37e   : > { %v1458_v3 = vpop.permute.xlu0 %1457  ;;  %1354 = vst.msk [vmem:[#allocation3 + $0x48] sm:$0xff] %vm1344_vm8, %v1267_v0  ;;  %v2571_v24 = vpack.c.bf16 %v2543_v54, %v2542_v25  ;;  %v15930_v20 = vld [vmem:[#allocation11_spill] sm:$0xff]  ;;  %v10418_v54 = vld [vmem:[%s15855_s2 + $0x14] ss:$0 sps:$4 sm:$0x11]  }
 0x37f   : > { %1546 = vst.msk [vmem:[#allocation3 + $0x40] sm:$0xff] %vm1537_vm9, %v1458_v3  ;;  %10379 = vmatprep.subr.msk.bf16.mxu1 %vm15891_vm6, %v10418_v54 }
 0x380   : > { %9883 = vmatmul.mubr.msk.bf16.gmra.mxu0 %vm2619_vm15, %v2571_v24  ;;  %1282 = vrot.lane.b32.xlu1 %v11754_v32, %s10991_s17 }
 0x381   : > { %v1271_v48 = vpop.permute.xlu1 %1270  ;;  %1284 = vrot.lane.b32.xlu0 %v15929_v56, %s10991_s17 }
 0x382   : > { %v1462_v16 = vpop.permute.xlu0 %1461  ;;  %1356 = vst.msk [vmem:[#allocation3 + $0x58] sm:$0xff] %vm1344_vm8, %v1271_v48 }
 0x383   : > { %1548 = vst.msk [vmem:[#allocation3 + $0x50] sm:$0xff] %vm1537_vm9, %v1462_v16  ;;  %v3134_v16 = vsel %vm15891_vm6, %v10418_v54, 0 }
 0x384   : > { %1286 = vrot.lane.b32.xlu1 %v15930_v20, %s10991_s17  ;;  %9911 = vmatpush3.bf16.msra.mxu1 %v3134_v16 }
 0x385   : > { %v1460_v52 = vpop.permute.xlu1 %1459  ;;  %1473 = vrot.lane.b32.xlu0 %v15931_v8, %s10992_s18 }
 0x386   : > { %v1651_v55 = vpop.permute.xlu0 %1650  ;;  %1547 = vst.msk [vmem:[#allocation3 + $0x48] sm:$0xff] %vm1537_vm9, %v1460_v52 }
 0x387   : > { %1739 = vst.msk [vmem:[#allocation3 + $0x40] sm:$0xff] %vm1730_vm10, %v1651_v55 }
 0x388   : > { %1475 = vrot.lane.b32.xlu1 %v15932_v37, %s10992_s18 }
 0x389   : > { %v1464_v60 = vpop.permute.xlu1 %1463  ;;  %1477 = vrot.lane.b32.xlu0 %v15933_v63, %s10992_s18 }
 0x38a   : > { %v1655_v33 = vpop.permute.xlu0 %1654  ;;  %1549 = vst.msk [vmem:[#allocation3 + $0x58] sm:$0xff] %vm1537_vm9, %v1464_v60 }
 0x38b   : > { %1741 = vst.msk [vmem:[#allocation3 + $0x50] sm:$0xff] %vm1730_vm10, %v1655_v33 }
 0x38c   : > { %1479 = vrot.lane.b32.xlu1 %v11810_v43, %s10992_s18 }
 0x38d   : > { %v1653_v2 = vpop.permute.xlu1 %1652  ;;  %1666 = vrot.lane.b32.xlu0 %v11752_v30, %s10993_s19 }
 0x38e   : > { %v1844_v29 = vpop.permute.xlu0 %1843  ;;  %1740 = vst.msk [vmem:[#allocation3 + $0x48] sm:$0xff] %vm1730_vm10, %v1653_v2 }
 0x38f   : > { %1932 = vst.msk [vmem:[#allocation3 + $0x40] sm:$0xff] %vm1923_vm11, %v1844_v29 }
 0x390   : > { %1668 = vrot.lane.b32.xlu1 %v11782_v26, %s10993_s19 }
 0x391   : > { %v1657_v57 = vpop.permute.xlu1 %1656  ;;  %1670 = vrot.lane.b32.xlu0 %v11767_v40, %s10993_s19 }
 0x392   : > { %v1848_v5 = vpop.permute.xlu0 %1847  ;;  %1742 = vst.msk [vmem:[#allocation3 + $0x58] sm:$0xff] %vm1730_vm10, %v1657_v57 }
 0x393   : > { %1934 = vst.msk [vmem:[#allocation3 + $0x50] sm:$0xff] %vm1923_vm11, %v1848_v5 }
 0x394   : > { %1672 = vrot.lane.b32.xlu1 %v11812_v44, %s10993_s19 }
 0x395   : > { %v1846_v49 = vpop.permute.xlu1 %1845  ;;  %1859 = vrot.lane.b32.xlu0 %v11754_v32, %s10994_s20 }
 0x396   : > { %v2038_v7 = vpop.permute.xlu0 %2037  ;;  %1933 = vst.msk [vmem:[#allocation3 + $0x48] sm:$0xff] %vm1923_vm11, %v1846_v49 }
 0x397   : > { %2126 = vst.msk [vmem:[#allocation3 + $0x40] sm:$0xff] %vm2117_vm12, %v2038_v7 }
 0x398   : > { %1861 = vrot.lane.b32.xlu1 %v15929_v56, %s10994_s20 }
 0x399   : > { %v1850_v30 = vpop.permute.xlu1 %1849  ;;  %1863 = vrot.lane.b32.xlu0 %v15930_v20, %s10994_s20 }
 0x39a   : > { %v2042_v62 = vpop.permute.xlu0 %2041  ;;  %1935 = vst.msk [vmem:[#allocation3 + $0x58] sm:$0xff] %vm1923_vm11, %v1850_v30 }
 0x39b   : > { %2128 = vst.msk [vmem:[#allocation3 + $0x50] sm:$0xff] %vm2117_vm12, %v2042_v62 }
 0x39c   : > { %1865 = vrot.lane.b32.xlu1 %v11814_v6, %s10994_s20 }
 0x39d   : > { %v2040_v0 = vpop.permute.xlu1 %2039  ;;  %2053 = vrot.lane.b32.xlu0 %v15932_v37, %s10995_s21 }
 0x39e   : > { %v2231_v3 = vpop.permute.xlu0 %2230  ;;  %2127 = vst.msk [vmem:[#allocation3 + $0x48] sm:$0xff] %vm2117_vm12, %v2040_v0 }
 0x39f   : > { %2319 = vst.msk [vmem:[#allocation3 + $0x40] sm:$0xff] %vm2310_vm13, %v2231_v3 }
 0x3a0   : > { %2055 = vrot.lane.b32.xlu1 %v15933_v63, %s10995_s21 }
 0x3a1   : > { %v2044_v32 = vpop.permute.xlu1 %2043  ;;  %2057 = vrot.lane.b32.xlu0 %v11810_v43, %s10995_s21  ;;  %v10419_v43 = vld [vmem:[%s15855_s2 + $0xc] sm:$0xff]  }
 0x3a2   : > { %v2235_v25 = vpop.permute.xlu0 %2234  ;;  %2129 = vst.msk [vmem:[#allocation3 + $0x58] sm:$0xff] %vm2117_vm12, %v2044_v32  ;;  %9912 = vmatprep.subr.bf16.mxu1 %v10419_v43 }
 0x3a3   : > { %2321 = vst.msk [vmem:[#allocation3 + $0x50] sm:$0xff] %vm2310_vm13, %v2235_v25  ;;  %9913 = vmatpush3.bf16.msra.mxu1 %v10419_v43 }
 0x3a4   : > { %2059 = vrot.lane.b32.xlu1 %v11864_v27, %s10995_s21 }
 0x3a5   : > { %v2233_v24 = vpop.permute.xlu1 %2232  ;;  %2246 = vrot.lane.b32.xlu0 %v11782_v26, %s10996_s22 }
 0x3a6   : > { %v2424_v48 = vpop.permute.xlu0 %2423  ;;  %2320 = vst.msk [vmem:[#allocation3 + $0x48] sm:$0xff] %vm2310_vm13, %v2233_v24 }
 0x3a7   : > { %2512 = vst.msk [vmem:[#allocation3 + $0x40] sm:$0xff] %vm2503_vm14, %v2424_v48 }
 0x3a8   : > { %2248 = vrot.lane.b32.xlu1 %v11767_v40, %s10996_s22 }
 0x3a9   : > { %v2237_v52 = vpop.permute.xlu1 %2236  ;;  %2250 = vrot.lane.b32.xlu0 %v11812_v44, %s10996_s22 }
 0x3aa   : > { %v1080_v55 = vpop.permute.xlu0 %1079  ;;  %2322 = vst.msk [vmem:[#allocation3 + $0x58] sm:$0xff] %vm2310_vm13, %v2237_v52 }
 0x3ab   : > { %1164 = vst.msk [vmem:[#allocation3 + $0x60] sm:$0xff] %vm1151_vm7, %v1080_v55 }
 0x3ac   : > { %2252 = vrot.lane.b32.xlu1 %v11866_v53, %s10996_s22 }
 0x3ad   : > { %v2426_v26 = vpop.permute.xlu1 %2425  ;;  %2439 = vrot.lane.b32.xlu0 %v15929_v56, %s10997_s27 }
 0x3ae   : > { %v2428_v8 = vpop.permute.xlu0 %2427  ;;  %2513 = vst.msk [vmem:[#allocation3 + $0x48] sm:$0xff] %vm2503_vm14, %v2426_v26  ;;  %v2544_v63 = vld [vmem:[#allocation3 + $0x40] sm:$0xff] }
 0x3af   : > { %2514 = vst.msk [vmem:[#allocation3 + $0x50] sm:$0xff] %vm2503_vm14, %v2428_v8 }
 0x3b0   : > { %2441 = vrot.lane.b32.xlu1 %v15930_v20, %s10997_s27 }
 0x3b1   : > { %v1082_v40 = vpop.permute.xlu1 %1081  ;;  %1095 = vrot.lane.b32.xlu0 %v11812_v44, %s10990_s16 }
 0x3b2   : > { %v1084_v60 = vpop.permute.xlu0 %1083  ;;  %1165 = vst.msk [vmem:[#allocation3 + $0x68] sm:$0xff] %vm1151_vm7, %v1082_v40 }
 0x3b3   : > { %1166 = vst.msk [vmem:[#allocation3 + $0x70] sm:$0xff] %vm1151_vm7, %v1084_v60 }
 0x3b4   : > { %1097 = vrot.lane.b32.xlu1 %v11866_v53, %s10990_s16 }
 0x3b5   : > { %v2430_v37 = vpop.permute.xlu1 %2429  ;;  %v2545_v2 = vld [vmem:[#allocation3 + $0x48] sm:$0xff]  ;;  %2443 = vrot.lane.b32.xlu0 %v11814_v6, %s10997_s27 }
 0x3b6   : > { %v1273_v33 = vpop.permute.xlu0 %1272  ;;  %2515 = vst.msk [vmem:[#allocation3 + $0x58] sm:$0xff] %vm2503_vm14, %v2430_v37  ;;  %v2572_v56 = vpack.c.bf16 %v2545_v2, %v2544_v63  ;;  %v2546_v5 = vld [vmem:[#allocation3 + $0x50] sm:$0xff] }
 0x3b7   : > { %1357 = vst.msk [vmem:[#allocation3 + $0x60] sm:$0xff] %vm1344_vm8, %v1273_v33 }
 0x3b8   : > { %9886 = vmatprep.mubr.msk.bf16.mxu0 %vm2619_vm15, %v2572_v56  ;;  %2445 = vrot.lane.b32.xlu1 %v11868_v61, %s10997_s27 }
 0x3b9   : > { %v1086_v20 = vpop.permute.xlu1 %1085  ;;  %1099 = vrot.lane.b32.xlu0 %v11925_v14, %s10990_s16 }
 0x3ba   : > { %v1277_v44 = vpop.permute.xlu0 %1276  ;;  %1167 = vst.msk [vmem:[#allocation3 + $0x78] sm:$0xff] %vm1151_vm7, %v1086_v20  ;;  %v12619_v20 = vld [vmem:[#allocation2 + $0x270] sm:$0xff] }
 0x3bb   : > { %1359 = vst.msk [vmem:[#allocation3 + $0x70] sm:$0xff] %vm1344_vm8, %v1277_v44  ;;  %v12621_v44 = vld [vmem:[#allocation2 + $0x271] sm:$0xff] }
 0x3bc   : > { %1101 = vrot.lane.b32.xlu1 %v11961_v22, %s10990_s16 }
 0x3bd   : > { %v1275_v29 = vpop.permute.xlu1 %1274  ;;  %v2547_v49 = vld [vmem:[#allocation3 + $0x58] sm:$0xff]  ;;  %1288 = vrot.lane.b32.xlu0 %v11814_v6, %s10991_s17 }
 0x3be   : > { %v1466_v57 = vpop.permute.xlu0 %1465  ;;  %1358 = vst.msk [vmem:[#allocation3 + $0x68] sm:$0xff] %vm1344_vm8, %v1275_v29  ;;  %v2573_v7 = vpack.c.bf16 %v2547_v49, %v2546_v5  ;;  %v12623_v29 = vld [vmem:[#allocation2 + $0x272] sm:$0xff] }
 0x3bf   : > { %1550 = vst.msk [vmem:[#allocation3 + $0x60] sm:$0xff] %vm1537_vm9, %v1466_v57 }
 0x3c0   : > { %9887 = vmatmul.mubr.msk.bf16.gmra.mxu0 %vm2619_vm15, %v2573_v7  ;;  %1290 = vrot.lane.b32.xlu1 %v11868_v61, %s10991_s17  ;;  %5092 = vst.msk [vmem:[#allocation2 + $0x270] sm:$0xff] %vm617_vm1, %v15910_v38 }
 0x3c1   : > { %v1279_v30 = vpop.permute.xlu1 %1278  ;;  %1292 = vrot.lane.b32.xlu0 %v11927_v45, %s10991_s17  ;;  %5093 = vst.msk [vmem:[#allocation2 + $0x278] sm:$0x3] %vm619_vm2, %v15910_v38  ;;  %vm3083_vm2 = vcmask 146432  }
 0x3c2   : > { %v1470_v62 = vpop.permute.xlu0 %1469  ;;  %1360 = vst.msk [vmem:[#allocation3 + $0x78] sm:$0xff] %vm1344_vm8, %v1279_v30 }
 0x3c3   : > { %1552 = vst.msk [vmem:[#allocation3 + $0x70] sm:$0xff] %vm1537_vm9, %v1470_v62 }
 0x3c4   : > { %1294 = vrot.lane.b32.xlu1 %v11963_v11, %s10991_s17 }
 0x3c5   : > { %v1468_v0 = vpop.permute.xlu1 %1467  ;;  %1481 = vrot.lane.b32.xlu0 %v11864_v27, %s10992_s18 }
 0x3c6   : > { %v1659_v6 = vpop.permute.xlu0 %1658  ;;  %1551 = vst.msk [vmem:[#allocation3 + $0x68] sm:$0xff] %vm1537_vm9, %v1468_v0 }
 0x3c7   : > { %1743 = vst.msk [vmem:[#allocation3 + $0x60] sm:$0xff] %vm1730_vm10, %v1659_v6 }
 0x3c8   : > { %1483 = vrot.lane.b32.xlu1 %v11929_v41, %s10992_s18 }
 0x3c9   : > { %v1472_v3 = vpop.permute.xlu1 %1471  ;;  %1485 = vrot.lane.b32.xlu0 %v11965_v12, %s10992_s18 }
 0x3ca   : > { %v1663_v32 = vpop.permute.xlu0 %1662  ;;  %1553 = vst.msk [vmem:[#allocation3 + $0x78] sm:$0xff] %vm1537_vm9, %v1472_v3 }
 0x3cb   : > { %1745 = vst.msk [vmem:[#allocation3 + $0x70] sm:$0xff] %vm1730_vm10, %v1663_v32 }
 0x3cc   : > { %1487 = vrot.lane.b32.xlu1 %v11980_v46, %s10992_s18 }
 0x3cd   : > { %v1661_v25 = vpop.permute.xlu1 %1660  ;;  %1674 = vrot.lane.b32.xlu0 %v11866_v53, %s10993_s19 }
 0x3ce   : > { %v1852_v54 = vpop.permute.xlu0 %1851  ;;  %1744 = vst.msk [vmem:[#allocation3 + $0x68] sm:$0xff] %vm1730_vm10, %v1661_v25 }
 0x3cf   : > { %1936 = vst.msk [vmem:[#allocation3 + $0x60] sm:$0xff] %vm1923_vm11, %v1852_v54 }
 0x3d0   : > { %1676 = vrot.lane.b32.xlu1 %v11925_v14, %s10993_s19 }
 0x3d1   : > { %v1665_v27 = vpop.permute.xlu1 %1664  ;;  %1678 = vrot.lane.b32.xlu0 %v11961_v22, %s10993_s19 }
 0x3d2   : > { %v1856_v24 = vpop.permute.xlu0 %1855  ;;  %1746 = vst.msk [vmem:[#allocation3 + $0x78] sm:$0xff] %vm1730_vm10, %v1665_v27 }
 0x3d3   : > { %1938 = vst.msk [vmem:[#allocation3 + $0x70] sm:$0xff] %vm1923_vm11, %v1856_v24 }
 0x3d4   : > { %1680 = vrot.lane.b32.xlu1 %v11982_v23, %s10993_s19 }
 0x3d5   : > { %v1854_v48 = vpop.permute.xlu1 %1853  ;;  %1867 = vrot.lane.b32.xlu0 %v11868_v61, %s10994_s20 }
 0x3d6   : > { %v2046_v16 = vpop.permute.xlu0 %2045  ;;  %1937 = vst.msk [vmem:[#allocation3 + $0x68] sm:$0xff] %vm1923_vm11, %v1854_v48 }
 0x3d7   : > { %2130 = vst.msk [vmem:[#allocation3 + $0x60] sm:$0xff] %vm2117_vm12, %v2046_v16 }
 0x3d8   : > { %1869 = vrot.lane.b32.xlu1 %v11927_v45, %s10994_s20 }
 0x3d9   : > { %v1858_v53 = vpop.permute.xlu1 %1857  ;;  %1871 = vrot.lane.b32.xlu0 %v11963_v11, %s10994_s20 }
 0x3da   : > { %v2050_v43 = vpop.permute.xlu0 %2049  ;;  %1939 = vst.msk [vmem:[#allocation3 + $0x78] sm:$0xff] %vm1923_vm11, %v1858_v53 }
 0x3db   : > { %2132 = vst.msk [vmem:[#allocation3 + $0x70] sm:$0xff] %vm2117_vm12, %v2050_v43 }
 0x3dc   : > { %1873 = vrot.lane.b32.xlu1 %v11984_v34, %s10994_s20 }
 0x3dd   : > { %v2048_v52 = vpop.permute.xlu1 %2047  ;;  %2061 = vrot.lane.b32.xlu0 %v11929_v41, %s10995_s21 }
 0x3de   : > { %v2239_v55 = vpop.permute.xlu0 %2238  ;;  %2131 = vst.msk [vmem:[#allocation3 + $0x68] sm:$0xff] %vm2117_vm12, %v2048_v52 }
 0x3df   : > { %2323 = vst.msk [vmem:[#allocation3 + $0x60] sm:$0xff] %vm2310_vm13, %v2239_v55 }
 0x3e0   : > { %2063 = vrot.lane.b32.xlu1 %v11965_v12, %s10995_s21 }
 0x3e1   : > { %v2052_v61 = vpop.permute.xlu1 %2051  ;;  %2065 = vrot.lane.b32.xlu0 %v11980_v46, %s10995_s21  ;;  %v951_v46 = vld [vmem:[#allocation2 + $0x1e0] sm:$0xff] }
 0x3e2   : > { %v2243_v26 = vpop.permute.xlu0 %2242  ;;  %2133 = vst.msk [vmem:[#allocation3 + $0x78] sm:$0xff] %vm2117_vm12, %v2052_v61 }
 0x3e3   : > { %2325 = vst.msk [vmem:[#allocation3 + $0x70] sm:$0xff] %vm2310_vm13, %v2243_v26 }
 0x3e4   : > { %2067 = vrot.lane.b32.xlu1 %v12384_v39, %s10995_s21  ;;  %983 = vst.msk [vmem:[#allocation3 + $0xc0] sm:$0xff] %vm617_vm1, %v951_v46  ;;  %5074 = vst.msk [vmem:[#allocation2 + $0x1e0] sm:$0xff] %vm617_vm1, %v15910_v38 }
 0x3e5   : > { %v2241_v8 = vpop.permute.xlu1 %2240  ;;  %2254 = vrot.lane.b32.xlu0 %v11925_v14, %s10996_s22 }
 0x3e6   : > { %v2432_v40 = vpop.permute.xlu0 %2431  ;;  %2324 = vst.msk [vmem:[#allocation3 + $0x68] sm:$0xff] %vm2310_vm13, %v2241_v8 }
 0x3e7   : > { %2516 = vst.msk [vmem:[#allocation3 + $0x60] sm:$0xff] %vm2503_vm14, %v2432_v40 }
 0x3e8   : > { %2256 = vrot.lane.b32.xlu1 %v11961_v22, %s10996_s22 }
 0x3e9   : > { %v2245_v41 = vpop.permute.xlu1 %2244  ;;  %2258 = vrot.lane.b32.xlu0 %v11982_v23, %s10996_s22 }
 0x3ea   : > { %v1088_v12 = vpop.permute.xlu0 %1087  ;;  %2326 = vst.msk [vmem:[#allocation3 + $0x78] sm:$0xff] %vm2310_vm13, %v2245_v41 }
 0x3eb   : > { %1168 = vst.msk [vmem:[#allocation3 + $0x80] sm:$0xff] %vm1151_vm7, %v1088_v12 }
 0x3ec   : > { %2260 = vrot.lane.b32.xlu1 %v12386_v10, %s10996_s22 }
 0x3ed   : > { %v2434_v39 = vpop.permute.xlu1 %2433  ;;  %2447 = vrot.lane.b32.xlu0 %v11927_v45, %s10997_s27 }
 0x3ee   : > { %v2436_v14 = vpop.permute.xlu0 %2435  ;;  %2517 = vst.msk [vmem:[#allocation3 + $0x68] sm:$0xff] %vm2503_vm14, %v2434_v39  ;;  %v2548_v37 = vld [vmem:[#allocation3 + $0x60] sm:$0xff] }
 0x3ef   : > { %2518 = vst.msk [vmem:[#allocation3 + $0x70] sm:$0xff] %vm2503_vm14, %v2436_v14 }
 0x3f0   : > { %2449 = vrot.lane.b32.xlu1 %v11963_v11, %s10997_s27 }
 0x3f1   : > { %v1090_v22 = vpop.permute.xlu1 %1089  ;;  %1103 = vrot.lane.b32.xlu0 %v12400_v58, %s10990_s16 }
 0x3f2   : > { %v1092_v23 = vpop.permute.xlu0 %1091  ;;  %1169 = vst.msk [vmem:[#allocation3 + $0x88] sm:$0xff] %vm1151_vm7, %v1090_v22 }
 0x3f3   : > { %1170 = vst.msk [vmem:[#allocation3 + $0x90] sm:$0xff] %vm1151_vm7, %v1092_v23 }
 0x3f4   : > { %1105 = vrot.lane.b32.xlu1 %v12045_v35, %s10990_s16 }
 0x3f5   : > { %v2438_v10 = vpop.permute.xlu1 %2437  ;;  %v2549_v33 = vld [vmem:[#allocation3 + $0x68] sm:$0xff]  ;;  %2451 = vrot.lane.b32.xlu0 %v11984_v34, %s10997_s27 }
 0x3f6   : > { %v1281_v60 = vpop.permute.xlu0 %1280  ;;  %2519 = vst.msk [vmem:[#allocation3 + $0x78] sm:$0xff] %vm2503_vm14, %v2438_v10  ;;  %v2574_v45 = vpack.c.bf16 %v2549_v33, %v2548_v37  ;;  %v2550_v2 = vld [vmem:[#allocation3 + $0x70] sm:$0xff] }
 0x3f7   : > { %1361 = vst.msk [vmem:[#allocation3 + $0x80] sm:$0xff] %vm1344_vm8, %v1281_v60 }
 0x3f8   : > { %9890 = vmatprep.mubr.msk.bf16.mxu0 %vm2619_vm15, %v2574_v45  ;;  %2453 = vrot.lane.b32.xlu1 %v12388_v31, %s10997_s27 }
 0x3f9   : > { %v1094_v11 = vpop.permute.xlu1 %1093  ;;  %1107 = vrot.lane.b32.xlu0 %v12084_v17, %s10990_s16 }
 0x3fa   : > { %v1285_v58 = vpop.permute.xlu0 %1284  ;;  %1171 = vst.msk [vmem:[#allocation3 + $0x98] sm:$0xff] %vm1151_vm7, %v1094_v11 }
 0x3fb   : > { %1363 = vst.msk [vmem:[#allocation3 + $0x90] sm:$0xff] %vm1344_vm8, %v1285_v58 }
 0x3fc   : > { %1109 = vrot.lane.b32.xlu1 %v12063_v42, %s10990_s16 }
 0x3fd   : > { %v1283_v63 = vpop.permute.xlu1 %1282  ;;  %v2551_v56 = vld [vmem:[#allocation3 + $0x78] sm:$0xff]  ;;  %1296 = vrot.lane.b32.xlu0 %v12404_v59, %s10991_s17 }
 0x3fe   : > { %v1474_v34 = vpop.permute.xlu0 %1473  ;;  %1362 = vst.msk [vmem:[#allocation3 + $0x88] sm:$0xff] %vm1344_vm8, %v1283_v63  ;;  %v2575_v31 = vpack.c.bf16 %v2551_v56, %v2550_v2 }
 0x3ff   : > { %1554 = vst.msk [vmem:[#allocation3 + $0x80] sm:$0xff] %vm1537_vm9, %v1474_v34 }
 0x400   : > { %v12629_v57 = vpop.f32.mrf.mxu0  ;;  %9891 = vmatmul.mubr.msk.bf16.gmra.mxu0 %vm2619_vm15, %v2575_v31  ;;  %1298 = vrot.lane.b32.xlu1 %v12047_v4, %s10991_s17 }
 0x401   : > { %v9288_v5 = vmul.f32 -1.442695, %v12629_v57  ;;  %v1287_v59 = vpop.permute.xlu1 %1286  ;;  %1300 = vrot.lane.b32.xlu0 %v12086_v50, %s10991_s17 }
 0x402   : > { %v1478_v49 = vpop.permute.xlu0 %1477  ;;  %1364 = vst.msk [vmem:[#allocation3 + $0x98] sm:$0xff] %vm1344_vm8, %v1287_v59  ;;  %v12637_v7 = vpop.f32.mrf.mxu0 }
 0x403   : > { %1556 = vst.msk [vmem:[#allocation3 + $0x90] sm:$0xff] %vm1537_vm9, %v1478_v49  ;;  %v9286_v38 = vmul.f32 -1.442695, %v12637_v7  ;;  %10436 = vpow2.f32 %v9288_v5 }
 0x404   : > { %v12642_v30 = vpop.f32.mrf.mxu0  ;;  %1302 = vrot.lane.b32.xlu1 %v12065_v21, %s10991_s17 }
 0x405   : > { %10438 = vpow2.f32 %v9286_v38  ;;  %v9289_v62 = vmul.f32 -1.442695, %v12642_v30  ;;  %v1476_v0 = vpop.permute.xlu1 %1475  ;;  %1489 = vrot.lane.b32.xlu0 %v12049_v19, %s10992_s18 }
 0x406   : > { %v1667_v6 = vpop.permute.xlu0 %1666  ;;  %1555 = vst.msk [vmem:[#allocation3 + $0x88] sm:$0xff] %vm1537_vm9, %v1476_v0  ;;  %v12649_v3 = vpop.f32.mrf.mxu0 }
 0x407   : > { %1747 = vst.msk [vmem:[#allocation3 + $0x80] sm:$0xff] %vm1730_vm10, %v1667_v6  ;;  %10440 = vpow2.f32 %v9289_v62  ;;  %v9287_v32 = vmul.f32 -1.442695, %v12649_v3 }
 0x408   : > { %1491 = vrot.lane.b32.xlu1 %v12088_v51, %s10992_s18 }
 0x409   : > { %10442 = vpow2.f32 %v9287_v32  ;;  %v1480_v25 = vpop.permute.xlu1 %1479  ;;  %1493 = vrot.lane.b32.xlu0 %v12067_v47, %s10992_s18 }
 0x40a   : > { %v1671_v54 = vpop.permute.xlu0 %1670  ;;  %1557 = vst.msk [vmem:[#allocation3 + $0x98] sm:$0xff] %vm1537_vm9, %v1480_v25 }
 0x40b   : > { %1749 = vst.msk [vmem:[#allocation3 + $0x90] sm:$0xff] %vm1730_vm10, %v1671_v54 }
 0x40c   : > { %1495 = vrot.lane.b32.xlu1 %v12094_v28, %s10992_s18 }
 0x40d   : > { %v1669_v27 = vpop.permute.xlu1 %1668  ;;  %1682 = vrot.lane.b32.xlu0 %v12045_v35, %s10993_s19 }
 0x40e   : > { %v1860_v19 = vpop.permute.xlu0 %1859  ;;  %1748 = vst.msk [vmem:[#allocation3 + $0x88] sm:$0xff] %vm1730_vm10, %v1669_v27 }
 0x40f   : > { %1940 = vst.msk [vmem:[#allocation3 + $0x80] sm:$0xff] %vm1923_vm11, %v1860_v19 }
 0x410   : > { %v10437_v24 = vpop.eup %10436  ;;  %1684 = vrot.lane.b32.xlu1 %v12084_v17, %s10993_s19 }
 0x411   : > { %v1673_v48 = vpop.permute.xlu1 %1672  ;;  %1686 = vrot.lane.b32.xlu0 %v12063_v42, %s10993_s19  ;;  %v2931_v55 = vadd.f32 1.0, %v10437_v24 }
 0x412   : > { %v1864_v16 = vpop.permute.xlu0 %1863  ;;  %v10439_v53 = vpop.eup %10438  ;;  %1750 = vst.msk [vmem:[#allocation3 + $0x98] sm:$0xff] %vm1730_vm10, %v1673_v48 }
 0x413   : > { %1942 = vst.msk [vmem:[#allocation3 + $0x90] sm:$0xff] %vm1923_vm11, %v1864_v16  ;;  %v2929_v43 = vadd.f32 1.0, %v10439_v53  ;;  %v15936_v16 = vld [vmem:[#allocation16_spill] sm:$0xff] }
 0x414   : > { %v10441_v52 = vpop.eup %10440  ;;  %1688 = vrot.lane.b32.xlu1 %v12096_v18, %s10993_s19 }
 0x415   : > { %v2932_v61 = vadd.f32 1.0, %v10441_v52  ;;  %v1862_v26 = vpop.permute.xlu1 %1861  ;;  %10444 = vrcp.f32 %v2929_v43  ;;  %1875 = vrot.lane.b32.xlu0 %v12047_v4, %s10994_s20 }
 0x416   : > { %v2054_v35 = vpop.permute.xlu0 %2053  ;;  %v10443_v8 = vpop.eup %10442  ;;  %1941 = vst.msk [vmem:[#allocation3 + $0x88] sm:$0xff] %vm1923_vm11, %v1862_v26 }
 0x417   : > { %2134 = vst.msk [vmem:[#allocation3 + $0x80] sm:$0xff] %vm2117_vm12, %v2054_v35  ;;  %10446 = vrcp.f32 %v2932_v61  ;;  %v2930_v40 = vadd.f32 1.0, %v10443_v8  ;;  %v15937_v61 = vld [vmem:[#allocation19_spill] sm:$0xff]  ;;  %v15938_v35 = vld [vmem:[#allocation17_spill] sm:$0xff] }
 0x418   : > { %10448 = vrcp.f32 %v2931_v55  ;;  %1877 = vrot.lane.b32.xlu1 %v12086_v50, %s10994_s20 }
 0x419   : > { %10450 = vrcp.f32 %v2930_v40  ;;  %v1866_v41 = vpop.permute.xlu1 %1865  ;;  %1879 = vrot.lane.b32.xlu0 %v12065_v21, %s10994_s20  ;;  %v15939_v40 = vld [vmem:[#allocation20_spill] sm:$0xff] }
 0x41a   : > { %v2058_v12 = vpop.permute.xlu0 %2057  ;;  %1943 = vst.msk [vmem:[#allocation3 + $0x98] sm:$0xff] %vm1923_vm11, %v1866_v41 }
 0x41b   : > { %2136 = vst.msk [vmem:[#allocation3 + $0x90] sm:$0xff] %vm2117_vm12, %v2058_v12 }
 0x41c   : > { %1881 = vrot.lane.b32.xlu1 %v12098_v1, %s10994_s20 }
 0x41d   : > { %v2056_v46 = vpop.permute.xlu1 %2055  ;;  %2069 = vrot.lane.b32.xlu0 %v12088_v51, %s10995_s21 }
 0x41e   : > { %v2247_v4 = vpop.permute.xlu0 %2246  ;;  %2135 = vst.msk [vmem:[#allocation3 + $0x88] sm:$0xff] %vm2117_vm12, %v2056_v46 }
 0x41f   : > { %2327 = vst.msk [vmem:[#allocation3 + $0x80] sm:$0xff] %vm2310_vm13, %v2247_v4 }
 0x420   : > { %2071 = vrot.lane.b32.xlu1 %v12067_v47, %s10995_s21 }
 0x421   : > { %v2060_v39 = vpop.permute.xlu1 %2059  ;;  %2073 = vrot.lane.b32.xlu0 %v12094_v28, %s10995_s21 }
 0x422   : > { %v2251_v14 = vpop.permute.xlu0 %2250  ;;  %2137 = vst.msk [vmem:[#allocation3 + $0x98] sm:$0xff] %vm2117_vm12, %v2060_v39  ;;  %v10445_v22 = vpop.eup %10444 }
 0x423   : > { %2329 = vst.msk [vmem:[#allocation3 + $0x90] sm:$0xff] %vm2310_vm13, %v2251_v14  ;;  %v3025_v47 = vmul.f32 %v10445_v22, %v12637_v7  ;;  %v15934_v7 = vld [vmem:[#allocation15_spill] sm:$0xff] }
 0x424   : > { %v10447_v23 = vpop.eup %10446  ;;  %2075 = vrot.lane.b32.xlu1 %v12114_v13, %s10995_s21 }
 0x425   : > { %v10449_v10 = vpop.eup %10448  ;;  %v2249_v60 = vpop.permute.xlu1 %2248  ;;  %v3028_v33 = vmul.f32 %v10447_v23, %v12642_v30  ;;  %2262 = vrot.lane.b32.xlu0 %v12084_v17, %s10996_s22 }
 0x426   : > { %v2440_v51 = vpop.permute.xlu0 %2439  ;;  %v10451_v37 = vpop.eup %10450  ;;  %2328 = vst.msk [vmem:[#allocation3 + $0x88] sm:$0xff] %vm2310_vm13, %v2249_v60  ;;  %v3027_v45 = vmul.f32 %v10449_v10, %v12629_v57 }
 0x427   : > { %2520 = vst.msk [vmem:[#allocation3 + $0x80] sm:$0xff] %vm2503_vm14, %v2440_v51  ;;  %v3026_v28 = vmul.f32 %v10451_v37, %v12649_v3 }
 0x428   : > { %2264 = vrot.lane.b32.xlu1 %v12063_v42, %s10996_s22  ;;  %v12710_v34 = vpack.c.bf16 %v3028_v33, %v3027_v45  ;;  %v15941_v45 = vld [vmem:[#allocation22_spill] sm:$0xff] }
 0x429   : > { %v2253_v11 = vpop.permute.xlu1 %2252  ;;  %v12708_v63 = vpack.c.bf16 %v3026_v28, %v3025_v47  ;;  %2266 = vrot.lane.b32.xlu0 %v12096_v18, %s10996_s22 }
 0x42a   : > { %v1096_v58 = vpop.permute.xlu0 %1095  ;;  %2330 = vst.msk [vmem:[#allocation3 + $0x98] sm:$0xff] %vm2310_vm13, %v2253_v11 }
 0x42b   : > { %1172 = vst.msk [vmem:[#allocation3 + $0xa0] sm:$0xff] %vm1151_vm7, %v1096_v58  ;;  %9914 = vmatprep.mubr.msk.bf16.mxu1 %vm3083_vm2, %v12708_v63 }
 0x42c   : > { %9915 = vmatmul.mubr.msk.bf16.vlgmr.msra.gmra.mxu1 %vm3083_vm2, %v12710_v34  ;;  %2268 = vrot.lane.b32.xlu1 %v12116_v36, %s10996_s22 }
 0x42d   : > { %v2442_v17 = vpop.permute.xlu1 %2441  ;;  %2455 = vrot.lane.b32.xlu0 %v12086_v50, %s10997_s27 }
 0x42e   : > { %v2444_v42 = vpop.permute.xlu0 %2443  ;;  %2521 = vst.msk [vmem:[#allocation3 + $0x88] sm:$0xff] %vm2503_vm14, %v2442_v17  ;;  %v2552_v5 = vld [vmem:[#allocation3 + $0x80] sm:$0xff] }
 0x42f   : > { %2522 = vst.msk [vmem:[#allocation3 + $0x90] sm:$0xff] %vm2503_vm14, %v2444_v42 }
 0x430   : > { %2457 = vrot.lane.b32.xlu1 %v12065_v21, %s10997_s27 }
 0x431   : > { %v1098_v2 = vpop.permute.xlu1 %1097  ;;  %1111 = vrot.lane.b32.xlu0 %v12096_v18, %s10990_s16 }
 0x432   : > { %v1100_v56 = vpop.permute.xlu0 %1099  ;;  %1173 = vst.msk [vmem:[#allocation3 + $0xa8] sm:$0xff] %vm1151_vm7, %v1098_v2 }
 0x433   : > { %1174 = vst.msk [vmem:[#allocation3 + $0xb0] sm:$0xff] %vm1151_vm7, %v1100_v56 }
 0x434   : > { %1113 = vrot.lane.b32.xlu1 %v12116_v36, %s10990_s16 }
 0x435   : > { %v2446_v31 = vpop.permute.xlu1 %2445  ;;  %v2553_v59 = vld [vmem:[#allocation3 + $0x88] sm:$0xff]  ;;  %2459 = vrot.lane.b32.xlu0 %v12098_v1, %s10997_s27 }
 0x436   : > { %v1289_v57 = vpop.permute.xlu0 %1288  ;;  %2523 = vst.msk [vmem:[#allocation3 + $0x98] sm:$0xff] %vm2503_vm14, %v2446_v31  ;;  %v2576_v21 = vpack.c.bf16 %v2553_v59, %v2552_v5  ;;  %v2554_v30 = vld [vmem:[#allocation3 + $0x90] sm:$0xff] }
 0x437   : > { %1365 = vst.msk [vmem:[#allocation3 + $0xa0] sm:$0xff] %vm1344_vm8, %v1289_v57 }
 0x438   : > { %9894 = vmatprep.mubr.msk.bf16.mxu0 %vm2619_vm15, %v2576_v21  ;;  %2461 = vrot.lane.b32.xlu1 %v12122_v9, %s10997_s27 }
 0x439   : > { %v1102_v50 = vpop.permute.xlu1 %1101  ;;  %1115 = vrot.lane.b32.xlu0 %v12144_v15, %s10990_s16 }
 0x43a   : > { %v1293_v18 = vpop.permute.xlu0 %1292  ;;  %1175 = vst.msk [vmem:[#allocation3 + $0xb8] sm:$0xff] %vm1151_vm7, %v1102_v50 }
 0x43b   : > { %1367 = vst.msk [vmem:[#allocation3 + $0xb0] sm:$0xff] %vm1344_vm8, %v1293_v18 }
 0x43c   : > { %1117 = vrot.lane.b32.xlu1 %v15934_v7, %s10990_s16 }
 0x43d   : > { %v1291_v49 = vpop.permute.xlu1 %1290  ;;  %v2555_v62 = vld [vmem:[#allocation3 + $0x98] sm:$0xff]  ;;  %1304 = vrot.lane.b32.xlu0 %v12098_v1, %s10991_s17  ;;  %v15935_v1 = vld [vmem:[#allocation18_spill] sm:$0xff] }
 0x43e   : > { %v1482_v38 = vpop.permute.xlu0 %1481  ;;  %1366 = vst.msk [vmem:[#allocation3 + $0xa8] sm:$0xff] %vm1344_vm8, %v1291_v49  ;;  %v2577_v0 = vpack.c.bf16 %v2555_v62, %v2554_v30 }
 0x43f   : > { %1558 = vst.msk [vmem:[#allocation3 + $0xa0] sm:$0xff] %vm1537_vm9, %v1482_v38 }
 0x440   : > { %v12751_v6 = vpop.f32.mrf.mxu0  ;;  %9895 = vmatmul.mubr.msk.bf16.gmra.mxu0 %vm2619_vm15, %v2577_v0  ;;  %1306 = vrot.lane.b32.xlu1 %v12122_v9, %s10991_s17 }
 0x441   : > { %v9292_v3 = vmul.f32 -1.442695, %v12751_v6  ;;  %v1295_v32 = vpop.permute.xlu1 %1294  ;;  %1308 = vrot.lane.b32.xlu0 %v15935_v1, %s10991_s17 }
 0x442   : > { %v1486_v25 = vpop.permute.xlu0 %1485  ;;  %1368 = vst.msk [vmem:[#allocation3 + $0xb8] sm:$0xff] %vm1344_vm8, %v1295_v32  ;;  %v12759_v54 = vpop.f32.mrf.mxu0 }
 0x443   : > { %1560 = vst.msk [vmem:[#allocation3 + $0xb0] sm:$0xff] %vm1537_vm9, %v1486_v25  ;;  %v9290_v27 = vmul.f32 -1.442695, %v12759_v54  ;;  %10452 = vpow2.f32 %v9292_v3 }
 0x444   : > { %v12764_v19 = vpop.f32.mrf.mxu0  ;;  %1310 = vrot.lane.b32.xlu1 %v15936_v16, %s10991_s17 }
 0x445   : > { %10454 = vpow2.f32 %v9290_v27  ;;  %v9293_v24 = vmul.f32 -1.442695, %v12764_v19  ;;  %v1484_v48 = vpop.permute.xlu1 %1483  ;;  %1497 = vrot.lane.b32.xlu0 %v12114_v13, %s10992_s18 }
 0x446   : > { %v1675_v53 = vpop.permute.xlu0 %1674  ;;  %1559 = vst.msk [vmem:[#allocation3 + $0xa8] sm:$0xff] %vm1537_vm9, %v1484_v48  ;;  %v12771_v43 = vpop.f32.mrf.mxu0 }
 0x447   : > { %1751 = vst.msk [vmem:[#allocation3 + $0xa0] sm:$0xff] %vm1730_vm10, %v1675_v53  ;;  %10456 = vpow2.f32 %v9293_v24  ;;  %v9291_v52 = vmul.f32 -1.442695, %v12771_v43  ;;  %v12878_v53 = vld [vmem:[%s15855_s2 + $0x18] sm:$0xff]  }
 0x448   : > { %1499 = vrot.lane.b32.xlu1 %v15937_v61, %s10992_s18 }
 0x449   : > { %10458 = vpow2.f32 %v9291_v52  ;;  %v1488_v55 = vpop.permute.xlu1 %1487  ;;  %1501 = vrot.lane.b32.xlu0 %v15938_v35, %s10992_s18 }
 0x44a   : > { %v1679_v26 = vpop.permute.xlu0 %1678  ;;  %1561 = vst.msk [vmem:[#allocation3 + $0xb8] sm:$0xff] %vm1537_vm9, %v1488_v55 }
 0x44b   : > { %1753 = vst.msk [vmem:[#allocation3 + $0xb0] sm:$0xff] %vm1730_vm10, %v1679_v26 }
 0x44c   : > { %1503 = vrot.lane.b32.xlu1 %v15939_v40, %s10992_s18 }
 0x44d   : > { %v1677_v8 = vpop.permute.xlu1 %1676  ;;  %1690 = vrot.lane.b32.xlu0 %v12116_v36, %s10993_s19  ;;  %v15940_v36 = vld [vmem:[#allocation21_spill] sm:$0xff] }
 0x44e   : > { %v1868_v13 = vpop.permute.xlu0 %1867  ;;  %1752 = vst.msk [vmem:[#allocation3 + $0xa8] sm:$0xff] %vm1730_vm10, %v1677_v8 }
 0x44f   : > { %1944 = vst.msk [vmem:[#allocation3 + $0xa0] sm:$0xff] %vm1923_vm11, %v1868_v13 }
 0x450   : > { %v10453_v41 = vpop.eup %10452  ;;  %1692 = vrot.lane.b32.xlu1 %v12144_v15, %s10993_s19 }
 0x451   : > { %v1681_v12 = vpop.permute.xlu1 %1680  ;;  %1694 = vrot.lane.b32.xlu0 %v15934_v7, %s10993_s19  ;;  %v2935_v22 = vadd.f32 1.0, %v10453_v41 }
 0x452   : > { %v1872_v46 = vpop.permute.xlu0 %1871  ;;  %v10455_v4 = vpop.eup %10454  ;;  %1754 = vst.msk [vmem:[#allocation3 + $0xb8] sm:$0xff] %vm1730_vm10, %v1681_v12 }
 0x453   : > { %1946 = vst.msk [vmem:[#allocation3 + $0xb0] sm:$0xff] %vm1923_vm11, %v1872_v46  ;;  %v2933_v39 = vadd.f32 1.0, %v10455_v4 }
 0x454   : > { %v10457_v14 = vpop.eup %10456  ;;  %1696 = vrot.lane.b32.xlu1 %v15940_v36, %s10993_s19 }
 0x455   : > { %v2936_v23 = vadd.f32 1.0, %v10457_v14  ;;  %v1870_v10 = vpop.permute.xlu1 %1869  ;;  %10460 = vrcp.f32 %v2933_v39  ;;  %1883 = vrot.lane.b32.xlu0 %v12122_v9, %s10994_s20 }
 0x456   : > { %v2062_v60 = vpop.permute.xlu0 %2061  ;;  %v10459_v51 = vpop.eup %10458  ;;  %1945 = vst.msk [vmem:[#allocation3 + $0xa8] sm:$0xff] %vm1923_vm11, %v1870_v10 }
 0x457   : > { %2138 = vst.msk [vmem:[#allocation3 + $0xa0] sm:$0xff] %vm2117_vm12, %v2062_v60  ;;  %10462 = vrcp.f32 %v2936_v23  ;;  %v2934_v37 = vadd.f32 1.0, %v10459_v51 }
 0x458   : > { %10464 = vrcp.f32 %v2935_v22  ;;  %1885 = vrot.lane.b32.xlu1 %v15935_v1, %s10994_s20 }
 0x459   : > { %10466 = vrcp.f32 %v2934_v37  ;;  %v1874_v33 = vpop.permute.xlu1 %1873  ;;  %1887 = vrot.lane.b32.xlu0 %v15936_v16, %s10994_s20 }
 0x45a   : > { %v2066_v47 = vpop.permute.xlu0 %2065  ;;  %1947 = vst.msk [vmem:[#allocation3 + $0xb8] sm:$0xff] %vm1923_vm11, %v1874_v33 }
 0x45b   : > { %2140 = vst.msk [vmem:[#allocation3 + $0xb0] sm:$0xff] %vm2117_vm12, %v2066_v47 }
 0x45c   : > { %1889 = vrot.lane.b32.xlu1 %v15941_v45, %s10994_s20 }
 0x45d   : > { %v2064_v28 = vpop.permute.xlu1 %2063  ;;  %2077 = vrot.lane.b32.xlu0 %v15937_v61, %s10995_s21 }
 0x45e   : > { %v2255_v9 = vpop.permute.xlu0 %2254  ;;  %2139 = vst.msk [vmem:[#allocation3 + $0xa8] sm:$0xff] %vm2117_vm12, %v2064_v28 }
 0x45f   : > { %2331 = vst.msk [vmem:[#allocation3 + $0xa0] sm:$0xff] %vm2310_vm13, %v2255_v9 }
 0x460   : > { %2079 = vrot.lane.b32.xlu1 %v15938_v35, %s10995_s21 }
 0x461   : > { %v2068_v11 = vpop.permute.xlu1 %2067  ;;  %2081 = vrot.lane.b32.xlu0 %v15939_v40, %s10995_s21 }
 0x462   : > { %v2259_v58 = vpop.permute.xlu0 %2258  ;;  %2141 = vst.msk [vmem:[#allocation3 + $0xb8] sm:$0xff] %vm2117_vm12, %v2068_v11  ;;  %v10461_v17 = vpop.eup %10460 }
 0x463   : > { %2333 = vst.msk [vmem:[#allocation3 + $0xb0] sm:$0xff] %vm2310_vm13, %v2259_v58  ;;  %v3029_v59 = vmul.f32 %v10461_v17, %v12759_v54 }
 0x464   : > { %v10463_v42 = vpop.eup %10462  ;;  %2083 = vrot.lane.b32.xlu1 %v12619_v20, %s10995_s21 }
 0x465   : > { %v10465_v2 = vpop.eup %10464  ;;  %v2257_v56 = vpop.permute.xlu1 %2256  ;;  %v3032_v5 = vmul.f32 %v10463_v42, %v12764_v19  ;;  %2270 = vrot.lane.b32.xlu0 %v12144_v15, %s10996_s22 }
 0x466   : > { %v2448_v31 = vpop.permute.xlu0 %2447  ;;  %v10467_v57 = vpop.eup %10466  ;;  %2332 = vst.msk [vmem:[#allocation3 + $0xa8] sm:$0xff] %vm2310_vm13, %v2257_v56  ;;  %v3031_v50 = vmul.f32 %v10465_v2, %v12751_v6 }
 0x467   : > { %2524 = vst.msk [vmem:[#allocation3 + $0xa0] sm:$0xff] %vm2503_vm14, %v2448_v31  ;;  %v3030_v21 = vmul.f32 %v10467_v57, %v12771_v43 }
 0x468   : > { %2272 = vrot.lane.b32.xlu1 %v15934_v7, %s10996_s22  ;;  %v12832_v38 = vpack.c.bf16 %v3032_v5, %v3031_v50 }
 0x469   : > { %v12828_v18 = vpack.c.bf16 %v3030_v21, %v3029_v59  ;;  %v2261_v20 = vpop.permute.xlu1 %2260  ;;  %2274 = vrot.lane.b32.xlu0 %v15940_v36, %s10996_s22 }
 0x46a   : > { %v1104_v49 = vpop.permute.xlu0 %1103  ;;  %2334 = vst.msk [vmem:[#allocation3 + $0xb8] sm:$0xff] %vm2310_vm13, %v2261_v20 }
 0x46b   : > { %1176 = vst.msk [vmem:[#allocation3 + $0xc0] sm:$0xff] %vm1151_vm7, %v1104_v49  ;;  %9918 = vmatprep.mubr.msk.bf16.mxu1 %vm3083_vm2, %v12828_v18 }
 0x46c   : > { %9919 = vmatmul.mubr.msk.bf16.gmra.mxu1 %vm3083_vm2, %v12832_v38  ;;  %2276 = vrot.lane.b32.xlu1 %v12621_v44, %s10996_s22 }
 0x46d   : > { %v2450_v15 = vpop.permute.xlu1 %2449  ;;  %2463 = vrot.lane.b32.xlu0 %v15935_v1, %s10997_s27  ;;  %v12864_v1 = vld [vmem:[%s15855_s2 + $0x20] ss:$0 sps:$4 sm:$0x11]  }
 0x46e   : > { %v2452_v7 = vpop.permute.xlu0 %2451  ;;  %2525 = vst.msk [vmem:[#allocation3 + $0xa8] sm:$0xff] %vm2503_vm14, %v2450_v15  ;;  %v2556_v6 = vld [vmem:[#allocation3 + $0xa0] sm:$0xff]  ;;  %10381 = vmatprep.subr.msk.bf16.mxu0 %vm15891_vm6, %v12864_v1  ;;  %v12870_v48 = vsel %vm15891_vm6, %v12864_v1, 0 }
 0x46f   : > { %2526 = vst.msk [vmem:[#allocation3 + $0xb0] sm:$0xff] %vm2503_vm14, %v2452_v7  ;;  %9983 = vmatpush3.bf16.msra.mxu0 %v12870_v48 }
 0x470   : > { %2465 = vrot.lane.b32.xlu1 %v15936_v16, %s10997_s27  ;;  %9984 = vmatprep.subr.bf16.mxu0 %v12878_v53 }
 0x471   : > { %v1106_v30 = vpop.permute.xlu1 %1105  ;;  %2467 = vrot.lane.b32.xlu0 %v15941_v45, %s10997_s27 }
 0x472   : > { %v1108_v62 = vpop.permute.xlu0 %1107  ;;  %1177 = vst.msk [vmem:[#allocation3 + $0xc8] sm:$0xff] %vm1151_vm7, %v1106_v30 }
 0x473   : > { %1178 = vst.msk [vmem:[#allocation3 + $0xd0] sm:$0xff] %vm1151_vm7, %v1108_v62  ;;  %9985 = vmatpush3.bf16.msra.mxu0 %v12878_v53 }
 0x474   : > { %2469 = vrot.lane.b32.xlu1 %v12623_v29, %s10997_s27 }
 0x475   : > { %v2454_v44 = vpop.permute.xlu1 %2453  ;;  %v2557_v3 = vld [vmem:[#allocation3 + $0xa8] sm:$0xff] }
 0x476   : > { %v1297_v0 = vpop.permute.xlu0 %1296  ;;  %2527 = vst.msk [vmem:[#allocation3 + $0xb8] sm:$0xff] %vm2503_vm14, %v2454_v44  ;;  %v2578_v32 = vpack.c.bf16 %v2557_v3, %v2556_v6  ;;  %v2558_v19 = vld [vmem:[#allocation3 + $0xb0] sm:$0xff] }
 0x477   : > { %1369 = vst.msk [vmem:[#allocation3 + $0xc0] sm:$0xff] %vm1344_vm8, %v1297_v0 }
 0x478   : > { %9898 = vmatprep.mubr.msk.bf16.mxu0 %vm2619_vm15, %v2578_v32 }
 0x479   : > { %v1110_v25 = vpop.permute.xlu1 %1109 }
 0x47a   : > { %v1301_v54 = vpop.permute.xlu0 %1300  ;;  %1179 = vst.msk [vmem:[#allocation3 + $0xd8] sm:$0xff] %vm1151_vm7, %v1110_v25 }
 0x47b   : > { %1371 = vst.msk [vmem:[#allocation3 + $0xd0] sm:$0xff] %vm1344_vm8, %v1301_v54 }
 0x47d   : > { %v1299_v27 = vpop.permute.xlu1 %1298  ;;  %v2559_v24 = vld [vmem:[#allocation3 + $0xb8] sm:$0xff] }
 0x47e   : > { %v1490_v29 = vpop.permute.xlu0 %1489  ;;  %1370 = vst.msk [vmem:[#allocation3 + $0xc8] sm:$0xff] %vm1344_vm8, %v1299_v27  ;;  %v2579_v16 = vpack.c.bf16 %v2559_v24, %v2558_v19 }
 0x47f   : > { %1562 = vst.msk [vmem:[#allocation3 + $0xc0] sm:$0xff] %vm1537_vm9, %v1490_v29 }
 0x480   : > { %v12880_v43 = vpop.f32.mrf.mxu0  ;;  %9899 = vmatmul.mubr.msk.bf16.gmra.mxu0 %vm2619_vm15, %v2579_v16 }
 0x481   : > { %v9296_v52 = vmul.f32 -1.442695, %v12880_v43  ;;  %v1303_v55 = vpop.permute.xlu1 %1302 }
 0x482   : > { %v1494_v61 = vpop.permute.xlu0 %1493  ;;  %1372 = vst.msk [vmem:[#allocation3 + $0xd8] sm:$0xff] %vm1344_vm8, %v1303_v55  ;;  %v12887_v26 = vpop.f32.mrf.mxu0 }
 0x483   : > { %1564 = vst.msk [vmem:[#allocation3 + $0xd0] sm:$0xff] %vm1537_vm9, %v1494_v61  ;;  %v9294_v35 = vmul.f32 -1.442695, %v12887_v26  ;;  %10468 = vpow2.f32 %v9296_v52 }
 0x484   : > { %v9889_v8 = vpop.f32.mrf.mxu0 }
 0x485   : > { %10470 = vpow2.f32 %v9294_v35  ;;  %v9297_v40 = vmul.f32 -1.442695, %v9889_v8  ;;  %v1492_v13 = vpop.permute.xlu1 %1491 }
 0x486   : > { %v1683_v41 = vpop.permute.xlu0 %1682  ;;  %1563 = vst.msk [vmem:[#allocation3 + $0xc8] sm:$0xff] %vm1537_vm9, %v1492_v13  ;;  %v2741_v12 = vpop.f32.mrf.mxu0 }
 0x487   : > { %1755 = vst.msk [vmem:[#allocation3 + $0xc0] sm:$0xff] %vm1730_vm10, %v1683_v41  ;;  %10472 = vpow2.f32 %v9297_v40  ;;  %v9295_v46 = vmul.f32 -1.442695, %v2741_v12 }
 0x489   : > { %10474 = vpow2.f32 %v9295_v46  ;;  %v1496_v4 = vpop.permute.xlu1 %1495 }
 0x48a   : > { %v1687_v39 = vpop.permute.xlu0 %1686  ;;  %1565 = vst.msk [vmem:[#allocation3 + $0xd8] sm:$0xff] %vm1537_vm9, %v1496_v4 }
 0x48b   : > { %1757 = vst.msk [vmem:[#allocation3 + $0xd0] sm:$0xff] %vm1730_vm10, %v1687_v39 }
 0x48d   : > { %v1685_v14 = vpop.permute.xlu1 %1684 }
 0x48e   : > { %v1876_v22 = vpop.permute.xlu0 %1875  ;;  %1756 = vst.msk [vmem:[#allocation3 + $0xc8] sm:$0xff] %vm1730_vm10, %v1685_v14 }
 0x48f   : > { %1948 = vst.msk [vmem:[#allocation3 + $0xc0] sm:$0xff] %vm1923_vm11, %v1876_v22 }
 0x490   : > { %v10469_v23 = vpop.eup %10468 }
 0x491   : > { %v1689_v10 = vpop.permute.xlu1 %1688  ;;  %v2939_v33 = vadd.f32 1.0, %v10469_v23 }
 0x492   : > { %v1880_v36 = vpop.permute.xlu0 %1879  ;;  %v10471_v60 = vpop.eup %10470  ;;  %1758 = vst.msk [vmem:[#allocation3 + $0xd8] sm:$0xff] %vm1730_vm10, %v1689_v10 }
 0x493   : > { %1950 = vst.msk [vmem:[#allocation3 + $0xd0] sm:$0xff] %vm1923_vm11, %v1880_v36  ;;  %v2937_v51 = vadd.f32 1.0, %v10471_v60 }
 0x494   : > { %v10473_v37 = vpop.eup %10472 }
 0x495   : > { %v2940_v47 = vadd.f32 1.0, %v10473_v37  ;;  %v1878_v28 = vpop.permute.xlu1 %1877  ;;  %10476 = vrcp.f32 %v2937_v51 }
 0x496   : > { %v2070_v45 = vpop.permute.xlu0 %2069  ;;  %v10475_v9 = vpop.eup %10474  ;;  %1949 = vst.msk [vmem:[#allocation3 + $0xc8] sm:$0xff] %vm1923_vm11, %v1878_v28 }
 0x497   : > { %2142 = vst.msk [vmem:[#allocation3 + $0xc0] sm:$0xff] %vm2117_vm12, %v2070_v45  ;;  %10478 = vrcp.f32 %v2940_v47  ;;  %v2938_v11 = vadd.f32 1.0, %v10475_v9 }
 0x498   : > { %10480 = vrcp.f32 %v2939_v33 }
 0x499   : > { %10482 = vrcp.f32 %v2938_v11  ;;  %v1882_v58 = vpop.permute.xlu1 %1881 }
 0x49a   : > { %v2074_v17 = vpop.permute.xlu0 %2073  ;;  %1951 = vst.msk [vmem:[#allocation3 + $0xd8] sm:$0xff] %vm1923_vm11, %v1882_v58 }
 0x49b   : > { %2144 = vst.msk [vmem:[#allocation3 + $0xd0] sm:$0xff] %vm2117_vm12, %v2074_v17 }
 0x49d   : > { %v2072_v42 = vpop.permute.xlu1 %2071 }
 0x49e   : > { %v2263_v2 = vpop.permute.xlu0 %2262  ;;  %2143 = vst.msk [vmem:[#allocation3 + $0xc8] sm:$0xff] %vm2117_vm12, %v2072_v42 }
 0x49f   : > { %2335 = vst.msk [vmem:[#allocation3 + $0xc0] sm:$0xff] %vm2310_vm13, %v2263_v2 }
 0x4a1   : > { %v2076_v56 = vpop.permute.xlu1 %2075 }
 0x4a2   : > { %v2267_v31 = vpop.permute.xlu0 %2266  ;;  %2145 = vst.msk [vmem:[#allocation3 + $0xd8] sm:$0xff] %vm2117_vm12, %v2076_v56  ;;  %v10477_v57 = vpop.eup %10476 }
 0x4a3   : > { %2337 = vst.msk [vmem:[#allocation3 + $0xd0] sm:$0xff] %vm2310_vm13, %v2267_v31  ;;  %v3033_v15 = vmul.f32 %v10477_v57, %v12887_v26 }
 0x4a4   : > { %v10479_v5 = vpop.eup %10478 }
 0x4a5   : > { %v10481_v59 = vpop.eup %10480  ;;  %v2265_v21 = vpop.permute.xlu1 %2264  ;;  %v3036_v49 = vmul.f32 %v10479_v5, %v9889_v8 }
 0x4a6   : > { %v2456_v50 = vpop.permute.xlu0 %2455  ;;  %v10483_v20 = vpop.eup %10482  ;;  %2336 = vst.msk [vmem:[#allocation3 + $0xc8] sm:$0xff] %vm2310_vm13, %v2265_v21  ;;  %v3035_v30 = vmul.f32 %v10481_v59, %v12880_v43 }
 0x4a7   : > { %2528 = vst.msk [vmem:[#allocation3 + $0xc0] sm:$0xff] %vm2503_vm14, %v2456_v50  ;;  %v3034_v7 = vmul.f32 %v10483_v20, %v2741_v12 }
 0x4a8   : > { %v12913_v6 = vpack.c.bf16 %v3036_v49, %v3035_v30 }
 0x4a9   : > { %v12911_v62 = vpack.c.bf16 %v3034_v7, %v3033_v15  ;;  %v2269_v44 = vpop.permute.xlu1 %2268 }
 0x4aa   : > { %v1112_v0 = vpop.permute.xlu0 %1111  ;;  %2338 = vst.msk [vmem:[#allocation3 + $0xd8] sm:$0xff] %vm2310_vm13, %v2269_v44 }
 0x4ab   : > { %1180 = vst.msk [vmem:[#allocation3 + $0xe0] sm:$0xff] %vm1151_vm7, %v1112_v0  ;;  %9922 = vmatprep.mubr.msk.bf16.mxu1 %vm3083_vm2, %v12911_v62 }
 0x4ac   : > { %9923 = vmatmul.mubr.msk.bf16.gmra.mxu1 %vm3083_vm2, %v12913_v6 }
 0x4ad   : > { %v2458_v3 = vpop.permute.xlu1 %2457 }
 0x4ae   : > { %v2460_v32 = vpop.permute.xlu0 %2459  ;;  %2529 = vst.msk [vmem:[#allocation3 + $0xc8] sm:$0xff] %vm2503_vm14, %v2458_v3  ;;  %v2560_v19 = vld [vmem:[#allocation3 + $0xc0] sm:$0xff] }
 0x4af   : > { %2530 = vst.msk [vmem:[#allocation3 + $0xd0] sm:$0xff] %vm2503_vm14, %v2460_v32 }
 0x4b1   : > { %v1114_v25 = vpop.permute.xlu1 %1113 }
 0x4b2   : > { %v1116_v54 = vpop.permute.xlu0 %1115  ;;  %1181 = vst.msk [vmem:[#allocation3 + $0xe8] sm:$0xff] %vm1151_vm7, %v1114_v25 }
 0x4b3   : > { %1182 = vst.msk [vmem:[#allocation3 + $0xf0] sm:$0xff] %vm1151_vm7, %v1116_v54 }
 0x4b5   : > { %v2462_v27 = vpop.permute.xlu1 %2461  ;;  %v2561_v24 = vld [vmem:[#allocation3 + $0xc8] sm:$0xff] }
 0x4b6   : > { %v1305_v29 = vpop.permute.xlu0 %1304  ;;  %2531 = vst.msk [vmem:[#allocation3 + $0xd8] sm:$0xff] %vm2503_vm14, %v2462_v27  ;;  %v2580_v16 = vpack.c.bf16 %v2561_v24, %v2560_v19  ;;  %v2562_v26 = vld [vmem:[#allocation3 + $0xd0] sm:$0xff] }
 0x4b7   : > { %1373 = vst.msk [vmem:[#allocation3 + $0xe0] sm:$0xff] %vm1344_vm8, %v1305_v29 }
 0x4b8   : > { %9902 = vmatprep.mubr.msk.bf16.mxu0 %vm2619_vm15, %v2580_v16 }
 0x4b9   : > { %v1118_v43 = vpop.permute.xlu1 %1117 }
 0x4ba   : > { %v1309_v52 = vpop.permute.xlu0 %1308  ;;  %1183 = vst.msk [vmem:[#allocation3 + $0xf8] sm:$0xff] %vm1151_vm7, %v1118_v43 }
 0x4bb   : > { %1375 = vst.msk [vmem:[#allocation3 + $0xf0] sm:$0xff] %vm1344_vm8, %v1309_v52 }
 0x4bd   : > { %v1307_v55 = vpop.permute.xlu1 %1306  ;;  %v2563_v35 = vld [vmem:[#allocation3 + $0xd8] sm:$0xff] }
 0x4be   : > { %v1498_v61 = vpop.permute.xlu0 %1497  ;;  %1374 = vst.msk [vmem:[#allocation3 + $0xe8] sm:$0xff] %vm1344_vm8, %v1307_v55  ;;  %v2581_v8 = vpack.c.bf16 %v2563_v35, %v2562_v26 }
 0x4bf   : > { %1566 = vst.msk [vmem:[#allocation3 + $0xe0] sm:$0xff] %vm1537_vm9, %v1498_v61 }
 0x4c0   : > { %v12932_v40 = vpop.f32.mrf.mxu0  ;;  %9903 = vmatmul.mubr.msk.bf16.gmra.mxu0 %vm2619_vm15, %v2581_v8 }
 0x4c1   : > { %v9300_v13 = vmul.f32 -1.442695, %v12932_v40  ;;  %v1311_v41 = vpop.permute.xlu1 %1310 }
 0x4c2   : > { %v1502_v12 = vpop.permute.xlu0 %1501  ;;  %1376 = vst.msk [vmem:[#allocation3 + $0xf8] sm:$0xff] %vm1344_vm8, %v1311_v41  ;;  %v12938_v46 = vpop.f32.mrf.mxu0 }
 0x4c3   : > { %1568 = vst.msk [vmem:[#allocation3 + $0xf0] sm:$0xff] %vm1537_vm9, %v1502_v12  ;;  %v9298_v4 = vmul.f32 -1.442695, %v12938_v46  ;;  %10484 = vpow2.f32 %v9300_v13 }
 0x4c4   : > { %v9893_v39 = vpop.f32.mrf.mxu0 }
 0x4c5   : > { %10486 = vpow2.f32 %v9298_v4  ;;  %v9301_v14 = vmul.f32 -1.442695, %v9893_v39  ;;  %v1500_v22 = vpop.permute.xlu1 %1499 }
 0x4c6   : > { %v1691_v23 = vpop.permute.xlu0 %1690  ;;  %1567 = vst.msk [vmem:[#allocation3 + $0xe8] sm:$0xff] %vm1537_vm9, %v1500_v22  ;;  %v2757_v10 = vpop.f32.mrf.mxu0 }
 0x4c7   : > { %1759 = vst.msk [vmem:[#allocation3 + $0xe0] sm:$0xff] %vm1730_vm10, %v1691_v23  ;;  %10488 = vpow2.f32 %v9301_v14  ;;  %v9299_v36 = vmul.f32 -1.442695, %v2757_v10 }
 0x4c9   : > { %10490 = vpow2.f32 %v9299_v36  ;;  %v1504_v60 = vpop.permute.xlu1 %1503 }
 0x4ca   : > { %v1695_v51 = vpop.permute.xlu0 %1694  ;;  %1569 = vst.msk [vmem:[#allocation3 + $0xf8] sm:$0xff] %vm1537_vm9, %v1504_v60 }
 0x4cb   : > { %1761 = vst.msk [vmem:[#allocation3 + $0xf0] sm:$0xff] %vm1730_vm10, %v1695_v51 }
 0x4cd   : > { %v1693_v37 = vpop.permute.xlu1 %1692 }
 0x4ce   : > { %v1884_v33 = vpop.permute.xlu0 %1883  ;;  %1760 = vst.msk [vmem:[#allocation3 + $0xe8] sm:$0xff] %vm1730_vm10, %v1693_v37 }
 0x4cf   : > { %1952 = vst.msk [vmem:[#allocation3 + $0xe0] sm:$0xff] %vm1923_vm11, %v1884_v33 }
 0x4d0   : > { %v10485_v47 = vpop.eup %10484 }
 0x4d1   : > { %v1697_v28 = vpop.permute.xlu1 %1696  ;;  %v2943_v17 = vadd.f32 1.0, %v10485_v47 }
 0x4d2   : > { %v1888_v45 = vpop.permute.xlu0 %1887  ;;  %v10487_v9 = vpop.eup %10486  ;;  %1762 = vst.msk [vmem:[#allocation3 + $0xf8] sm:$0xff] %vm1730_vm10, %v1697_v28 }
 0x4d3   : > { %1954 = vst.msk [vmem:[#allocation3 + $0xf0] sm:$0xff] %vm1923_vm11, %v1888_v45  ;;  %v2941_v11 = vadd.f32 1.0, %v10487_v9 }
 0x4d4   : > { %v10489_v58 = vpop.eup %10488 }
 0x4d5   : > { %v2944_v42 = vadd.f32 1.0, %v10489_v58  ;;  %v1886_v2 = vpop.permute.xlu1 %1885  ;;  %10492 = vrcp.f32 %v2941_v11 }
 0x4d6   : > { %v2078_v56 = vpop.permute.xlu0 %2077  ;;  %v10491_v31 = vpop.eup %10490  ;;  %1953 = vst.msk [vmem:[#allocation3 + $0xe8] sm:$0xff] %vm1923_vm11, %v1886_v2 }
 0x4d7   : > { %2146 = vst.msk [vmem:[#allocation3 + $0xe0] sm:$0xff] %vm2117_vm12, %v2078_v56  ;;  %10494 = vrcp.f32 %v2944_v42  ;;  %v2942_v57 = vadd.f32 1.0, %v10491_v31 }
 0x4d8   : > { %10496 = vrcp.f32 %v2943_v17 }
 0x4d9   : > { %10498 = vrcp.f32 %v2942_v57  ;;  %v1890_v5 = vpop.permute.xlu1 %1889  ;;  %v10422_v57 = vld [vmem:[%s15855_s2 + $0x8] ss:$0 sps:$4 sm:$0x11]  }
 0x4da   : > { %v2082_v59 = vpop.permute.xlu0 %2081  ;;  %1955 = vst.msk [vmem:[#allocation3 + $0xf8] sm:$0xff] %vm1923_vm11, %v1890_v5  ;;  %10380 = vmatprep.subr.msk.bf16.mxu1 %vm15891_vm6, %v10422_v57  ;;  %v3310_v5 = vsel %vm15891_vm6, %v10422_v57, 0 }
 0x4db   : > { %2148 = vst.msk [vmem:[#allocation3 + $0xf0] sm:$0xff] %vm2117_vm12, %v2082_v59  ;;  %9947 = vmatpush3.bf16.msra.mxu1 %v3310_v5 }
 0x4dd   : > { %v2080_v21 = vpop.permute.xlu1 %2079 }
 0x4de   : > { %v2271_v50 = vpop.permute.xlu0 %2270  ;;  %2147 = vst.msk [vmem:[#allocation3 + $0xe8] sm:$0xff] %vm2117_vm12, %v2080_v21 }
 0x4df   : > { %2339 = vst.msk [vmem:[#allocation3 + $0xe0] sm:$0xff] %vm2310_vm13, %v2271_v50 }
 0x4e1   : > { %v2084_v20 = vpop.permute.xlu1 %2083 }
 0x4e2   : > { %v2275_v49 = vpop.permute.xlu0 %2274  ;;  %2149 = vst.msk [vmem:[#allocation3 + $0xf8] sm:$0xff] %vm2117_vm12, %v2084_v20  ;;  %v10493_v15 = vpop.eup %10492 }
 0x4e3   : > { %2341 = vst.msk [vmem:[#allocation3 + $0xf0] sm:$0xff] %vm2310_vm13, %v2275_v49  ;;  %v3037_v25 = vmul.f32 %v10493_v15, %v12938_v46 }
 0x4e4   : > { %v10495_v7 = vpop.eup %10494 }
 0x4e5   : > { %v10497_v30 = vpop.eup %10496  ;;  %v2273_v44 = vpop.permute.xlu1 %2272  ;;  %v3040_v32 = vmul.f32 %v10495_v7, %v9893_v39 }
 0x4e6   : > { %v2464_v0 = vpop.permute.xlu0 %2463  ;;  %v10499_v3 = vpop.eup %10498  ;;  %2340 = vst.msk [vmem:[#allocation3 + $0xe8] sm:$0xff] %vm2310_vm13, %v2273_v44  ;;  %v3039_v27 = vmul.f32 %v10497_v30, %v12932_v40 }
 0x4e7   : > { %2532 = vst.msk [vmem:[#allocation3 + $0xe0] sm:$0xff] %vm2503_vm14, %v2464_v0  ;;  %v3038_v54 = vmul.f32 %v10499_v3, %v2757_v10 }
 0x4e8   : > { %v12963_v16 = vpack.c.bf16 %v3040_v32, %v3039_v27 }
 0x4e9   : > { %v12961_v29 = vpack.c.bf16 %v3038_v54, %v3037_v25  ;;  %v2277_v19 = vpop.permute.xlu1 %2276 }
 0x4ea   : > { %v2468_v24 = vpop.permute.xlu0 %2467  ;;  %2342 = vst.msk [vmem:[#allocation3 + $0xf8] sm:$0xff] %vm2310_vm13, %v2277_v19 }
 0x4eb   : > { %2534 = vst.msk [vmem:[#allocation3 + $0xf0] sm:$0xff] %vm2503_vm14, %v2468_v24  ;;  %9926 = vmatprep.mubr.msk.bf16.mxu1 %vm3083_vm2, %v12961_v29 }
 0x4ec   : > { %9927 = vmatmul.mubr.msk.bf16.gmra.mxu1 %vm3083_vm2, %v12963_v16 }
 0x4ed   : > { %v2466_v43 = vpop.permute.xlu1 %2465 }
 0x4ee   : > { %2533 = vst.msk [vmem:[#allocation3 + $0xe8] sm:$0xff] %vm2503_vm14, %v2466_v43  ;;  %v2564_v55 = vld [vmem:[#allocation3 + $0xe0] sm:$0xff] }
 0x4f1   : > { %v2470_v52 = vpop.permute.xlu1 %2469 }
 0x4f2   : > { %2535 = vst.msk [vmem:[#allocation3 + $0xf8] sm:$0xff] %vm2503_vm14, %v2470_v52  ;;  %v2566_v35 = vld [vmem:[#allocation3 + $0xf0] sm:$0xff] }
 0x4f5   : > { %v2565_v61 = vld [vmem:[#allocation3 + $0xe8] sm:$0xff] }
 0x4f6   : > { %v2582_v26 = vpack.c.bf16 %v2565_v61, %v2564_v55  ;;  %v10423_v55 = vld [vmem:[%s15855_s2] sm:$0xff]  }
 0x4f7   : > { %9948 = vmatprep.subr.bf16.mxu1 %v10423_v55 }
 0x4f8   : > { %9906 = vmatprep.mubr.msk.bf16.mxu0 %vm2619_vm15, %v2582_v26  ;;  %9949 = vmatpush3.bf16.msra.mxu1 %v10423_v55 }
 0x4f9   : > { %v2567_v8 = vld [vmem:[#allocation3 + $0xf8] sm:$0xff]  ;;  %10382 = vmatprep.subr.msk.bf16.mxu1 %vm15891_vm6, %v12864_v1  ;;  %vm15895_vm6 = vcmask 1043456  }
 0x4fa   : > { %v2583_v40 = vpack.c.bf16 %v2567_v8, %v2566_v35 }
 0x4fc   : > { %9907 = vmatmul.mubr.msk.bf16.gmra.mxu0 %vm2619_vm15, %v2583_v40 }
 0x4fd   : > { %9986 = vmatprep.mubr.msk.bf16.mxu0 %vm3083_vm2, %v12911_v62 }
 0x500   : > { %v9896_v13 = vpop.f32.mrf.mxu0 }
 0x501   : > { %v9304_v41 = vmul.f32 -1.442695, %v9896_v13 }
 0x502   : > { %v2770_v12 = vpop.f32.mrf.mxu0 }
 0x503   : > { %v9302_v46 = vmul.f32 -1.442695, %v2770_v12  ;;  %10500 = vpow2.f32 %v9304_v41 }
 0x504   : > { %v9897_v4 = vpop.f32.mrf.mxu0  ;;  %9987 = vmatmul.mubr.msk.bf16.vlgmr.msra.gmra.mxu0 %vm3083_vm2, %v12913_v6 }
 0x505   : > { %10502 = vpow2.f32 %v9302_v46  ;;  %v9305_v39 = vmul.f32 -1.442695, %v9897_v4  ;;  %9990 = vmatprep.mubr.msk.bf16.mxu0 %vm3083_vm2, %v12961_v29 }
 0x506   : > { %v2773_v14 = vpop.f32.mrf.mxu0 }
 0x507   : > { %10504 = vpow2.f32 %v9305_v39  ;;  %v9303_v22 = vmul.f32 -1.442695, %v2773_v14 }
 0x509   : > { %10506 = vpow2.f32 %v9303_v22 }
 0x50c   : > { %9991 = vmatmul.mubr.msk.bf16.gmra.mxu0 %vm3083_vm2, %v12963_v16 }
 0x510   : > { %v10501_v23 = vpop.eup %10500 }
 0x511   : > { %v2947_v51 = vadd.f32 1.0, %v10501_v23 }
 0x512   : > { %v10503_v10 = vpop.eup %10502 }
 0x513   : > { %v2945_v36 = vadd.f32 1.0, %v10503_v10 }
 0x514   : > { %v10505_v60 = vpop.eup %10504 }
 0x515   : > { %v2948_v37 = vadd.f32 1.0, %v10505_v60  ;;  %10508 = vrcp.f32 %v2945_v36 }
 0x516   : > { %v10507_v33 = vpop.eup %10506 }
 0x517   : > { %10510 = vrcp.f32 %v2948_v37  ;;  %v2946_v47 = vadd.f32 1.0, %v10507_v33 }
 0x518   : > { %10512 = vrcp.f32 %v2947_v51 }
 0x519   : > { %10514 = vrcp.f32 %v2946_v47 }
 0x522   : > { %v10509_v28 = vpop.eup %10508 }
 0x523   : > { %v3041_v17 = vmul.f32 %v10509_v28, %v2770_v12 }
 0x524   : > { %v10511_v45 = vpop.eup %10510 }
 0x525   : > { %v10513_v9 = vpop.eup %10512  ;;  %v3044_v58 = vmul.f32 %v10511_v45, %v9897_v4 }
 0x526   : > { %v10515_v11 = vpop.eup %10514  ;;  %v3043_v2 = vmul.f32 %v10513_v9, %v9896_v13 }
 0x527   : > { %v3042_v42 = vmul.f32 %v10515_v11, %v2773_v14 }
 0x528   : > { %v12985_v31 = vpack.c.bf16 %v3044_v58, %v3043_v2 }
 0x529   : > { %v12983_v56 = vpack.c.bf16 %v3042_v42, %v3041_v17 }
 0x52b   : > { %9930 = vmatprep.mubr.msk.bf16.mxu1 %vm3083_vm2, %v12983_v56  ;;  %9994 = vmatprep.mubr.msk.bf16.mxu0 %vm3083_vm2, %v12983_v56 }
 0x52c   : > { %9931 = vmatmul.mubr.msk.bf16.gmra.mxu1 %vm3083_vm2, %v12985_v31  ;;  %9995 = vmatmul.mubr.msk.bf16.gmra.mxu0 %vm3083_vm2, %v12985_v31 }
 0x540   : > { %v9900_v59 = vpop.f32.mrf.mxu0 }
 0x541   : > { %v9308_v21 = vmul.f32 -1.442695, %v9900_v59 }
 0x542   : > { %v2786_v50 = vpop.f32.mrf.mxu0 }
 0x543   : > { %v9306_v20 = vmul.f32 -1.442695, %v2786_v50  ;;  %10516 = vpow2.f32 %v9308_v21 }
 0x544   : > { %v9901_v49 = vpop.f32.mrf.mxu0 }
 0x545   : > { %10518 = vpow2.f32 %v9306_v20  ;;  %v9309_v15 = vmul.f32 -1.442695, %v9901_v49 }
 0x546   : > { %v2789_v7 = vpop.f32.mrf.mxu0 }
 0x547   : > { %10520 = vpow2.f32 %v9309_v15  ;;  %v9307_v30 = vmul.f32 -1.442695, %v2789_v7 }
 0x549   : > { %10522 = vpow2.f32 %v9307_v30 }
 0x550   : > { %v10517_v44 = vpop.eup %10516 }
 0x551   : > { %v2951_v25 = vadd.f32 1.0, %v10517_v44 }
 0x552   : > { %v10519_v0 = vpop.eup %10518 }
 0x553   : > { %v2949_v3 = vadd.f32 1.0, %v10519_v0 }
 0x554   : > { %v10521_v32 = vpop.eup %10520 }
 0x555   : > { %v2952_v54 = vadd.f32 1.0, %v10521_v32  ;;  %10524 = vrcp.f32 %v2949_v3 }
 0x556   : > { %v10523_v27 = vpop.eup %10522 }
 0x557   : > { %10526 = vrcp.f32 %v2952_v54  ;;  %v2950_v19 = vadd.f32 1.0, %v10523_v27 }
 0x558   : > { %10528 = vrcp.f32 %v2951_v25 }
 0x559   : > { %10530 = vrcp.f32 %v2950_v19 }
 0x562   : > { %v10525_v24 = vpop.eup %10524 }
 0x563   : > { %v3045_v35 = vmul.f32 %v10525_v24, %v2786_v50 }
 0x564   : > { %v10527_v43 = vpop.eup %10526 }
 0x565   : > { %v10529_v52 = vpop.eup %10528  ;;  %v3048_v26 = vmul.f32 %v10527_v43, %v9901_v49 }
 0x566   : > { %v10531_v61 = vpop.eup %10530  ;;  %v3047_v40 = vmul.f32 %v10529_v52, %v9900_v59 }
 0x567   : > { %v3046_v8 = vmul.f32 %v10531_v61, %v2789_v7 }
 0x568   : > { %v13007_v41 = vpack.c.bf16 %v3048_v26, %v3047_v40 }
 0x569   : > { %v13003_v13 = vpack.c.bf16 %v3046_v8, %v3045_v35 }
 0x56b   : > { %9934 = vmatprep.mubr.msk.bf16.mxu1 %vm3083_vm2, %v13003_v13  ;;  %9998 = vmatprep.mubr.msk.bf16.mxu0 %vm3083_vm2, %v13003_v13 }
 0x56c   : > { %9935 = vmatmul.mubr.msk.bf16.gmra.mxu1 %vm3083_vm2, %v13007_v41  ;;  %9999 = vmatmul.mubr.msk.bf16.gmra.mxu0 %vm3083_vm2, %v13007_v41 }
 0x580   : > { %v9904_v12 = vpop.f32.mrf.mxu0 }
 0x581   : > { %v9312_v46 = vmul.f32 -1.442695, %v9904_v12 }
 0x582   : > { %v2802_v4 = vpop.f32.mrf.mxu0 }
 0x583   : > { %v9310_v39 = vmul.f32 -1.442695, %v2802_v4  ;;  %10532 = vpow2.f32 %v9312_v46 }
 0x584   : > { %v9905_v1 = vpop.f32.mrf.mxu0 }
 0x585   : > { %10534 = vpow2.f32 %v9310_v39  ;;  %v9313_v14 = vmul.f32 -1.442695, %v9905_v1 }
 0x586   : > { %v2805_v22 = vpop.f32.mrf.mxu0 }
 0x587   : > { %10536 = vpow2.f32 %v9313_v14  ;;  %v9311_v23 = vmul.f32 -1.442695, %v2805_v22 }
 0x589   : > { %10538 = vpow2.f32 %v9311_v23 }
 0x590   : > { %v10533_v10 = vpop.eup %10532 }
 0x591   : > { %v2955_v37 = vadd.f32 1.0, %v10533_v10 }
 0x592   : > { %v10535_v36 = vpop.eup %10534 }
 0x593   : > { %v2953_v60 = vadd.f32 1.0, %v10535_v36 }
 0x594   : > { %v10537_v51 = vpop.eup %10536 }
 0x595   : > { %v2956_v33 = vadd.f32 1.0, %v10537_v51  ;;  %10540 = vrcp.f32 %v2953_v60 }
 0x596   : > { %v10539_v47 = vpop.eup %10538 }
 0x597   : > { %10542 = vrcp.f32 %v2956_v33  ;;  %v2954_v28 = vadd.f32 1.0, %v10539_v47 }
 0x598   : > { %10544 = vrcp.f32 %v2955_v37 }
 0x599   : > { %10546 = vrcp.f32 %v2954_v28 }
 0x5a2   : > { %v10541_v45 = vpop.eup %10540 }
 0x5a3   : > { %v3049_v42 = vmul.f32 %v10541_v45, %v2802_v4  ;;  %v15892_v4 = vmov 0.0|0.0  }
 0x5a4   : > { %v10543_v9 = vpop.eup %10542 }
 0x5a5   : > { %v10545_v11 = vpop.eup %10544  ;;  %v3052_v17 = vmul.f32 %v10543_v9, %v9905_v1 }
 0x5a6   : > { %v10547_v58 = vpop.eup %10546  ;;  %v3051_v57 = vmul.f32 %v10545_v11, %v9904_v12 }
 0x5a7   : > { %v3050_v2 = vmul.f32 %v10547_v58, %v2805_v22 }
 0x5a8   : > { %v3071_v59 = vpack.c.bf16 %v3052_v17, %v3051_v57 }
 0x5a9   : > { %v3070_v5 = vpack.c.bf16 %v3050_v2, %v3049_v42 }
 0x5ab   : > { %9938 = vmatprep.mubr.msk.bf16.mxu1 %vm3083_vm2, %v3070_v5  ;;  %10002 = vmatprep.mubr.msk.bf16.mxu0 %vm3083_vm2, %v3070_v5 }
 0x5ac   : > { %9939 = vmatmul.mubr.msk.bf16.gmra.mxu1 %vm3083_vm2, %v3071_v59  ;;  %10003 = vmatmul.mubr.msk.bf16.gmra.mxu0 %vm3083_vm2, %v3071_v59 }
 0x5bc   : > { %v9908_v21 = vpop.f32.mrf.mxu0 }
 0x5bd   : > { %v9316_v50 = vmul.f32 -1.442695, %v9908_v21 }
 0x5be   : > { %v2818_v20 = vpop.f32.mrf.mxu0 }
 0x5bf   : > { %v9314_v49 = vmul.f32 -1.442695, %v2818_v20  ;;  %10548 = vpow2.f32 %v9316_v50 }
 0x5c0   : > { %v9909_v15 = vpop.f32.mrf.mxu0 }
 0x5c1   : > { %10550 = vpow2.f32 %v9314_v49  ;;  %v9317_v7 = vmul.f32 -1.442695, %v9909_v15 }
 0x5c2   : > { %v2821_v30 = vpop.f32.mrf.mxu0 }
 0x5c3   : > { %10552 = vpow2.f32 %v9317_v7  ;;  %v9315_v44 = vmul.f32 -1.442695, %v2821_v30 }
 0x5c4   : > { %v9988_v37 = vpop.f32.mrf.mxu0 }
 0x5c5   : > { %10554 = vpow2.f32 %v9315_v44 }
 0x5c6   : > { %v3519_v47 = vpop.f32.mrf.mxu0 }
 0x5c8   : > { %v9989_v45 = vpop.f32.mrf.mxu0 }
 0x5ca   : > { %v3522_v11 = vpop.f32.mrf.mxu0 }
 0x5cc   : > { %v10549_v0 = vpop.eup %10548  ;;  %v9992_v17 = vpop.f32.mrf.mxu0 }
 0x5cd   : > { %v2959_v54 = vadd.f32 1.0, %v10549_v0 }
 0x5ce   : > { %v10551_v3 = vpop.eup %10550  ;;  %v3535_v2 = vpop.f32.mrf.mxu0 }
 0x5cf   : > { %v2957_v32 = vadd.f32 1.0, %v10551_v3 }
 0x5d0   : > { %v10553_v25 = vpop.eup %10552  ;;  %v9993_v59 = vpop.f32.mrf.mxu0 }
 0x5d1   : > { %v2960_v27 = vadd.f32 1.0, %v10553_v25  ;;  %10556 = vrcp.f32 %v2957_v32 }
 0x5d2   : > { %v10555_v19 = vpop.eup %10554  ;;  %v3538_v50 = vpop.f32.mrf.mxu0 }
 0x5d3   : > { %10558 = vrcp.f32 %v2960_v27  ;;  %v2958_v24 = vadd.f32 1.0, %v10555_v19 }
 0x5d4   : > { %10560 = vrcp.f32 %v2959_v54 }
 0x5d5   : > { %10562 = vrcp.f32 %v2958_v24 }
 0x5de   : > { %v10557_v43 = vpop.eup %10556 }
 0x5df   : > { %v3053_v35 = vmul.f32 %v10557_v43, %v2818_v20 }
 0x5e0   : > { %v10559_v52 = vpop.eup %10558 }
 0x5e1   : > { %v10561_v55 = vpop.eup %10560  ;;  %v3056_v26 = vmul.f32 %v10559_v52, %v9909_v15 }
 0x5e2   : > { %v10563_v61 = vpop.eup %10562  ;;  %v3055_v40 = vmul.f32 %v10561_v55, %v9908_v21 }
 0x5e3   : > { %v3054_v8 = vmul.f32 %v10563_v61, %v2821_v30 }
 0x5e4   : > { %v3073_v46 = vpack.c.bf16 %v3056_v26, %v3055_v40 }
 0x5e5   : > { %v3072_v12 = vpack.c.bf16 %v3054_v8, %v3053_v35 }
 0x5e7   : > { %9942 = vmatprep.mubr.msk.bf16.mxu1 %vm3083_vm2, %v3072_v12  ;;  %10006 = vmatprep.mubr.msk.bf16.mxu0 %vm3083_vm2, %v3072_v12 }
 0x5e8   : > { %9943 = vmatmul.mubr.msk.bf16.gmra.mxu1 %vm3083_vm2, %v3073_v46  ;;  %10007 = vmatmul.mubr.msk.bf16.gmra.mxu0 %vm3083_vm2, %v3073_v46 }
 0x5e9   : > { %9950 = vmatprep.mubr.bf16.mxu1 %v15892_v4  ;;  %10010 = vmatprep.mubr.bf16.mxu0 %v15892_v4 }
 0x5ec   : > { %v13123_v20 = vpop.f32.mrf.mxu0 }
 0x5ee   : > { %v13127_v15 = vpop.f32.mrf.mxu0 }
 0x5f0   : > { %9951 = vmatmul.mubr.bf16.vlgmr.msra.gmra.mxu1 %v15892_v4  ;;  %10011 = vmatmul.mubr.bf16.gmra.mxu0 %v15892_v4  ;;  %v9997_v44 = vpop.f32.mrf.mxu0 }
 0x5f1   : > { %10376 = vmatpush3.bf16.msra.mxu1 %v12870_v48  ;;  %9954 = vmatprep.mubr.bf16.mxu1 %v15892_v4  ;;  %v9916_v48 = vpop.f32.mrf.mxu1 }
 0x5f2   : > { %10375 = vmatprep.subr.bf16.mxu1 %v12878_v53  ;;  %10054 = vmatprep.mubr.bf16.mxu0 %v15892_v4  ;;  %v13137_v32 = vpop.f32.mrf.mxu0 }
 0x5f5   : > { %10377 = vmatpush3.bf16.msra.mxu1 %v12878_v53  ;;  %v3170_v53 = vpop.f32.mrf.mxu1 }
 0x5f8   : > { %9955 = vmatmul.mubr.bf16.gmra.mxu1 %v15892_v4 }
 0x5f9   : > { %9958 = vmatprep.mubr.msk.bf16.mxu1 %vm3083_vm2, %v12708_v63  ;;  %v387_v63 = vld [vmem:[%s15856_s3] sm:$0xf] }
 0x5fa   : > { %10384 = vmatprep.subr.msk.bf16.mxu0 %vm15895_vm6, %v387_v63 }
 0x600   : > { %9959 = vmatmul.mubr.msk.bf16.gmra.mxu1 %vm3083_vm2, %v12710_v34  ;;  %v3942_v34 = vsel %vm15895_vm6, %v387_v63, 0 }
 0x601   : > { %9962 = vmatprep.mubr.msk.bf16.mxu1 %vm3083_vm2, %v12828_v18  ;;  %10053 = vmatpush3.bf16.msra.mxu0 %v3942_v34  ;;  %v388_v18 = vld [vmem:[%s15856_s3 + $0x4] sm:$0xf] }
 0x602   : > { %10383 = vmatprep.subr.msk.bf16.mxu1 %vm15895_vm6, %v388_v18 }
 0x604   : > { %10055 = vmatmul.mubr.bf16.vlgmr.msra.gmra.mxu0 %v15892_v4 }
 0x605   : > { %10058 = vmatprep.mubr.bf16.mxu0 %v15892_v4 }
 0x608   : > { %9963 = vmatmul.mubr.msk.bf16.gmra.mxu1 %vm3083_vm2, %v12832_v38  ;;  %v3776_v38 = vsel %vm15895_vm6, %v388_v18, 0 }
 0x609   : > { %9966 = vmatprep.mubr.msk.bf16.mxu1 %vm3083_vm2, %v12911_v62  ;;  %v13077_v62 = vld [vmem:[%s15856_s3 + $0x8] sm:$0xf] }
 0x60c   : > { %10059 = vmatmul.mubr.bf16.gmra.mxu0 %v15892_v4 }
 0x610   : > { %9967 = vmatmul.mubr.msk.bf16.gmra.mxu1 %vm3083_vm2, %v12913_v6  ;;  %v9917_v6 = vpop.f32.mrf.mxu1 }
 0x611   : > { %9970 = vmatprep.mubr.msk.bf16.mxu1 %vm3083_vm2, %v12961_v29 }
 0x612   : > { %v3173_v29 = vpop.f32.mrf.mxu1 }
 0x618   : > { %9971 = vmatmul.mubr.msk.bf16.gmra.mxu1 %vm3083_vm2, %v12963_v16  ;;  %v13081_v16 = vpop.f32.mrf.mxu1 }
 0x619   : > { %9974 = vmatprep.mubr.msk.bf16.mxu1 %vm3083_vm2, %v12983_v56 }
 0x61a   : > { %v3186_v56 = vpop.f32.mrf.mxu1 }
 0x620   : > { %9975 = vmatmul.mubr.msk.bf16.gmra.mxu1 %vm3083_vm2, %v12985_v31  ;;  %v13083_v31 = vpop.f32.mrf.mxu1 }
 0x621   : > { %9978 = vmatprep.mubr.msk.bf16.mxu1 %vm3083_vm2, %v13003_v13 }
 0x622   : > { %v13085_v13 = vpop.f32.mrf.mxu1 }
 0x628   : > { %9979 = vmatmul.mubr.msk.bf16.gmra.mxu1 %vm3083_vm2, %v13007_v41  ;;  %v13087_v41 = vpop.f32.mrf.mxu1 }
 0x629   : > { %10014 = vmatprep.mubr.bf16.mxu1 %v15892_v4 }
 0x62a   : > { %v13089_v39 = vpop.f32.mrf.mxu1 }
 0x62c   : > { %v13091_v1 = vpop.f32.mrf.mxu1  ;;  %v13141_v54 = vpop.f32.mrf.mxu0 }
 0x62e   : > { %v13093_v14 = vpop.f32.mrf.mxu1  ;;  %v13143_v43 = vpop.f32.mrf.mxu0 }
 0x630   : > { %10015 = vmatmul.mubr.bf16.vlgmr.msra.gmra.mxu1 %v15892_v4  ;;  %v13095_v22 = vpop.f32.mrf.mxu1  ;;  %v13145_v12 = vpop.f32.mrf.mxu0 }
 0x631   : > { %10019 = vmatpush3.bf16.msra.mxu1 %v3776_v38 }
 0x632   : > { %10385 = vmatprep.subr.msk.bf16.mxu1 %vm15895_vm6, %v13077_v62  ;;  %v13097_v23 = vpop.f32.mrf.mxu1 }
 0x634   : > { %v13099_v10 = vpop.f32.mrf.mxu1 }
 0x636   : > { %v13101_v36 = vpop.f32.mrf.mxu1 }
 0x638   : > { %v13103_v60 = vpop.f32.mrf.mxu1 }
 0x63a   : > { %v13105_v51 = vpop.f32.mrf.mxu1 }
 0x63c   : > { %v13107_v33 = vpop.f32.mrf.mxu1 }
 0x63e   : > { %v13109_v28 = vpop.f32.mrf.mxu1 }
 0x640   : > { %v13111_v9 = vpop.f32.mrf.mxu1 }
 0x642   : > { %v13113_v58 = vpop.f32.mrf.mxu1 }
 0x644   : > { %v13115_v42 = vpop.f32.mrf.mxu1 }
 0x646   : > { %v13117_v57 = vpop.f32.mrf.mxu1 }
 0x66c   : > { %v13119_v5 = vpop.f32.mrf.mxu1 }
 0x66e   : > { %v13121_v21 = vpop.f32.mrf.mxu1 }
 0x670   : > { %v13125_v49 = vpop.f32.mrf.mxu1 }
 0x672   : > { %v13129_v7 = vpop.f32.mrf.mxu1 }
 0x6a8   : > { %v13131_v30 = vpop.f32.mrf.mxu1 }
 0x6aa   : > { %v13133_v0 = vpop.f32.mrf.mxu1 }
 0x6ac   : > { %v13135_v3 = vpop.f32.mrf.mxu1 }
 0x6ad   : > { %15942 = vst [vmem:[#allocation5_spill] sm:$0xff] %v13135_v3 }
 0x6ae   : > { %v13139_v25 = vpop.f32.mrf.mxu1 }
 0x6af   : > { %15943 = vst [vmem:[#allocation4_spill] sm:$0xff] %v13139_v25 }
 0x6b0   : > { %v9952_v27 = vpop.f32.mrf.mxu1 }
 0x6b1   : > { %v3355_v52 = vadd.f32 %v9952_v27, %v9916_v48 }
 0x6b2   : > { %v3346_v19 = vpop.f32.mrf.mxu1 }
 0x6b3   : > { %v3347_v24 = vadd.f32 %v3346_v19, %v3170_v53  ;;  %v3648_v46 = vadd.f32 %v9988_v37, %v3355_v52  ;;  %v13147_v53 = vpop.f32.mrf.mxu0 }
 0x6b4   : > { %v9953_v55 = vpop.f32.mrf.mxu1 }
 0x6b5   : > { %v3358_v61 = vadd.f32 %v9953_v55, %v9917_v6  ;;  %v3646_v35 = vadd.f32 %v3519_v47, %v3347_v24  ;;  %v3680_v19 = vmax.f32 %v3648_v46, 0.0 }
 0x6b6   : > { %v3349_v26 = vpop.f32.mrf.mxu1 }
 0x6b7   : > { %v3649_v8 = vadd.f32 %v9989_v45, %v3358_v61  ;;  %v3350_v40 = vadd.f32 %v3349_v26, %v3173_v29  ;;  %v3678_v4 = vmax.f32 %v3646_v35, 0.0  ;;  %v13151_v29 = vpop.f32.mrf.mxu0 }
 0x6b8   : > { %v9956_v63 = vpop.f32.mrf.mxu1 }
 0x6b9   : > { %v3647_v34 = vadd.f32 %v3522_v11, %v3350_v40  ;;  %v3681_v18 = vmax.f32 %v3649_v8, 0.0  ;;  %v3371_v48 = vadd.f32 %v9956_v63, %v13081_v16  ;;  %v4106_v11 = vsel %vm15895_vm6, %v13077_v62, 0 }
 0x6ba   : > { %v3362_v38 = vpop.f32.mrf.mxu1 }
 0x6bb   : > { %v3679_v25 = vmax.f32 %v3647_v34, 0.0  ;;  %v3363_v3 = vadd.f32 %v3362_v38, %v3186_v56  ;;  %v3711_v45 = vpack.c.bf16 %v3681_v18, %v3680_v19  ;;  %v3652_v16 = vadd.f32 %v9992_v17, %v3371_v48 }
 0x6bc   : > { %v9957_v6 = vpop.f32.mrf.mxu1 }
 0x6bd   : > { %v3710_v27 = vpack.c.bf16 %v3679_v25, %v3678_v4  ;;  %v3374_v47 = vadd.f32 %v9957_v6, %v13083_v31  ;;  %v3650_v24 = vadd.f32 %v3535_v2, %v3363_v3  ;;  %v3583_v31 = vpop.f32.mrf.mxu0 }
 0x6be   : > { %v3365_v37 = vpop.f32.mrf.mxu1 }
 0x6bf   : > { %v3653_v52 = vadd.f32 %v9993_v59, %v3374_v47  ;;  %v3366_v56 = vadd.f32 %v3365_v37, %v13085_v13  ;;  %10020 = vmatprep.mubr.msk.bf16.mxu1 %vm15894_vm0, %v3710_v27  ;;  %10062 = vmatprep.mubr.msk.bf16.mxu0 %vm15894_vm0, %v3710_v27  ;;  %v3682_v62 = vmax.f32 %v3650_v24, 0.0  ;;  %v3684_v13 = vmax.f32 %v3652_v16, 0.0  ;;  %v10005_v8 = vpop.f32.mrf.mxu0 }
 0x6c0   : > { %v9960_v55 = vpop.f32.mrf.mxu1  ;;  %10021 = vmatmul.mubr.msk.bf16.vlgmr.msra.gmra.mxu1 %vm15894_vm0, %v3711_v45  ;;  %10063 = vmatmul.mubr.msk.bf16.gmra.mxu0 %vm15894_vm0, %v3711_v45 }
 0x6c1   : > { %v3651_v4 = vadd.f32 %v3538_v50, %v3366_v56  ;;  %10087 = vmatpush3.bf16.msra.mxu1 %v4106_v11  ;;  %v3685_v25 = vmax.f32 %v3653_v52, 0.0  ;;  %v3387_v3 = vadd.f32 %v9960_v55, %v13087_v41 }
 0x6c2   : > { %v3378_v61 = vpop.f32.mrf.mxu1 }
 0x6c3   : > { %v3683_v2 = vmax.f32 %v3651_v4, 0.0  ;;  %v3379_v59 = vadd.f32 %v3378_v61, %v13089_v39  ;;  %v3713_v40 = vpack.c.bf16 %v3685_v25, %v3684_v13  ;;  %v3656_v39 = vadd.f32 %v13123_v20, %v3387_v3 }
 0x6c4   : > { %v9961_v26 = vpop.f32.mrf.mxu1 }
 0x6c5   : > { %v3712_v35 = vpack.c.bf16 %v3683_v2, %v3682_v62  ;;  %v3390_v17 = vadd.f32 %v9961_v26, %v13091_v1  ;;  %v3654_v50 = vadd.f32 %v13127_v15, %v3379_v59  ;;  %v3586_v1 = vpop.f32.mrf.mxu0  ;;  %v3688_v6 = vmax.f32 %v3656_v39, 0.0 }
 0x6c6   : > { %v3381_v46 = vpop.f32.mrf.mxu1 }
 0x6c7   : > { %v3657_v63 = vadd.f32 %v9997_v44, %v3390_v17  ;;  %v3382_v34 = vadd.f32 %v3381_v46, %v13093_v14  ;;  %10024 = vmatprep.mubr.msk.bf16.mxu1 %vm15894_vm0, %v3712_v35  ;;  %10066 = vmatprep.mubr.msk.bf16.mxu0 %vm15894_vm0, %v3712_v35  ;;  %v3686_v15 = vmax.f32 %v3654_v50, 0.0  ;;  %v10008_v48 = vpop.f32.mrf.mxu0 }
 0x6c8   : > { %v9964_v18 = vpop.f32.mrf.mxu1  ;;  %10025 = vmatmul.mubr.msk.bf16.gmra.mxu1 %vm15894_vm0, %v3713_v40  ;;  %10067 = vmatmul.mubr.msk.bf16.gmra.mxu0 %vm15894_vm0, %v3713_v40 }
 0x6c9   : > { %v3655_v41 = vadd.f32 %v13137_v32, %v3382_v34  ;;  %v3689_v38 = vmax.f32 %v3657_v63, 0.0  ;;  %v3403_v27 = vadd.f32 %v9964_v18, %v13095_v22  ;;  %v3599_v22 = vpop.f32.mrf.mxu0 }
 0x6ca   : > { %v3394_v19 = vpop.f32.mrf.mxu1 }
 0x6cb   : > { %v3687_v44 = vmax.f32 %v3655_v41, 0.0  ;;  %v3395_v14 = vadd.f32 %v3394_v19, %v13097_v23  ;;  %v13176_v37 = vpack.c.bf16 %v3689_v38, %v3688_v6  ;;  %v3660_v23 = vadd.f32 %v13141_v54, %v3403_v27  ;;  %v10009_v4 = vpop.f32.mrf.mxu0 }
 0x6cc   : > { %v9965_v47 = vpop.f32.mrf.mxu1 }
 0x6cd   : > { %v13173_v20 = vpack.c.bf16 %v3687_v44, %v3686_v15  ;;  %v3406_v45 = vadd.f32 %v9965_v47, %v13099_v10  ;;  %v3658_v32 = vadd.f32 %v13143_v43, %v3395_v14  ;;  %v3692_v25 = vmax.f32 %v3660_v23, 0.0 }
 0x6ce   : > { %v3397_v11 = vpop.f32.mrf.mxu1 }
 0x6cf   : > { %v3661_v24 = vadd.f32 %v13145_v12, %v3406_v45  ;;  %v3398_v52 = vadd.f32 %v3397_v11, %v13101_v36  ;;  %10028 = vmatprep.mubr.msk.bf16.mxu1 %vm15894_vm0, %v13173_v20  ;;  %10070 = vmatprep.mubr.msk.bf16.mxu0 %vm15894_vm0, %v13173_v20  ;;  %v3690_v12 = vmax.f32 %v3658_v32, 0.0 }
 0x6d0   : > { %v9968_v56 = vpop.f32.mrf.mxu1  ;;  %10029 = vmatmul.mubr.msk.bf16.gmra.mxu1 %vm15894_vm0, %v13176_v37  ;;  %10071 = vmatmul.mubr.msk.bf16.gmra.mxu0 %vm15894_vm0, %v13176_v37 }
 0x6d1   : > { %v3659_v10 = vadd.f32 %v13147_v53, %v3398_v52  ;;  %v3693_v43 = vmax.f32 %v3661_v24, 0.0  ;;  %v3419_v61 = vadd.f32 %v9968_v56, %v13103_v60 }
 0x6d2   : > { %v3410_v36 = vpop.f32.mrf.mxu1 }
 0x6d3   : > { %v3691_v16 = vmax.f32 %v3659_v10, 0.0  ;;  %v3411_v55 = vadd.f32 %v3410_v36, %v13105_v51  ;;  %v13196_v59 = vpack.c.bf16 %v3693_v43, %v3692_v25  ;;  %v3602_v51 = vpop.f32.mrf.mxu0  ;;  %v3664_v60 = vadd.f32 %v13151_v29, %v3419_v61 }
 0x6d4   : > { %v9969_v54 = vpop.f32.mrf.mxu1 }
 0x6d5   : > { %v13193_v62 = vpack.c.bf16 %v3691_v16, %v3690_v12  ;;  %v3422_v2 = vadd.f32 %v9969_v54, %v13107_v33  ;;  %v3662_v3 = vadd.f32 %v3583_v31, %v3411_v55  ;;  %v3696_v50 = vmax.f32 %v3664_v60, 0.0 }
 0x6d6   : > { %v3413_v13 = vpop.f32.mrf.mxu1 }
 0x6d7   : > { %v3665_v53 = vadd.f32 %v10005_v8, %v3422_v2  ;;  %v3414_v26 = vadd.f32 %v3413_v13, %v13109_v28  ;;  %10032 = vmatprep.mubr.msk.bf16.mxu1 %vm15894_vm0, %v13193_v62  ;;  %10074 = vmatprep.mubr.msk.bf16.mxu0 %vm15894_vm0, %v13193_v62  ;;  %v10012_v28 = vpop.f32.mrf.mxu0  ;;  %v3694_v8 = vmax.f32 %v3662_v3, 0.0 }
 0x6d8   : > { %v9972_v35 = vpop.f32.mrf.mxu1  ;;  %10033 = vmatmul.mubr.msk.bf16.gmra.mxu1 %vm15894_vm0, %v13196_v59  ;;  %10075 = vmatmul.mubr.msk.bf16.gmra.mxu0 %vm15894_vm0, %v13196_v59 }
 0x6d9   : > { %v3663_v33 = vadd.f32 %v3586_v1, %v3414_v26  ;;  %v3697_v31 = vmax.f32 %v3665_v53, 0.0  ;;  %v3435_v63 = vadd.f32 %v9972_v35, %v13111_v9  ;;  %v3615_v38 = vpop.f32.mrf.mxu0  ;;  %v15944_v26 = vld [vmem:[#allocation5_spill] sm:$0xff] }
 0x6da   : > { %v3426_v17 = vpop.f32.mrf.mxu1 }
 0x6db   : > { %v3695_v40 = vmax.f32 %v3663_v33, 0.0  ;;  %v3427_v46 = vadd.f32 %v3426_v17, %v13113_v58  ;;  %v13213_v18 = vpack.c.bf16 %v3697_v31, %v3696_v50  ;;  %v3668_v9 = vadd.f32 %v10008_v48, %v3435_v63  ;;  %v10013_v6 = vpop.f32.mrf.mxu0  ;;  %v15945_v33 = vld [vmem:[#allocation4_spill] sm:$0xff] }
 0x6dc   : > { %v9973_v34 = vpop.f32.mrf.mxu1 }
 0x6dd   : > { %v13210_v29 = vpack.c.bf16 %v3695_v40, %v3694_v8  ;;  %v3438_v39 = vadd.f32 %v9973_v34, %v13115_v42  ;;  %v3666_v1 = vadd.f32 %v3599_v22, %v3427_v46  ;;  %v3700_v45 = vmax.f32 %v3668_v9, 0.0  ;;  %v3618_v23 = vpop.f32.mrf.mxu0 }
 0x6de   : > { %v3429_v41 = vpop.f32.mrf.mxu1 }
 0x6df   : > { %v3669_v19 = vadd.f32 %v10009_v4, %v3438_v39  ;;  %v3430_v15 = vadd.f32 %v3429_v41, %v13117_v57  ;;  %10036 = vmatprep.mubr.msk.bf16.mxu1 %vm15894_vm0, %v13210_v29  ;;  %10078 = vmatprep.mubr.msk.bf16.mxu0 %vm15894_vm0, %v13210_v29  ;;  %v3698_v27 = vmax.f32 %v3666_v1, 0.0 }
 0x6e0   : > { %v9976_v58 = vpop.f32.mrf.mxu1  ;;  %10037 = vmatmul.mubr.msk.bf16.gmra.mxu1 %vm15894_vm0, %v13213_v18  ;;  %10079 = vmatmul.mubr.msk.bf16.gmra.mxu0 %vm15894_vm0, %v13213_v18 }
 0x6e1   : > { %v3667_v42 = vadd.f32 %v3602_v51, %v3430_v15  ;;  %v3701_v44 = vmax.f32 %v3669_v19, 0.0  ;;  %v3451_v11 = vadd.f32 %v9976_v58, %v13119_v5 }
 0x6e2   : > { %v3442_v14 = vpop.f32.mrf.mxu1 }
 0x6e3   : > { %v3699_v57 = vmax.f32 %v3667_v42, 0.0  ;;  %v3443_v47 = vadd.f32 %v3442_v14, %v13121_v21  ;;  %v3721_v52 = vpack.c.bf16 %v3701_v44, %v3700_v45  ;;  %v3672_v36 = vadd.f32 %v10012_v28, %v3451_v11 }
 0x6e4   : > { %v9977_v32 = vpop.f32.mrf.mxu1 }
 0x6e5   : > { %v3720_v48 = vpack.c.bf16 %v3699_v57, %v3698_v27  ;;  %v3454_v24 = vadd.f32 %v9977_v32, %v13125_v49  ;;  %v3670_v56 = vadd.f32 %v3615_v38, %v3443_v47  ;;  %v3704_v4 = vmax.f32 %v3672_v36, 0.0 }
 0x6e6   : > { %v3445_v22 = vpop.f32.mrf.mxu1 }
 0x6e7   : > { %v3446_v10 = vadd.f32 %v3445_v22, %v13129_v7  ;;  %v3673_v43 = vadd.f32 %v10013_v6, %v3454_v24  ;;  %10040 = vmatprep.mubr.msk.bf16.mxu1 %vm15894_vm0, %v3720_v48  ;;  %10082 = vmatprep.mubr.msk.bf16.mxu0 %vm15894_vm0, %v3720_v48  ;;  %v3702_v16 = vmax.f32 %v3670_v56, 0.0 }
 0x6e8   : > { %v9980_v21 = vpop.f32.mrf.mxu1  ;;  %10041 = vmatmul.mubr.msk.bf16.gmra.mxu1 %vm15894_vm0, %v3721_v52  ;;  %10083 = vmatmul.mubr.msk.bf16.gmra.mxu0 %vm15894_vm0, %v3721_v52 }
 0x6e9   : > { %v3671_v5 = vadd.f32 %v3618_v23, %v3446_v10  ;;  %v3705_v12 = vmax.f32 %v3673_v43, 0.0  ;;  %v3467_v13 = vadd.f32 %v9980_v21, %v13131_v30  ;;  %v15946_v30 = vmov 0.0|0.0   ;;  %v10056_v21 = vpop.f32.mrf.mxu0 }
 0x6ea   : > { %v3458_v49 = vpop.f32.mrf.mxu1 }
 0x6eb   : > { %v3703_v55 = vmax.f32 %v3671_v5, 0.0  ;;  %v3723_v7 = vpack.c.bf16 %v3705_v12, %v3704_v4  ;;  %v3459_v53 = vadd.f32 %v3458_v49, %v13133_v0  ;;  %v3978_v12 = vpop.f32.mrf.mxu0 }
 0x6ec   : > { %v9981_v25 = vpop.f32.mrf.mxu1 }
 0x6ed   : > { %v3722_v61 = vpack.c.bf16 %v3703_v55, %v3702_v16  ;;  %v3470_v51 = vadd.f32 %v9981_v25, %v15944_v26  ;;  %v10057_v4 = vpop.f32.mrf.mxu0 }
 0x6ee   : > { %v3461_v54 = vpop.f32.mrf.mxu1 }
 0x6ef   : > { %10044 = vmatprep.mubr.msk.bf16.mxu1 %vm15894_vm0, %v3722_v61  ;;  %v3462_v31 = vadd.f32 %v3461_v54, %v15945_v33 }
 0x6f0   : > { %v10016_v2 = vpop.f32.mrf.mxu1  ;;  %10045 = vmatmul.mubr.msk.bf16.gmra.mxu1 %vm15894_vm0, %v3723_v7 }
 0x6f1   : > { %v3676_v60 = vadd.f32 %v10016_v2, %v3467_v13 }
 0x6f2   : > { %v3631_v3 = vpop.f32.mrf.mxu1 }
 0x6f3   : > { %v3674_v17 = vadd.f32 %v3631_v3, %v3459_v53  ;;  %v3708_v40 = vmax.f32 %v3676_v60, 0.0 }
 0x6f4   : > { %v10017_v35 = vpop.f32.mrf.mxu1 }
 0x6f5   : > { %v3677_v28 = vadd.f32 %v10017_v35, %v3470_v51  ;;  %v3706_v63 = vmax.f32 %v3674_v17, 0.0 }
 0x6f6   : > { %v3634_v8 = vpop.f32.mrf.mxu1 }
 0x6f7   : > { %v3709_v46 = vmax.f32 %v3677_v28, 0.0  ;;  %v3675_v50 = vadd.f32 %v3634_v8, %v3462_v31 }
 0x6f9   : > { %v3725_v34 = vpack.c.bf16 %v3709_v46, %v3708_v40  ;;  %v3707_v39 = vmax.f32 %v3675_v50, 0.0 }
 0x6fb   : > { %v3724_v41 = vpack.c.bf16 %v3707_v39, %v3706_v63 }
 0x6fd   : > { %10048 = vmatprep.mubr.msk.bf16.mxu1 %vm15894_vm0, %v3724_v41 }
 0x6fe   : > { %10049 = vmatmul.mubr.msk.bf16.gmra.mxu1 %vm15894_vm0, %v3725_v34 }
 0x6ff   : > { %10088 = vmatprep.mubr.msk.bf16.mxu1 %vm15894_vm0, %v13173_v20 }
 0x706   : > { %10089 = vmatmul.mubr.msk.bf16.vlgmr.msra.gmra.mxu1 %vm15894_vm0, %v13176_v37 }
 0x707   : > { %10092 = vmatprep.mubr.msk.bf16.mxu1 %vm15894_vm0, %v13193_v62 }
 0x70e   : > { %10093 = vmatmul.mubr.msk.bf16.gmra.mxu1 %vm15894_vm0, %v13196_v59 }
 0x70f   : > { %10096 = vmatprep.mubr.msk.bf16.mxu1 %vm15894_vm0, %v13210_v29 }
 0x716   : > { %10097 = vmatmul.mubr.msk.bf16.gmra.mxu1 %vm15894_vm0, %v13213_v18 }
 0x717   : > { %10100 = vmatprep.mubr.msk.bf16.mxu1 %vm15894_vm0, %v3720_v48 }
 0x71e   : > { %10101 = vmatmul.mubr.msk.bf16.gmra.mxu1 %vm15894_vm0, %v3721_v52 }
 0x71f   : > { %10104 = vmatprep.mubr.msk.bf16.mxu1 %vm15894_vm0, %v3722_v61 }
 0x726   : > { %10105 = vmatmul.mubr.msk.bf16.gmra.mxu1 %vm15894_vm0, %v3723_v7  ;;  %v3981_v7 = vpop.f32.mrf.mxu0 }
 0x727   : > { %10108 = vmatprep.mubr.msk.bf16.mxu1 %vm15894_vm0, %v3724_v41 }
 0x728   : > { %v10060_v51 = vpop.f32.mrf.mxu0 }
 0x72a   : > { %v3994_v31 = vpop.f32.mrf.mxu0 }
 0x72c   : > { %v10061_v50 = vpop.f32.mrf.mxu0 }
 0x72e   : > { %10109 = vmatmul.mubr.msk.bf16.gmra.mxu1 %vm15894_vm0, %v3725_v34 }
 0x72f   : > { %10112 = vmatprep.mubr.bf16.mxu1 %v15946_v30 }
 0x736   : > { %10113 = vmatmul.mubr.bf16.gmra.mxu1 %v15946_v30 }
 0x737   : > { %10116 = vmatprep.mubr.bf16.mxu1 %v15946_v30 }
 0x73e   : > { %10117 = vmatmul.mubr.bf16.gmra.mxu1 %v15946_v30 }
 0x780   : > { %v10022_v0 = vpop.f32.mrf.mxu1 }
 0x781   : > { %v3987_v54 = vadd.f32 %v10056_v21, %v10022_v0  ;;  %v3997_v0 = vpop.f32.mrf.mxu0 }
 0x782   : > { %v3812_v20 = vpop.f32.mrf.mxu1 }
 0x783   : > { %v3979_v16 = vadd.f32 %v3978_v12, %v3812_v20 }
 0x784   : > { %v10023_v37 = vpop.f32.mrf.mxu1 }
 0x785   : > { %v3990_v28 = vadd.f32 %v10057_v4, %v10023_v37 }
 0x786   : > { %v3815_v62 = vpop.f32.mrf.mxu1 }
 0x787   : > { %v3982_v13 = vadd.f32 %v3981_v7, %v3815_v62 }
 0x788   : > { %v13262_v59 = vpop.f32.mrf.mxu1 }
 0x789   : > { %v4003_v37 = vadd.f32 %v10060_v51, %v13262_v59 }
 0x78a   : > { %v3828_v29 = vpop.f32.mrf.mxu1 }
 0x78b   : > { %v3995_v63 = vadd.f32 %v3994_v31, %v3828_v29 }
 0x78c   : > { %v13264_v18 = vpop.f32.mrf.mxu1 }
 0x78e   : > { %v3831_v38 = vpop.f32.mrf.mxu1 }
 0x78f   : > { %v3998_v62 = vadd.f32 %v3997_v0, %v3831_v38 }
 0x790   : > { %v13266_v1 = vpop.f32.mrf.mxu1 }
 0x792   : > { %v13268_v19 = vpop.f32.mrf.mxu1 }
 0x794   : > { %v13270_v15 = vpop.f32.mrf.mxu1 }
 0x796   : > { %v13272_v9 = vpop.f32.mrf.mxu1 }
 0x798   : > { %v13274_v58 = vpop.f32.mrf.mxu1 }
 0x79a   : > { %v13276_v42 = vpop.f32.mrf.mxu1 }
 0x79c   : > { %v13278_v44 = vpop.f32.mrf.mxu1 }
 0x79e   : > { %v13280_v14 = vpop.f32.mrf.mxu1 }
 0x7a0   : > { %v13282_v6 = vpop.f32.mrf.mxu1 }
 0x7a2   : > { %v13284_v27 = vpop.f32.mrf.mxu1 }
 0x7a4   : > { %v13286_v57 = vpop.f32.mrf.mxu1 }
 0x7a6   : > { %v13288_v47 = vpop.f32.mrf.mxu1 }
 0x7a8   : > { %v13290_v45 = vpop.f32.mrf.mxu1 }
 0x7aa   : > { %v13292_v11 = vpop.f32.mrf.mxu1 }
 0x7ac   : > { %v13294_v32 = vpop.f32.mrf.mxu1 }
 0x7ae   : > { %v13296_v48 = vpop.f32.mrf.mxu1 }
 0x7b0   : > { %v13298_v24 = vpop.f32.mrf.mxu1 }
 0x7b2   : > { %v13300_v52 = vpop.f32.mrf.mxu1 }
 0x7b4   : > { %v13302_v22 = vpop.f32.mrf.mxu1 }
 0x7b6   : > { %v13304_v23 = vpop.f32.mrf.mxu1 }
 0x7be   : > { %v13306_v56 = vpop.f32.mrf.mxu1 }
 0x7c0   : > { %v13308_v10 = vpop.f32.mrf.mxu1 }
 0x7c2   : > { %v13310_v43 = vpop.f32.mrf.mxu1 }
 0x7c4   : > { %v13312_v36 = vpop.f32.mrf.mxu1 }
 0x7c6   : > { %v10090_v5 = vpop.f32.mrf.mxu1 }
 0x7c7   : > { %v13317_v3 = vadd.f32 %v10090_v5, %v3987_v54 }
 0x7c8   : > { %v4142_v49 = vpop.f32.mrf.mxu1 }
 0x7c9   : > { %v13314_v55 = vadd.f32 %v4142_v49, %v3979_v16  ;;  %v9406_v35 = vmul.f32 -2.0, %v13317_v3  ;;  %v10064_v16 = vpop.f32.mrf.mxu0 }
 0x7ca   : > { %v10091_v25 = vpop.f32.mrf.mxu1 }
 0x7cb   : > { %v9404_v61 = vmul.f32 -2.0, %v13314_v55  ;;  %v4369_v8 = vmul.f32 1.442695, %v9406_v35  ;;  %v13323_v40 = vadd.f32 %v10091_v25, %v3990_v28  ;;  %v4010_v38 = vpop.f32.mrf.mxu0 }
 0x7cc   : > { %v4145_v2 = vpop.f32.mrf.mxu1 }
 0x7cd   : > { %v4365_v53 = vmul.f32 1.442695, %v9404_v61  ;;  %v13319_v26 = vadd.f32 %v4145_v2, %v3982_v13  ;;  %v9407_v41 = vmul.f32 -2.0, %v13323_v40  ;;  %v4006_v61 = vadd.f32 %v10061_v50, %v13264_v18  ;;  %v13339_v35 = vpop.f32.mrf.mxu0 }
 0x7ce   : > { %v10094_v60 = vpop.f32.mrf.mxu1 }
 0x7cf   : > { %10564 = vpow2.f32 %v4365_v53  ;;  %v9405_v33 = vmul.f32 -2.0, %v13319_v26  ;;  %v4371_v5 = vmul.f32 1.442695, %v9407_v41  ;;  %v13332_v29 = vadd.f32 %v10094_v60, %v4003_v37  ;;  %v4013_v50 = vpop.f32.mrf.mxu0 }
 0x7d0   : > { %v4158_v17 = vpop.f32.mrf.mxu1  ;;  %10566 = vpow2.f32 %v4369_v8  ;;  %v4014_v0 = vadd.f32 %v4013_v50, %v13272_v9  ;;  %v4019_v37 = vadd.f32 %v10064_v16, %v13266_v1  ;;  %v4303_v50 = vmul.f32 2.0, %v13317_v3 }
 0x7d1   : > { %v4367_v46 = vmul.f32 1.442695, %v9405_v33  ;;  %v13325_v39 = vadd.f32 %v4158_v17, %v3995_v63  ;;  %v9410_v2 = vmul.f32 -2.0, %v13332_v29  ;;  %v4011_v17 = vadd.f32 %v4010_v38, %v13268_v19 }
 0x7d2   : > { %v10095_v34 = vpop.f32.mrf.mxu1  ;;  %v4557_v63 = vlaneseq  ;;  %v4301_v38 = vmul.f32 2.0, %v13314_v55 }
 0x7d3   : > { %10568 = vpow2.f32 %v4367_v46  ;;  %v9408_v21 = vmul.f32 -2.0, %v13325_v39  ;;  %v13337_v13 = vadd.f32 %v10095_v34, %v4006_v61  ;;  %v4377_v33 = vmul.f32 1.442695, %v9410_v2  ;;  %v390_v2 = vld [vmem:[%s15857_s4] sm:$0xf] }
 0x7d4   : > { %v4161_v20 = vpop.f32.mrf.mxu1  ;;  %10570 = vpow2.f32 %v4371_v5  ;;  %v13351_v19 = vshrl.u32 %v4557_v63, 7 }
 0x7d5   : > { %v13330_v12 = vadd.f32 %v4161_v20, %v3998_v62  ;;  %v4373_v25 = vmul.f32 1.442695, %v9408_v21  ;;  %v9411_v18 = vmul.f32 -2.0, %v13337_v13 }
 0x7d6   : > { %v10098_v4 = vpop.f32.mrf.mxu1  ;;  %15947 = vst [vmem:[#allocation6_spill] sm:$0xff] %v13351_v19  ;;  %v15899_v3 = vsub.s32 3, %v13351_v19 }
 0x7d7   : > { %v9409_v54 = vmul.f32 -2.0, %v13330_v12  ;;  %10572 = vpow2.f32 %v4373_v25  ;;  %v4379_v34 = vmul.f32 1.442695, %v9411_v18  ;;  %v13354_v61 = vadd.f32 %v10098_v4, %v4019_v37 }
 0x7d8   : > { %v4174_v59 = vpop.f32.mrf.mxu1 }
 0x7d9   : > { %v4375_v51 = vmul.f32 1.442695, %v9409_v54  ;;  %v13345_v46 = vadd.f32 %v4174_v59, %v4011_v17  ;;  %v15898_v54 = vsub.s32 0, %v13351_v19  ;;  %v9414_v16 = vmul.f32 -2.0, %v13354_v61 }
 0x7da   : > { %v13342_v31 = vpop.f32.mrf.mxu1 }
 0x7db   : > { %v9412_v62 = vmul.f32 -2.0, %v13345_v46 }
 0x7dc   : > { %v10565_v49 = vpop.eup %10564  ;;  %v4177_v41 = vpop.f32.mrf.mxu1 }
 0x7dd   : > { %v4429_v7 = vadd.f32 1.0, %v10565_v49  ;;  %v10567_v53 = vpop.eup %10566  ;;  %v13349_v21 = vadd.f32 %v4177_v41, %v4014_v0 }
 0x7de   : > { %v4431_v28 = vadd.f32 1.0, %v10567_v53 }
 0x7df   : > { %10574 = vrcp.f32 %v4429_v7  ;;  %v4381_v7 = vmul.f32 1.442695, %v9412_v62  ;;  %v9413_v9 = vmul.f32 -2.0, %v13349_v21 }
 0x7e0   : > { %v10569_v60 = vpop.eup %10568  ;;  %10576 = vpow2.f32 %v4375_v51  ;;  %v13365_v51 = vrot.slane %v390_v2, %v15898_v54 }
 0x7e1   : > { %v4430_v8 = vadd.f32 1.0, %v10569_v60  ;;  %10578 = vpow2.f32 %v4377_v33  ;;  %v10571_v20 = vpop.eup %10570  ;;  %v4383_v4 = vmul.f32 1.442695, %v9413_v9  ;;  %v15897_v60 = vsub.s32 1, %v13351_v19 }
 0x7e2   : > { %10580 = vrcp.f32 %v4431_v28  ;;  %v4432_v49 = vadd.f32 1.0, %v10571_v20 }
 0x7e3   : > { %10582 = vrcp.f32 %v4430_v8  ;;  %v4385_v8 = vmul.f32 1.442695, %v9414_v16  ;;  %v13372_v63 = vrot.slane %v390_v2, %v15897_v60 }
 0x7e4   : > { %10584 = vpow2.f32 %v4379_v34  ;;  %v10573_v5 = vpop.eup %10572  ;;  %v4302_v34 = vmul.f32 2.0, %v13319_v26 }
 0x7e5   : > { %v4433_v59 = vadd.f32 1.0, %v10573_v5  ;;  %10586 = vrcp.f32 %v4432_v49  ;;  %v15896_v49 = vsub.s32 2, %v13351_v19 }
 0x7e6   : > { %10588 = vpow2.f32 %v4381_v7 }
 0x7e7   : > { %10590 = vrcp.f32 %v4433_v59  ;;  %v4304_v59 = vmul.f32 2.0, %v13323_v40 }
 0x7e8   : > { %10592 = vpow2.f32 %v4383_v4 }
 0x7ec   : > { %v10575_v25 = vpop.eup %10574 }
 0x7ed   : > { %v4525_v53 = vmul.f32 %v10575_v25, %v4301_v38  ;;  %v10577_v1 = vpop.eup %10576 }
 0x7ee   : > { %v10579_v33 = vpop.eup %10578  ;;  %v4434_v17 = vadd.f32 1.0, %v10577_v1  ;;  %v13387_v1 = vrot.slane %v390_v2, %v15899_v3 }
 0x7ef   : > { %v10581_v55 = vpop.eup %10580  ;;  %v4561_v18 = vmul.f32 %v13365_v51, %v4525_v53  ;;  %v4435_v41 = vadd.f32 1.0, %v10579_v33  ;;  %v13383_v53 = vrot.slane %v390_v2, %v15896_v49 }
 0x7f0   : > { %v10583_v28 = vpop.eup %10582  ;;  %v4527_v20 = vmul.f32 %v10581_v55, %v4303_v50  ;;  %10594 = vrcp.f32 %v4434_v17  ;;  %v4305_v17 = vmul.f32 2.0, %v13325_v39 }
 0x7f1   : > { %v10585_v0 = vpop.eup %10584  ;;  %v4597_v62 = vadd.f32 %v13372_v63, %v4561_v18  ;;  %v4526_v37 = vmul.f32 %v10583_v28, %v4302_v34  ;;  %10596 = vpow2.f32 %v4385_v8 }
 0x7f2   : > { %10598 = vrcp.f32 %v4435_v41  ;;  %v4436_v5 = vadd.f32 1.0, %v10585_v0  ;;  %v4563_v25 = vmul.f32 %v13365_v51, %v4527_v20  ;;  %v10587_v26 = vpop.eup %10586 }
 0x7f3   : > { %v4629_v7 = vmax.f32 %v4597_v62, 0.0  ;;  %v4562_v9 = vmul.f32 %v13365_v51, %v4526_v37  ;;  %v10589_v38 = vpop.eup %10588  ;;  %v4528_v33 = vmul.f32 %v10587_v26, %v4304_v59 }
 0x7f4   : > { %10600 = vrcp.f32 %v4436_v5  ;;  %v10591_v16 = vpop.eup %10590  ;;  %v4599_v4 = vadd.f32 %v13372_v63, %v4563_v25  ;;  %v4437_v40 = vadd.f32 1.0, %v10589_v38  ;;  %v4306_v5 = vmul.f32 2.0, %v13330_v12 }
 0x7f5   : > { %v4598_v55 = vadd.f32 %v13372_v63, %v4562_v9  ;;  %v4665_v18 = vmul.f32 %v13383_v53, %v4629_v7  ;;  %v10593_v28 = vpop.eup %10592  ;;  %v4529_v50 = vmul.f32 %v10591_v16, %v4305_v17  ;;  %v4564_v41 = vmul.f32 %v13365_v51, %v4528_v33 }
 0x7f6   : > { %v4631_v34 = vmax.f32 %v4599_v4, 0.0  ;;  %10602 = vrcp.f32 %v4437_v40  ;;  %v4438_v62 = vadd.f32 1.0, %v10593_v28  ;;  %v4307_v7 = vmul.f32 2.0, %v13332_v29 }
 0x7f7   : > { %v4701_v8 = vadd.f32 %v13387_v1, %v4665_v18  ;;  %v4630_v2 = vmax.f32 %v4598_v55, 0.0  ;;  %v4565_v9 = vmul.f32 %v13365_v51, %v4529_v50  ;;  %v4600_v26 = vadd.f32 %v13372_v63, %v4564_v41 }
 0x7f8   : > { %v4667_v59 = vmul.f32 %v13383_v53, %v4631_v34  ;;  %10604 = vrcp.f32 %v4438_v62  ;;  %v4308_v17 = vmul.f32 2.0, %v13337_v13 }
 0x7f9   : > { %v13395_v0 = vmax.f32 %v4701_v8, 0.0  ;;  %v4666_v16 = vmul.f32 %v13383_v53, %v4630_v2  ;;  %v4601_v29 = vadd.f32 %v13372_v63, %v4565_v9  ;;  %v4632_v40 = vmax.f32 %v4600_v26, 0.0 }
 0x7fa   : > { %v4703_v12 = vadd.f32 %v13387_v1, %v4667_v59  ;;  %v4309_v26 = vmul.f32 2.0, %v13345_v46 }
 0x7fb   : > { %v4790_v39 = vsel %vm15894_vm0, %v13395_v0, 0.0  ;;  %v4702_v55 = vadd.f32 %v13387_v1, %v4666_v16  ;;  %v4633_v62 = vmax.f32 %v4601_v29, 0.0 }
 0x7fc   : > { %4791 = vadd.xlane.f32.xlu0 %v4790_v39  ;;  %v13410_v8 = vmax.f32 %v4703_v12, 0.0 }
 0x7fd   : > { %v10595_v20 = vpop.eup %10594  ;;  %v13412_v50 = vmax.f32 %v4702_v55, 0.0 }
 0x7fe   : > { %v10597_v37 = vpop.eup %10596  ;;  %v4530_v38 = vmul.f32 %v10595_v20, %v4306_v5  ;;  %v4796_v2 = vsel %vm15894_vm0, %v13410_v8, 0.0 }
 0x7ff   : > { %v10599_v25 = vpop.eup %10598  ;;  %v4439_v4 = vadd.f32 1.0, %v10597_v37  ;;  %v4793_v20 = vsel %vm15894_vm0, %v13412_v50, 0.0  ;;  %v4668_v37 = vmul.f32 %v13383_v53, %v4632_v40  ;;  %v4921_v9 = vsel %vm15894_vm0, %v13412_v50, -inf }
 0x800   : > { %v4531_v33 = vmul.f32 %v10599_v25, %v4307_v7  ;;  %v4566_v28 = vmul.f32 %v13365_v51, %v4530_v38  ;;  %4797 = vadd.xlane.f32.xlu0 %v4796_v2  ;;  %4794 = vadd.xlane.f32.xlu1 %v4793_v20  ;;  %v4669_v38 = vmul.f32 %v13383_v53, %v4633_v62  ;;  %v4310_v40 = vmul.f32 2.0, %v13349_v21 }
 0x801   : > { %v10601_v18 = vpop.eup %10600  ;;  %10606 = vrcp.f32 %v4439_v4  ;;  %v4704_v7 = vadd.f32 %v13387_v1, %v4668_v37  ;;  %v4022_v4 = vadd.f32 %v13339_v35, %v13270_v15  ;;  %v4918_v62 = vsel %vm15894_vm0, %v13395_v0, -inf }
 0x802   : > { %v4567_v34 = vmul.f32 %v13365_v51, %v4531_v33  ;;  %v4532_v41 = vmul.f32 %v10601_v18, %v4308_v17  ;;  %v4602_v13 = vadd.f32 %v13372_v63, %v4566_v28  ;;  %v4705_v12 = vadd.f32 %v13387_v1, %v4669_v38 }
 0x803   : > { %v10603_v5 = vpop.eup %10602  ;;  %v13428_v16 = vmax.f32 %v4704_v7, 0.0  ;;  %v13437_v46 = vadd.f32 %v13342_v31, %v4022_v4 }
 0x804   : > { %v4603_v39 = vadd.f32 %v13372_v63, %v4567_v34  ;;  %v4568_v25 = vmul.f32 %v13365_v51, %v4532_v41  ;;  %4922 = vmax.xlane.f32.xlu1 %v4921_v9  ;;  %v4634_v59 = vmax.f32 %v4602_v13, 0.0  ;;  %v4533_v33 = vmul.f32 %v10603_v5, %v4309_v26 }
 0x805   : > { %v10605_v55 = vpop.eup %10604  ;;  %v4799_v17 = vsel %vm15894_vm0, %v13428_v16, 0.0  ;;  %v13440_v28 = vmax.f32 %v4705_v12, 0.0  ;;  %v4311_v13 = vmul.f32 2.0, %v13354_v61  ;;  %v9415_v37 = vmul.f32 -2.0, %v13437_v46 }
 0x806   : > { %v4635_v18 = vmax.f32 %v4603_v39, 0.0  ;;  %v4604_v29 = vadd.f32 %v13372_v63, %v4568_v25  ;;  %4800 = vadd.xlane.f32.xlu0 %v4799_v17  ;;  %v4670_v15 = vmul.f32 %v13383_v53, %v4634_v59  ;;  %v4569_v35 = vmul.f32 %v13365_v51, %v4533_v33 }
 0x807   : > { %v4534_v34 = vmul.f32 %v10605_v55, %v4310_v40  ;;  %v4802_v41 = vsel %vm15894_vm0, %v13440_v28, 0.0  ;;  %v4924_v9 = vsel %vm15894_vm0, %v13410_v8, -inf  ;;  %v4387_v59 = vmul.f32 1.442695, %v9415_v37 }
 0x808   : > { %v4636_v20 = vmax.f32 %v4604_v29, 0.0  ;;  %4803 = vadd.xlane.f32.xlu1 %v4802_v41  ;;  %v4706_v31 = vadd.f32 %v13387_v1, %v4670_v15  ;;  %v4671_v21 = vmul.f32 %v13383_v53, %v4635_v18  ;;  %v4605_v25 = vadd.f32 %v13372_v63, %v4569_v35 }
 0x809   : > { %v4570_v7 = vmul.f32 %v13365_v51, %v4534_v34  ;;  %v4927_v55 = vsel %vm15894_vm0, %v13428_v16, -inf  ;;  %v4930_v18 = vsel %vm15894_vm0, %v13440_v28, -inf  ;;  %10608 = vpow2.f32 %v4387_v59 }
 0x80a   : > { %4919 = vmax.xlane.f32.xlu0 %v4918_v62  ;;  %v13452_v5 = vmax.f32 %v4706_v31, 0.0  ;;  %v4707_v38 = vadd.f32 %v13387_v1, %v4671_v21  ;;  %v4672_v61 = vmul.f32 %v13383_v53, %v4636_v20  ;;  %v4637_v33 = vmax.f32 %v4605_v25, 0.0  ;;  %v10068_v20 = vpop.f32.mrf.mxu0  ;;  %v10102_v62 = vpop.f32.mrf.mxu1 }
 0x80b   : > { %v4606_v12 = vadd.f32 %v13372_v63, %v4570_v7 }
 0x80c   : > { %v4805_v26 = vsel %vm15894_vm0, %v13452_v5, 0.0  ;;  %v13468_v29 = vmax.f32 %v4707_v38, 0.0  ;;  %v4708_v17 = vadd.f32 %v13387_v1, %v4672_v61  ;;  %v4933_v34 = vsel %vm15894_vm0, %v13452_v5, -inf  ;;  %v4026_v25 = vpop.f32.mrf.mxu0  ;;  %v4190_v7 = vpop.f32.mrf.mxu1 }
 0x80d   : > { %4806 = vadd.xlane.f32.xlu1 %v4805_v26  ;;  %v4638_v15 = vmax.f32 %v4606_v12, 0.0 }
 0x80e   : > { %v10607_v2 = vpop.eup %10606  ;;  %4925 = vmax.xlane.f32.xlu0 %v4924_v9  ;;  %v4808_v35 = vsel %vm15894_vm0, %v13468_v29, 0.0  ;;  %v13476_v41 = vmax.f32 %v4708_v17, 0.0  ;;  %v4027_v9 = vadd.f32 %v4026_v25, %v13276_v42  ;;  %v4936_v26 = vsel %vm15894_vm0, %v13468_v29, -inf }
 0x80f   : > { %v4535_v39 = vmul.f32 %v10607_v2, %v4311_v13  ;;  %v4673_v2 = vmul.f32 %v13383_v53, %v4637_v33  ;;  %v4035_v25 = vadd.f32 %v10068_v20, %v13274_v58 }
 0x810   : > { %v4811_v21 = vsel %vm15894_vm0, %v13476_v41, 0.0  ;;  %v4939_v13 = vsel %vm15894_vm0, %v13476_v41, -inf }
 0x811   : > { %v4571_v4 = vmul.f32 %v13365_v51, %v4535_v39  ;;  %4931 = vmax.xlane.f32.xlu1 %v4930_v18  ;;  %v4709_v37 = vadd.f32 %v13387_v1, %v4673_v2  ;;  %v4674_v39 = vmul.f32 %v13383_v53, %v4638_v15 }
 0x812   : > { %4928 = vmax.xlane.f32.xlu0 %v4927_v55 }
 0x813   : > { %v4607_v40 = vadd.f32 %v13372_v63, %v4571_v4  ;;  %v13488_v38 = vmax.f32 %v4709_v37, 0.0  ;;  %v4710_v61 = vadd.f32 %v13387_v1, %v4674_v39  ;;  %v4281_v4 = vadd.f32 %v4190_v7, %v4027_v9 }
 0x814   : > { %v4283_v9 = vadd.f32 %v10102_v62, %v4035_v25 }
 0x815   : > { %4934 = vmax.xlane.f32.xlu1 %v4933_v34  ;;  %v4639_v31 = vmax.f32 %v4607_v40, 0.0  ;;  %v4814_v12 = vsel %vm15894_vm0, %v13488_v38, 0.0  ;;  %v13494_v55 = vmax.f32 %v4710_v61, 0.0  ;;  %v9416_v17 = vmul.f32 -2.0, %v4281_v4 }
 0x816   : > { %4809 = vadd.xlane.f32.xlu0 %v4808_v35  ;;  %v10609_v33 = vpop.eup %10608 }
 0x817   : > { %v4675_v59 = vmul.f32 %v13383_v53, %v4639_v31  ;;  %v4440_v42 = vadd.f32 1.0, %v10609_v33  ;;  %v4817_v40 = vsel %vm15894_vm0, %v13494_v55, 0.0  ;;  %v4389_v35 = vmul.f32 1.442695, %v9416_v17  ;;  %v10069_v33 = vpop.f32.mrf.mxu0 }
 0x818   : > { %v4312_v31 = vmul.f32 2.0, %v13437_v46 }
 0x819   : > { %4940 = vmax.xlane.f32.xlu1 %v4939_v13  ;;  %v4711_v18 = vadd.f32 %v13387_v1, %v4675_v59  ;;  %10610 = vrcp.f32 %v4440_v42  ;;  %v4029_v42 = vpop.f32.mrf.mxu0 }
 0x81a   : > { %4812 = vadd.xlane.f32.xlu0 %v4811_v21  ;;  %10612 = vpow2.f32 %v4389_v35  ;;  %v4030_v17 = vadd.f32 %v4029_v42, %v13280_v14 }
 0x81b   : > { %v13499_v15 = vmax.f32 %v4711_v18, 0.0  ;;  %v4313_v18 = vmul.f32 2.0, %v4281_v4 }
 0x81d   : > { %v4820_v34 = vsel %vm15894_vm0, %v13499_v15, 0.0 }
 0x81e   : > { %4937 = vmax.xlane.f32.xlu0 %v4936_v26  ;;  %v9418_v26 = vmul.f32 -2.0, %v4283_v9 }
 0x820   : > { %v4393_v61 = vmul.f32 1.442695, %v9418_v26 }
 0x822   : > { %4815 = vadd.xlane.f32.xlu0 %v4814_v12  ;;  %v10103_v12 = vpop.f32.mrf.mxu1 }
 0x824   : > { %v4193_v62 = vpop.f32.mrf.mxu1 }
 0x826   : > { %4818 = vadd.xlane.f32.xlu0 %v4817_v40  ;;  %v10611_v2 = vpop.eup %10610  ;;  %v4282_v40 = vadd.f32 %v4193_v62, %v4030_v17 }
 0x827   : > { %v4536_v21 = vmul.f32 %v10611_v2, %v4312_v31  ;;  %v10613_v13 = vpop.eup %10612 }
 0x828   : > { %v4441_v39 = vadd.f32 1.0, %v10613_v13  ;;  %v9417_v2 = vmul.f32 -2.0, %v4282_v40 }
 0x829   : > { %v4572_v37 = vmul.f32 %v13365_v51, %v4536_v21 }
 0x82a   : > { %4821 = vadd.xlane.f32.xlu0 %v4820_v34  ;;  %5190 = vrot.lane.b32.xlu1 %v13395_v0, %s10989_s15  ;;  %10614 = vrcp.f32 %v4441_v39  ;;  %v4391_v4 = vmul.f32 1.442695, %v9417_v2  ;;  %v4945_v39 = vsel %vm15894_vm0, %v13494_v55, -inf }
 0x82b   : > { %v4608_v7 = vadd.f32 %v13372_v63, %v4572_v37  ;;  %10616 = vpow2.f32 %v4393_v61  ;;  %v4942_v37 = vsel %vm15894_vm0, %v13488_v38, -inf }
 0x82c   : > { %10618 = vpow2.f32 %v4391_v4 }
 0x82d   : > { %v4640_v0 = vmax.f32 %v4608_v7, 0.0  ;;  %v4948_v7 = vsel %vm15894_vm0, %v13499_v15, -inf }
 0x82e   : > { %5194 = vrot.lane.b32.xlu1 %v13410_v8, %s10989_s15 }
 0x82f   : > { %v4676_v8 = vmul.f32 %v13383_v53, %v4640_v0 }
 0x831   : > { %v4712_v46 = vadd.f32 %v13387_v1, %v4676_v8 }
 0x833   : > { %v13515_v20 = vmax.f32 %v4712_v46, 0.0  ;;  %v4315_v46 = vmul.f32 2.0, %v4283_v9 }
 0x835   : > { %v4823_v35 = vsel %vm15894_vm0, %v13515_v20, 0.0 }
 0x837   : > { %v10615_v59 = vpop.eup %10614 }
 0x838   : > { %v4537_v58 = vmul.f32 %v10615_v59, %v4313_v18  ;;  %v10617_v31 = vpop.eup %10616 }
 0x839   : > { %v4443_v13 = vadd.f32 1.0, %v10617_v31  ;;  %v10619_v8 = vpop.eup %10618 }
 0x83a   : > { %v4442_v18 = vadd.f32 1.0, %v10619_v8 }
 0x83b   : > { %10620 = vrcp.f32 %v4443_v13 }
 0x83c   : > { %10622 = vrcp.f32 %v4442_v18 }
 0x840   : > { %5192 = vrot.lane.b32.xlu0 %v13412_v50, %s10989_s15  ;;  %v4573_v50 = vmul.f32 %v13365_v51, %v4537_v58 }
 0x842   : > { %v4609_v34 = vadd.f32 %v13372_v63, %v4573_v50 }
 0x844   : > { %v4641_v21 = vmax.f32 %v4609_v34, 0.0  ;;  %v10106_v34 = vpop.f32.mrf.mxu1 }
 0x846   : > { %v4677_v14 = vmul.f32 %v13383_v53, %v4641_v21 }
 0x848   : > { %v4713_v25 = vadd.f32 %v13387_v1, %v4677_v14  ;;  %v10621_v61 = vpop.eup %10620  ;;  %v4206_v14 = vpop.f32.mrf.mxu1 }
 0x849   : > { %v4539_v59 = vmul.f32 %v10621_v61, %v4315_v46  ;;  %v10623_v9 = vpop.eup %10622 }
 0x84a   : > { %v13532_v0 = vmax.f32 %v4713_v25, 0.0 }
 0x84b   : > { %v4575_v58 = vmul.f32 %v13365_v51, %v4539_v59  ;;  %v13558_v59 = vpop.f32.mrf.mxu1 }
 0x84c   : > { %v4826_v26 = vsel %vm15894_vm0, %v13532_v0, 0.0 }
 0x84d   : > { %v4611_v42 = vadd.f32 %v13372_v63, %v4575_v58 }
 0x84f   : > { %v4643_v17 = vmax.f32 %v4611_v42, 0.0 }
 0x851   : > { %v4679_v31 = vmul.f32 %v13383_v53, %v4643_v17 }
 0x852   : > { %4824 = vadd.xlane.f32.xlu1 %v4823_v35  ;;  %v10072_v35 = vpop.f32.mrf.mxu0 }
 0x854   : > { %v4042_v13 = vpop.f32.mrf.mxu0 }
 0x856   : > { %v13556_v46 = vpop.f32.mrf.mxu0 }
 0x858   : > { %v4045_v17 = vpop.f32.mrf.mxu0 }
 0x85f   : > { %4943 = vmax.xlane.f32.xlu0 %v4942_v37  ;;  %v4314_v37 = vmul.f32 2.0, %v4282_v40 }
 0x863   : > { %4946 = vmax.xlane.f32.xlu0 %v4945_v39  ;;  %5196 = vrot.lane.b32.xlu1 %v13428_v16, %s10989_s15  ;;  %v4038_v16 = vadd.f32 %v10069_v33, %v13278_v44  ;;  %v4043_v44 = vadd.f32 %v4042_v13, %v13284_v27  ;;  %v4538_v33 = vmul.f32 %v10623_v9, %v4314_v37 }
 0x865   : > { %v13539_v62 = vadd.f32 %v10103_v12, %v4038_v16  ;;  %v4715_v12 = vadd.f32 %v13387_v1, %v4679_v31  ;;  %v13548_v39 = vadd.f32 %v4206_v14, %v4043_v44  ;;  %v4574_v25 = vmul.f32 %v13365_v51, %v4538_v33 }
 0x866   : > { %v4051_v14 = vadd.f32 %v10072_v35, %v13282_v6 }
 0x867   : > { %4949 = vmax.xlane.f32.xlu0 %v4948_v7  ;;  %v9419_v50 = vmul.f32 -2.0, %v13539_v62  ;;  %v4951_v7 = vsel %vm15894_vm0, %v13515_v20, -inf  ;;  %v13553_v8 = vmax.f32 %v4715_v12, 0.0  ;;  %v4610_v18 = vadd.f32 %v13372_v63, %v4574_v25 }
 0x869   : > { %v4395_v21 = vmul.f32 1.442695, %v9419_v50  ;;  %v4832_v58 = vsel %vm15894_vm0, %v13553_v8, 0.0  ;;  %v4209_v50 = vpop.f32.mrf.mxu1  ;;  %v4642_v31 = vmax.f32 %v4610_v18, 0.0 }
 0x86b   : > { %4827 = vadd.xlane.f32.xlu0 %v4826_v26  ;;  %10624 = vpow2.f32 %v4395_v21  ;;  %v4954_v21 = vsel %vm15894_vm0, %v13532_v0, -inf }
 0x878   : > { %v10625_v37 = vpop.eup %10624 }
 0x879   : > { %v4444_v25 = vadd.f32 1.0, %v10625_v37 }
 0x881   : > { %5198 = vrot.lane.b32.xlu0 %v13440_v28, %s10989_s15  ;;  %v9420_v28 = vmul.f32 -2.0, %v13548_v39 }
 0x883   : > { %v4397_v42 = vmul.f32 1.442695, %v9420_v28 }
 0x885   : > { %v4792_v2 = vpop.xlane.xlu0 %4791  ;;  %10626 = vpow2.f32 %v4397_v42 }
 0x886   : > { %v4886_v4 = vmul.f32 0.125, %v4792_v2  ;;  %v4046_v2 = vadd.f32 %v4045_v17, %v13288_v47  ;;  %v4678_v47 = vmul.f32 %v13383_v53, %v4642_v31  ;;  %10628 = vrcp.f32 %v4444_v25 }
 0x887   : > { %4952 = vmax.xlane.f32.xlu1 %v4951_v7  ;;  %v13574_v7 = vadd.f32 %v10106_v34, %v4051_v14 }
 0x888   : > { %5094 = vst.msk [vmem:[#allocation2 + $0x11] sm:$0xff] %vm700_vm3, %v4886_v4  ;;  %v13569_v4 = vadd.f32 %v4209_v50, %v4046_v2  ;;  %v4714_v6 = vadd.f32 %v13387_v1, %v4678_v47 }
 0x889   : > { %v4798_v40 = vpop.xlane.xlu0 %4797  ;;  %v4795_v26 = vpop.xlane.xlu1 %4794  ;;  %v9422_v35 = vmul.f32 -2.0, %v13574_v7 }
 0x88a   : > { %v4888_v27 = vmul.f32 0.125, %v4798_v40  ;;  %v4887_v61 = vmul.f32 0.125, %v4795_v26  ;;  %v9421_v40 = vmul.f32 -2.0, %v13569_v4 }
 0x88b   : > { %4833 = vadd.xlane.f32.xlu1 %v4832_v58  ;;  %v13583_v58 = vmax.f32 %v4714_v6, 0.0 }
 0x88c   : > { %5096 = vst.msk [vmem:[#allocation2 + $0x31] sm:$0xff] %vm700_vm3, %v4888_v27  ;;  %5095 = vst.msk [vmem:[#allocation2 + $0x21] sm:$0xff] %vm700_vm3, %v4887_v61  ;;  %v4399_v27 = vmul.f32 1.442695, %v9421_v40 }
 0x88d   : > { %v4923_v16 = vpop.xlane.xlu1 %4922  ;;  %v4829_v2 = vsel %vm15894_vm0, %v13583_v58, 0.0 }
 0x88e   : > { %5127 = vst.msk [vmem:[#allocation2 + $0x21] sm:$0xff] %vm733_vm4, %v4923_v16  ;;  %v4401_v16 = vmul.f32 1.442695, %v9422_v35  ;;  %10630 = vpow2.f32 %v4399_v27 }
 0x88f   : > { %v4801_v9 = vpop.xlane.xlu0 %4800  ;;  %4955 = vmax.xlane.f32.xlu1 %v4954_v21 }
 0x890   : > { %v4889_v13 = vmul.f32 0.125, %v4801_v9  ;;  %10632 = vpow2.f32 %v4401_v16 }
 0x891   : > { %v4804_v44 = vpop.xlane.xlu1 %4803 }
 0x892   : > { %5097 = vst.msk [vmem:[#allocation2 + $0x41] sm:$0xff] %vm700_vm3, %v4889_v13  ;;  %v4890_v12 = vmul.f32 0.125, %v4804_v44  ;;  %v10627_v42 = vpop.eup %10626  ;;  %v4316_v44 = vmul.f32 2.0, %v13539_v62 }
 0x893   : > { %v4920_v33 = vpop.xlane.xlu0 %4919  ;;  %v4445_v31 = vadd.f32 1.0, %v10627_v42  ;;  %v10629_v14 = vpop.eup %10628  ;;  %v4317_v42 = vmul.f32 2.0, %v13548_v39 }
 0x894   : > { %5126 = vst.msk [vmem:[#allocation2 + $0x11] sm:$0xff] %vm733_vm4, %v4920_v33  ;;  %v4540_v47 = vmul.f32 %v10629_v14, %v4316_v44 }
 0x895   : > { %5098 = vst.msk [vmem:[#allocation2 + $0x51] sm:$0xff] %vm700_vm3, %v4890_v12  ;;  %10634 = vrcp.f32 %v4445_v31 }
 0x896   : > { %v4807_v28 = vpop.xlane.xlu1 %4806 }
 0x897   : > { %v4926_v26 = vpop.xlane.xlu0 %4925  ;;  %v4891_v61 = vmul.f32 0.125, %v4807_v28 }
 0x898   : > { %5128 = vst.msk [vmem:[#allocation2 + $0x31] sm:$0xff] %vm733_vm4, %v4926_v26  ;;  %v4576_v26 = vmul.f32 %v13365_v51, %v4540_v47 }
 0x899   : > { %5099 = vst.msk [vmem:[#allocation2 + $0x61] sm:$0xff] %vm700_vm3, %v4891_v61 }
 0x89a   : > { %v4932_v18 = vpop.xlane.xlu1 %4931  ;;  %v4612_v61 = vadd.f32 %v13372_v63, %v4576_v26 }
 0x89b   : > { %v4929_v34 = vpop.xlane.xlu0 %4928  ;;  %5130 = vst.msk [vmem:[#allocation2 + $0x51] sm:$0xff] %vm733_vm4, %v4932_v18 }
 0x89c   : > { %5129 = vst.msk [vmem:[#allocation2 + $0x41] sm:$0xff] %vm733_vm4, %v4929_v34 }
 0x89e   : > { %v4935_v50 = vpop.xlane.xlu1 %4934 }
 0x89f   : > { %v4810_v17 = vpop.xlane.xlu0 %4809  ;;  %5131 = vst.msk [vmem:[#allocation2 + $0x61] sm:$0xff] %vm733_vm4, %v4935_v50 }
 0x8a0   : > { %v4892_v9 = vmul.f32 0.125, %v4810_v17  ;;  %4830 = vadd.xlane.f32.xlu0 %v4829_v2  ;;  %5200 = vrot.lane.b32.xlu1 %v13452_v5, %s10989_s15  ;;  %v10631_v5 = vpop.eup %10630  ;;  %v4644_v2 = vmax.f32 %v4612_v61, 0.0  ;;  %v4960_v61 = vsel %vm15894_vm0, %v13553_v8, -inf }
 0x8a1   : > { %v4446_v28 = vadd.f32 1.0, %v10631_v5  ;;  %v10633_v6 = vpop.eup %10632 }
 0x8a2   : > { %5100 = vst.msk [vmem:[#allocation2 + $0x71] sm:$0xff] %vm700_vm3, %v4892_v9  ;;  %v4941_v13 = vpop.xlane.xlu1 %4940  ;;  %v4447_v34 = vadd.f32 1.0, %v10633_v6  ;;  %v10635_v16 = vpop.eup %10634 }
 0x8a3   : > { %v4813_v21 = vpop.xlane.xlu0 %4812  ;;  %10636 = vrcp.f32 %v4446_v28  ;;  %v4541_v31 = vmul.f32 %v10635_v16, %v4317_v42 }
 0x8a4   : > { %v4893_v37 = vmul.f32 0.125, %v4813_v21  ;;  %10638 = vrcp.f32 %v4447_v34 }
 0x8a5   : > { %v4577_v39 = vmul.f32 %v13365_v51, %v4541_v31 }
 0x8a6   : > { %5101 = vst.msk [vmem:[#allocation2 + $0x81] sm:$0xff] %vm700_vm3, %v4893_v37  ;;  %v5191_v12 = vpop.permute.xlu1 %5190  ;;  %v4054_v37 = vadd.f32 %v13556_v46, %v13286_v57  ;;  %v4319_v46 = vmul.f32 2.0, %v13574_v7 }
 0x8a7   : > { %5133 = vst.msk [vmem:[#allocation2 + $0x81] sm:$0xff] %vm733_vm4, %v4941_v13  ;;  %v4938_v33 = vpop.xlane.xlu0 %4937  ;;  %v4680_v13 = vmul.f32 %v13383_v53, %v4644_v2  ;;  %v4613_v14 = vadd.f32 %v13372_v63, %v4577_v39  ;;  %v10110_v2 = vpop.f32.mrf.mxu1 }
 0x8a8   : > { %5132 = vst.msk [vmem:[#allocation2 + $0x71] sm:$0xff] %vm733_vm4, %v4938_v33 }
 0x8a9   : > { %5286 = vst.msk [vmem:[#allocation2 + $0x11] sm:$0xff] %vm894_vm5, %v5191_v12  ;;  %v4716_v44 = vadd.f32 %v13387_v1, %v4680_v13  ;;  %v4318_v12 = vmul.f32 2.0, %v13569_v4  ;;  %v4645_v5 = vmax.f32 %v4613_v14, 0.0  ;;  %v4222_v13 = vpop.f32.mrf.mxu1 }
 0x8aa   : > { %v5195_v25 = vpop.permute.xlu1 %5194 }
 0x8ab   : > { %v4816_v40 = vpop.xlane.xlu0 %4815  ;;  %5288 = vst.msk [vmem:[#allocation2 + $0x31] sm:$0xff] %vm894_vm5, %v5195_v25  ;;  %v4681_v28 = vmul.f32 %v13383_v53, %v4645_v5  ;;  %v4957_v5 = vsel %vm15894_vm0, %v13583_v58, -inf }
 0x8ac   : > { %v4894_v62 = vmul.f32 0.125, %v4816_v40  ;;  %v13630_v40 = vmax.f32 %v4716_v44, 0.0 }
 0x8ad   : > { %v4717_v34 = vadd.f32 %v13387_v1, %v4681_v28 }
 0x8ae   : > { %5102 = vst.msk [vmem:[#allocation2 + $0xb1] sm:$0xff] %vm700_vm3, %v4894_v62  ;;  %v4835_v4 = vsel %vm15894_vm0, %v13630_v40, 0.0  ;;  %v4963_v16 = vsel %vm15894_vm0, %v13630_v40, -inf }
 0x8af   : > { %v4819_v35 = vpop.xlane.xlu0 %4818  ;;  %v13648_v42 = vmax.f32 %v4717_v34, 0.0 }
 0x8b0   : > { %v13601_v27 = vld [vmem:[#allocation2 + $0x10] sm:$0xff]  ;;  %v4895_v18 = vmul.f32 0.125, %v4819_v35  ;;  %v10637_v33 = vpop.eup %10636 }
 0x8b1   : > { %5351 = vst.msk [vmem:[#allocation3 + $0x8] sm:$0xff] %vm617_vm1, %v13601_v27  ;;  %v4542_v25 = vmul.f32 %v10637_v33, %v4318_v12  ;;  %v10639_v57 = vpop.eup %10638 }
 0x8b2   : > { %5103 = vst.msk [vmem:[#allocation2 + $0xc1] sm:$0xff] %vm700_vm3, %v4895_v18  ;;  %v13608_v50 = vld [vmem:[#allocation2 + $0x30] sm:$0xff]  ;;  %v4543_v26 = vmul.f32 %v10639_v57, %v4319_v46 }
 0x8b3   : > { %v4822_v17 = vpop.xlane.xlu0 %4821  ;;  %5353 = vst.msk [vmem:[#allocation3 + $0x18] sm:$0xff] %vm617_vm1, %v13608_v50 }
 0x8b4   : > { %v4896_v9 = vmul.f32 0.125, %v4822_v17  ;;  %v4579_v6 = vmul.f32 %v13365_v51, %v4543_v26  ;;  %v10076_v17 = vpop.f32.mrf.mxu0 }
 0x8b6   : > { %5104 = vst.msk [vmem:[#allocation2 + $0xd1] sm:$0xff] %vm700_vm3, %v4896_v9  ;;  %5202 = vrot.lane.b32.xlu0 %v13468_v29, %s10989_s15  ;;  %v13625_v29 = vadd.f32 %v13558_v59, %v4054_v37  ;;  %v4578_v59 = vmul.f32 %v13365_v51, %v4542_v25  ;;  %v4615_v7 = vadd.f32 %v13372_v63, %v4579_v6  ;;  %v4838_v9 = vsel %vm15894_vm0, %v13648_v42, 0.0  ;;  %v4058_v39 = vpop.f32.mrf.mxu0 }
 0x8b7   : > { %v5193_v21 = vpop.permute.xlu0 %5192  ;;  %v4059_v37 = vadd.f32 %v4058_v39, %v13292_v11 }
 0x8b8   : > { %5287 = vst.msk [vmem:[#allocation2 + $0x21] sm:$0xff] %vm894_vm5, %v5193_v21  ;;  %v4614_v35 = vadd.f32 %v13372_v63, %v4578_v59  ;;  %v4647_v31 = vmax.f32 %v4615_v7, 0.0  ;;  %v4320_v7 = vmul.f32 2.0, %v13625_v29 }
 0x8b9   : > { %v4289_v33 = vadd.f32 %v4222_v13, %v4059_v37 }
 0x8ba   : > { %5204 = vrot.lane.b32.xlu0 %v13476_v41, %s10989_s15  ;;  %v9423_v41 = vmul.f32 -2.0, %v13625_v29  ;;  %v4646_v18 = vmax.f32 %v4614_v35, 0.0  ;;  %v4683_v44 = vmul.f32 %v13383_v53, %v4647_v31 }
 0x8bb   : > { %v9424_v46 = vmul.f32 -2.0, %v4289_v33 }
 0x8bc   : > { %v4403_v62 = vmul.f32 1.442695, %v9423_v41  ;;  %v4682_v21 = vmul.f32 %v13383_v53, %v4646_v18  ;;  %v4719_v57 = vadd.f32 %v13387_v1, %v4683_v44 }
 0x8be   : > { %10640 = vpow2.f32 %v4403_v62  ;;  %v4718_v14 = vadd.f32 %v13387_v1, %v4682_v21  ;;  %v13663_v59 = vmax.f32 %v4719_v57, 0.0  ;;  %v4067_v21 = vadd.f32 %v10076_v17, %v13290_v45 }
 0x8bf   : > { %v13628_v47 = vld [vmem:[#allocation2 + $0x20] sm:$0xff] }
 0x8c0   : > { %5352 = vst.msk [vmem:[#allocation3 + $0x10] sm:$0xff] %vm617_vm1, %v13628_v47  ;;  %v13658_v25 = vmax.f32 %v4718_v14, 0.0  ;;  %v4844_v6 = vsel %vm15894_vm0, %v13663_v59, 0.0  ;;  %v4291_v14 = vadd.f32 %v10110_v2, %v4067_v21 }
 0x8c2   : > { %v4841_v11 = vsel %vm15894_vm0, %v13658_v25, 0.0 }
 0x8c4   : > { %4836 = vadd.xlane.f32.xlu1 %v4835_v4  ;;  %v4405_v4 = vmul.f32 1.442695, %v9424_v46  ;;  %v10111_v46 = vpop.f32.mrf.mxu1 }
 0x8c8   : > { %4961 = vmax.xlane.f32.xlu1 %v4960_v61 }
 0x8cb   : > { %v10641_v12 = vpop.eup %10640 }
 0x8cc   : > { %4964 = vmax.xlane.f32.xlu1 %v4963_v16  ;;  %v4448_v41 = vadd.f32 1.0, %v10641_v12  ;;  %v9426_v12 = vmul.f32 -2.0, %v4291_v14 }
 0x8ce   : > { %10642 = vrcp.f32 %v4448_v41  ;;  %v4409_v57 = vmul.f32 1.442695, %v9426_v12  ;;  %v10077_v41 = vpop.f32.mrf.mxu0  ;;  %v4972_v12 = vsel %vm15894_vm0, %v13663_v59, -inf }
 0x8cf   : > { %10644 = vpow2.f32 %v4405_v4 }
 0x8d0   : > { %4839 = vadd.xlane.f32.xlu1 %v4838_v9  ;;  %v4061_v4 = vpop.f32.mrf.mxu0 }
 0x8d9   : > { %4958 = vmax.xlane.f32.xlu0 %v4957_v5 }
 0x8db   : > { %v4825_v26 = vpop.xlane.xlu1 %4824  ;;  %v10643_v34 = vpop.eup %10642 }
 0x8dc   : > { %v4897_v28 = vmul.f32 0.125, %v4825_v26  ;;  %v4544_v16 = vmul.f32 %v10643_v34, %v4320_v7  ;;  %v10645_v31 = vpop.eup %10644 }
 0x8dd   : > { %4842 = vadd.xlane.f32.xlu0 %v4841_v11 }
 0x8de   : > { %5105 = vst.msk [vmem:[#allocation2 + $0xe1] sm:$0xff] %vm700_vm3, %v4897_v28  ;;  %v4580_v9 = vmul.f32 %v13365_v51, %v4544_v16  ;;  %v4225_v28 = vpop.f32.mrf.mxu1 }
 0x8df   : > { %v5197_v62 = vpop.permute.xlu1 %5196 }
 0x8e0   : > { %5289 = vst.msk [vmem:[#allocation2 + $0x41] sm:$0xff] %vm894_vm5, %v5197_v62  ;;  %v4616_v13 = vadd.f32 %v13372_v63, %v4580_v9  ;;  %v4062_v62 = vadd.f32 %v4061_v4, %v13296_v48  ;;  %v4966_v48 = vsel %vm15894_vm0, %v13648_v42, -inf }
 0x8e1   : > { %4845 = vadd.xlane.f32.xlu0 %v4844_v6  ;;  %5206 = vrot.lane.b32.xlu1 %v13488_v38, %s10989_s15 }
 0x8e2   : > { %v4648_v44 = vmax.f32 %v4616_v13, 0.0 }
 0x8e4   : > { %v4684_v5 = vmul.f32 %v13383_v53, %v4648_v44 }
 0x8e5   : > { %5210 = vrot.lane.b32.xlu1 %v13499_v15, %s10989_s15  ;;  %v4449_v15 = vadd.f32 1.0, %v10645_v31 }
 0x8e6   : > { %v4720_v17 = vadd.f32 %v13387_v1, %v4684_v5 }
 0x8e7   : > { %v13673_v61 = vld [vmem:[#allocation2 + $0x40] sm:$0xff]  ;;  %10646 = vrcp.f32 %v4449_v15 }
 0x8e8   : > { %v4944_v35 = vpop.xlane.xlu0 %4943  ;;  %5354 = vst.msk [vmem:[#allocation3 + $0x20] sm:$0xff] %vm617_vm1, %v13673_v61  ;;  %10648 = vpow2.f32 %v4409_v57  ;;  %v13694_v11 = vmax.f32 %v4720_v17, 0.0 }
 0x8e9   : > { %5134 = vst.msk [vmem:[#allocation2 + $0xb1] sm:$0xff] %vm733_vm4, %v4944_v35  ;;  %v4290_v35 = vadd.f32 %v4225_v28, %v4062_v62 }
 0x8ea   : > { %v4847_v34 = vsel %vm15894_vm0, %v13694_v11, 0.0 }
 0x8ec   : > { %v4947_v18 = vpop.xlane.xlu0 %4946 }
 0x8ed   : > { %5135 = vst.msk [vmem:[#allocation2 + $0xc1] sm:$0xff] %vm733_vm4, %v4947_v18  ;;  %v9425_v18 = vmul.f32 -2.0, %v4290_v35 }
 0x8f0   : > { %v4950_v38 = vpop.xlane.xlu0 %4949 }
 0x8f1   : > { %5136 = vst.msk [vmem:[#allocation2 + $0xd1] sm:$0xff] %vm733_vm4, %v4950_v38 }
 0x8f4   : > { %v4828_v39 = vpop.xlane.xlu0 %4827  ;;  %v10647_v2 = vpop.eup %10646 }
 0x8f5   : > { %v4898_v37 = vmul.f32 0.125, %v4828_v39  ;;  %v10649_v16 = vpop.eup %10648 }
 0x8f6   : > { %v4451_v9 = vadd.f32 1.0, %v10649_v16 }
 0x8f7   : > { %5106 = vst.msk [vmem:[#allocation2 + $0xf1] sm:$0xff] %vm700_vm3, %v4898_v37  ;;  %5208 = vrot.lane.b32.xlu0 %v13494_v55, %s10989_s15  ;;  %v4321_v55 = vmul.f32 2.0, %v4289_v33  ;;  %v4407_v33 = vmul.f32 1.442695, %v9425_v18  ;;  %v4969_v37 = vsel %vm15894_vm0, %v13658_v25, -inf }
 0x8f8   : > { %v5199_v29 = vpop.permute.xlu0 %5198 }
 0x8f9   : > { %5290 = vst.msk [vmem:[#allocation2 + $0x51] sm:$0xff] %vm894_vm5, %v5199_v29  ;;  %v4545_v26 = vmul.f32 %v10647_v2, %v4321_v55  ;;  %10650 = vpow2.f32 %v4407_v33  ;;  %v4323_v55 = vmul.f32 2.0, %v4291_v14 }
 0x8fa   : > { %10652 = vrcp.f32 %v4451_v9  ;;  %v10114_v9 = vpop.f32.mrf.mxu1 }
 0x8fb   : > { %v4581_v6 = vmul.f32 %v13365_v51, %v4545_v26 }
 0x8fd   : > { %v4617_v7 = vadd.f32 %v13372_v63, %v4581_v6 }
 0x8ff   : > { %v4649_v31 = vmax.f32 %v4617_v7, 0.0 }
 0x900   : > { %v13689_v45 = vld [vmem:[#allocation2 + $0x50] sm:$0xff] }
 0x901   : > { %5355 = vst.msk [vmem:[#allocation3 + $0x28] sm:$0xff] %vm617_vm1, %v13689_v45  ;;  %v4685_v21 = vmul.f32 %v13383_v53, %v4649_v31 }
 0x903   : > { %v4721_v29 = vadd.f32 %v13387_v1, %v4685_v21 }
 0x905   : > { %v13714_v5 = vmax.f32 %v4721_v29, 0.0 }
 0x906   : > { %v10651_v17 = vpop.eup %10650 }
 0x907   : > { %v4850_v57 = vsel %vm15894_vm0, %v13714_v5, 0.0  ;;  %v10653_v2 = vpop.eup %10652 }
 0x908   : > { %v4547_v4 = vmul.f32 %v10653_v2, %v4323_v55 }
 0x909   : > { %4848 = vadd.xlane.f32.xlu1 %v4847_v34  ;;  %v4070_v34 = vadd.f32 %v10077_v41, %v13294_v32 }
 0x90a   : > { %v4583_v62 = vmul.f32 %v13365_v51, %v4547_v4 }
 0x90b   : > { %v13728_v14 = vadd.f32 %v10111_v46, %v4070_v34  ;;  %v4322_v46 = vmul.f32 2.0, %v4290_v35  ;;  %v4978_v34 = vsel %vm15894_vm0, %v13714_v5, -inf }
 0x90c   : > { %v4619_v18 = vadd.f32 %v13372_v63, %v4583_v62 }
 0x90d   : > { %v9427_v33 = vmul.f32 -2.0, %v13728_v14 }
 0x90e   : > { %v4651_v31 = vmax.f32 %v4619_v18, 0.0 }
 0x90f   : > { %v4411_v41 = vmul.f32 1.442695, %v9427_v33 }
 0x910   : > { %v4953_v38 = vpop.xlane.xlu1 %4952 }
 0x911   : > { %5137 = vst.msk [vmem:[#allocation2 + $0xe1] sm:$0xff] %vm733_vm4, %v4953_v38  ;;  %v10080_v38 = vpop.f32.mrf.mxu0 }
 0x913   : > { %v4074_v21 = vpop.f32.mrf.mxu0 }
 0x914   : > { %v4834_v15 = vpop.xlane.xlu1 %4833 }
 0x915   : > { %v4900_v39 = vmul.f32 0.125, %v4834_v15  ;;  %v13749_v2 = vpop.f32.mrf.mxu0 }
 0x916   : > { %4967 = vmax.xlane.f32.xlu0 %v4966_v48  ;;  %v4687_v48 = vmul.f32 %v13383_v53, %v4651_v31 }
 0x917   : > { %5108 = vst.msk [vmem:[#allocation2 + $0x111] sm:$0xff] %vm700_vm3, %v4900_v39  ;;  %v4238_v39 = vpop.f32.mrf.mxu1 }
 0x918   : > { %v4956_v13 = vpop.xlane.xlu1 %4955  ;;  %v4723_v29 = vadd.f32 %v13387_v1, %v4687_v48 }
 0x919   : > { %5138 = vst.msk [vmem:[#allocation2 + $0xf1] sm:$0xff] %vm733_vm4, %v4956_v13  ;;  %v4075_v13 = vadd.f32 %v4074_v21, %v13300_v52 }
 0x91a   : > { %4970 = vmax.xlane.f32.xlu0 %v4969_v37  ;;  %5212 = vrot.lane.b32.xlu1 %v13515_v20, %s10989_s15  ;;  %v4450_v20 = vadd.f32 1.0, %v10651_v17  ;;  %v13746_v17 = vmax.f32 %v4723_v29, 0.0 }
 0x91c   : > { %v5201_v44 = vpop.permute.xlu1 %5200  ;;  %10654 = vrcp.f32 %v4450_v20  ;;  %v4856_v55 = vsel %vm15894_vm0, %v13746_v17, 0.0  ;;  %v4077_v20 = vpop.f32.mrf.mxu0 }
 0x91d   : > { %5291 = vst.msk [vmem:[#allocation2 + $0x61] sm:$0xff] %vm894_vm5, %v5201_v44  ;;  %10656 = vpow2.f32 %v4411_v41  ;;  %v13741_v44 = vadd.f32 %v4238_v39, %v4075_v13  ;;  %v4078_v62 = vadd.f32 %v4077_v20, %v13304_v23 }
 0x91e   : > { %4973 = vmax.xlane.f32.xlu0 %v4972_v12 }
 0x91f   : > { %v9428_v35 = vmul.f32 -2.0, %v13741_v44 }
 0x921   : > { %v4413_v4 = vmul.f32 1.442695, %v9428_v35 }
 0x922   : > { %4851 = vadd.xlane.f32.xlu0 %v4850_v57  ;;  %v4975_v57 = vsel %vm15894_vm0, %v13694_v11, -inf }
 0x923   : > { %10658 = vpow2.f32 %v4413_v4 }
 0x924   : > { %v13719_v26 = vld [vmem:[#allocation2 + $0x60] sm:$0xff] }
 0x925   : > { %5356 = vst.msk [vmem:[#allocation3 + $0x30] sm:$0xff] %vm617_vm1, %v13719_v26 }
 0x929   : > { %v4831_v28 = vpop.xlane.xlu0 %4830  ;;  %v10655_v32 = vpop.eup %10654 }
 0x92a   : > { %v4899_v6 = vmul.f32 0.125, %v4831_v28  ;;  %v4546_v37 = vmul.f32 %v10655_v32, %v4322_v46  ;;  %v10657_v18 = vpop.eup %10656 }
 0x92b   : > { %v4452_v33 = vadd.f32 1.0, %v10657_v18 }
 0x92c   : > { %5107 = vst.msk [vmem:[#allocation2 + $0x101] sm:$0xff] %vm700_vm3, %v4899_v6  ;;  %v4582_v12 = vmul.f32 %v13365_v51, %v4546_v37 }
 0x92d   : > { %v5203_v7 = vpop.permute.xlu0 %5202  ;;  %10660 = vrcp.f32 %v4452_v33 }
 0x92e   : > { %5292 = vst.msk [vmem:[#allocation2 + $0x71] sm:$0xff] %vm894_vm5, %v5203_v7  ;;  %v4618_v52 = vadd.f32 %v13372_v63, %v4582_v12 }
 0x930   : > { %v4650_v6 = vmax.f32 %v4618_v52, 0.0 }
 0x931   : > { %v5205_v16 = vpop.permute.xlu0 %5204 }
 0x932   : > { %5293 = vst.msk [vmem:[#allocation2 + $0x81] sm:$0xff] %vm894_vm5, %v5205_v16  ;;  %v4083_v16 = vadd.f32 %v10080_v38, %v13298_v24  ;;  %v4686_v31 = vmul.f32 %v13383_v53, %v4650_v6  ;;  %v10659_v38 = vpop.eup %10658 }
 0x933   : > { %v4453_v12 = vadd.f32 1.0, %v10659_v38 }
 0x934   : > { %v13763_v48 = vadd.f32 %v10114_v9, %v4083_v16  ;;  %v4722_v23 = vadd.f32 %v13387_v1, %v4686_v31 }
 0x935   : > { %v13732_v15 = vld [vmem:[#allocation2 + $0x70] sm:$0xff] }
 0x936   : > { %5357 = vst.msk [vmem:[#allocation3 + $0x38] sm:$0xff] %vm617_vm1, %v13732_v15  ;;  %v9430_v21 = vmul.f32 -2.0, %v13763_v48  ;;  %v13769_v37 = vmax.f32 %v4722_v23, 0.0  ;;  %v4325_v23 = vmul.f32 2.0, %v13741_v44 }
 0x938   : > { %5214 = vrot.lane.b32.xlu0 %v13532_v0, %s10989_s15  ;;  %v13751_v0 = vpop.f32.mrf.mxu1  ;;  %v4417_v24 = vmul.f32 1.442695, %v9430_v21  ;;  %v4853_v29 = vsel %vm15894_vm0, %v13769_v37, 0.0 }
 0x93a   : > { %v4241_v28 = vpop.f32.mrf.mxu1  ;;  %v10661_v52 = vpop.eup %10660 }
 0x93b   : > { %v13759_v7 = vadd.f32 %v4241_v28, %v4078_v62 }
 0x93d   : > { %v9429_v32 = vmul.f32 -2.0, %v13759_v7 }
 0x93e   : > { %4976 = vmax.xlane.f32.xlu1 %v4975_v57 }
 0x93f   : > { %v4415_v46 = vmul.f32 1.442695, %v9429_v32 }
 0x941   : > { %10662 = vpow2.f32 %v4415_v46 }
 0x942   : > { %4857 = vadd.xlane.f32.xlu1 %v4856_v55  ;;  %10664 = vpow2.f32 %v4417_v24  ;;  %v4324_v55 = vmul.f32 2.0, %v13728_v14 }
 0x943   : > { %10666 = vrcp.f32 %v4453_v12 }
 0x944   : > { %v4548_v20 = vmul.f32 %v10661_v52, %v4324_v55  ;;  %v4326_v52 = vmul.f32 2.0, %v13759_v7 }
 0x946   : > { %4979 = vmax.xlane.f32.xlu1 %v4978_v34  ;;  %v4584_v34 = vmul.f32 %v13365_v51, %v4548_v20 }
 0x948   : > { %v4620_v14 = vadd.f32 %v13372_v63, %v4584_v34 }
 0x94d   : > { %v4837_v41 = vpop.xlane.xlu1 %4836 }
 0x94e   : > { %v4901_v39 = vmul.f32 0.125, %v4837_v41  ;;  %v10663_v28 = vpop.eup %10662 }
 0x94f   : > { %v4454_v18 = vadd.f32 1.0, %v10663_v28 }
 0x950   : > { %5109 = vst.msk [vmem:[#allocation2 + $0x121] sm:$0xff] %vm700_vm3, %v4901_v39  ;;  %v4652_v39 = vmax.f32 %v4620_v14, 0.0 }
 0x951   : > { %v4962_v13 = vpop.xlane.xlu1 %4961  ;;  %10668 = vrcp.f32 %v4454_v18 }
 0x952   : > { %5140 = vst.msk [vmem:[#allocation2 + $0x111] sm:$0xff] %vm733_vm4, %v4962_v13 }
 0x955   : > { %v4965_v9 = vpop.xlane.xlu1 %4964 }
 0x956   : > { %5141 = vst.msk [vmem:[#allocation2 + $0x121] sm:$0xff] %vm733_vm4, %v4965_v9  ;;  %v4688_v9 = vmul.f32 %v13383_v53, %v4652_v39 }
 0x957   : > { %4854 = vadd.xlane.f32.xlu0 %v4853_v29  ;;  %5216 = vrot.lane.b32.xlu1 %v13583_v58, %s10989_s15  ;;  %v10665_v58 = vpop.eup %10664  ;;  %v4086_v29 = vadd.f32 %v13749_v2, %v13302_v22  ;;  %v4327_v2 = vmul.f32 2.0, %v13763_v48 }
 0x958   : > { %v4455_v33 = vadd.f32 1.0, %v10665_v58  ;;  %v10667_v41 = vpop.eup %10666 }
 0x959   : > { %v4840_v57 = vpop.xlane.xlu1 %4839  ;;  %v4549_v13 = vmul.f32 %v10667_v41, %v4325_v23  ;;  %v10084_v23 = vpop.f32.mrf.mxu0 }
 0x95a   : > { %v4902_v35 = vmul.f32 0.125, %v4840_v57  ;;  %10670 = vrcp.f32 %v4455_v33  ;;  %v4724_v57 = vadd.f32 %v13387_v1, %v4688_v9 }
 0x95b   : > { %v4585_v44 = vmul.f32 %v13365_v51, %v4549_v13 }
 0x95c   : > { %5110 = vst.msk [vmem:[#allocation2 + $0x151] sm:$0xff] %vm700_vm3, %v4902_v35  ;;  %v13812_v28 = vmax.f32 %v4724_v57, 0.0 }
 0x95d   : > { %v5207_v4 = vpop.permute.xlu1 %5206  ;;  %v4621_v12 = vadd.f32 %v13372_v63, %v4585_v44 }
 0x95e   : > { %5294 = vst.msk [vmem:[#allocation2 + $0xb1] sm:$0xff] %vm894_vm5, %v5207_v4  ;;  %v10669_v35 = vpop.eup %10668  ;;  %v4859_v7 = vsel %vm15894_vm0, %v13812_v28, 0.0 }
 0x95f   : > { %v4653_v4 = vmax.f32 %v4621_v12, 0.0  ;;  %v4550_v20 = vmul.f32 %v10669_v35, %v4326_v52  ;;  %v4981_v52 = vsel %vm15894_vm0, %v13769_v37, -inf }
 0x961   : > { %v5211_v6 = vpop.permute.xlu1 %5210 }
 0x962   : > { %v4959_v62 = vpop.xlane.xlu0 %4958  ;;  %5296 = vst.msk [vmem:[#allocation2 + $0xd1] sm:$0xff] %vm894_vm5, %v5211_v6  ;;  %v4689_v6 = vmul.f32 %v13383_v53, %v4653_v4 }
 0x963   : > { %5139 = vst.msk [vmem:[#allocation2 + $0x101] sm:$0xff] %vm733_vm4, %v4959_v62 }
 0x964   : > { %v4725_v14 = vadd.f32 %v13387_v1, %v4689_v6 }
 0x965   : > { %v13783_v31 = vld [vmem:[#allocation2 + $0xb0] sm:$0xff] }
 0x966   : > { %v4843_v16 = vpop.xlane.xlu0 %4842  ;;  %5359 = vst.msk [vmem:[#allocation3 + $0x48] sm:$0xff] %vm617_vm1, %v13783_v31  ;;  %v13830_v41 = vmax.f32 %v4725_v14, 0.0 }
 0x967   : > { %v4903_v32 = vmul.f32 0.125, %v4843_v16  ;;  %v10671_v22 = vpop.eup %10670  ;;  %v4984_v16 = vsel %vm15894_vm0, %v13746_v17, -inf }
 0x968   : > { %v4551_v62 = vmul.f32 %v10671_v22, %v4327_v2  ;;  %v4862_v13 = vsel %vm15894_vm0, %v13830_v41, 0.0 }
 0x969   : > { %5111 = vst.msk [vmem:[#allocation2 + $0x161] sm:$0xff] %vm700_vm3, %v4903_v32  ;;  %v13790_v46 = vld [vmem:[#allocation2 + $0xd0] sm:$0xff]  ;;  %v4987_v32 = vsel %vm15894_vm0, %v13812_v28, -inf }
 0x96a   : > { %v4846_v21 = vpop.xlane.xlu0 %4845  ;;  %5361 = vst.msk [vmem:[#allocation3 + $0x58] sm:$0xff] %vm617_vm1, %v13790_v46  ;;  %v4587_v18 = vmul.f32 %v13365_v51, %v4551_v62 }
 0x96b   : > { %v4904_v24 = vmul.f32 0.125, %v4846_v21  ;;  %v10118_v21 = vpop.f32.mrf.mxu1 }
 0x96c   : > { %v4623_v48 = vadd.f32 %v13372_v63, %v4587_v18 }
 0x96d   : > { %5112 = vst.msk [vmem:[#allocation2 + $0x171] sm:$0xff] %vm700_vm3, %v4904_v24  ;;  %5218 = vrot.lane.b32.xlu0 %v13553_v8, %s10989_s15  ;;  %v13807_v8 = vadd.f32 %v13751_v0, %v4086_v29  ;;  %v4586_v0 = vmul.f32 %v13365_v51, %v4550_v20  ;;  %v4254_v44 = vpop.f32.mrf.mxu1 }
 0x96e   : > { %v5209_v38 = vpop.permute.xlu0 %5208  ;;  %v4655_v39 = vmax.f32 %v4623_v48, 0.0 }
 0x96f   : > { %5295 = vst.msk [vmem:[#allocation2 + $0xc1] sm:$0xff] %vm894_vm5, %v5209_v38  ;;  %v4622_v58 = vadd.f32 %v13372_v63, %v4586_v0  ;;  %v4090_v38 = vpop.f32.mrf.mxu0  ;;  %v4328_v14 = vmul.f32 2.0, %v13807_v8 }
 0x970   : > { %v4091_v9 = vadd.f32 %v4090_v38, %v13308_v10  ;;  %v4691_v12 = vmul.f32 %v13383_v53, %v4655_v39 }
 0x971   : > { %5220 = vrot.lane.b32.xlu0 %v13630_v40, %s10989_s15  ;;  %v9431_v40 = vmul.f32 -2.0, %v13807_v8  ;;  %v4654_v33 = vmax.f32 %v4622_v58, 0.0 }
 0x972   : > { %v4297_v57 = vadd.f32 %v4254_v44, %v4091_v9  ;;  %v4727_v20 = vadd.f32 %v13387_v1, %v4691_v12 }
 0x973   : > { %v4419_v34 = vmul.f32 1.442695, %v9431_v40  ;;  %v4690_v24 = vmul.f32 %v13383_v53, %v4654_v33 }
 0x974   : > { %v9432_v40 = vmul.f32 -2.0, %v4297_v57  ;;  %v13845_v62 = vmax.f32 %v4727_v20, 0.0  ;;  %v10085_v20 = vpop.f32.mrf.mxu0 }
 0x975   : > { %10672 = vpow2.f32 %v4419_v34  ;;  %v4726_v29 = vadd.f32 %v13387_v1, %v4690_v24 }
 0x976   : > { %v13810_v55 = vld [vmem:[#allocation2 + $0xc0] sm:$0xff]  ;;  %v4421_v0 = vmul.f32 1.442695, %v9432_v40  ;;  %v4868_v34 = vsel %vm15894_vm0, %v13845_v62, 0.0 }
 0x977   : > { %5360 = vst.msk [vmem:[#allocation3 + $0x50] sm:$0xff] %vm617_vm1, %v13810_v55  ;;  %v13840_v4 = vmax.f32 %v4726_v29, 0.0 }
 0x979   : > { %v4865_v10 = vsel %vm15894_vm0, %v13840_v4, 0.0 }
 0x97b   : > { %4860 = vadd.xlane.f32.xlu1 %v4859_v7 }
 0x97f   : > { %4985 = vmax.xlane.f32.xlu1 %v4984_v16 }
 0x982   : > { %v10673_v35 = vpop.eup %10672 }
 0x983   : > { %4988 = vmax.xlane.f32.xlu1 %v4987_v32  ;;  %v4456_v22 = vadd.f32 1.0, %v10673_v35 }
 0x985   : > { %10674 = vrcp.f32 %v4456_v22  ;;  %v10119_v22 = vpop.f32.mrf.mxu1 }
 0x986   : > { %10676 = vpow2.f32 %v4421_v0 }
 0x987   : > { %4863 = vadd.xlane.f32.xlu1 %v4862_v13  ;;  %v4099_v13 = vadd.f32 %v10084_v23, %v13306_v56  ;;  %v4257_v0 = vpop.f32.mrf.mxu1 }
 0x989   : > { %v4299_v9 = vadd.f32 %v10118_v21, %v4099_v13 }
 0x98b   : > { %v9434_v12 = vmul.f32 -2.0, %v4299_v9 }
 0x990   : > { %4982 = vmax.xlane.f32.xlu0 %v4981_v52  ;;  %v4425_v52 = vmul.f32 1.442695, %v9434_v12 }
 0x992   : > { %v4849_v2 = vpop.xlane.xlu1 %4848  ;;  %v10675_v16 = vpop.eup %10674 }
 0x993   : > { %v4905_v7 = vmul.f32 0.125, %v4849_v2  ;;  %v4552_v33 = vmul.f32 %v10675_v16, %v4328_v14  ;;  %v10677_v32 = vpop.eup %10676 }
 0x994   : > { %4866 = vadd.xlane.f32.xlu0 %v4865_v10  ;;  %v4093_v10 = vpop.f32.mrf.mxu0 }
 0x995   : > { %5113 = vst.msk [vmem:[#allocation2 + $0x181] sm:$0xff] %vm700_vm3, %v4905_v7  ;;  %v4588_v39 = vmul.f32 %v13365_v51, %v4552_v33  ;;  %v4094_v7 = vadd.f32 %v4093_v10, %v13312_v36  ;;  %v4990_v36 = vsel %vm15894_vm0, %v13830_v41, -inf }
 0x996   : > { %v5213_v6 = vpop.permute.xlu1 %5212 }
 0x997   : > { %5297 = vst.msk [vmem:[#allocation2 + $0xe1] sm:$0xff] %vm894_vm5, %v5213_v6  ;;  %v4624_v38 = vadd.f32 %v13372_v63, %v4588_v39 }
 0x998   : > { %4869 = vadd.xlane.f32.xlu0 %v4868_v34  ;;  %5222 = vrot.lane.b32.xlu1 %v13648_v42, %s10989_s15  ;;  %v4298_v34 = vadd.f32 %v4257_v0, %v4094_v7 }
 0x999   : > { %v4656_v29 = vmax.f32 %v4624_v38, 0.0  ;;  %v4993_v38 = vsel %vm15894_vm0, %v13840_v4, -inf }
 0x99a   : > { %v9433_v14 = vmul.f32 -2.0, %v4298_v34 }
 0x99b   : > { %v4692_v35 = vmul.f32 %v13383_v53, %v4656_v29  ;;  %v4996_v29 = vsel %vm15894_vm0, %v13845_v62, -inf }
 0x99c   : > { %5226 = vrot.lane.b32.xlu1 %v13663_v59, %s10989_s15  ;;  %v4457_v59 = vadd.f32 1.0, %v10677_v32 }
 0x99d   : > { %v4728_v23 = vadd.f32 %v13387_v1, %v4692_v35 }
 0x99e   : > { %v13855_v58 = vld [vmem:[#allocation2 + $0xe0] sm:$0xff]  ;;  %10678 = vrcp.f32 %v4457_v59 }
 0x99f   : > { %v4968_v18 = vpop.xlane.xlu0 %4967  ;;  %5362 = vst.msk [vmem:[#allocation3 + $0x60] sm:$0xff] %vm617_vm1, %v13855_v58  ;;  %10680 = vpow2.f32 %v4425_v52  ;;  %v13876_v2 = vmax.f32 %v4728_v23, 0.0 }
 0x9a0   : > { %5142 = vst.msk [vmem:[#allocation2 + $0x151] sm:$0xff] %vm733_vm4, %v4968_v18 }
 0x9a1   : > { %v4871_v18 = vsel %vm15894_vm0, %v13876_v2, 0.0 }
 0x9a3   : > { %v4971_v48 = vpop.xlane.xlu0 %4970 }
 0x9a4   : > { %5143 = vst.msk [vmem:[#allocation2 + $0x161] sm:$0xff] %vm733_vm4, %v4971_v48 }
 0x9a7   : > { %v4974_v42 = vpop.xlane.xlu0 %4973 }
 0x9a8   : > { %5144 = vst.msk [vmem:[#allocation2 + $0x171] sm:$0xff] %vm733_vm4, %v4974_v42 }
 0x9ab   : > { %v4852_v24 = vpop.xlane.xlu0 %4851  ;;  %v10679_v21 = vpop.eup %10678 }
 0x9ac   : > { %v4906_v44 = vmul.f32 0.125, %v4852_v24  ;;  %v10681_v48 = vpop.eup %10680 }
 0x9ad   : > { %v4459_v42 = vadd.f32 1.0, %v10681_v48 }
 0x9ae   : > { %5114 = vst.msk [vmem:[#allocation2 + $0x191] sm:$0xff] %vm700_vm3, %v4906_v44  ;;  %5224 = vrot.lane.b32.xlu0 %v13658_v25, %s10989_s15  ;;  %v4329_v25 = vmul.f32 2.0, %v4297_v57  ;;  %v4423_v57 = vmul.f32 1.442695, %v9433_v14 }
 0x9af   : > { %v5215_v8 = vpop.permute.xlu0 %5214 }
 0x9b0   : > { %5298 = vst.msk [vmem:[#allocation2 + $0xf1] sm:$0xff] %vm894_vm5, %v5215_v8  ;;  %v4553_v40 = vmul.f32 %v10679_v21, %v4329_v25  ;;  %10682 = vpow2.f32 %v4423_v57  ;;  %v4331_v21 = vmul.f32 2.0, %v4299_v9 }
 0x9b1   : > { %10684 = vrcp.f32 %v4459_v42 }
 0x9b2   : > { %v4589_v6 = vmul.f32 %v13365_v51, %v4553_v40 }
 0x9b4   : > { %v4625_v16 = vadd.f32 %v13372_v63, %v4589_v6  ;;  %v4102_v6 = vadd.f32 %v10085_v20, %v13310_v43  ;;  %v4330_v43 = vmul.f32 2.0, %v4298_v34 }
 0x9b6   : > { %v4657_v33 = vmax.f32 %v4625_v16, 0.0  ;;  %v4300_v9 = vadd.f32 %v10119_v22, %v4102_v6 }
 0x9b7   : > { %v13871_v56 = vld [vmem:[#allocation2 + $0xf0] sm:$0xff] }
 0x9b8   : > { %5363 = vst.msk [vmem:[#allocation3 + $0x68] sm:$0xff] %vm617_vm1, %v13871_v56  ;;  %v4693_v59 = vmul.f32 %v13383_v53, %v4657_v33  ;;  %v9435_v33 = vmul.f32 -2.0, %v4300_v9 }
 0x9ba   : > { %v4729_v44 = vadd.f32 %v13387_v1, %v4693_v59  ;;  %v4999_v59 = vsel %vm15894_vm0, %v13876_v2, -inf }
 0x9bc   : > { %v13896_v12 = vmax.f32 %v4729_v44, 0.0 }
 0x9bd   : > { %v10683_v52 = vpop.eup %10682 }
 0x9be   : > { %v4874_v35 = vsel %vm15894_vm0, %v13896_v12, 0.0  ;;  %v10685_v23 = vpop.eup %10684 }
 0x9bf   : > { %v4555_v40 = vmul.f32 %v10685_v23, %v4331_v21 }
 0x9c0   : > { %4872 = vadd.xlane.f32.xlu1 %v4871_v18 }
 0x9c1   : > { %v4591_v0 = vmul.f32 %v13365_v51, %v4555_v40 }
 0x9c3   : > { %v4627_v16 = vadd.f32 %v13372_v63, %v4591_v0 }
 0x9c5   : > { %v4659_v48 = vmax.f32 %v4627_v16, 0.0 }
 0x9c7   : > { %v4977_v32 = vpop.xlane.xlu1 %4976  ;;  %v4695_v57 = vmul.f32 %v13383_v53, %v4659_v48 }
 0x9c8   : > { %5145 = vst.msk [vmem:[#allocation2 + $0x181] sm:$0xff] %vm733_vm4, %v4977_v32 }
 0x9c9   : > { %v4731_v22 = vadd.f32 %v13387_v1, %v4695_v57 }
 0x9cb   : > { %v4858_v39 = vpop.xlane.xlu1 %4857 }
 0x9cc   : > { %v4908_v13 = vmul.f32 0.125, %v4858_v39  ;;  %v4427_v39 = vmul.f32 1.442695, %v9435_v33 }
 0x9cd   : > { %4991 = vmax.xlane.f32.xlu0 %v4990_v36 }
 0x9ce   : > { %5116 = vst.msk [vmem:[#allocation2 + $0x1b1] sm:$0xff] %vm700_vm3, %v4908_v13  ;;  %v13922_v13 = vmax.f32 %v4731_v22, 0.0 }
 0x9cf   : > { %v4980_v24 = vpop.xlane.xlu1 %4979 }
 0x9d0   : > { %5146 = vst.msk [vmem:[#allocation2 + $0x191] sm:$0xff] %vm733_vm4, %v4980_v24  ;;  %v4880_v34 = vsel %vm15894_vm0, %v13922_v13, 0.0 }
 0x9d1   : > { %4994 = vmax.xlane.f32.xlu0 %v4993_v38  ;;  %5228 = vrot.lane.b32.xlu1 %v13694_v11, %s10989_s15  ;;  %v4458_v11 = vadd.f32 1.0, %v10683_v52 }
 0x9d3   : > { %v5217_v8 = vpop.permute.xlu1 %5216  ;;  %10686 = vrcp.f32 %v4458_v11 }
 0x9d4   : > { %5299 = vst.msk [vmem:[#allocation2 + $0x101] sm:$0xff] %vm894_vm5, %v5217_v8  ;;  %10688 = vpow2.f32 %v4427_v39 }
 0x9d5   : > { %4997 = vmax.xlane.f32.xlu0 %v4996_v29 }
 0x9d9   : > { %4875 = vadd.xlane.f32.xlu0 %v4874_v35 }
 0x9db   : > { %v13901_v25 = vld [vmem:[#allocation2 + $0x100] sm:$0xff] }
 0x9dc   : > { %5364 = vst.msk [vmem:[#allocation3 + $0x70] sm:$0xff] %vm617_vm1, %v13901_v25 }
 0x9e0   : > { %v4855_v10 = vpop.xlane.xlu0 %4854  ;;  %v10687_v42 = vpop.eup %10686 }
 0x9e1   : > { %v4907_v7 = vmul.f32 0.125, %v4855_v10  ;;  %v4554_v20 = vmul.f32 %v10687_v42, %v4330_v43  ;;  %v10689_v44 = vpop.eup %10688 }
 0x9e2   : > { %v4460_v29 = vadd.f32 1.0, %v10689_v44 }
 0x9e3   : > { %5115 = vst.msk [vmem:[#allocation2 + $0x1a1] sm:$0xff] %vm700_vm3, %v4907_v7  ;;  %v4590_v36 = vmul.f32 %v13365_v51, %v4554_v20 }
 0x9e4   : > { %v5219_v18 = vpop.permute.xlu0 %5218  ;;  %10690 = vrcp.f32 %v4460_v29 }
 0x9e5   : > { %5300 = vst.msk [vmem:[#allocation2 + $0x111] sm:$0xff] %vm894_vm5, %v5219_v18  ;;  %v4626_v24 = vadd.f32 %v13372_v63, %v4590_v36  ;;  %v4332_v18 = vmul.f32 2.0, %v4300_v9 }
 0x9e7   : > { %v4658_v38 = vmax.f32 %v4626_v24, 0.0 }
 0x9e8   : > { %v5221_v14 = vpop.permute.xlu0 %5220 }
 0x9e9   : > { %5301 = vst.msk [vmem:[#allocation2 + $0x121] sm:$0xff] %vm894_vm5, %v5221_v14  ;;  %v4694_v8 = vmul.f32 %v13383_v53, %v4658_v38 }
 0x9eb   : > { %v4730_v52 = vadd.f32 %v13387_v1, %v4694_v8 }
 0x9ec   : > { %v13912_v32 = vld [vmem:[#allocation2 + $0x110] sm:$0xff] }
 0x9ed   : > { %5365 = vst.msk [vmem:[#allocation3 + $0x78] sm:$0xff] %vm617_vm1, %v13912_v32  ;;  %v13932_v40 = vmax.f32 %v4730_v52, 0.0 }
 0x9ef   : > { %5230 = vrot.lane.b32.xlu0 %v13714_v5, %s10989_s15  ;;  %v5002_v5 = vsel %vm15894_vm0, %v13896_v12, -inf  ;;  %v4877_v10 = vsel %vm15894_vm0, %v13932_v40, 0.0 }
 0x9f1   : > { %v10691_v6 = vpop.eup %10690 }
 0x9f2   : > { %v4556_v14 = vmul.f32 %v10691_v6, %v4332_v18  ;;  %v5961_v18 = vld [vmem:[#allocation2 + $0x41] sm:$0xff] }
 0x9f4   : > { %v4592_v57 = vmul.f32 %v13365_v51, %v4556_v14 }
 0x9f5   : > { %5000 = vmax.xlane.f32.xlu1 %v4999_v59 }
 0x9f6   : > { %v4628_v39 = vadd.f32 %v13372_v63, %v4592_v57  ;;  %v10424_v57 = vld [vmem:[%s15858_s5 + $0x28] sm:$0x1f]  }
 0x9f8   : > { %v4660_v22 = vmax.f32 %v4628_v39, 0.0 }
 0x9f9   : > { %4881 = vadd.xlane.f32.xlu1 %v4880_v34 }
 0x9fa   : > { %v4696_v36 = vmul.f32 %v13383_v53, %v4660_v22 }
 0x9fc   : > { %v4732_v59 = vadd.f32 %v13387_v1, %v4696_v36  ;;  %v10428_v36 = vld [vmem:[%s15858_s5 + $0x8] sm:$0xff]  }
 0x9fd   : > { %5003 = vmax.xlane.f32.xlu1 %v5002_v5 }
 0x9fe   : > { %v4764_v34 = vmax.f32 %v4732_v59, 0.0  ;;  %v6729_v59 = vld [vmem:[#allocation2 + $0x52] sm:$0xff] }
 0xa00   : > { %v4883_v38 = vsel %vm15894_vm0, %v4764_v34, 0.0  ;;  %v5011_v53 = vsel %vm15894_vm0, %v4764_v34, -inf }
 0xa04   : > { %v4861_v35 = vpop.xlane.xlu1 %4860 }
 0xa05   : > { %v4909_v23 = vmul.f32 0.125, %v4861_v35  ;;  %v5382_v35 = vld [vmem:[#allocation2 + $0x1] sm:$0xff] }
 0xa07   : > { %5117 = vst.msk [vmem:[#allocation2 + $0x1c1] sm:$0xff] %vm700_vm3, %v4909_v23  ;;  %v5383_v23 = vld [vmem:[#allocation2 + $0x11] sm:$0xff] }
 0xa08   : > { %v4986_v21 = vpop.xlane.xlu1 %4985 }
 0xa09   : > { %5148 = vst.msk [vmem:[#allocation2 + $0x1b1] sm:$0xff] %vm733_vm4, %v4986_v21  ;;  %v5385_v21 = vld [vmem:[#allocation2 + $0x31] sm:$0xff] }
 0xa0c   : > { %v4989_v11 = vpop.xlane.xlu1 %4988 }
 0xa0d   : > { %5149 = vst.msk [vmem:[#allocation2 + $0x1c1] sm:$0xff] %vm733_vm4, %v4989_v11  ;;  %v5575_v11 = vld [vmem:[#allocation2 + $0x12] sm:$0xff] }
 0xa0e   : > { %4878 = vadd.xlane.f32.xlu0 %v4877_v10  ;;  %5232 = vrot.lane.b32.xlu1 %v13769_v37, %s10989_s15 }
 0xa10   : > { %v4864_v0 = vpop.xlane.xlu1 %4863 }
 0xa11   : > { %v4910_v7 = vmul.f32 0.125, %v4864_v0  ;;  %v5577_v0 = vld [vmem:[#allocation2 + $0x32] sm:$0xff] }
 0xa13   : > { %5118 = vst.msk [vmem:[#allocation2 + $0x1f1] sm:$0xff] %vm700_vm3, %v4910_v7  ;;  %v5576_v7 = vld [vmem:[#allocation2 + $0x22] sm:$0xff] }
 0xa14   : > { %v5223_v16 = vpop.permute.xlu1 %5222 }
 0xa15   : > { %5302 = vst.msk [vmem:[#allocation2 + $0x151] sm:$0xff] %vm894_vm5, %v5223_v16 }
 0xa18   : > { %v5227_v33 = vpop.permute.xlu1 %5226 }
 0xa19   : > { %v4983_v48 = vpop.xlane.xlu0 %4982  ;;  %5304 = vst.msk [vmem:[#allocation2 + $0x171] sm:$0xff] %vm894_vm5, %v5227_v33 }
 0xa1a   : > { %5147 = vst.msk [vmem:[#allocation2 + $0x1a1] sm:$0xff] %vm733_vm4, %v4983_v48  ;;  %v6153_v48 = vld [vmem:[#allocation2 + $0x42] sm:$0xff] }
 0xa1c   : > { %v13945_v37 = vld [vmem:[#allocation2 + $0x150] sm:$0xff] }
 0xa1d   : > { %v4867_v42 = vpop.xlane.xlu0 %4866  ;;  %5367 = vst.msk [vmem:[#allocation3 + $0x88] sm:$0xff] %vm617_vm1, %v13945_v37 }
 0xa1e   : > { %v4911_v9 = vmul.f32 0.125, %v4867_v42 }
 0xa20   : > { %5119 = vst.msk [vmem:[#allocation2 + $0x201] sm:$0xff] %vm700_vm3, %v4911_v9  ;;  %v13951_v20 = vld [vmem:[#allocation2 + $0x170] sm:$0xff] }
 0xa21   : > { %v4870_v43 = vpop.xlane.xlu0 %4869  ;;  %5369 = vst.msk [vmem:[#allocation3 + $0x98] sm:$0xff] %vm617_vm1, %v13951_v20 }
 0xa22   : > { %v4912_v51 = vmul.f32 0.125, %v4870_v43  ;;  %v10426_v43 = vld [vmem:[%s15858_s5 + $0x18] sm:$0xff]  }
 0xa24   : > { %5120 = vst.msk [vmem:[#allocation2 + $0x211] sm:$0xff] %vm700_vm3, %v4912_v51  ;;  %5234 = vrot.lane.b32.xlu0 %v13746_v17, %s10989_s15  ;;  %v5008_v17 = vsel %vm15894_vm0, %v13922_v13, -inf  ;;  %v10427_v51 = vld [vmem:[%s15858_s5 + $0x10] sm:$0xff]  }
 0xa25   : > { %v5225_v63 = vpop.permute.xlu0 %5224 }
 0xa26   : > { %5303 = vst.msk [vmem:[#allocation2 + $0x161] sm:$0xff] %vm894_vm5, %v5225_v63 }
 0xa28   : > { %5236 = vrot.lane.b32.xlu0 %v13812_v28, %s10989_s15  ;;  %v5005_v28 = vsel %vm15894_vm0, %v13932_v40, -inf  ;;  %vm15948_vm0 = vcmask 1044480  }
 0xa29   : > { %10386 = vmatprep.subr.msk.bf16.mxu0 %vm15948_vm0, %v10424_v57  ;;  %vm15949_vm6 = vmmov %vm15948_vm0  ;;  %vm15950_vm0 = vcmask 1040384  }
 0xa2a   : > { %v7050_v42 = vsel %vm15949_vm6, %v10424_v57, 0  ;;  %vm15955_vm6 = vmmov %vm15950_vm0 }
 0xa2b   : > { %10121 = vmatpush3.bf16.msra.mxu0 %v7050_v42 }
 0xa2d   : > { %v13963_v24 = vld [vmem:[#allocation2 + $0x160] sm:$0xff] }
 0xa2e   : > { %5368 = vst.msk [vmem:[#allocation3 + $0x90] sm:$0xff] %vm617_vm1, %v13963_v24 }
 0xa32   : > { %4884 = vadd.xlane.f32.xlu1 %v4883_v38  ;;  %v10429_v38 = vld [vmem:[%s15858_s5] sm:$0xff]  }
 0xa36   : > { %5009 = vmax.xlane.f32.xlu1 %v5008_v17  ;;  %v5389_v17 = vld [vmem:[#allocation2 + $0x71] sm:$0xff] }
 0xa3a   : > { %5012 = vmax.xlane.f32.xlu1 %v5011_v53  ;;  %v5388_v53 = vld [vmem:[#allocation2 + $0x61] sm:$0xff] }
 0xa47   : > { %5006 = vmax.xlane.f32.xlu0 %v5005_v28  ;;  %v5581_v28 = vld [vmem:[#allocation2 + $0x72] sm:$0xff] }
 0xa49   : > { %v4873_v1 = vpop.xlane.xlu1 %4872 }
 0xa4a   : > { %v4913_v5 = vmul.f32 0.125, %v4873_v1  ;;  %v14086_v1 = vld [vmem:[#allocation2 + $0x62] sm:$0xff] }
 0xa4b   : > { %5238 = vrot.lane.b32.xlu1 %v13830_v41, %s10989_s15 }
 0xa4c   : > { %5121 = vst.msk [vmem:[#allocation2 + $0x221] sm:$0xff] %vm700_vm3, %v4913_v5  ;;  %v5773_v5 = vld [vmem:[#allocation2 + $0x80] sm:$0xff] }
 0xa4d   : > { %v5229_v44 = vpop.permute.xlu1 %5228 }
 0xa4e   : > { %5305 = vst.msk [vmem:[#allocation2 + $0x181] sm:$0xff] %vm894_vm5, %v5229_v44 }
 0xa4f   : > { %5242 = vrot.lane.b32.xlu1 %v13845_v62, %s10989_s15  ;;  %v5318_v62 = vld [vmem:[#allocation2] sm:$0xff] }
 0xa50   : > { %5350 = vst.msk [vmem:[#allocation3] sm:$0xff] %vm617_vm1, %v5318_v62 }
 0xa53   : > { %5244 = vrot.lane.b32.xlu1 %v13876_v2, %s10989_s15 }
 0xa55   : > { %v13981_v29 = vld [vmem:[#allocation2 + $0x180] sm:$0xff] }
 0xa56   : > { %v4992_v8 = vpop.xlane.xlu0 %4991  ;;  %5370 = vst.msk [vmem:[#allocation3 + $0xa0] sm:$0xff] %vm617_vm1, %v13981_v29 }
 0xa57   : > { %5150 = vst.msk [vmem:[#allocation2 + $0x1f1] sm:$0xff] %vm733_vm4, %v4992_v8  ;;  %5246 = vrot.lane.b32.xlu1 %v13896_v12, %s10989_s15 }
 0xa5a   : > { %v4995_v41 = vpop.xlane.xlu0 %4994 }
 0xa5b   : > { %5151 = vst.msk [vmem:[#allocation2 + $0x201] sm:$0xff] %vm733_vm4, %v4995_v41  ;;  %5248 = vrot.lane.b32.xlu1 %v13932_v40, %s10989_s15  ;;  %v5384_v40 = vld [vmem:[#allocation2 + $0x21] sm:$0xff] }
 0xa5c   : > { %v5965_v41 = vld [vmem:[#allocation2 + $0x81] sm:$0xff] }
 0xa5d   : > { %5240 = vrot.lane.b32.xlu0 %v13840_v4, %s10989_s15 }
 0xa5e   : > { %v4998_v2 = vpop.xlane.xlu0 %4997 }
 0xa5f   : > { %5152 = vst.msk [vmem:[#allocation2 + $0x211] sm:$0xff] %vm733_vm4, %v4998_v2  ;;  %5252 = vrot.lane.b32.xlu1 %v4764_v34, %s10989_s15  ;;  %v14107_v2 = vld [vmem:[#allocation2 + $0x82] sm:$0xff] }
 0xa61   : > { %5250 = vrot.lane.b32.xlu0 %v13922_v13, %s10989_s15  ;;  %v5574_v13 = vld [vmem:[#allocation2 + $0x2] sm:$0xff] }
 0xa62   : > { %v4876_v12 = vpop.xlane.xlu0 %4875 }
 0xa63   : > { %v4914_v52 = vmul.f32 0.125, %v4876_v12  ;;  %5448 = vrot.lane.b32.xlu1 %v5383_v23, %s10990_s16 }
 0xa65   : > { %5122 = vst.msk [vmem:[#allocation2 + $0x231] sm:$0xff] %vm700_vm3, %v4914_v52  ;;  %5446 = vrot.lane.b32.xlu0 %v5382_v35, %s10990_s16  ;;  %v6349_v52 = vld [vmem:[#allocation2 + $0x90] sm:$0xff] }
 0xa66   : > { %v5231_v4 = vpop.permute.xlu0 %5230 }
 0xa67   : > { %5306 = vst.msk [vmem:[#allocation2 + $0x191] sm:$0xff] %vm894_vm5, %v5231_v4  ;;  %5452 = vrot.lane.b32.xlu1 %v5385_v21, %s10990_s16 }
 0xa69   : > { %5450 = vrot.lane.b32.xlu0 %v5384_v40, %s10990_s16 }
 0xa6b   : > { %5640 = vrot.lane.b32.xlu1 %v5575_v11, %s10991_s17 }
 0xa6d   : > { %5638 = vrot.lane.b32.xlu0 %v5574_v13, %s10991_s17  ;;  %v6541_v13 = vld [vmem:[#allocation2 + $0x91] sm:$0xff] }
 0xa6e   : > { %v14006_v10 = vld [vmem:[#allocation2 + $0x190] sm:$0xff] }
 0xa6f   : > { %5371 = vst.msk [vmem:[#allocation3 + $0xa8] sm:$0xff] %vm617_vm1, %v14006_v10  ;;  %5644 = vrot.lane.b32.xlu1 %v5577_v0, %s10991_s17 }
 0xa71   : > { %5642 = vrot.lane.b32.xlu0 %v5576_v7, %s10991_s17 }
 0xa73   : > { %5832 = vrot.lane.b32.xlu1 %v13628_v47, %s10992_s18 }
 0xa75   : > { %5830 = vrot.lane.b32.xlu0 %v13601_v27, %s10992_s18 }
 0xa77   : > { %5836 = vrot.lane.b32.xlu1 %v13673_v61, %s10992_s18 }
 0xa79   : > { %5834 = vrot.lane.b32.xlu0 %v13608_v50, %s10992_s18 }
 0xa7b   : > { %6024 = vrot.lane.b32.xlu1 %v5384_v40, %s10993_s19 }
 0xa7d   : > { %6022 = vrot.lane.b32.xlu0 %v5383_v23, %s10993_s19 }
 0xa7e   : > { %v5001_v6 = vpop.xlane.xlu1 %5000 }
 0xa7f   : > { %5153 = vst.msk [vmem:[#allocation2 + $0x221] sm:$0xff] %vm733_vm4, %v5001_v6  ;;  %6028 = vrot.lane.b32.xlu1 %v5961_v18, %s10993_s19  ;;  %v5326_v6 = vld [vmem:[#allocation2 + $0xa0] sm:$0xff] }
 0xa80   : > { %5358 = vst.msk [vmem:[#allocation3 + $0x40] sm:$0xff] %vm617_vm1, %v5326_v6 }
 0xa81   : > { %6026 = vrot.lane.b32.xlu0 %v5385_v21, %s10993_s19 }
 0xa82   : > { %v4882_v16 = vpop.xlane.xlu1 %4881 }
 0xa83   : > { %v4916_v27 = vmul.f32 0.125, %v4882_v16  ;;  %6216 = vrot.lane.b32.xlu1 %v5576_v7, %s10994_s20 }
 0xa85   : > { %6214 = vrot.lane.b32.xlu0 %v5575_v11, %s10994_s20  ;;  %5124 = vst.msk [vmem:[#allocation2 + $0x251] sm:$0xff] %vm700_vm3, %v4916_v27 }
 0xa86   : > { %v5004_v14 = vpop.xlane.xlu1 %5003 }
 0xa87   : > { %5154 = vst.msk [vmem:[#allocation2 + $0x231] sm:$0xff] %vm733_vm4, %v5004_v14  ;;  %6220 = vrot.lane.b32.xlu1 %v6153_v48, %s10994_s20 }
 0xa89   : > { %6218 = vrot.lane.b32.xlu0 %v5577_v0, %s10994_s20 }
 0xa8a   : > { %v5233_v33 = vpop.permute.xlu1 %5232 }
 0xa8b   : > { %5307 = vst.msk [vmem:[#allocation2 + $0x1a1] sm:$0xff] %vm894_vm5, %v5233_v33  ;;  %6408 = vrot.lane.b32.xlu1 %v13608_v50, %s10995_s21  ;;  %v10425_v50 = vld [vmem:[%s15858_s5 + $0x20] sm:$0xff]   ;;  %v5391_v33 = vld [vmem:[#allocation2 + $0xb1] sm:$0xff] }
 0xa8c   : > { %10122 = vmatprep.subr.bf16.mxu0 %v10425_v50 }
 0xa8d   : > { %6406 = vrot.lane.b32.xlu0 %v13628_v47, %s10995_s21  ;;  %10123 = vmatpush3.bf16.msra.mxu0 %v10425_v50  ;;  %v6733_v50 = vld [vmem:[#allocation2 + $0x92] sm:$0xff] }
 0xa8e   : > { %10124 = vmatprep.subr.bf16.mxu0 %v10426_v43 }
 0xa8f   : > { %6412 = vrot.lane.b32.xlu1 %v13689_v45, %s10995_s21 }
 0xa91   : > { %6410 = vrot.lane.b32.xlu0 %v13673_v61, %s10995_s21  ;;  %v6537_v61 = vld [vmem:[#allocation2 + $0x51] sm:$0xff]  ;;  %10125 = vmatpush3.bf16.msra.mxu0 %v10426_v43 }
 0xa92   : > { %v14045_v39 = vld [vmem:[#allocation2 + $0x1a0] sm:$0xff]  ;;  %10126 = vmatprep.subr.bf16.mxu0 %v10427_v51 }
 0xa93   : > { %6600 = vrot.lane.b32.xlu1 %v5385_v21, %s10996_s22  ;;  %5372 = vst.msk [vmem:[#allocation3 + $0xb0] sm:$0xff] %vm617_vm1, %v14045_v39 }
 0xa95   : > { %6598 = vrot.lane.b32.xlu0 %v5384_v40, %s10996_s22  ;;  %10127 = vmatpush3.bf16.msra.mxu0 %v10427_v51 }
 0xa96   : > { %10128 = vmatprep.subr.bf16.mxu0 %v10428_v36 }
 0xa97   : > { %v4879_v47 = vpop.xlane.xlu0 %4878  ;;  %6604 = vrot.lane.b32.xlu1 %v6537_v61, %s10996_s22 }
 0xa98   : > { %v4915_v9 = vmul.f32 0.125, %v4879_v47 }
 0xa99   : > { %6602 = vrot.lane.b32.xlu0 %v5961_v18, %s10996_s22  ;;  %10129 = vmatpush3.bf16.msra.mxu0 %v10428_v36  ;;  %v14177_v36 = vld [vmem:[#allocation2 + $0xc1] sm:$0xff] }
 0xa9a   : > { %5123 = vst.msk [vmem:[#allocation2 + $0x241] sm:$0xff] %vm700_vm3, %v4915_v9  ;;  %10130 = vmatprep.subr.bf16.mxu0 %v10429_v38 }
 0xa9b   : > { %v5235_v22 = vpop.permute.xlu0 %5234  ;;  %6792 = vrot.lane.b32.xlu1 %v5577_v0, %s10997_s27 }
 0xa9c   : > { %5308 = vst.msk [vmem:[#allocation2 + $0x1b1] sm:$0xff] %vm894_vm5, %v5235_v22  ;;  %v14173_v22 = vld [vmem:[#allocation2 + $0xd1] sm:$0xff] }
 0xa9d   : > { %6790 = vrot.lane.b32.xlu0 %v5576_v7, %s10997_s27  ;;  %10131 = vmatpush3.bf16.msra.mxu0 %v10429_v38  ;;  %v5583_v38 = vld [vmem:[#allocation2 + $0xb2] sm:$0xff] }
 0xa9f   : > { %v5237_v63 = vpop.permute.xlu0 %5236  ;;  %5456 = vrot.lane.b32.xlu1 %v6537_v61, %s10990_s16 }
 0xaa0   : > { %5309 = vst.msk [vmem:[#allocation2 + $0x1c1] sm:$0xff] %vm894_vm5, %v5237_v63 }
 0xaa1   : > { %5454 = vrot.lane.b32.xlu0 %v5961_v18, %s10990_s16 }
 0xaa3   : > { %v14072_v34 = vld [vmem:[#allocation2 + $0x1b0] sm:$0xff]  ;;  %6796 = vrot.lane.b32.xlu1 %v6729_v59, %s10997_s27 }
 0xaa4   : > { %5373 = vst.msk [vmem:[#allocation3 + $0xb8] sm:$0xff] %vm617_vm1, %v14072_v34 }
 0xaa5   : > { %6794 = vrot.lane.b32.xlu0 %v6153_v48, %s10997_s27 }
 0xaa7   : > { %5460 = vrot.lane.b32.xlu1 %v5389_v17, %s10990_s16 }
 0xaa9   : > { %5458 = vrot.lane.b32.xlu0 %v5388_v53, %s10990_s16 }
 0xaab   : > { %5648 = vrot.lane.b32.xlu1 %v6729_v59, %s10991_s17 }
 0xaad   : > { %5646 = vrot.lane.b32.xlu0 %v6153_v48, %s10991_s17  ;;  %v5390_v48 = vld [vmem:[#allocation2 + $0xa1] sm:$0xff] }
 0xaaf   : > { %5652 = vrot.lane.b32.xlu1 %v5581_v28, %s10991_s17 }
 0xab1   : > { %5650 = vrot.lane.b32.xlu0 %v14086_v1, %s10991_s17 }
 0xab3   : > { %5840 = vrot.lane.b32.xlu1 %v13719_v26, %s10992_s18 }
 0xab5   : > { %5838 = vrot.lane.b32.xlu0 %v13689_v45, %s10992_s18 }
 0xab7   : > { %5844 = vrot.lane.b32.xlu1 %v5773_v5, %s10992_s18 }
 0xab9   : > { %5842 = vrot.lane.b32.xlu0 %v13732_v15, %s10992_s18 }
 0xabb   : > { %v4885_v44 = vpop.xlane.xlu1 %4884  ;;  %6032 = vrot.lane.b32.xlu1 %v5388_v53, %s10993_s19 }
 0xabc   : > { %v4917_v8 = vmul.f32 0.125, %v4885_v44  ;;  %v14191_v44 = vld [vmem:[#allocation2 + $0xc2] sm:$0xff] }
 0xabd   : > { %6030 = vrot.lane.b32.xlu0 %v6537_v61, %s10993_s19 }
 0xabe   : > { %5125 = vst.msk [vmem:[#allocation2 + $0x261] sm:$0xff] %vm700_vm3, %v4917_v8  ;;  %vm15951_vm3 = vmmov %vm15950_vm0 }
 0xabf   : > { %v5010_v62 = vpop.xlane.xlu1 %5009  ;;  %6036 = vrot.lane.b32.xlu1 %v5965_v41, %s10993_s19 }
 0xac0   : > { %5156 = vst.msk [vmem:[#allocation2 + $0x251] sm:$0xff] %vm733_vm4, %v5010_v62 }
 0xac1   : > { %6034 = vrot.lane.b32.xlu0 %v5389_v17, %s10993_s19 }
 0xac3   : > { %v5013_v45 = vpop.xlane.xlu1 %5012  ;;  %6224 = vrot.lane.b32.xlu1 %v14086_v1, %s10994_s20 }
 0xac4   : > { %5157 = vst.msk [vmem:[#allocation2 + $0x261] sm:$0xff] %vm733_vm4, %v5013_v45 }
 0xac5   : > { %6222 = vrot.lane.b32.xlu0 %v6729_v59, %s10994_s20  ;;  %v5582_v59 = vld [vmem:[#allocation2 + $0xa2] sm:$0xff] }
 0xac7   : > { %v5239_v12 = vpop.permute.xlu1 %5238  ;;  %6228 = vrot.lane.b32.xlu1 %v14107_v2, %s10994_s20 }
 0xac8   : > { %5310 = vst.msk [vmem:[#allocation2 + $0x1f1] sm:$0xff] %vm894_vm5, %v5239_v12 }
 0xac9   : > { %6226 = vrot.lane.b32.xlu0 %v5581_v28, %s10994_s20 }
 0xacb   : > { %v5243_v35 = vpop.permute.xlu1 %5242  ;;  %6416 = vrot.lane.b32.xlu1 %v13732_v15, %s10995_s21 }
 0xacc   : > { %5312 = vst.msk [vmem:[#allocation2 + $0x211] sm:$0xff] %vm894_vm5, %v5243_v35 }
 0xacd   : > { %6414 = vrot.lane.b32.xlu0 %v13719_v26, %s10995_s21 }
 0xacf   : > { %v5245_v23 = vpop.permute.xlu1 %5244  ;;  %6420 = vrot.lane.b32.xlu1 %v6349_v52, %s10995_s21  ;;  %v14119_v21 = vld [vmem:[#allocation2 + $0x1f0] sm:$0xff] }
 0xad0   : > { %v5007_v4 = vpop.xlane.xlu0 %5006  ;;  %5313 = vst.msk [vmem:[#allocation2 + $0x221] sm:$0xff] %vm894_vm5, %v5245_v23 }
 0xad1   : > { %5155 = vst.msk [vmem:[#allocation2 + $0x241] sm:$0xff] %vm733_vm4, %v5007_v4  ;;  %6418 = vrot.lane.b32.xlu0 %v5773_v5, %s10995_s21  ;;  %vm15953_vm4 = vmmov %vm15950_vm0 }
 0xad2   : > { %5375 = vst.msk [vmem:[#allocation3 + $0xc8] sm:$0xff] %vm617_vm1, %v14119_v21 }
 0xad3   : > { %v5247_v15 = vpop.permute.xlu1 %5246  ;;  %6608 = vrot.lane.b32.xlu1 %v5389_v17, %s10996_s22  ;;  %v14127_v40 = vld [vmem:[#allocation2 + $0x210] sm:$0xff] }
 0xad4   : > { %v5241_v26 = vpop.permute.xlu0 %5240  ;;  %5314 = vst.msk [vmem:[#allocation2 + $0x231] sm:$0xff] %vm894_vm5, %v5247_v15  ;;  %v14224_v15 = vld [vmem:[#allocation2 + $0xe2] sm:$0xff] }
 0xad5   : > { %5311 = vst.msk [vmem:[#allocation2 + $0x201] sm:$0xff] %vm894_vm5, %v5241_v26  ;;  %6606 = vrot.lane.b32.xlu0 %v5388_v53, %s10996_s22 }
 0xad6   : > { %5377 = vst.msk [vmem:[#allocation3 + $0xd8] sm:$0xff] %vm617_vm1, %v14127_v40 }
 0xad7   : > { %6612 = vrot.lane.b32.xlu1 %v6541_v13, %s10996_s22  ;;  %v5249_v11 = vpop.permute.xlu1 %5248  ;;  %v14135_v7 = vld [vmem:[#allocation2 + $0x220] sm:$0xff] }
 0xad8   : > { %v5251_v0 = vpop.permute.xlu0 %5250  ;;  %5315 = vst.msk [vmem:[#allocation2 + $0x241] sm:$0xff] %vm894_vm5, %v5249_v11 }
 0xad9   : > { %5316 = vst.msk [vmem:[#allocation2 + $0x251] sm:$0xff] %vm894_vm5, %v5251_v0  ;;  %6610 = vrot.lane.b32.xlu0 %v5965_v41, %s10996_s22 }
 0xada   : > { %5378 = vst.msk [vmem:[#allocation3 + $0xe0] sm:$0xff] %vm617_vm1, %v14135_v7 }
 0xadb   : > { %6800 = vrot.lane.b32.xlu1 %v5581_v28, %s10997_s27  ;;  %v5253_v18 = vpop.permute.xlu1 %5252  ;;  %v14150_v14 = vld [vmem:[#allocation2 + $0x230] sm:$0xff] }
 0xadc   : > { %v5447_v16 = vpop.permute.xlu0 %5446  ;;  %v14144_v27 = vld [vmem:[#allocation2 + $0x200] sm:$0xff]  ;;  %5317 = vst.msk [vmem:[#allocation2 + $0x261] sm:$0xff] %vm894_vm5, %v5253_v18  ;;  %v14187_v28 = vld [vmem:[#allocation2 + $0xd2] sm:$0xff]  ;;  %vm15954_vm5 = vmmov %vm15950_vm0 }
 0xadd   : > { %5542 = vst.msk [vmem:[#allocation3] sm:$0xff] %vm1151_vm7, %v5447_v16  ;;  %6798 = vrot.lane.b32.xlu0 %v14086_v1, %s10997_s27 }
 0xade   : > { %5376 = vst.msk [vmem:[#allocation3 + $0xd0] sm:$0xff] %vm617_vm1, %v14144_v27  ;;  %5379 = vst.msk [vmem:[#allocation3 + $0xe8] sm:$0xff] %vm617_vm1, %v14150_v14 }
 0xadf   : > { %5464 = vrot.lane.b32.xlu1 %v5391_v33, %s10990_s16  ;;  %v5449_v57 = vpop.permute.xlu1 %5448  ;;  %v14160_v47 = vld [vmem:[#allocation2 + $0x240] sm:$0xff] }
 0xae0   : > { %v5451_v42 = vpop.permute.xlu0 %5450  ;;  %5543 = vst.msk [vmem:[#allocation3 + $0x8] sm:$0xff] %vm1151_vm7, %v5449_v57  ;;  %v14162_v61 = vld [vmem:[#allocation2 + $0x250] sm:$0xff] }
 0xae1   : > { %5544 = vst.msk [vmem:[#allocation3 + $0x10] sm:$0xff] %vm1151_vm7, %v5451_v42  ;;  %5462 = vrot.lane.b32.xlu0 %v5390_v48, %s10990_s16 }
 0xae2   : > { %5380 = vst.msk [vmem:[#allocation3 + $0xf0] sm:$0xff] %vm617_vm1, %v14160_v47  ;;  %5381 = vst.msk [vmem:[#allocation3 + $0xf8] sm:$0xff] %vm617_vm1, %v14162_v61 }
 0xae3   : > { %6804 = vrot.lane.b32.xlu1 %v6733_v50, %s10997_s27  ;;  %v5453_v9 = vpop.permute.xlu1 %5452 }
 0xae4   : > { %v5639_v43 = vpop.permute.xlu0 %5638  ;;  %5545 = vst.msk [vmem:[#allocation3 + $0x18] sm:$0xff] %vm1151_vm7, %v5453_v9 }
 0xae5   : > { %5734 = vst.msk [vmem:[#allocation3] sm:$0xff] %vm1344_vm8, %v5639_v43  ;;  %6802 = vrot.lane.b32.xlu0 %v14107_v2, %s10997_s27 }
 0xae7   : > { %5468 = vrot.lane.b32.xlu1 %v14173_v22, %s10990_s16  ;;  %v5641_v51 = vpop.permute.xlu1 %5640 }
 0xae8   : > { %v5643_v63 = vpop.permute.xlu0 %5642  ;;  %5735 = vst.msk [vmem:[#allocation3 + $0x8] sm:$0xff] %vm1344_vm8, %v5641_v51  ;;  %v14269_v51 = vld [vmem:[#allocation2 + $0xf2] sm:$0xff] }
 0xae9   : > { %5736 = vst.msk [vmem:[#allocation3 + $0x10] sm:$0xff] %vm1344_vm8, %v5643_v63  ;;  %5466 = vrot.lane.b32.xlu0 %v14177_v36, %s10990_s16 }
 0xaeb   : > { %5656 = vrot.lane.b32.xlu1 %v5583_v38, %s10991_s17  ;;  %v5645_v17 = vpop.permute.xlu1 %5644 }
 0xaec   : > { %v5831_v53 = vpop.permute.xlu0 %5830  ;;  %5737 = vst.msk [vmem:[#allocation3 + $0x18] sm:$0xff] %vm1344_vm8, %v5645_v17 }
 0xaed   : > { %5926 = vst.msk [vmem:[#allocation3] sm:$0xff] %vm1537_vm9, %v5831_v53  ;;  %5654 = vrot.lane.b32.xlu0 %v5582_v59, %s10991_s17  ;;  %v14277_v59 = vld [vmem:[#allocation2 + $0x111] sm:$0xff]  ;;  %v14281_v53 = vld [vmem:[#allocation2 + $0x101] sm:$0xff] }
 0xaef   : > { %5660 = vrot.lane.b32.xlu1 %v14187_v28, %s10991_s17  ;;  %v5833_v1 = vpop.permute.xlu1 %5832 }
 0xaf0   : > { %v5835_v5 = vpop.permute.xlu0 %5834  ;;  %5927 = vst.msk [vmem:[#allocation3 + $0x8] sm:$0xff] %vm1537_vm9, %v5833_v1 }
 0xaf1   : > { %5928 = vst.msk [vmem:[#allocation3 + $0x10] sm:$0xff] %vm1537_vm9, %v5835_v5  ;;  %5658 = vrot.lane.b32.xlu0 %v14191_v44, %s10991_s17 }
 0xaf3   : > { %5848 = vrot.lane.b32.xlu1 %v13810_v55, %s10992_s18  ;;  %v5837_v8 = vpop.permute.xlu1 %5836 }
 0xaf4   : > { %v6023_v41 = vpop.permute.xlu0 %6022  ;;  %5929 = vst.msk [vmem:[#allocation3 + $0x18] sm:$0xff] %vm1537_vm9, %v5837_v8 }
 0xaf5   : > { %6118 = vst.msk [vmem:[#allocation3] sm:$0xff] %vm1730_vm10, %v6023_v41  ;;  %5846 = vrot.lane.b32.xlu0 %v13783_v31, %s10992_s18  ;;  %v5969_v31 = vld [vmem:[#allocation2 + $0xe1] sm:$0xff]  ;;  %v14294_v41 = vld [vmem:[#allocation2 + $0x112] sm:$0xff] }
 0xaf7   : > { %5852 = vrot.lane.b32.xlu1 %v13855_v58, %s10992_s18  ;;  %v6025_v62 = vpop.permute.xlu1 %6024 }
 0xaf8   : > { %v6027_v45 = vpop.permute.xlu0 %6026  ;;  %6119 = vst.msk [vmem:[#allocation3 + $0x8] sm:$0xff] %vm1730_vm10, %v6025_v62 }
 0xaf9   : > { %6120 = vst.msk [vmem:[#allocation3 + $0x10] sm:$0xff] %vm1730_vm10, %v6027_v45  ;;  %5850 = vrot.lane.b32.xlu0 %v13790_v46, %s10992_s18 }
 0xafb   : > { %6040 = vrot.lane.b32.xlu1 %v14177_v36, %s10993_s19  ;;  %v6029_v2 = vpop.permute.xlu1 %6028 }
 0xafc   : > { %v6215_v12 = vpop.permute.xlu0 %6214  ;;  %6121 = vst.msk [vmem:[#allocation3 + $0x18] sm:$0xff] %vm1730_vm10, %v6029_v2  ;;  %v14298_v2 = vld [vmem:[#allocation2 + $0x102] sm:$0xff] }
 0xafd   : > { %6310 = vst.msk [vmem:[#allocation3] sm:$0xff] %vm1923_vm11, %v6215_v12  ;;  %6038 = vrot.lane.b32.xlu0 %v5391_v33, %s10993_s19 }
 0xaff   : > { %6044 = vrot.lane.b32.xlu1 %v5969_v31, %s10993_s19  ;;  %v6217_v35 = vpop.permute.xlu1 %6216 }
 0xb00   : > { %v6219_v52 = vpop.permute.xlu0 %6218  ;;  %6311 = vst.msk [vmem:[#allocation3 + $0x8] sm:$0xff] %vm1923_vm11, %v6217_v35  ;;  %v5781_v35 = vld [vmem:[#allocation2 + $0x120] sm:$0xff] }
 0xb01   : > { %6312 = vst.msk [vmem:[#allocation3 + $0x10] sm:$0xff] %vm1923_vm11, %v6219_v52  ;;  %6042 = vrot.lane.b32.xlu0 %v14173_v22, %s10993_s19 }
 0xb03   : > { %6232 = vrot.lane.b32.xlu1 %v14191_v44, %s10994_s20  ;;  %v6221_v23 = vpop.permute.xlu1 %6220 }
 0xb04   : > { %v6407_v4 = vpop.permute.xlu0 %6406  ;;  %6313 = vst.msk [vmem:[#allocation3 + $0x18] sm:$0xff] %vm1923_vm11, %v6221_v23 }
 0xb05   : > { %6502 = vst.msk [vmem:[#allocation3] sm:$0xff] %vm2117_vm12, %v6407_v4  ;;  %6230 = vrot.lane.b32.xlu0 %v5583_v38, %s10994_s20 }
 0xb07   : > { %6236 = vrot.lane.b32.xlu1 %v14224_v15, %s10994_s20  ;;  %v6409_v26 = vpop.permute.xlu1 %6408 }
 0xb08   : > { %v6411_v13 = vpop.permute.xlu0 %6410  ;;  %6503 = vst.msk [vmem:[#allocation3 + $0x8] sm:$0xff] %vm2117_vm12, %v6409_v26 }
 0xb09   : > { %6504 = vst.msk [vmem:[#allocation3 + $0x10] sm:$0xff] %vm2117_vm12, %v6411_v13  ;;  %6234 = vrot.lane.b32.xlu0 %v14187_v28, %s10994_s20 }
 0xb0b   : > { %6424 = vrot.lane.b32.xlu1 %v13790_v46, %s10995_s21  ;;  %v6413_v11 = vpop.permute.xlu1 %6412 }
 0xb0c   : > { %v6599_v0 = vpop.permute.xlu0 %6598  ;;  %6505 = vst.msk [vmem:[#allocation3 + $0x18] sm:$0xff] %vm2117_vm12, %v6413_v11 }
 0xb0d   : > { %6694 = vst.msk [vmem:[#allocation3] sm:$0xff] %vm2310_vm13, %v6599_v0  ;;  %6422 = vrot.lane.b32.xlu0 %v13810_v55, %s10995_s21  ;;  %v14250_v55 = vld [vmem:[#allocation2 + $0xf1] sm:$0xff] }
 0xb0f   : > { %6428 = vrot.lane.b32.xlu1 %v13871_v56, %s10995_s21  ;;  %v6601_v6 = vpop.permute.xlu1 %6600 }
 0xb10   : > { %v6603_v18 = vpop.permute.xlu0 %6602  ;;  %6695 = vst.msk [vmem:[#allocation3 + $0x8] sm:$0xff] %vm2310_vm13, %v6601_v6  ;;  %v6165_v6 = vld [vmem:[#allocation2 + $0x122] sm:$0xff] }
 0xb11   : > { %6696 = vst.msk [vmem:[#allocation3 + $0x10] sm:$0xff] %vm2310_vm13, %v6603_v18  ;;  %6426 = vrot.lane.b32.xlu0 %v13855_v58, %s10995_s21 }
 0xb13   : > { %6616 = vrot.lane.b32.xlu1 %v14173_v22, %s10996_s22  ;;  %v6605_v46 = vpop.permute.xlu1 %6604 }
 0xb14   : > { %v6791_v16 = vpop.permute.xlu0 %6790  ;;  %6697 = vst.msk [vmem:[#allocation3 + $0x18] sm:$0xff] %vm2310_vm13, %v6605_v46 }
 0xb15   : > { %6886 = vst.msk [vmem:[#allocation3] sm:$0xff] %vm2503_vm14, %v6791_v16  ;;  %6614 = vrot.lane.b32.xlu0 %v14177_v36, %s10996_s22 }
 0xb17   : > { %6620 = vrot.lane.b32.xlu1 %v14250_v55, %s10996_s22  ;;  %v6793_v48 = vpop.permute.xlu1 %6792 }
 0xb18   : > { %v5455_v33 = vpop.permute.xlu0 %5454  ;;  %6887 = vst.msk [vmem:[#allocation3 + $0x8] sm:$0xff] %vm2503_vm14, %v6793_v48  ;;  %v6357_v48 = vld [vmem:[#allocation2 + $0x130] sm:$0xff] }
 0xb19   : > { %5546 = vst.msk [vmem:[#allocation3 + $0x20] sm:$0xff] %vm1151_vm7, %v5455_v33  ;;  %6618 = vrot.lane.b32.xlu0 %v5969_v31, %s10996_s22 }
 0xb1b   : > { %6808 = vrot.lane.b32.xlu1 %v14187_v28, %s10997_s27  ;;  %v5457_v58 = vpop.permute.xlu1 %5456 }
 0xb1c   : > { %v6795_v57 = vpop.permute.xlu0 %6794  ;;  %5547 = vst.msk [vmem:[#allocation3 + $0x28] sm:$0xff] %vm1151_vm7, %v5457_v58  ;;  %v6918_v9 = vld [vmem:[#allocation3] sm:$0xff] }
 0xb1d   : > { %6888 = vst.msk [vmem:[#allocation3 + $0x10] sm:$0xff] %vm2503_vm14, %v6795_v57  ;;  %6806 = vrot.lane.b32.xlu0 %v14191_v44, %s10997_s27 }
 0xb1f   : > { %5472 = vrot.lane.b32.xlu1 %v14250_v55, %s10990_s16  ;;  %v6797_v42 = vpop.permute.xlu1 %6796  ;;  %v6919_v43 = vld [vmem:[#allocation3 + $0x8] sm:$0xff] }
 0xb20   : > { %v5459_v50 = vpop.permute.xlu0 %5458  ;;  %6889 = vst.msk [vmem:[#allocation3 + $0x18] sm:$0xff] %vm2503_vm14, %v6797_v42  ;;  %v6950_v22 = vpack.c.bf16 %v6919_v43, %v6918_v9  ;;  %v5334_v9 = vld [vmem:[#allocation2 + $0x140] sm:$0xff] }
 0xb21   : > { %5548 = vst.msk [vmem:[#allocation3 + $0x30] sm:$0xff] %vm1151_vm7, %v5459_v50  ;;  %5470 = vrot.lane.b32.xlu0 %v5969_v31, %s10990_s16 }
 0xb22   : > { %10132 = vmatprep.mubr.msk.bf16.mxu0 %vm2619_vm15, %v6950_v22  ;;  %5366 = vst.msk [vmem:[#allocation3 + $0x80] sm:$0xff] %vm617_vm1, %v5334_v9 }
 0xb23   : > { %6812 = vrot.lane.b32.xlu1 %v14269_v51, %s10997_s27  ;;  %v5461_v63 = vpop.permute.xlu1 %5460 }
 0xb24   : > { %v5647_v36 = vpop.permute.xlu0 %5646  ;;  %5549 = vst.msk [vmem:[#allocation3 + $0x38] sm:$0xff] %vm1151_vm7, %v5461_v63  ;;  %v6920_v28 = vld [vmem:[#allocation3 + $0x10] sm:$0xff] }
 0xb25   : > { %5738 = vst.msk [vmem:[#allocation3 + $0x20] sm:$0xff] %vm1344_vm8, %v5647_v36  ;;  %6810 = vrot.lane.b32.xlu0 %v14224_v15, %s10997_s27  ;;  %v14364_v63 = vld [vmem:[#allocation2 + $0x151] sm:$0xff] }
 0xb27   : > { %5476 = vrot.lane.b32.xlu1 %v14277_v59, %s10990_s16  ;;  %v5649_v38 = vpop.permute.xlu1 %5648  ;;  %v6921_v1 = vld [vmem:[#allocation3 + $0x18] sm:$0xff] }
 0xb28   : > { %v5651_v17 = vpop.permute.xlu0 %5650  ;;  %5739 = vst.msk [vmem:[#allocation3 + $0x28] sm:$0xff] %vm1344_vm8, %v5649_v38  ;;  %v6951_v5 = vpack.c.bf16 %v6921_v1, %v6920_v28  ;;  %v6741_v28 = vld [vmem:[#allocation2 + $0x132] sm:$0xff] }
 0xb29   : > { %5740 = vst.msk [vmem:[#allocation3 + $0x30] sm:$0xff] %vm1344_vm8, %v5651_v17  ;;  %5474 = vrot.lane.b32.xlu0 %v14281_v53, %s10990_s16 }
 0xb2a   : > { %10133 = vmatmul.mubr.msk.bf16.vlgmr.msra.gmra.mxu0 %vm2619_vm15, %v6951_v5 }
 0xb2b   : > { %5664 = vrot.lane.b32.xlu1 %v14269_v51, %s10991_s17  ;;  %v5653_v44 = vpop.permute.xlu1 %5652 }
 0xb2c   : > { %v5839_v8 = vpop.permute.xlu0 %5838  ;;  %5741 = vst.msk [vmem:[#allocation3 + $0x38] sm:$0xff] %vm1344_vm8, %v5653_v44  ;;  %v14376_v44 = vld [vmem:[#allocation2 + $0x171] sm:$0xff] }
 0xb2d   : > { %5930 = vst.msk [vmem:[#allocation3 + $0x20] sm:$0xff] %vm1537_vm9, %v5839_v8  ;;  %5662 = vrot.lane.b32.xlu0 %v14224_v15, %s10991_s17 }
 0xb2f   : > { %5668 = vrot.lane.b32.xlu1 %v14294_v41, %s10991_s17  ;;  %v5841_v62 = vpop.permute.xlu1 %5840 }
 0xb30   : > { %v5843_v45 = vpop.permute.xlu0 %5842  ;;  %5931 = vst.msk [vmem:[#allocation3 + $0x28] sm:$0xff] %vm1537_vm9, %v5841_v62  ;;  %v14380_v62 = vld [vmem:[#allocation2 + $0x161] sm:$0xff] }
 0xb31   : > { %5932 = vst.msk [vmem:[#allocation3 + $0x30] sm:$0xff] %vm1537_vm9, %v5843_v45  ;;  %5666 = vrot.lane.b32.xlu0 %v14298_v2, %s10991_s17 }
 0xb33   : > { %5856 = vrot.lane.b32.xlu1 %v13901_v25, %s10992_s18  ;;  %v5845_v12 = vpop.permute.xlu1 %5844 }
 0xb34   : > { %v6031_v31 = vpop.permute.xlu0 %6030  ;;  %5933 = vst.msk [vmem:[#allocation3 + $0x38] sm:$0xff] %vm1537_vm9, %v5845_v12 }
 0xb35   : > { %6122 = vst.msk [vmem:[#allocation3 + $0x20] sm:$0xff] %vm1730_vm10, %v6031_v31  ;;  %5854 = vrot.lane.b32.xlu0 %v13871_v56, %s10992_s18  ;;  %v5973_v56 = vld [vmem:[#allocation2 + $0x121] sm:$0xff] }
 0xb36   : > { %v5590_v31 = vld [vmem:[#allocation2 + $0x142] sm:$0xff] }
 0xb37   : > { %5860 = vrot.lane.b32.xlu1 %v5781_v35, %s10992_s18  ;;  %v6033_v52 = vpop.permute.xlu1 %6032 }
 0xb38   : > { %v6035_v23 = vpop.permute.xlu0 %6034  ;;  %6123 = vst.msk [vmem:[#allocation3 + $0x28] sm:$0xff] %vm1730_vm10, %v6033_v52 }
 0xb39   : > { %6124 = vst.msk [vmem:[#allocation3 + $0x30] sm:$0xff] %vm1730_vm10, %v6035_v23  ;;  %5858 = vrot.lane.b32.xlu0 %v13912_v32, %s10992_s18 }
 0xb3b   : > { %6048 = vrot.lane.b32.xlu1 %v14281_v53, %s10993_s19  ;;  %v6037_v4 = vpop.permute.xlu1 %6036 }
 0xb3c   : > { %v6223_v15 = vpop.permute.xlu0 %6222  ;;  %6125 = vst.msk [vmem:[#allocation3 + $0x38] sm:$0xff] %vm1730_vm10, %v6037_v4  ;;  %v14391_v4 = vld [vmem:[#allocation2 + $0x172] sm:$0xff] }
 0xb3d   : > { %6314 = vst.msk [vmem:[#allocation3 + $0x20] sm:$0xff] %vm1923_vm11, %v6223_v15  ;;  %6046 = vrot.lane.b32.xlu0 %v14250_v55, %s10993_s19 }
 0xb3f   : > { %6052 = vrot.lane.b32.xlu1 %v5973_v56, %s10993_s19  ;;  %v6225_v26 = vpop.permute.xlu1 %6224 }
 0xb40   : > { %v6227_v13 = vpop.permute.xlu0 %6226  ;;  %6315 = vst.msk [vmem:[#allocation3 + $0x28] sm:$0xff] %vm1923_vm11, %v6225_v26  ;;  %v14395_v26 = vld [vmem:[#allocation2 + $0x162] sm:$0xff] }
 0xb41   : > { %6316 = vst.msk [vmem:[#allocation3 + $0x30] sm:$0xff] %vm1923_vm11, %v6227_v13  ;;  %6050 = vrot.lane.b32.xlu0 %v14277_v59, %s10993_s19 }
 0xb43   : > { %6240 = vrot.lane.b32.xlu1 %v14298_v2, %s10994_s20  ;;  %v6229_v11 = vpop.permute.xlu1 %6228 }
 0xb44   : > { %v6415_v0 = vpop.permute.xlu0 %6414  ;;  %6317 = vst.msk [vmem:[#allocation3 + $0x38] sm:$0xff] %vm1923_vm11, %v6229_v11 }
 0xb45   : > { %6506 = vst.msk [vmem:[#allocation3 + $0x20] sm:$0xff] %vm2117_vm12, %v6415_v0  ;;  %6238 = vrot.lane.b32.xlu0 %v14269_v51, %s10994_s20  ;;  %v5398_v51 = vld [vmem:[#allocation2 + $0x141] sm:$0xff] }
 0xb47   : > { %6244 = vrot.lane.b32.xlu1 %v6165_v6, %s10994_s20  ;;  %v6417_v18 = vpop.permute.xlu1 %6416 }
 0xb48   : > { %v6419_v46 = vpop.permute.xlu0 %6418  ;;  %6507 = vst.msk [vmem:[#allocation3 + $0x28] sm:$0xff] %vm2117_vm12, %v6417_v18 }
 0xb49   : > { %6508 = vst.msk [vmem:[#allocation3 + $0x30] sm:$0xff] %vm2117_vm12, %v6419_v46  ;;  %6242 = vrot.lane.b32.xlu0 %v14294_v41, %s10994_s20 }
 0xb4b   : > { %6432 = vrot.lane.b32.xlu1 %v13912_v32, %s10995_s21  ;;  %v6421_v16 = vpop.permute.xlu1 %6420 }
 0xb4c   : > { %v6607_v55 = vpop.permute.xlu0 %6606  ;;  %6509 = vst.msk [vmem:[#allocation3 + $0x38] sm:$0xff] %vm2117_vm12, %v6421_v16 }
 0xb4d   : > { %6698 = vst.msk [vmem:[#allocation3 + $0x20] sm:$0xff] %vm2310_vm13, %v6607_v55  ;;  %6430 = vrot.lane.b32.xlu0 %v13901_v25, %s10995_s21  ;;  %v6549_v25 = vld [vmem:[#allocation2 + $0x131] sm:$0xff] }
 0xb4f   : > { %6436 = vrot.lane.b32.xlu1 %v6357_v48, %s10995_s21  ;;  %v6609_v33 = vpop.permute.xlu1 %6608 }
 0xb50   : > { %v6611_v58 = vpop.permute.xlu0 %6610  ;;  %6699 = vst.msk [vmem:[#allocation3 + $0x28] sm:$0xff] %vm2310_vm13, %v6609_v33 }
 0xb51   : > { %6700 = vst.msk [vmem:[#allocation3 + $0x30] sm:$0xff] %vm2310_vm13, %v6611_v58  ;;  %6434 = vrot.lane.b32.xlu0 %v5781_v35, %s10995_s21  ;;  %v5591_v35 = vld [vmem:[#allocation2 + $0x152] sm:$0xff]  ;;  %v14432_v58 = vld [vmem:[#allocation2 + $0x182] sm:$0xff] }
 0xb53   : > { %6624 = vrot.lane.b32.xlu1 %v14277_v59, %s10996_s22  ;;  %v6613_v32 = vpop.permute.xlu1 %6612 }
 0xb54   : > { %v6799_v57 = vpop.permute.xlu0 %6798  ;;  %6701 = vst.msk [vmem:[#allocation3 + $0x38] sm:$0xff] %vm2310_vm13, %v6613_v32 }
 0xb55   : > { %6890 = vst.msk [vmem:[#allocation3 + $0x20] sm:$0xff] %vm2503_vm14, %v6799_v57  ;;  %6622 = vrot.lane.b32.xlu0 %v14281_v53, %s10996_s22 }
 0xb57   : > { %6628 = vrot.lane.b32.xlu1 %v6549_v25, %s10996_s22  ;;  %v6801_v42 = vpop.permute.xlu1 %6800 }
 0xb58   : > { %v5463_v50 = vpop.permute.xlu0 %5462  ;;  %6891 = vst.msk [vmem:[#allocation3 + $0x28] sm:$0xff] %vm2503_vm14, %v6801_v42 }
 0xb59   : > { %5550 = vst.msk [vmem:[#allocation3 + $0x40] sm:$0xff] %vm1151_vm7, %v5463_v50  ;;  %6626 = vrot.lane.b32.xlu0 %v5973_v56, %s10996_s22 }
 0xb5b   : > { %6816 = vrot.lane.b32.xlu1 %v14294_v41, %s10997_s27  ;;  %v5465_v43 = vpop.permute.xlu1 %5464 }
 0xb5c   : > { %v6803_v22 = vpop.permute.xlu0 %6802  ;;  %5551 = vst.msk [vmem:[#allocation3 + $0x48] sm:$0xff] %vm1151_vm7, %v5465_v43  ;;  %v6922_v38 = vld [vmem:[#allocation3 + $0x20] sm:$0xff] }
 0xb5d   : > { %6892 = vst.msk [vmem:[#allocation3 + $0x30] sm:$0xff] %vm2503_vm14, %v6803_v22  ;;  %6814 = vrot.lane.b32.xlu0 %v14298_v2, %s10997_s27  ;;  %v10431_v22 = vld [vmem:[%s15859_s6 + $0xc] sm:$0xff]  }
 0xb5f   : > { %5480 = vrot.lane.b32.xlu1 %v14364_v63, %s10990_s16  ;;  %v6805_v36 = vpop.permute.xlu1 %6804  ;;  %v6923_v17 = vld [vmem:[#allocation3 + $0x28] sm:$0xff] }
 0xb60   : > { %v5467_v59 = vpop.permute.xlu0 %5466  ;;  %6893 = vst.msk [vmem:[#allocation3 + $0x38] sm:$0xff] %vm2503_vm14, %v6805_v36  ;;  %v6952_v53 = vpack.c.bf16 %v6923_v17, %v6922_v38 }
 0xb61   : > { %5552 = vst.msk [vmem:[#allocation3 + $0x50] sm:$0xff] %vm1151_vm7, %v5467_v59  ;;  %5478 = vrot.lane.b32.xlu0 %v5398_v51, %s10990_s16  ;;  %v14466_v51 = vld [vmem:[#allocation2 + $0x191] sm:$0xff] }
 0xb62   : > { %10136 = vmatprep.mubr.msk.bf16.mxu0 %vm2619_vm15, %v6952_v53 }
 0xb63   : > { %6820 = vrot.lane.b32.xlu1 %v6741_v28, %s10997_s27  ;;  %v5469_v1 = vpop.permute.xlu1 %5468 }
 0xb64   : > { %v5655_v5 = vpop.permute.xlu0 %5654  ;;  %5553 = vst.msk [vmem:[#allocation3 + $0x58] sm:$0xff] %vm1151_vm7, %v5469_v1  ;;  %v6924_v45 = vld [vmem:[#allocation3 + $0x30] sm:$0xff] }
 0xb65   : > { %5742 = vst.msk [vmem:[#allocation3 + $0x40] sm:$0xff] %vm1344_vm8, %v5655_v5  ;;  %6818 = vrot.lane.b32.xlu0 %v6165_v6, %s10997_s27 }
 0xb67   : > { %5484 = vrot.lane.b32.xlu1 %v14376_v44, %s10990_s16  ;;  %v5657_v8 = vpop.permute.xlu1 %5656  ;;  %v6925_v2 = vld [vmem:[#allocation3 + $0x38] sm:$0xff] }
 0xb68   : > { %v5659_v41 = vpop.permute.xlu0 %5658  ;;  %5743 = vst.msk [vmem:[#allocation3 + $0x48] sm:$0xff] %vm1344_vm8, %v5657_v8  ;;  %v6953_v12 = vpack.c.bf16 %v6925_v2, %v6924_v45 }
 0xb69   : > { %5744 = vst.msk [vmem:[#allocation3 + $0x50] sm:$0xff] %vm1344_vm8, %v5659_v41  ;;  %5482 = vrot.lane.b32.xlu0 %v14380_v62, %s10990_s16 }
 0xb6a   : > { %10137 = vmatmul.mubr.msk.bf16.gmra.mxu0 %vm2619_vm15, %v6953_v12  ;;  %v14499_v12 = vld [vmem:[#allocation2 + $0x1a1] sm:$0xff] }
 0xb6b   : > { %5672 = vrot.lane.b32.xlu1 %v5591_v35, %s10991_s17  ;;  %v5661_v52 = vpop.permute.xlu1 %5660 }
 0xb6c   : > { %v5847_v23 = vpop.permute.xlu0 %5846  ;;  %5745 = vst.msk [vmem:[#allocation3 + $0x58] sm:$0xff] %vm1344_vm8, %v5661_v52 }
 0xb6d   : > { %5934 = vst.msk [vmem:[#allocation3 + $0x40] sm:$0xff] %vm1537_vm9, %v5847_v23  ;;  %5670 = vrot.lane.b32.xlu0 %v5590_v31, %s10991_s17 }
 0xb6f   : > { %5676 = vrot.lane.b32.xlu1 %v14391_v4, %s10991_s17  ;;  %v5849_v15 = vpop.permute.xlu1 %5848 }
 0xb70   : > { %v5851_v56 = vpop.permute.xlu0 %5850  ;;  %5935 = vst.msk [vmem:[#allocation3 + $0x48] sm:$0xff] %vm1537_vm9, %v5849_v15  ;;  %v14512_v15 = vld [vmem:[#allocation2 + $0x1b2] sm:$0xff] }
 0xb71   : > { %5936 = vst.msk [vmem:[#allocation3 + $0x50] sm:$0xff] %vm1537_vm9, %v5851_v56  ;;  %5674 = vrot.lane.b32.xlu0 %v14395_v26, %s10991_s17 }
 0xb73   : > { %5864 = vrot.lane.b32.xlu1 %v13963_v24, %s10992_s18  ;;  %v5853_v13 = vpop.permute.xlu1 %5852 }
 0xb74   : > { %v6039_v11 = vpop.permute.xlu0 %6038  ;;  %5937 = vst.msk [vmem:[#allocation3 + $0x58] sm:$0xff] %vm1537_vm9, %v5853_v13  ;;  %v14516_v13 = vld [vmem:[#allocation2 + $0x1a2] sm:$0xff] }
 0xb75   : > { %6126 = vst.msk [vmem:[#allocation3 + $0x40] sm:$0xff] %vm1730_vm10, %v6039_v11  ;;  %5862 = vrot.lane.b32.xlu0 %v13945_v37, %s10992_s18  ;;  %v14419_v37 = vld [vmem:[#allocation2 + $0x181] sm:$0xff] }
 0xb77   : > { %5868 = vrot.lane.b32.xlu1 %v13981_v29, %s10992_s18  ;;  %v6041_v0 = vpop.permute.xlu1 %6040 }
 0xb78   : > { %v6043_v6 = vpop.permute.xlu0 %6042  ;;  %6127 = vst.msk [vmem:[#allocation3 + $0x48] sm:$0xff] %vm1730_vm10, %v6041_v0 }
 0xb79   : > { %6128 = vst.msk [vmem:[#allocation3 + $0x50] sm:$0xff] %vm1730_vm10, %v6043_v6  ;;  %5866 = vrot.lane.b32.xlu0 %v13951_v20, %s10992_s18  ;;  %v5789_v6 = vld [vmem:[#allocation2 + $0x1c0] sm:$0xff] }
 0xb7b   : > { %6056 = vrot.lane.b32.xlu1 %v14380_v62, %s10993_s19  ;;  %v6045_v18 = vpop.permute.xlu1 %6044 }
 0xb7c   : > { %v6231_v46 = vpop.permute.xlu0 %6230  ;;  %6129 = vst.msk [vmem:[#allocation3 + $0x58] sm:$0xff] %vm1730_vm10, %v6045_v18 }
 0xb7d   : > { %6318 = vst.msk [vmem:[#allocation3 + $0x40] sm:$0xff] %vm1923_vm11, %v6231_v46  ;;  %6054 = vrot.lane.b32.xlu0 %v14364_v63, %s10993_s19 }
 0xb7f   : > { %6060 = vrot.lane.b32.xlu1 %v14419_v37, %s10993_s19  ;;  %v6233_v16 = vpop.permute.xlu1 %6232 }
 0xb80   : > { %v6235_v55 = vpop.permute.xlu0 %6234  ;;  %6319 = vst.msk [vmem:[#allocation3 + $0x48] sm:$0xff] %vm1923_vm11, %v6233_v16 }
 0xb81   : > { %6320 = vst.msk [vmem:[#allocation3 + $0x50] sm:$0xff] %vm1923_vm11, %v6235_v55  ;;  %6058 = vrot.lane.b32.xlu0 %v14376_v44, %s10993_s19 }
 0xb83   : > { %6248 = vrot.lane.b32.xlu1 %v14395_v26, %s10994_s20  ;;  %v6237_v48 = vpop.permute.xlu1 %6236 }
 0xb84   : > { %v6423_v33 = vpop.permute.xlu0 %6422  ;;  %6321 = vst.msk [vmem:[#allocation3 + $0x58] sm:$0xff] %vm1923_vm11, %v6237_v48 }
 0xb85   : > { %6510 = vst.msk [vmem:[#allocation3 + $0x40] sm:$0xff] %vm2117_vm12, %v6423_v33  ;;  %6246 = vrot.lane.b32.xlu0 %v5591_v35, %s10994_s20 }
 0xb87   : > { %6252 = vrot.lane.b32.xlu1 %v14432_v58, %s10994_s20  ;;  %v6425_v32 = vpop.permute.xlu1 %6424 }
 0xb88   : > { %v6427_v57 = vpop.permute.xlu0 %6426  ;;  %6511 = vst.msk [vmem:[#allocation3 + $0x48] sm:$0xff] %vm2117_vm12, %v6425_v32  ;;  %v6173_v32 = vld [vmem:[#allocation2 + $0x1c2] sm:$0xff] }
 0xb89   : > { %6512 = vst.msk [vmem:[#allocation3 + $0x50] sm:$0xff] %vm2117_vm12, %v6427_v57  ;;  %6250 = vrot.lane.b32.xlu0 %v14391_v4, %s10994_s20 }
 0xb8b   : > { %6440 = vrot.lane.b32.xlu1 %v13951_v20, %s10995_s21  ;;  %v6429_v25 = vpop.permute.xlu1 %6428 }
 0xb8c   : > { %v6615_v42 = vpop.permute.xlu0 %6614  ;;  %6513 = vst.msk [vmem:[#allocation3 + $0x58] sm:$0xff] %vm2117_vm12, %v6429_v25 }
 0xb8d   : > { %6702 = vst.msk [vmem:[#allocation3 + $0x40] sm:$0xff] %vm2310_vm13, %v6615_v42  ;;  %6438 = vrot.lane.b32.xlu0 %v13963_v24, %s10995_s21  ;;  %v10430_v24 = vld [vmem:[%s15859_s6 + $0x14] ss:$0 sps:$4 sm:$0x11]  }
 0xb8e   : > { %10387 = vmatprep.subr.msk.bf16.mxu1 %vm15950_vm0, %v10430_v24 }
 0xb8f   : > { %6444 = vrot.lane.b32.xlu1 %v14006_v10, %s10995_s21  ;;  %v6617_v50 = vpop.permute.xlu1 %6616 }
 0xb90   : > { %v6619_v9 = vpop.permute.xlu0 %6618  ;;  %6703 = vst.msk [vmem:[#allocation3 + $0x48] sm:$0xff] %vm2310_vm13, %v6617_v50 }
 0xb91   : > { %6704 = vst.msk [vmem:[#allocation3 + $0x50] sm:$0xff] %vm2310_vm13, %v6619_v9  ;;  %6442 = vrot.lane.b32.xlu0 %v13981_v29, %s10995_s21  ;;  %v7511_v29 = vsel %vm15951_vm3, %v10430_v24, 0  ;;  %v6365_v9 = vld [vmem:[#allocation2 + $0x1d0] sm:$0xff] }
 0xb92   : > { %10165 = vmatpush3.bf16.msra.mxu1 %v7511_v29 }
 0xb93   : > { %6632 = vrot.lane.b32.xlu1 %v14376_v44, %s10996_s22  ;;  %v6621_v20 = vpop.permute.xlu1 %6620  ;;  %10166 = vmatprep.subr.bf16.mxu1 %v10431_v22  ;;  %v14487_v44 = vld [vmem:[#allocation2 + $0x192] sm:$0xff] }
 0xb94   : > { %v6807_v43 = vpop.permute.xlu0 %6806  ;;  %6705 = vst.msk [vmem:[#allocation3 + $0x58] sm:$0xff] %vm2310_vm13, %v6621_v20 }
 0xb95   : > { %6894 = vst.msk [vmem:[#allocation3 + $0x40] sm:$0xff] %vm2503_vm14, %v6807_v43  ;;  %6630 = vrot.lane.b32.xlu0 %v14380_v62, %s10996_s22  ;;  %v14495_v62 = vld [vmem:[#allocation2 + $0x1b1] sm:$0xff] }
 0xb96   : > { %10167 = vmatpush3.bf16.msra.mxu1 %v10431_v22 }
 0xb97   : > { %6636 = vrot.lane.b32.xlu1 %v14466_v51, %s10996_s22  ;;  %v6809_v63 = vpop.permute.xlu1 %6808 }
 0xb98   : > { %v5471_v36 = vpop.permute.xlu0 %5470  ;;  %6895 = vst.msk [vmem:[#allocation3 + $0x48] sm:$0xff] %vm2503_vm14, %v6809_v63 }
 0xb99   : > { %5554 = vst.msk [vmem:[#allocation3 + $0x60] sm:$0xff] %vm1151_vm7, %v5471_v36  ;;  %6634 = vrot.lane.b32.xlu0 %v14419_v37, %s10996_s22 }
 0xb9b   : > { %6824 = vrot.lane.b32.xlu1 %v14391_v4, %s10997_s27  ;;  %v5473_v59 = vpop.permute.xlu1 %5472 }
 0xb9c   : > { %v6811_v38 = vpop.permute.xlu0 %6810  ;;  %5555 = vst.msk [vmem:[#allocation3 + $0x68] sm:$0xff] %vm1151_vm7, %v5473_v59  ;;  %v6926_v28 = vld [vmem:[#allocation3 + $0x40] sm:$0xff] }
 0xb9d   : > { %6896 = vst.msk [vmem:[#allocation3 + $0x50] sm:$0xff] %vm2503_vm14, %v6811_v38  ;;  %6822 = vrot.lane.b32.xlu0 %v14395_v26, %s10997_s27  ;;  %v5406_v59 = vld [vmem:[#allocation2 + $0x1e1] sm:$0xff]  ;;  %v14582_v38 = vld [vmem:[#allocation2 + $0x1f1] sm:$0xff] }
 0xb9f   : > { %5488 = vrot.lane.b32.xlu1 %v14466_v51, %s10990_s16  ;;  %v6813_v17 = vpop.permute.xlu1 %6812  ;;  %v6927_v1 = vld [vmem:[#allocation3 + $0x48] sm:$0xff] }
 0xba0   : > { %v5475_v53 = vpop.permute.xlu0 %5474  ;;  %6897 = vst.msk [vmem:[#allocation3 + $0x58] sm:$0xff] %vm2503_vm14, %v6813_v17  ;;  %v6954_v5 = vpack.c.bf16 %v6927_v1, %v6926_v28 }
 0xba1   : > { %5556 = vst.msk [vmem:[#allocation3 + $0x70] sm:$0xff] %vm1151_vm7, %v5475_v53  ;;  %5486 = vrot.lane.b32.xlu0 %v14419_v37, %s10990_s16 }
 0xba2   : > { %10140 = vmatprep.mubr.msk.bf16.mxu0 %vm2619_vm15, %v6954_v5 }
 0xba3   : > { %6828 = vrot.lane.b32.xlu1 %v14487_v44, %s10997_s27  ;;  %v5477_v8 = vpop.permute.xlu1 %5476 }
 0xba4   : > { %v5663_v41 = vpop.permute.xlu0 %5662  ;;  %5557 = vst.msk [vmem:[#allocation3 + $0x78] sm:$0xff] %vm1151_vm7, %v5477_v8  ;;  %v6928_v31 = vld [vmem:[#allocation3 + $0x50] sm:$0xff] }
 0xba5   : > { %5746 = vst.msk [vmem:[#allocation3 + $0x60] sm:$0xff] %vm1344_vm8, %v5663_v41  ;;  %6826 = vrot.lane.b32.xlu0 %v14432_v58, %s10997_s27 }
 0xba7   : > { %v5665_v45 = vpop.permute.xlu1 %5664  ;;  %5492 = vrot.lane.b32.xlu1 %v14495_v62, %s10990_s16  ;;  %v6929_v35 = vld [vmem:[#allocation3 + $0x58] sm:$0xff] }
 0xba8   : > { %v5667_v2 = vpop.permute.xlu0 %5666  ;;  %5747 = vst.msk [vmem:[#allocation3 + $0x68] sm:$0xff] %vm1344_vm8, %v5665_v45  ;;  %v6955_v52 = vpack.c.bf16 %v6929_v35, %v6928_v31 }
 0xba9   : > { %5748 = vst.msk [vmem:[#allocation3 + $0x70] sm:$0xff] %vm1344_vm8, %v5667_v2  ;;  %5490 = vrot.lane.b32.xlu0 %v14499_v12, %s10990_s16 }
 0xbaa   : > { %10141 = vmatmul.mubr.msk.bf16.gmra.mxu0 %vm2619_vm15, %v6955_v52 }
 0xbab   : > { %v5669_v23 = vpop.permute.xlu1 %5668  ;;  %5680 = vrot.lane.b32.xlu1 %v14487_v44, %s10991_s17 }
 0xbac   : > { %v5855_v4 = vpop.permute.xlu0 %5854  ;;  %5749 = vst.msk [vmem:[#allocation3 + $0x78] sm:$0xff] %vm1344_vm8, %v5669_v23  ;;  %v5598_v23 = vld [vmem:[#allocation2 + $0x1e2] sm:$0xff] }
 0xbad   : > { %5938 = vst.msk [vmem:[#allocation3 + $0x60] sm:$0xff] %vm1537_vm9, %v5855_v4  ;;  %5678 = vrot.lane.b32.xlu0 %v14432_v58, %s10991_s17 }
 0xbaf   : > { %v5857_v56 = vpop.permute.xlu1 %5856  ;;  %5684 = vrot.lane.b32.xlu1 %v14512_v15, %s10991_s17 }
 0xbb0   : > { %v5859_v26 = vpop.permute.xlu0 %5858  ;;  %5939 = vst.msk [vmem:[#allocation3 + $0x68] sm:$0xff] %vm1537_vm9, %v5857_v56 }
 0xbb1   : > { %5940 = vst.msk [vmem:[#allocation3 + $0x70] sm:$0xff] %vm1537_vm9, %v5859_v26  ;;  %5682 = vrot.lane.b32.xlu0 %v14516_v13, %s10991_s17 }
 0xbb3   : > { %v5861_v11 = vpop.permute.xlu1 %5860  ;;  %5872 = vrot.lane.b32.xlu1 %v14045_v39, %s10992_s18 }
 0xbb4   : > { %v6047_v0 = vpop.permute.xlu0 %6046  ;;  %5941 = vst.msk [vmem:[#allocation3 + $0x78] sm:$0xff] %vm1537_vm9, %v5861_v11 }
 0xbb5   : > { %6130 = vst.msk [vmem:[#allocation3 + $0x60] sm:$0xff] %vm1730_vm10, %v6047_v0  ;;  %5870 = vrot.lane.b32.xlu0 %v14006_v10, %s10992_s18  ;;  %v5981_v10 = vld [vmem:[#allocation2 + $0x1c1] sm:$0xff] }
 0xbb7   : > { %v6049_v18 = vpop.permute.xlu1 %6048  ;;  %5876 = vrot.lane.b32.xlu1 %v5789_v6, %s10992_s18 }
 0xbb8   : > { %v6051_v46 = vpop.permute.xlu0 %6050  ;;  %6131 = vst.msk [vmem:[#allocation3 + $0x68] sm:$0xff] %vm1730_vm10, %v6049_v18  ;;  %v14620_v18 = vld [vmem:[#allocation2 + $0x212] sm:$0xff] }
 0xbb9   : > { %6132 = vst.msk [vmem:[#allocation3 + $0x70] sm:$0xff] %vm1730_vm10, %v6051_v46  ;;  %5874 = vrot.lane.b32.xlu0 %v14072_v34, %s10992_s18 }
 0xbbb   : > { %v6053_v37 = vpop.permute.xlu1 %6052  ;;  %6064 = vrot.lane.b32.xlu1 %v14499_v12, %s10993_s19 }
 0xbbc   : > { %v6239_v16 = vpop.permute.xlu0 %6238  ;;  %6133 = vst.msk [vmem:[#allocation3 + $0x78] sm:$0xff] %vm1730_vm10, %v6053_v37 }
 0xbbd   : > { %6322 = vst.msk [vmem:[#allocation3 + $0x60] sm:$0xff] %vm1923_vm11, %v6239_v16  ;;  %6062 = vrot.lane.b32.xlu0 %v14466_v51, %s10993_s19  ;;  %v5342_v51 = vld [vmem:[#allocation2 + $0x1e0] sm:$0xff] }
 0xbbe   : > { %5374 = vst.msk [vmem:[#allocation3 + $0xc0] sm:$0xff] %vm617_vm1, %v5342_v51  ;;  %vm15952_vm1 = vmmov %vm15950_vm0 }
 0xbbf   : > { %v6241_v55 = vpop.permute.xlu1 %6240  ;;  %6068 = vrot.lane.b32.xlu1 %v5981_v10, %s10993_s19 }
 0xbc0   : > { %v6243_v48 = vpop.permute.xlu0 %6242  ;;  %6323 = vst.msk [vmem:[#allocation3 + $0x68] sm:$0xff] %vm1923_vm11, %v6241_v55 }
 0xbc1   : > { %6324 = vst.msk [vmem:[#allocation3 + $0x70] sm:$0xff] %vm1923_vm11, %v6243_v48  ;;  %6066 = vrot.lane.b32.xlu0 %v14495_v62, %s10993_s19 }
 0xbc3   : > { %v6245_v33 = vpop.permute.xlu1 %6244  ;;  %6256 = vrot.lane.b32.xlu1 %v14516_v13, %s10994_s20 }
 0xbc4   : > { %v6431_v58 = vpop.permute.xlu0 %6430  ;;  %6325 = vst.msk [vmem:[#allocation3 + $0x78] sm:$0xff] %vm1923_vm11, %v6245_v33 }
 0xbc5   : > { %6514 = vst.msk [vmem:[#allocation3 + $0x60] sm:$0xff] %vm2117_vm12, %v6431_v58  ;;  %6254 = vrot.lane.b32.xlu0 %v14487_v44, %s10994_s20  ;;  %v6749_v44 = vld [vmem:[#allocation2 + $0x1d2] sm:$0xff] }
 0xbc7   : > { %v6433_v57 = vpop.permute.xlu1 %6432  ;;  %6260 = vrot.lane.b32.xlu1 %v6173_v32, %s10994_s20 }
 0xbc8   : > { %v6435_v25 = vpop.permute.xlu0 %6434  ;;  %6515 = vst.msk [vmem:[#allocation3 + $0x68] sm:$0xff] %vm2117_vm12, %v6433_v57 }
 0xbc9   : > { %6516 = vst.msk [vmem:[#allocation3 + $0x70] sm:$0xff] %vm2117_vm12, %v6435_v25  ;;  %6258 = vrot.lane.b32.xlu0 %v14512_v15, %s10994_s20 }
 0xbcb   : > { %v6437_v42 = vpop.permute.xlu1 %6436  ;;  %6448 = vrot.lane.b32.xlu1 %v14072_v34, %s10995_s21 }
 0xbcc   : > { %v6623_v50 = vpop.permute.xlu0 %6622  ;;  %6517 = vst.msk [vmem:[#allocation3 + $0x78] sm:$0xff] %vm2117_vm12, %v6437_v42 }
 0xbcd   : > { %6706 = vst.msk [vmem:[#allocation3 + $0x60] sm:$0xff] %vm2310_vm13, %v6623_v50  ;;  %6446 = vrot.lane.b32.xlu0 %v14045_v39, %s10995_s21  ;;  %v6557_v39 = vld [vmem:[#allocation2 + $0x1d1] sm:$0xff] }
 0xbcf   : > { %v6625_v20 = vpop.permute.xlu1 %6624  ;;  %6452 = vrot.lane.b32.xlu1 %v6365_v9, %s10995_s21 }
 0xbd0   : > { %v6627_v43 = vpop.permute.xlu0 %6626  ;;  %6707 = vst.msk [vmem:[#allocation3 + $0x68] sm:$0xff] %vm2310_vm13, %v6625_v20 }
 0xbd1   : > { %6708 = vst.msk [vmem:[#allocation3 + $0x70] sm:$0xff] %vm2310_vm13, %v6627_v43  ;;  %6450 = vrot.lane.b32.xlu0 %v5789_v6, %s10995_s21 }
 0xbd3   : > { %v6629_v34 = vpop.permute.xlu1 %6628  ;;  %6640 = vrot.lane.b32.xlu1 %v14495_v62, %s10996_s22  ;;  %v14594_v62 = vld [vmem:[#allocation2 + $0x211] sm:$0xff] }
 0xbd4   : > { %v6815_v24 = vpop.permute.xlu0 %6814  ;;  %6709 = vst.msk [vmem:[#allocation3 + $0x78] sm:$0xff] %vm2310_vm13, %v6629_v34  ;;  %v14652_v34 = vld [vmem:[#allocation2 + $0x221] sm:$0xff] }
 0xbd5   : > { %6898 = vst.msk [vmem:[#allocation3 + $0x60] sm:$0xff] %vm2503_vm14, %v6815_v24  ;;  %6638 = vrot.lane.b32.xlu0 %v14499_v12, %s10996_s22  ;;  %v14598_v12 = vld [vmem:[#allocation2 + $0x201] sm:$0xff] }
 0xbd7   : > { %v6817_v22 = vpop.permute.xlu1 %6816  ;;  %6644 = vrot.lane.b32.xlu1 %v6557_v39, %s10996_s22 }
 0xbd8   : > { %v5479_v29 = vpop.permute.xlu0 %5478  ;;  %6899 = vst.msk [vmem:[#allocation3 + $0x68] sm:$0xff] %vm2503_vm14, %v6817_v22 }
 0xbd9   : > { %5558 = vst.msk [vmem:[#allocation3 + $0x80] sm:$0xff] %vm1151_vm7, %v5479_v29  ;;  %6642 = vrot.lane.b32.xlu0 %v5981_v10, %s10996_s22  ;;  %v14625_v10 = vld [vmem:[#allocation2 + $0x202] sm:$0xff] }
 0xbdb   : > { %v5481_v63 = vpop.permute.xlu1 %5480  ;;  %6832 = vrot.lane.b32.xlu1 %v14512_v15, %s10997_s27  ;;  %v14607_v15 = vld [vmem:[#allocation2 + $0x1f2] sm:$0xff] }
 0xbdc   : > { %v6819_v36 = vpop.permute.xlu0 %6818  ;;  %5559 = vst.msk [vmem:[#allocation3 + $0x88] sm:$0xff] %vm1151_vm7, %v5481_v63  ;;  %v6930_v28 = vld [vmem:[#allocation3 + $0x60] sm:$0xff] }
 0xbdd   : > { %6900 = vst.msk [vmem:[#allocation3 + $0x70] sm:$0xff] %vm2503_vm14, %v6819_v36  ;;  %6830 = vrot.lane.b32.xlu0 %v14516_v13, %s10997_s27 }
 0xbdf   : > { %v6821_v17 = vpop.permute.xlu1 %6820  ;;  %5496 = vrot.lane.b32.xlu1 %v14582_v38, %s10990_s16  ;;  %v6931_v1 = vld [vmem:[#allocation3 + $0x68] sm:$0xff] }
 0xbe0   : > { %v5483_v53 = vpop.permute.xlu0 %5482  ;;  %6901 = vst.msk [vmem:[#allocation3 + $0x78] sm:$0xff] %vm2503_vm14, %v6821_v17  ;;  %v6956_v5 = vpack.c.bf16 %v6931_v1, %v6930_v28 }
 0xbe1   : > { %5560 = vst.msk [vmem:[#allocation3 + $0x90] sm:$0xff] %vm1151_vm7, %v5483_v53  ;;  %5494 = vrot.lane.b32.xlu0 %v5406_v59, %s10990_s16  ;;  %v14666_v59 = vld [vmem:[#allocation2 + $0x222] sm:$0xff] }
 0xbe2   : > { %10144 = vmatprep.mubr.msk.bf16.mxu0 %vm2619_vm15, %v6956_v5 }
 0xbe3   : > { %v5485_v8 = vpop.permute.xlu1 %5484  ;;  %6836 = vrot.lane.b32.xlu1 %v6749_v44, %s10997_s27 }
 0xbe4   : > { %v5671_v41 = vpop.permute.xlu0 %5670  ;;  %5561 = vst.msk [vmem:[#allocation3 + $0x98] sm:$0xff] %vm1151_vm7, %v5485_v8  ;;  %v6932_v31 = vld [vmem:[#allocation3 + $0x70] sm:$0xff] }
 0xbe5   : > { %5750 = vst.msk [vmem:[#allocation3 + $0x80] sm:$0xff] %vm1344_vm8, %v5671_v41  ;;  %6834 = vrot.lane.b32.xlu0 %v6173_v32, %s10997_s27 }
 0xbe7   : > { %v5673_v45 = vpop.permute.xlu1 %5672  ;;  %5500 = vrot.lane.b32.xlu1 %v14594_v62, %s10990_s16  ;;  %v6933_v35 = vld [vmem:[#allocation3 + $0x78] sm:$0xff] }
 0xbe8   : > { %v5675_v2 = vpop.permute.xlu0 %5674  ;;  %5751 = vst.msk [vmem:[#allocation3 + $0x88] sm:$0xff] %vm1344_vm8, %v5673_v45  ;;  %v6957_v52 = vpack.c.bf16 %v6933_v35, %v6932_v31 }
 0xbe9   : > { %5752 = vst.msk [vmem:[#allocation3 + $0x90] sm:$0xff] %vm1344_vm8, %v5675_v2  ;;  %5498 = vrot.lane.b32.xlu0 %v14598_v12, %s10990_s16 }
 0xbea   : > { %v14604_v4 = vpop.f32.mrf.mxu0  ;;  %10145 = vmatmul.mubr.msk.bf16.gmra.mxu0 %vm2619_vm15, %v6957_v52 }
 0xbeb   : > { %v9460_v56 = vmul.f32 -1.442695, %v14604_v4  ;;  %v5677_v26 = vpop.permute.xlu1 %5676  ;;  %5688 = vrot.lane.b32.xlu1 %v14607_v15, %s10991_s17 }
 0xbec   : > { %v5863_v13 = vpop.permute.xlu0 %5862  ;;  %5753 = vst.msk [vmem:[#allocation3 + $0x98] sm:$0xff] %vm1344_vm8, %v5677_v26  ;;  %v14614_v11 = vpop.f32.mrf.mxu0 }
 0xbed   : > { %5942 = vst.msk [vmem:[#allocation3 + $0x80] sm:$0xff] %vm1537_vm9, %v5863_v13  ;;  %5686 = vrot.lane.b32.xlu0 %v5598_v23, %s10991_s17  ;;  %v9458_v0 = vmul.f32 -1.442695, %v14614_v11  ;;  %10692 = vpow2.f32 %v9460_v56 }
 0xbee   : > { %v14618_v6 = vpop.f32.mrf.mxu0 }
 0xbef   : > { %10694 = vpow2.f32 %v9458_v0  ;;  %v9461_v46 = vmul.f32 -1.442695, %v14618_v6  ;;  %v5865_v37 = vpop.permute.xlu1 %5864  ;;  %5692 = vrot.lane.b32.xlu1 %v14620_v18, %s10991_s17 }
 0xbf0   : > { %v5867_v16 = vpop.permute.xlu0 %5866  ;;  %5943 = vst.msk [vmem:[#allocation3 + $0x88] sm:$0xff] %vm1537_vm9, %v5865_v37  ;;  %v14629_v55 = vpop.f32.mrf.mxu0 }
 0xbf1   : > { %5944 = vst.msk [vmem:[#allocation3 + $0x90] sm:$0xff] %vm1537_vm9, %v5867_v16  ;;  %5690 = vrot.lane.b32.xlu0 %v14625_v10, %s10991_s17  ;;  %10696 = vpow2.f32 %v9461_v46  ;;  %v9459_v48 = vmul.f32 -1.442695, %v14629_v55  ;;  %v14733_v16 = vld [vmem:[#allocation2 + $0x251] sm:$0xff] }
 0xbf3   : > { %10698 = vpow2.f32 %v9459_v48  ;;  %v5869_v33 = vpop.permute.xlu1 %5868  ;;  %5880 = vrot.lane.b32.xlu1 %v14144_v27, %s10992_s18  ;;  %v14737_v48 = vld [vmem:[#allocation2 + $0x241] sm:$0xff] }
 0xbf4   : > { %v6055_v58 = vpop.permute.xlu0 %6054  ;;  %5945 = vst.msk [vmem:[#allocation3 + $0x98] sm:$0xff] %vm1537_vm9, %v5869_v33 }
 0xbf5   : > { %6134 = vst.msk [vmem:[#allocation3 + $0x80] sm:$0xff] %vm1730_vm10, %v6055_v58  ;;  %5878 = vrot.lane.b32.xlu0 %v14119_v21, %s10992_s18 }
 0xbf7   : > { %v6057_v32 = vpop.permute.xlu1 %6056  ;;  %5884 = vrot.lane.b32.xlu1 %v14135_v7, %s10992_s18 }
 0xbf8   : > { %v6059_v57 = vpop.permute.xlu0 %6058  ;;  %6135 = vst.msk [vmem:[#allocation3 + $0x88] sm:$0xff] %vm1730_vm10, %v6057_v32 }
 0xbf9   : > { %6136 = vst.msk [vmem:[#allocation3 + $0x90] sm:$0xff] %vm1730_vm10, %v6059_v57  ;;  %5882 = vrot.lane.b32.xlu0 %v14127_v40, %s10992_s18 }
 0xbfa   : > { %v10693_v25 = vpop.eup %10692 }
 0xbfb   : > { %v6061_v42 = vpop.permute.xlu1 %6060  ;;  %6072 = vrot.lane.b32.xlu1 %v14598_v12, %s10993_s19  ;;  %v7311_v43 = vadd.f32 1.0, %v10693_v25 }
 0xbfc   : > { %v6247_v50 = vpop.permute.xlu0 %6246  ;;  %v10695_v9 = vpop.eup %10694  ;;  %6137 = vst.msk [vmem:[#allocation3 + $0x98] sm:$0xff] %vm1730_vm10, %v6061_v42 }
 0xbfd   : > { %6326 = vst.msk [vmem:[#allocation3 + $0x80] sm:$0xff] %vm1923_vm11, %v6247_v50  ;;  %6070 = vrot.lane.b32.xlu0 %v14582_v38, %s10993_s19  ;;  %v7309_v21 = vadd.f32 1.0, %v10695_v9 }
 0xbfe   : > { %v10697_v20 = vpop.eup %10696 }
 0xbff   : > { %v7312_v24 = vadd.f32 1.0, %v10697_v20  ;;  %v6249_v39 = vpop.permute.xlu1 %6248  ;;  %6076 = vrot.lane.b32.xlu1 %v14652_v34, %s10993_s19  ;;  %10700 = vrcp.f32 %v7309_v21 }
 0xc00   : > { %v6251_v22 = vpop.permute.xlu0 %6250  ;;  %v10699_v29 = vpop.eup %10698  ;;  %6327 = vst.msk [vmem:[#allocation3 + $0x88] sm:$0xff] %vm1923_vm11, %v6249_v39 }
 0xc01   : > { %6328 = vst.msk [vmem:[#allocation3 + $0x90] sm:$0xff] %vm1923_vm11, %v6251_v22  ;;  %6074 = vrot.lane.b32.xlu0 %v14594_v62, %s10993_s19  ;;  %10702 = vrcp.f32 %v7312_v24  ;;  %v7310_v51 = vadd.f32 1.0, %v10699_v29  ;;  %v14763_v22 = vld [vmem:[#allocation2 + $0x242] sm:$0xff] }
 0xc02   : > { %10704 = vrcp.f32 %v7311_v43  ;;  %v14758_v43 = vld [vmem:[#allocation2 + $0x252] sm:$0xff] }
 0xc03   : > { %10706 = vrcp.f32 %v7310_v51  ;;  %v6253_v63 = vpop.permute.xlu1 %6252  ;;  %6264 = vrot.lane.b32.xlu1 %v14625_v10, %s10994_s20 }
 0xc04   : > { %v6439_v36 = vpop.permute.xlu0 %6438  ;;  %6329 = vst.msk [vmem:[#allocation3 + $0x98] sm:$0xff] %vm1923_vm11, %v6253_v63 }
 0xc05   : > { %6518 = vst.msk [vmem:[#allocation3 + $0x80] sm:$0xff] %vm2117_vm12, %v6439_v36  ;;  %6262 = vrot.lane.b32.xlu0 %v14607_v15, %s10994_s20 }
 0xc07   : > { %v6441_v38 = vpop.permute.xlu1 %6440  ;;  %6268 = vrot.lane.b32.xlu1 %v14666_v59, %s10994_s20 }
 0xc08   : > { %v6443_v17 = vpop.permute.xlu0 %6442  ;;  %6519 = vst.msk [vmem:[#allocation3 + $0x88] sm:$0xff] %vm2117_vm12, %v6441_v38 }
 0xc09   : > { %6520 = vst.msk [vmem:[#allocation3 + $0x90] sm:$0xff] %vm2117_vm12, %v6443_v17  ;;  %6266 = vrot.lane.b32.xlu0 %v14620_v18, %s10994_s20 }
 0xc0b   : > { %v6445_v53 = vpop.permute.xlu1 %6444  ;;  %6456 = vrot.lane.b32.xlu1 %v14127_v40, %s10995_s21 }
 0xc0c   : > { %v6631_v28 = vpop.permute.xlu0 %6630  ;;  %6521 = vst.msk [vmem:[#allocation3 + $0x98] sm:$0xff] %vm2117_vm12, %v6445_v53  ;;  %v10701_v1 = vpop.eup %10700 }
 0xc0d   : > { %6710 = vst.msk [vmem:[#allocation3 + $0x80] sm:$0xff] %vm2310_vm13, %v6631_v28  ;;  %6454 = vrot.lane.b32.xlu0 %v14144_v27, %s10995_s21  ;;  %v7405_v40 = vmul.f32 %v10701_v1, %v14614_v11 }
 0xc0e   : > { %v10703_v5 = vpop.eup %10702 }
 0xc0f   : > { %v10705_v44 = vpop.eup %10704  ;;  %v6633_v8 = vpop.permute.xlu1 %6632  ;;  %6460 = vrot.lane.b32.xlu1 %v14150_v14, %s10995_s21  ;;  %v7408_v2 = vmul.f32 %v10703_v5, %v14618_v6 }
 0xc10   : > { %v6635_v41 = vpop.permute.xlu0 %6634  ;;  %v10707_v45 = vpop.eup %10706  ;;  %6711 = vst.msk [vmem:[#allocation3 + $0x88] sm:$0xff] %vm2310_vm13, %v6633_v8  ;;  %v7407_v31 = vmul.f32 %v10705_v44, %v14604_v4 }
 0xc11   : > { %6712 = vst.msk [vmem:[#allocation3 + $0x90] sm:$0xff] %vm2310_vm13, %v6635_v41  ;;  %6458 = vrot.lane.b32.xlu0 %v14135_v7, %s10995_s21  ;;  %v7406_v27 = vmul.f32 %v10707_v45, %v14629_v55  ;;  %v14704_v7 = vld [vmem:[#allocation2 + $0x231] sm:$0xff]  ;;  %v14789_v41 = vld [vmem:[#allocation2 + $0x261] sm:$0xff] }
 0xc12   : > { %v14694_v15 = vpack.c.bf16 %v7408_v2, %v7407_v31 }
 0xc13   : > { %v14690_v35 = vpack.c.bf16 %v7406_v27, %v7405_v40  ;;  %v6637_v52 = vpop.permute.xlu1 %6636  ;;  %6648 = vrot.lane.b32.xlu1 %v14594_v62, %s10996_s22 }
 0xc14   : > { %v6823_v23 = vpop.permute.xlu0 %6822  ;;  %6713 = vst.msk [vmem:[#allocation3 + $0x98] sm:$0xff] %vm2310_vm13, %v6637_v52 }
 0xc15   : > { %6902 = vst.msk [vmem:[#allocation3 + $0x80] sm:$0xff] %vm2503_vm14, %v6823_v23  ;;  %6646 = vrot.lane.b32.xlu0 %v14598_v12, %s10996_s22  ;;  %10168 = vmatprep.mubr.msk.bf16.mxu1 %vm3083_vm2, %v14690_v35 }
 0xc16   : > { %10169 = vmatmul.mubr.msk.bf16.vlgmr.msra.gmra.mxu1 %vm3083_vm2, %v14694_v15 }
 0xc17   : > { %v6825_v4 = vpop.permute.xlu1 %6824  ;;  %6652 = vrot.lane.b32.xlu1 %v14704_v7, %s10996_s22 }
 0xc18   : > { %v5487_v62 = vpop.permute.xlu0 %5486  ;;  %6903 = vst.msk [vmem:[#allocation3 + $0x88] sm:$0xff] %vm2503_vm14, %v6825_v4 }
 0xc19   : > { %5562 = vst.msk [vmem:[#allocation3 + $0xa0] sm:$0xff] %vm1151_vm7, %v5487_v62  ;;  %6650 = vrot.lane.b32.xlu0 %v14652_v34, %s10996_s22 }
 0xc1b   : > { %v5489_v12 = vpop.permute.xlu1 %5488  ;;  %6840 = vrot.lane.b32.xlu1 %v14620_v18, %s10997_s27  ;;  %v14725_v18 = vld [vmem:[#allocation2 + $0x232] sm:$0xff] }
 0xc1c   : > { %v6827_v56 = vpop.permute.xlu0 %6826  ;;  %5563 = vst.msk [vmem:[#allocation3 + $0xa8] sm:$0xff] %vm1151_vm7, %v5489_v12  ;;  %v6934_v11 = vld [vmem:[#allocation3 + $0x80] sm:$0xff] }
 0xc1d   : > { %6904 = vst.msk [vmem:[#allocation3 + $0x90] sm:$0xff] %vm2503_vm14, %v6827_v56  ;;  %6838 = vrot.lane.b32.xlu0 %v14625_v10, %s10997_s27 }
 0xc1f   : > { %v6829_v26 = vpop.permute.xlu1 %6828  ;;  %5504 = vrot.lane.b32.xlu1 %v14704_v7, %s10990_s16  ;;  %v6935_v0 = vld [vmem:[#allocation3 + $0x88] sm:$0xff] }
 0xc20   : > { %v5491_v13 = vpop.permute.xlu0 %5490  ;;  %6905 = vst.msk [vmem:[#allocation3 + $0x98] sm:$0xff] %vm2503_vm14, %v6829_v26  ;;  %v6958_v6 = vpack.c.bf16 %v6935_v0, %v6934_v11  ;;  %v6373_v26 = vld [vmem:[#allocation2 + $0x270] sm:$0xff] }
 0xc21   : > { %5564 = vst.msk [vmem:[#allocation3 + $0xb0] sm:$0xff] %vm1151_vm7, %v5491_v13  ;;  %5502 = vrot.lane.b32.xlu0 %v14652_v34, %s10990_s16 }
 0xc22   : > { %10148 = vmatprep.mubr.msk.bf16.mxu0 %vm2619_vm15, %v6958_v6 }
 0xc23   : > { %v5493_v46 = vpop.permute.xlu1 %5492  ;;  %6844 = vrot.lane.b32.xlu1 %v14725_v18, %s10997_s27 }
 0xc24   : > { %v5679_v37 = vpop.permute.xlu0 %5678  ;;  %5565 = vst.msk [vmem:[#allocation3 + $0xb8] sm:$0xff] %vm1151_vm7, %v5493_v46  ;;  %v6936_v33 = vld [vmem:[#allocation3 + $0x90] sm:$0xff] }
 0xc25   : > { %5754 = vst.msk [vmem:[#allocation3 + $0xa0] sm:$0xff] %vm1344_vm8, %v5679_v37  ;;  %6842 = vrot.lane.b32.xlu0 %v14666_v59, %s10997_s27 }
 0xc27   : > { %v5681_v10 = vpop.permute.xlu1 %5680  ;;  %5508 = vrot.lane.b32.xlu1 %v14733_v16, %s10990_s16  ;;  %v6937_v58 = vld [vmem:[#allocation3 + $0x98] sm:$0xff] }
 0xc28   : > { %v5683_v55 = vpop.permute.xlu0 %5682  ;;  %5755 = vst.msk [vmem:[#allocation3 + $0xa8] sm:$0xff] %vm1344_vm8, %v5681_v10  ;;  %v6959_v32 = vpack.c.bf16 %v6937_v58, %v6936_v33 }
 0xc29   : > { %5756 = vst.msk [vmem:[#allocation3 + $0xb0] sm:$0xff] %vm1344_vm8, %v5683_v55  ;;  %5506 = vrot.lane.b32.xlu0 %v14737_v48, %s10990_s16 }
 0xc2a   : > { %v14743_v57 = vpop.f32.mrf.mxu0  ;;  %10149 = vmatmul.mubr.msk.bf16.gmra.mxu0 %vm2619_vm15, %v6959_v32 }
 0xc2b   : > { %v9464_v25 = vmul.f32 -1.442695, %v14743_v57  ;;  %v5685_v42 = vpop.permute.xlu1 %5684  ;;  %5696 = vrot.lane.b32.xlu1 %v14725_v18, %s10991_s17 }
 0xc2c   : > { %v5871_v50 = vpop.permute.xlu0 %5870  ;;  %5757 = vst.msk [vmem:[#allocation3 + $0xb8] sm:$0xff] %vm1344_vm8, %v5685_v42  ;;  %v14751_v9 = vpop.f32.mrf.mxu0 }
 0xc2d   : > { %5946 = vst.msk [vmem:[#allocation3 + $0xa0] sm:$0xff] %vm1537_vm9, %v5871_v50  ;;  %5694 = vrot.lane.b32.xlu0 %v14666_v59, %s10991_s17  ;;  %v9462_v21 = vmul.f32 -1.442695, %v14751_v9  ;;  %10708 = vpow2.f32 %v9464_v25  ;;  %v5797_v59 = vld [vmem:[#allocation2 + $0x260] sm:$0xff]  ;;  %v6565_v25 = vld [vmem:[#allocation2 + $0x271] sm:$0xff] }
 0xc2e   : > { %v14756_v20 = vpop.f32.mrf.mxu0  ;;  %v6757_v50 = vld [vmem:[#allocation2 + $0x272] sm:$0xff] }
 0xc2f   : > { %10710 = vpow2.f32 %v9462_v21  ;;  %v9465_v34 = vmul.f32 -1.442695, %v14756_v20  ;;  %v5873_v24 = vpop.permute.xlu1 %5872  ;;  %5700 = vrot.lane.b32.xlu1 %v14758_v43, %s10991_s17 }
 0xc30   : > { %v5875_v39 = vpop.permute.xlu0 %5874  ;;  %5947 = vst.msk [vmem:[#allocation3 + $0xa8] sm:$0xff] %vm1537_vm9, %v5873_v24  ;;  %v14767_v29 = vpop.f32.mrf.mxu0 }
 0xc31   : > { %5948 = vst.msk [vmem:[#allocation3 + $0xb0] sm:$0xff] %vm1537_vm9, %v5875_v39  ;;  %5698 = vrot.lane.b32.xlu0 %v14763_v22, %s10991_s17  ;;  %10712 = vpow2.f32 %v9465_v34  ;;  %v9463_v51 = vmul.f32 -1.442695, %v14767_v29  ;;  %s15542_s17 = scalar_lea.vmem %s15862_s9, %s9610_s11 }
 0xc33   : > { %10714 = vpow2.f32 %v9463_v51  ;;  %v5877_v63 = vpop.permute.xlu1 %5876  ;;  %5888 = vrot.lane.b32.xlu1 %v14160_v47, %s10992_s18 }
 0xc34   : > { %v6063_v36 = vpop.permute.xlu0 %6062  ;;  %5949 = vst.msk [vmem:[#allocation3 + $0xb8] sm:$0xff] %vm1537_vm9, %v5877_v63 }
 0xc35   : > { %6138 = vst.msk [vmem:[#allocation3 + $0xa0] sm:$0xff] %vm1730_vm10, %v6063_v36  ;;  %5886 = vrot.lane.b32.xlu0 %v14150_v14, %s10992_s18 }
 0xc37   : > { %v6065_v38 = vpop.permute.xlu1 %6064  ;;  %5892 = vrot.lane.b32.xlu1 %v5797_v59, %s10992_s18 }
 0xc38   : > { %v6067_v17 = vpop.permute.xlu0 %6066  ;;  %6139 = vst.msk [vmem:[#allocation3 + $0xa8] sm:$0xff] %vm1730_vm10, %v6065_v38 }
 0xc39   : > { %6140 = vst.msk [vmem:[#allocation3 + $0xb0] sm:$0xff] %vm1730_vm10, %v6067_v17  ;;  %5890 = vrot.lane.b32.xlu0 %v14162_v61, %s10992_s18 }
 0xc3a   : > { %v10709_v53 = vpop.eup %10708 }
 0xc3b   : > { %v6069_v28 = vpop.permute.xlu1 %6068  ;;  %6080 = vrot.lane.b32.xlu1 %v14737_v48, %s10993_s19  ;;  %v7315_v8 = vadd.f32 1.0, %v10709_v53 }
 0xc3c   : > { %v6255_v1 = vpop.permute.xlu0 %6254  ;;  %v10711_v5 = vpop.eup %10710  ;;  %6141 = vst.msk [vmem:[#allocation3 + $0xb8] sm:$0xff] %vm1730_vm10, %v6069_v28 }
 0xc3d   : > { %6330 = vst.msk [vmem:[#allocation3 + $0xa0] sm:$0xff] %vm1923_vm11, %v6255_v1  ;;  %6078 = vrot.lane.b32.xlu0 %v14704_v7, %s10993_s19  ;;  %v7313_v14 = vadd.f32 1.0, %v10711_v5  ;;  %v6181_v7 = vld [vmem:[#allocation2 + $0x262] sm:$0xff] }
 0xc3e   : > { %v10713_v44 = vpop.eup %10712 }
 0xc3f   : > { %v7316_v45 = vadd.f32 1.0, %v10713_v44  ;;  %v6257_v2 = vpop.permute.xlu1 %6256  ;;  %6084 = vrot.lane.b32.xlu1 %v14789_v41, %s10993_s19  ;;  %10716 = vrcp.f32 %v7313_v14 }
 0xc40   : > { %v6259_v40 = vpop.permute.xlu0 %6258  ;;  %v10715_v27 = vpop.eup %10714  ;;  %6331 = vst.msk [vmem:[#allocation3 + $0xa8] sm:$0xff] %vm1923_vm11, %v6257_v2 }
 0xc41   : > { %6332 = vst.msk [vmem:[#allocation3 + $0xb0] sm:$0xff] %vm1923_vm11, %v6259_v40  ;;  %6082 = vrot.lane.b32.xlu0 %v14733_v16, %s10993_s19  ;;  %10718 = vrcp.f32 %v7316_v45  ;;  %v7314_v31 = vadd.f32 1.0, %v10715_v27 }
 0xc42   : > { %10720 = vrcp.f32 %v7315_v8 }
 0xc43   : > { %10722 = vrcp.f32 %v7314_v31  ;;  %v6261_v52 = vpop.permute.xlu1 %6260  ;;  %6272 = vrot.lane.b32.xlu1 %v14763_v22, %s10994_s20 }
 0xc44   : > { %v6447_v23 = vpop.permute.xlu0 %6446  ;;  %6333 = vst.msk [vmem:[#allocation3 + $0xb8] sm:$0xff] %vm1923_vm11, %v6261_v52  ;;  %v10433_v52 = vld [vmem:[%s15859_s6] sm:$0xff]  }
 0xc45   : > { %6522 = vst.msk [vmem:[#allocation3 + $0xa0] sm:$0xff] %vm2117_vm12, %v6447_v23  ;;  %6270 = vrot.lane.b32.xlu0 %v14725_v18, %s10994_s20 }
 0xc47   : > { %v6449_v4 = vpop.permute.xlu1 %6448  ;;  %6276 = vrot.lane.b32.xlu1 %v6181_v7, %s10994_s20 }
 0xc48   : > { %v6451_v62 = vpop.permute.xlu0 %6450  ;;  %6523 = vst.msk [vmem:[#allocation3 + $0xa8] sm:$0xff] %vm2117_vm12, %v6449_v4 }
 0xc49   : > { %6524 = vst.msk [vmem:[#allocation3 + $0xb0] sm:$0xff] %vm2117_vm12, %v6451_v62  ;;  %6274 = vrot.lane.b32.xlu0 %v14758_v43, %s10994_s20 }
 0xc4b   : > { %v6453_v12 = vpop.permute.xlu1 %6452  ;;  %6464 = vrot.lane.b32.xlu1 %v14162_v61, %s10995_s21 }
 0xc4c   : > { %v6639_v56 = vpop.permute.xlu0 %6638  ;;  %6525 = vst.msk [vmem:[#allocation3 + $0xb8] sm:$0xff] %vm2117_vm12, %v6453_v12  ;;  %v10717_v13 = vpop.eup %10716 }
 0xc4d   : > { %6714 = vst.msk [vmem:[#allocation3 + $0xa0] sm:$0xff] %vm2310_vm13, %v6639_v56  ;;  %6462 = vrot.lane.b32.xlu0 %v14160_v47, %s10995_s21  ;;  %v7409_v61 = vmul.f32 %v10717_v13, %v14751_v9 }
 0xc4e   : > { %v10719_v11 = vpop.eup %10718 }
 0xc4f   : > { %v10721_v0 = vpop.eup %10720  ;;  %v6641_v6 = vpop.permute.xlu1 %6640  ;;  %6468 = vrot.lane.b32.xlu1 %v6373_v26, %s10995_s21  ;;  %v7412_v37 = vmul.f32 %v10719_v11, %v14756_v20 }
 0xc50   : > { %v6643_v18 = vpop.permute.xlu0 %6642  ;;  %v10723_v46 = vpop.eup %10722  ;;  %6715 = vst.msk [vmem:[#allocation3 + $0xa8] sm:$0xff] %vm2310_vm13, %v6641_v6  ;;  %v7411_v10 = vmul.f32 %v10721_v0, %v14743_v57 }
 0xc51   : > { %6716 = vst.msk [vmem:[#allocation3 + $0xb0] sm:$0xff] %vm2310_vm13, %v6643_v18  ;;  %6466 = vrot.lane.b32.xlu0 %v5797_v59, %s10995_s21  ;;  %v7410_v47 = vmul.f32 %v10723_v46, %v14767_v29 }
 0xc52   : > { %v14826_v32 = vpack.c.bf16 %v7412_v37, %v7411_v10 }
 0xc53   : > { %v14822_v55 = vpack.c.bf16 %v7410_v47, %v7409_v61  ;;  %v6645_v33 = vpop.permute.xlu1 %6644  ;;  %6656 = vrot.lane.b32.xlu1 %v14733_v16, %s10996_s22 }
 0xc54   : > { %v6831_v58 = vpop.permute.xlu0 %6830  ;;  %6717 = vst.msk [vmem:[#allocation3 + $0xb8] sm:$0xff] %vm2310_vm13, %v6645_v33 }
 0xc55   : > { %6906 = vst.msk [vmem:[#allocation3 + $0xa0] sm:$0xff] %vm2503_vm14, %v6831_v58  ;;  %6654 = vrot.lane.b32.xlu0 %v14737_v48, %s10996_s22  ;;  %10172 = vmatprep.mubr.msk.bf16.mxu1 %vm3083_vm2, %v14822_v55 }
 0xc56   : > { %10173 = vmatmul.mubr.msk.bf16.gmra.mxu1 %vm3083_vm2, %v14826_v32 }
 0xc57   : > { %v6833_v57 = vpop.permute.xlu1 %6832  ;;  %6660 = vrot.lane.b32.xlu1 %v6565_v25, %s10996_s22 }
 0xc58   : > { %v5495_v16 = vpop.permute.xlu0 %5494  ;;  %6907 = vst.msk [vmem:[#allocation3 + $0xa8] sm:$0xff] %vm2503_vm14, %v6833_v57 }
 0xc59   : > { %5566 = vst.msk [vmem:[#allocation3 + $0xc0] sm:$0xff] %vm1151_vm7, %v5495_v16  ;;  %6658 = vrot.lane.b32.xlu0 %v14789_v41, %s10996_s22 }
 0xc5b   : > { %v5497_v42 = vpop.permute.xlu1 %5496  ;;  %6848 = vrot.lane.b32.xlu1 %v14758_v43, %s10997_s27 }
 0xc5c   : > { %v6835_v48 = vpop.permute.xlu0 %6834  ;;  %5567 = vst.msk [vmem:[#allocation3 + $0xc8] sm:$0xff] %vm1151_vm7, %v5497_v42  ;;  %v6938_v20 = vld [vmem:[#allocation3 + $0xa0] sm:$0xff] }
 0xc5d   : > { %6908 = vst.msk [vmem:[#allocation3 + $0xb0] sm:$0xff] %vm2503_vm14, %v6835_v48  ;;  %6846 = vrot.lane.b32.xlu0 %v14763_v22, %s10997_s27  ;;  %v10432_v22 = vld [vmem:[%s15859_s6 + $0x8] ss:$0 sps:$4 sm:$0x11]  }
 0xc5e   : > { %10388 = vmatprep.subr.msk.bf16.mxu0 %vm15952_vm1, %v10432_v22  ;;  %v7684_v38 = vsel %vm15953_vm4, %v10432_v22, 0 }
 0xc5f   : > { %v6837_v9 = vpop.permute.xlu1 %6836  ;;  %v6939_v34 = vld [vmem:[#allocation3 + $0xa8] sm:$0xff]  ;;  %6852 = vrot.lane.b32.xlu1 %v6757_v50, %s10997_s27  ;;  %10201 = vmatpush3.bf16.msra.mxu0 %v7684_v38 }
 0xc60   : > { %v5499_v21 = vpop.permute.xlu0 %5498  ;;  %6909 = vst.msk [vmem:[#allocation3 + $0xb8] sm:$0xff] %vm2503_vm14, %v6837_v9  ;;  %v6960_v43 = vpack.c.bf16 %v6939_v34, %v6938_v20  ;;  %10202 = vmatprep.subr.bf16.mxu0 %v10433_v52 }
 0xc61   : > { %5568 = vst.msk [vmem:[#allocation3 + $0xd0] sm:$0xff] %vm1151_vm7, %v5499_v21  ;;  %6850 = vrot.lane.b32.xlu0 %v6181_v7, %s10997_s27 }
 0xc62   : > { %10152 = vmatprep.mubr.msk.bf16.mxu0 %vm2619_vm15, %v6960_v43 }
 0xc63   : > { %v5501_v24 = vpop.permute.xlu1 %5500  ;;  %10203 = vmatpush3.bf16.msra.mxu0 %v10433_v52 }
 0xc64   : > { %v5687_v39 = vpop.permute.xlu0 %5686  ;;  %5569 = vst.msk [vmem:[#allocation3 + $0xd8] sm:$0xff] %vm1151_vm7, %v5501_v24  ;;  %v6940_v63 = vld [vmem:[#allocation3 + $0xb0] sm:$0xff] }
 0xc65   : > { %5758 = vst.msk [vmem:[#allocation3 + $0xc0] sm:$0xff] %vm1344_vm8, %v5687_v39 }
 0xc67   : > { %v5689_v29 = vpop.permute.xlu1 %5688  ;;  %v6941_v36 = vld [vmem:[#allocation3 + $0xb8] sm:$0xff] }
 0xc68   : > { %v5691_v51 = vpop.permute.xlu0 %5690  ;;  %5759 = vst.msk [vmem:[#allocation3 + $0xc8] sm:$0xff] %vm1344_vm8, %v5689_v29  ;;  %v6961_v59 = vpack.c.bf16 %v6941_v36, %v6940_v63 }
 0xc69   : > { %5760 = vst.msk [vmem:[#allocation3 + $0xd0] sm:$0xff] %vm1344_vm8, %v5691_v51 }
 0xc6a   : > { %v14861_v17 = vpop.f32.mrf.mxu0  ;;  %10153 = vmatmul.mubr.msk.bf16.gmra.mxu0 %vm2619_vm15, %v6961_v59 }
 0xc6b   : > { %v9468_v53 = vmul.f32 -1.442695, %v14861_v17  ;;  %v5693_v28 = vpop.permute.xlu1 %5692 }
 0xc6c   : > { %v5879_v1 = vpop.permute.xlu0 %5878  ;;  %5761 = vst.msk [vmem:[#allocation3 + $0xd8] sm:$0xff] %vm1344_vm8, %v5693_v28  ;;  %v14867_v5 = vpop.f32.mrf.mxu0 }
 0xc6d   : > { %5950 = vst.msk [vmem:[#allocation3 + $0xc0] sm:$0xff] %vm1537_vm9, %v5879_v1  ;;  %v9466_v14 = vmul.f32 -1.442695, %v14867_v5  ;;  %10724 = vpow2.f32 %v9468_v53 }
 0xc6e   : > { %v10143_v44 = vpop.f32.mrf.mxu0 }
 0xc6f   : > { %10726 = vpow2.f32 %v9466_v14  ;;  %v9469_v8 = vmul.f32 -1.442695, %v10143_v44  ;;  %v5881_v41 = vpop.permute.xlu1 %5880 }
 0xc70   : > { %v5883_v45 = vpop.permute.xlu0 %5882  ;;  %5951 = vst.msk [vmem:[#allocation3 + $0xc8] sm:$0xff] %vm1537_vm9, %v5881_v41  ;;  %v7121_v2 = vpop.f32.mrf.mxu0 }
 0xc71   : > { %5952 = vst.msk [vmem:[#allocation3 + $0xd0] sm:$0xff] %vm1537_vm9, %v5883_v45  ;;  %10728 = vpow2.f32 %v9469_v8  ;;  %v9467_v40 = vmul.f32 -1.442695, %v7121_v2 }
 0xc73   : > { %10730 = vpow2.f32 %v9467_v40  ;;  %v5885_v27 = vpop.permute.xlu1 %5884 }
 0xc74   : > { %v6071_v31 = vpop.permute.xlu0 %6070  ;;  %5953 = vst.msk [vmem:[#allocation3 + $0xd8] sm:$0xff] %vm1537_vm9, %v5885_v27 }
 0xc75   : > { %6142 = vst.msk [vmem:[#allocation3 + $0xc0] sm:$0xff] %vm1730_vm10, %v6071_v31 }
 0xc77   : > { %v6073_v23 = vpop.permute.xlu1 %6072 }
 0xc78   : > { %v6075_v7 = vpop.permute.xlu0 %6074  ;;  %6143 = vst.msk [vmem:[#allocation3 + $0xc8] sm:$0xff] %vm1730_vm10, %v6073_v23 }
 0xc79   : > { %6144 = vst.msk [vmem:[#allocation3 + $0xd0] sm:$0xff] %vm1730_vm10, %v6075_v7 }
 0xc7a   : > { %v10725_v4 = vpop.eup %10724 }
 0xc7b   : > { %v6077_v62 = vpop.permute.xlu1 %6076  ;;  %v7319_v11 = vadd.f32 1.0, %v10725_v4 }
 0xc7c   : > { %v6263_v12 = vpop.permute.xlu0 %6262  ;;  %v10727_v56 = vpop.eup %10726  ;;  %6145 = vst.msk [vmem:[#allocation3 + $0xd8] sm:$0xff] %vm1730_vm10, %v6077_v62 }
 0xc7d   : > { %6334 = vst.msk [vmem:[#allocation3 + $0xc0] sm:$0xff] %vm1923_vm11, %v6263_v12  ;;  %v7317_v26 = vadd.f32 1.0, %v10727_v56 }
 0xc7e   : > { %v10729_v13 = vpop.eup %10728 }
 0xc7f   : > { %v7320_v0 = vadd.f32 1.0, %v10729_v13  ;;  %v6265_v6 = vpop.permute.xlu1 %6264  ;;  %10732 = vrcp.f32 %v7317_v26 }
 0xc80   : > { %v6267_v18 = vpop.permute.xlu0 %6266  ;;  %v10731_v46 = vpop.eup %10730  ;;  %6335 = vst.msk [vmem:[#allocation3 + $0xc8] sm:$0xff] %vm1923_vm11, %v6265_v6 }
 0xc81   : > { %6336 = vst.msk [vmem:[#allocation3 + $0xd0] sm:$0xff] %vm1923_vm11, %v6267_v18  ;;  %10734 = vrcp.f32 %v7320_v0  ;;  %v7318_v37 = vadd.f32 1.0, %v10731_v46 }
 0xc82   : > { %10736 = vrcp.f32 %v7319_v11 }
 0xc83   : > { %10738 = vrcp.f32 %v7318_v37  ;;  %v6269_v61 = vpop.permute.xlu1 %6268 }
 0xc84   : > { %v6455_v47 = vpop.permute.xlu0 %6454  ;;  %6337 = vst.msk [vmem:[#allocation3 + $0xd8] sm:$0xff] %vm1923_vm11, %v6269_v61 }
 0xc85   : > { %6526 = vst.msk [vmem:[#allocation3 + $0xc0] sm:$0xff] %vm2117_vm12, %v6455_v47 }
 0xc87   : > { %v6457_v10 = vpop.permute.xlu1 %6456 }
 0xc88   : > { %v6459_v33 = vpop.permute.xlu0 %6458  ;;  %6527 = vst.msk [vmem:[#allocation3 + $0xc8] sm:$0xff] %vm2117_vm12, %v6457_v10 }
 0xc89   : > { %6528 = vst.msk [vmem:[#allocation3 + $0xd0] sm:$0xff] %vm2117_vm12, %v6459_v33 }
 0xc8b   : > { %v6461_v58 = vpop.permute.xlu1 %6460 }
 0xc8c   : > { %v6647_v25 = vpop.permute.xlu0 %6646  ;;  %6529 = vst.msk [vmem:[#allocation3 + $0xd8] sm:$0xff] %vm2117_vm12, %v6461_v58  ;;  %v10733_v57 = vpop.eup %10732 }
 0xc8d   : > { %6718 = vst.msk [vmem:[#allocation3 + $0xc0] sm:$0xff] %vm2310_vm13, %v6647_v25  ;;  %v7413_v20 = vmul.f32 %v10733_v57, %v14867_v5 }
 0xc8e   : > { %v10735_v16 = vpop.eup %10734 }
 0xc8f   : > { %v10737_v42 = vpop.eup %10736  ;;  %v6649_v48 = vpop.permute.xlu1 %6648  ;;  %v7416_v21 = vmul.f32 %v10735_v16, %v10143_v44 }
 0xc90   : > { %v6651_v50 = vpop.permute.xlu0 %6650  ;;  %v10739_v9 = vpop.eup %10738  ;;  %6719 = vst.msk [vmem:[#allocation3 + $0xc8] sm:$0xff] %vm2310_vm13, %v6649_v48  ;;  %v7415_v43 = vmul.f32 %v10737_v42, %v14861_v17 }
 0xc91   : > { %6720 = vst.msk [vmem:[#allocation3 + $0xd0] sm:$0xff] %vm2310_vm13, %v6651_v50  ;;  %v7414_v34 = vmul.f32 %v10739_v9, %v7121_v2 }
 0xc92   : > { %v14895_v29 = vpack.c.bf16 %v7416_v21, %v7415_v43 }
 0xc93   : > { %v14893_v24 = vpack.c.bf16 %v7414_v34, %v7413_v20  ;;  %v6653_v39 = vpop.permute.xlu1 %6652 }
 0xc94   : > { %v6839_v22 = vpop.permute.xlu0 %6838  ;;  %6721 = vst.msk [vmem:[#allocation3 + $0xd8] sm:$0xff] %vm2310_vm13, %v6653_v39 }
 0xc95   : > { %6910 = vst.msk [vmem:[#allocation3 + $0xc0] sm:$0xff] %vm2503_vm14, %v6839_v22  ;;  %10176 = vmatprep.mubr.msk.bf16.mxu1 %vm3083_vm2, %v14893_v24 }
 0xc96   : > { %10177 = vmatmul.mubr.msk.bf16.gmra.mxu1 %vm3083_vm2, %v14895_v29 }
 0xc97   : > { %v6841_v51 = vpop.permute.xlu1 %6840 }
 0xc98   : > { %v5503_v63 = vpop.permute.xlu0 %5502  ;;  %6911 = vst.msk [vmem:[#allocation3 + $0xc8] sm:$0xff] %vm2503_vm14, %v6841_v51 }
 0xc99   : > { %5570 = vst.msk [vmem:[#allocation3 + $0xe0] sm:$0xff] %vm1151_vm7, %v5503_v63 }
 0xc9b   : > { %v5505_v36 = vpop.permute.xlu1 %5504 }
 0xc9c   : > { %v6843_v59 = vpop.permute.xlu0 %6842  ;;  %5571 = vst.msk [vmem:[#allocation3 + $0xe8] sm:$0xff] %vm1151_vm7, %v5505_v36  ;;  %v6942_v53 = vld [vmem:[#allocation3 + $0xc0] sm:$0xff] }
 0xc9d   : > { %6912 = vst.msk [vmem:[#allocation3 + $0xd0] sm:$0xff] %vm2503_vm14, %v6843_v59 }
 0xc9f   : > { %v6845_v38 = vpop.permute.xlu1 %6844  ;;  %v6943_v28 = vld [vmem:[#allocation3 + $0xc8] sm:$0xff] }
 0xca0   : > { %v5507_v17 = vpop.permute.xlu0 %5506  ;;  %6913 = vst.msk [vmem:[#allocation3 + $0xd8] sm:$0xff] %vm2503_vm14, %v6845_v38  ;;  %v6962_v1 = vpack.c.bf16 %v6943_v28, %v6942_v53 }
 0xca1   : > { %5572 = vst.msk [vmem:[#allocation3 + $0xf0] sm:$0xff] %vm1151_vm7, %v5507_v17 }
 0xca2   : > { %10156 = vmatprep.mubr.msk.bf16.mxu0 %vm2619_vm15, %v6962_v1 }
 0xca3   : > { %v5509_v5 = vpop.permute.xlu1 %5508 }
 0xca4   : > { %v5695_v14 = vpop.permute.xlu0 %5694  ;;  %5573 = vst.msk [vmem:[#allocation3 + $0xf8] sm:$0xff] %vm1151_vm7, %v5509_v5  ;;  %v6944_v41 = vld [vmem:[#allocation3 + $0xd0] sm:$0xff]  ;;  %vm15956_vm7 = vcmask 1043456  }
 0xca5   : > { %5762 = vst.msk [vmem:[#allocation3 + $0xe0] sm:$0xff] %vm1344_vm8, %v5695_v14 }
 0xca7   : > { %v5697_v44 = vpop.permute.xlu1 %5696  ;;  %v6945_v45 = vld [vmem:[#allocation3 + $0xd8] sm:$0xff] }
 0xca8   : > { %v5699_v8 = vpop.permute.xlu0 %5698  ;;  %5763 = vst.msk [vmem:[#allocation3 + $0xe8] sm:$0xff] %vm1344_vm8, %v5697_v44  ;;  %v6963_v2 = vpack.c.bf16 %v6945_v45, %v6944_v41 }
 0xca9   : > { %5764 = vst.msk [vmem:[#allocation3 + $0xf0] sm:$0xff] %vm1344_vm8, %v5699_v8 }
 0xcaa   : > { %v14914_v40 = vpop.f32.mrf.mxu0  ;;  %10157 = vmatmul.mubr.msk.bf16.gmra.mxu0 %vm2619_vm15, %v6963_v2 }
 0xcab   : > { %v9472_v27 = vmul.f32 -1.442695, %v14914_v40  ;;  %v5701_v31 = vpop.permute.xlu1 %5700 }
 0xcac   : > { %v5887_v52 = vpop.permute.xlu0 %5886  ;;  %5765 = vst.msk [vmem:[#allocation3 + $0xf8] sm:$0xff] %vm1344_vm8, %v5701_v31  ;;  %v14920_v23 = vpop.f32.mrf.mxu0  ;;  %vm15957_vm8 = vmmov %vm15956_vm7 }
 0xcad   : > { %5954 = vst.msk [vmem:[#allocation3 + $0xe0] sm:$0xff] %vm1537_vm9, %v5887_v52  ;;  %v9470_v7 = vmul.f32 -1.442695, %v14920_v23  ;;  %10740 = vpow2.f32 %v9472_v27 }
 0xcae   : > { %v10147_v4 = vpop.f32.mrf.mxu0 }
 0xcaf   : > { %10742 = vpow2.f32 %v9470_v7  ;;  %v9473_v62 = vmul.f32 -1.442695, %v10147_v4  ;;  %v5889_v12 = vpop.permute.xlu1 %5888 }
 0xcb0   : > { %v5891_v56 = vpop.permute.xlu0 %5890  ;;  %5955 = vst.msk [vmem:[#allocation3 + $0xe8] sm:$0xff] %vm1537_vm9, %v5889_v12  ;;  %v7137_v26 = vpop.f32.mrf.mxu0 }
 0xcb1   : > { %5956 = vst.msk [vmem:[#allocation3 + $0xf0] sm:$0xff] %vm1537_vm9, %v5891_v56  ;;  %10744 = vpow2.f32 %v9473_v62  ;;  %v9471_v13 = vmul.f32 -1.442695, %v7137_v26 }
 0xcb3   : > { %10746 = vpow2.f32 %v9471_v13  ;;  %v5893_v11 = vpop.permute.xlu1 %5892 }
 0xcb4   : > { %v6079_v0 = vpop.permute.xlu0 %6078  ;;  %5957 = vst.msk [vmem:[#allocation3 + $0xf8] sm:$0xff] %vm1537_vm9, %v5893_v11  ;;  %vm15958_vm9 = vmmov %vm15956_vm7 }
 0xcb5   : > { %6146 = vst.msk [vmem:[#allocation3 + $0xe0] sm:$0xff] %vm1730_vm10, %v6079_v0 }
 0xcb7   : > { %v6081_v6 = vpop.permute.xlu1 %6080 }
 0xcb8   : > { %v6083_v18 = vpop.permute.xlu0 %6082  ;;  %6147 = vst.msk [vmem:[#allocation3 + $0xe8] sm:$0xff] %vm1730_vm10, %v6081_v6 }
 0xcb9   : > { %6148 = vst.msk [vmem:[#allocation3 + $0xf0] sm:$0xff] %vm1730_vm10, %v6083_v18 }
 0xcba   : > { %v10741_v46 = vpop.eup %10740 }
 0xcbb   : > { %v6085_v37 = vpop.permute.xlu1 %6084  ;;  %v7323_v58 = vadd.f32 1.0, %v10741_v46 }
 0xcbc   : > { %v6271_v61 = vpop.permute.xlu0 %6270  ;;  %v10743_v47 = vpop.eup %10742  ;;  %6149 = vst.msk [vmem:[#allocation3 + $0xf8] sm:$0xff] %vm1730_vm10, %v6085_v37  ;;  %vm15959_vm10 = vmmov %vm15956_vm7 }
 0xcbd   : > { %6338 = vst.msk [vmem:[#allocation3 + $0xe0] sm:$0xff] %vm1923_vm11, %v6271_v61  ;;  %v7321_v10 = vadd.f32 1.0, %v10743_v47 }
 0xcbe   : > { %v10745_v33 = vpop.eup %10744 }
 0xcbf   : > { %v7324_v25 = vadd.f32 1.0, %v10745_v33  ;;  %v6273_v57 = vpop.permute.xlu1 %6272  ;;  %10748 = vrcp.f32 %v7321_v10 }
 0xcc0   : > { %v6275_v16 = vpop.permute.xlu0 %6274  ;;  %v10747_v42 = vpop.eup %10746  ;;  %6339 = vst.msk [vmem:[#allocation3 + $0xe8] sm:$0xff] %vm1923_vm11, %v6273_v57 }
 0xcc1   : > { %6340 = vst.msk [vmem:[#allocation3 + $0xf0] sm:$0xff] %vm1923_vm11, %v6275_v16  ;;  %10750 = vrcp.f32 %v7324_v25  ;;  %v7322_v48 = vadd.f32 1.0, %v10747_v42 }
 0xcc2   : > { %10752 = vrcp.f32 %v7323_v58 }
 0xcc3   : > { %10754 = vrcp.f32 %v7322_v48  ;;  %v6277_v50 = vpop.permute.xlu1 %6276  ;;  %v10434_v48 = vld [vmem:[%s15859_s6 + $0x20] ss:$0 sps:$4 sm:$0x11]  }
 0xcc4   : > { %v6463_v9 = vpop.permute.xlu0 %6462  ;;  %6341 = vst.msk [vmem:[#allocation3 + $0xf8] sm:$0xff] %vm1923_vm11, %v6277_v50  ;;  %10389 = vmatprep.subr.msk.bf16.mxu1 %vm15954_vm5, %v10434_v48  ;;  %v7857_v50 = vsel %vm15955_vm6, %v10434_v48, 0  ;;  %vm15960_vm11 = vmmov %vm15956_vm7 }
 0xcc5   : > { %6530 = vst.msk [vmem:[#allocation3 + $0xe0] sm:$0xff] %vm2117_vm12, %v6463_v9  ;;  %10237 = vmatpush3.bf16.msra.mxu1 %v7857_v50 }
 0xcc7   : > { %v6465_v21 = vpop.permute.xlu1 %6464 }
 0xcc8   : > { %v6467_v20 = vpop.permute.xlu0 %6466  ;;  %6531 = vst.msk [vmem:[#allocation3 + $0xe8] sm:$0xff] %vm2117_vm12, %v6465_v21 }
 0xcc9   : > { %6532 = vst.msk [vmem:[#allocation3 + $0xf0] sm:$0xff] %vm2117_vm12, %v6467_v20 }
 0xccb   : > { %v6469_v34 = vpop.permute.xlu1 %6468 }
 0xccc   : > { %v6655_v43 = vpop.permute.xlu0 %6654  ;;  %6533 = vst.msk [vmem:[#allocation3 + $0xf8] sm:$0xff] %vm2117_vm12, %v6469_v34  ;;  %v10749_v39 = vpop.eup %10748  ;;  %vm15967_vm12 = vmmov %vm15956_vm7 }
 0xccd   : > { %6722 = vst.msk [vmem:[#allocation3 + $0xe0] sm:$0xff] %vm2310_vm13, %v6655_v43  ;;  %v7417_v17 = vmul.f32 %v10749_v39, %v14920_v23 }
 0xcce   : > { %v10751_v22 = vpop.eup %10750 }
 0xccf   : > { %v10753_v51 = vpop.eup %10752  ;;  %v6657_v63 = vpop.permute.xlu1 %6656  ;;  %v7420_v38 = vmul.f32 %v10751_v22, %v10147_v4 }
 0xcd0   : > { %v6659_v36 = vpop.permute.xlu0 %6658  ;;  %v10755_v59 = vpop.eup %10754  ;;  %6723 = vst.msk [vmem:[#allocation3 + $0xe8] sm:$0xff] %vm2310_vm13, %v6657_v63  ;;  %v7419_v28 = vmul.f32 %v10753_v51, %v14914_v40 }
 0xcd1   : > { %6724 = vst.msk [vmem:[#allocation3 + $0xf0] sm:$0xff] %vm2310_vm13, %v6659_v36  ;;  %v7418_v53 = vmul.f32 %v10755_v59, %v7137_v26 }
 0xcd2   : > { %v14945_v44 = vpack.c.bf16 %v7420_v38, %v7419_v28 }
 0xcd3   : > { %v14943_v1 = vpack.c.bf16 %v7418_v53, %v7417_v17  ;;  %v6661_v5 = vpop.permute.xlu1 %6660 }
 0xcd4   : > { %v6847_v14 = vpop.permute.xlu0 %6846  ;;  %6725 = vst.msk [vmem:[#allocation3 + $0xf8] sm:$0xff] %vm2310_vm13, %v6661_v5  ;;  %vm15968_vm13 = vcmask 64512  }
 0xcd5   : > { %6914 = vst.msk [vmem:[#allocation3 + $0xe0] sm:$0xff] %vm2503_vm14, %v6847_v14  ;;  %10180 = vmatprep.mubr.msk.bf16.mxu1 %vm3083_vm2, %v14943_v1 }
 0xcd6   : > { %10181 = vmatmul.mubr.msk.bf16.gmra.mxu1 %vm3083_vm2, %v14945_v44 }
 0xcd7   : > { %v6849_v8 = vpop.permute.xlu1 %6848 }
 0xcd8   : > { %v6851_v41 = vpop.permute.xlu0 %6850  ;;  %6915 = vst.msk [vmem:[#allocation3 + $0xe8] sm:$0xff] %vm2503_vm14, %v6849_v8 }
 0xcd9   : > { %6916 = vst.msk [vmem:[#allocation3 + $0xf0] sm:$0xff] %vm2503_vm14, %v6851_v41 }
 0xcdb   : > { %v6853_v45 = vpop.permute.xlu1 %6852 }
 0xcdc   : > { %6917 = vst.msk [vmem:[#allocation3 + $0xf8] sm:$0xff] %vm2503_vm14, %v6853_v45  ;;  %v6946_v2 = vld [vmem:[#allocation3 + $0xe0] sm:$0xff]  ;;  %v10435_v45 = vld [vmem:[%s15859_s6 + $0x18] sm:$0xff]   ;;  %vm15969_vm14 = vmmov %vm15968_vm13 }
 0xcdd   : > { %10238 = vmatprep.subr.bf16.mxu1 %v10435_v45 }
 0xcde   : > { %10239 = vmatpush3.bf16.msra.mxu1 %v10435_v45 }
 0xcdf   : > { %v6947_v40 = vld [vmem:[#allocation3 + $0xe8] sm:$0xff] }
 0xce0   : > { %v6964_v27 = vpack.c.bf16 %v6947_v40, %v6946_v2  ;;  %v6948_v31 = vld [vmem:[#allocation3 + $0xf0] sm:$0xff] }
 0xce2   : > { %10160 = vmatprep.mubr.msk.bf16.mxu0 %vm2619_vm15, %v6964_v27 }
 0xce3   : > { %v6949_v52 = vld [vmem:[#allocation3 + $0xf8] sm:$0xff] }
 0xce4   : > { %v6965_v23 = vpack.c.bf16 %v6949_v52, %v6948_v31 }
 0xce6   : > { %10161 = vmatmul.mubr.msk.bf16.gmra.mxu0 %vm2619_vm15, %v6965_v23  ;;  %vm15970_vm15 = vmmov %vm15968_vm13 }
 0xce7   : > { %10204 = vmatprep.mubr.bf16.mxu0 %v15946_v30 }
 0xcea   : > { %v10150_v7 = vpop.f32.mrf.mxu0 }
 0xceb   : > { %v9476_v4 = vmul.f32 -1.442695, %v10150_v7 }
 0xcec   : > { %v7150_v62 = vpop.f32.mrf.mxu0 }
 0xced   : > { %v9474_v12 = vmul.f32 -1.442695, %v7150_v62  ;;  %10756 = vpow2.f32 %v9476_v4 }
 0xcee   : > { %v10151_v56 = vpop.f32.mrf.mxu0  ;;  %10205 = vmatmul.mubr.bf16.vlgmr.msra.gmra.mxu0 %v15946_v30 }
 0xcef   : > { %10758 = vpow2.f32 %v9474_v12  ;;  %v9477_v26 = vmul.f32 -1.442695, %v10151_v56  ;;  %10208 = vmatprep.mubr.bf16.mxu0 %v15946_v30 }
 0xcf0   : > { %v7153_v13 = vpop.f32.mrf.mxu0 }
 0xcf1   : > { %10760 = vpow2.f32 %v9477_v26  ;;  %v9475_v11 = vmul.f32 -1.442695, %v7153_v13 }
 0xcf3   : > { %10762 = vpow2.f32 %v9475_v11 }
 0xcf6   : > { %10209 = vmatmul.mubr.bf16.gmra.mxu0 %v15946_v30 }
 0xcf7   : > { %10212 = vmatprep.mubr.msk.bf16.mxu0 %vm3083_vm2, %v14690_v35 }
 0xcfa   : > { %v10757_v0 = vpop.eup %10756 }
 0xcfb   : > { %v7327_v37 = vadd.f32 1.0, %v10757_v0 }
 0xcfc   : > { %v10759_v6 = vpop.eup %10758 }
 0xcfd   : > { %v7325_v18 = vadd.f32 1.0, %v10759_v6 }
 0xcfe   : > { %v10761_v46 = vpop.eup %10760  ;;  %10213 = vmatmul.mubr.msk.bf16.gmra.mxu0 %vm3083_vm2, %v14694_v15 }
 0xcff   : > { %v7328_v61 = vadd.f32 1.0, %v10761_v46  ;;  %10216 = vmatprep.mubr.msk.bf16.mxu0 %vm3083_vm2, %v14822_v55  ;;  %10764 = vrcp.f32 %v7325_v18 }
 0xd00   : > { %v10763_v47 = vpop.eup %10762 }
 0xd01   : > { %10766 = vrcp.f32 %v7328_v61  ;;  %v7326_v10 = vadd.f32 1.0, %v10763_v47 }
 0xd02   : > { %10768 = vrcp.f32 %v7327_v37 }
 0xd03   : > { %10770 = vrcp.f32 %v7326_v10 }
 0xd06   : > { %10217 = vmatmul.mubr.msk.bf16.gmra.mxu0 %vm3083_vm2, %v14826_v32 }
 0xd07   : > { %10220 = vmatprep.mubr.msk.bf16.mxu0 %vm3083_vm2, %v14893_v24 }
 0xd0c   : > { %v10765_v35 = vpop.eup %10764 }
 0xd0d   : > { %v7421_v25 = vmul.f32 %v10765_v35, %v7150_v62 }
 0xd0e   : > { %v10767_v33 = vpop.eup %10766  ;;  %10221 = vmatmul.mubr.msk.bf16.gmra.mxu0 %vm3083_vm2, %v14895_v29 }
 0xd0f   : > { %v10769_v15 = vpop.eup %10768  ;;  %10224 = vmatprep.mubr.msk.bf16.mxu0 %vm3083_vm2, %v14943_v1  ;;  %v7424_v58 = vmul.f32 %v10767_v33, %v10151_v56 }
 0xd10   : > { %v10771_v55 = vpop.eup %10770  ;;  %v7423_v16 = vmul.f32 %v10769_v15, %v10150_v7 }
 0xd11   : > { %v7422_v57 = vmul.f32 %v10771_v55, %v7153_v13 }
 0xd12   : > { %v14978_v32 = vpack.c.bf16 %v7424_v58, %v7423_v16 }
 0xd13   : > { %v14976_v42 = vpack.c.bf16 %v7422_v57, %v7421_v25 }
 0xd15   : > { %10184 = vmatprep.mubr.msk.bf16.mxu1 %vm3083_vm2, %v14976_v42 }
 0xd16   : > { %10185 = vmatmul.mubr.msk.bf16.gmra.mxu1 %vm3083_vm2, %v14978_v32  ;;  %10225 = vmatmul.mubr.msk.bf16.gmra.mxu0 %vm3083_vm2, %v14945_v44 }
 0xd17   : > { %10228 = vmatprep.mubr.msk.bf16.mxu0 %vm3083_vm2, %v14976_v42 }
 0xd1e   : > { %10229 = vmatmul.mubr.msk.bf16.gmra.mxu0 %vm3083_vm2, %v14978_v32 }
 0xd2a   : > { %v10154_v9 = vpop.f32.mrf.mxu0 }
 0xd2b   : > { %v9480_v21 = vmul.f32 -1.442695, %v10154_v9 }
 0xd2c   : > { %v7166_v20 = vpop.f32.mrf.mxu0 }
 0xd2d   : > { %v9478_v34 = vmul.f32 -1.442695, %v7166_v20  ;;  %10772 = vpow2.f32 %v9480_v21 }
 0xd2e   : > { %v10155_v43 = vpop.f32.mrf.mxu0 }
 0xd2f   : > { %10774 = vpow2.f32 %v9478_v34  ;;  %v9481_v39 = vmul.f32 -1.442695, %v10155_v43 }
 0xd30   : > { %v7169_v22 = vpop.f32.mrf.mxu0 }
 0xd31   : > { %10776 = vpow2.f32 %v9481_v39  ;;  %v9479_v51 = vmul.f32 -1.442695, %v7169_v22 }
 0xd33   : > { %10778 = vpow2.f32 %v9479_v51 }
 0xd3a   : > { %v10773_v63 = vpop.eup %10772 }
 0xd3b   : > { %v7331_v17 = vadd.f32 1.0, %v10773_v63 }
 0xd3c   : > { %v10775_v36 = vpop.eup %10774 }
 0xd3d   : > { %v7329_v59 = vadd.f32 1.0, %v10775_v36 }
 0xd3e   : > { %v10777_v38 = vpop.eup %10776 }
 0xd3f   : > { %v7332_v53 = vadd.f32 1.0, %v10777_v38  ;;  %10780 = vrcp.f32 %v7329_v59 }
 0xd40   : > { %v10779_v28 = vpop.eup %10778 }
 0xd41   : > { %10782 = vrcp.f32 %v7332_v53  ;;  %v7330_v5 = vadd.f32 1.0, %v10779_v28 }
 0xd42   : > { %10784 = vrcp.f32 %v7331_v17 }
 0xd43   : > { %10786 = vrcp.f32 %v7330_v5 }
 0xd4c   : > { %v10781_v14 = vpop.eup %10780 }
 0xd4d   : > { %v7425_v27 = vmul.f32 %v10781_v14, %v7166_v20 }
 0xd4e   : > { %v10783_v8 = vpop.eup %10782 }
 0xd4f   : > { %v10785_v41 = vpop.eup %10784  ;;  %v7428_v40 = vmul.f32 %v10783_v8, %v10155_v43 }
 0xd50   : > { %v10787_v2 = vpop.eup %10786  ;;  %v7427_v52 = vmul.f32 %v10785_v41, %v10154_v9 }
 0xd51   : > { %v7426_v31 = vmul.f32 %v10787_v2, %v7169_v22 }
 0xd52   : > { %v15000_v7 = vpack.c.bf16 %v7428_v40, %v7427_v52 }
 0xd53   : > { %v14998_v23 = vpack.c.bf16 %v7426_v31, %v7425_v27 }
 0xd55   : > { %10188 = vmatprep.mubr.msk.bf16.mxu1 %vm3083_vm2, %v14998_v23  ;;  %10232 = vmatprep.mubr.msk.bf16.mxu0 %vm3083_vm2, %v14998_v23 }
 0xd56   : > { %10189 = vmatmul.mubr.msk.bf16.gmra.mxu1 %vm3083_vm2, %v15000_v7  ;;  %10233 = vmatmul.mubr.msk.bf16.gmra.mxu0 %vm3083_vm2, %v15000_v7 }
 0xd6a   : > { %v10158_v4 = vpop.f32.mrf.mxu0 }
 0xd6b   : > { %v9484_v62 = vmul.f32 -1.442695, %v10158_v4 }
 0xd6c   : > { %v7182_v12 = vpop.f32.mrf.mxu0 }
 0xd6d   : > { %v9482_v56 = vmul.f32 -1.442695, %v7182_v12  ;;  %10788 = vpow2.f32 %v9484_v62 }
 0xd6e   : > { %v10159_v26 = vpop.f32.mrf.mxu0 }
 0xd6f   : > { %10790 = vpow2.f32 %v9482_v56  ;;  %v9485_v13 = vmul.f32 -1.442695, %v10159_v26 }
 0xd70   : > { %v7185_v11 = vpop.f32.mrf.mxu0 }
 0xd71   : > { %10792 = vpow2.f32 %v9485_v13  ;;  %v9483_v0 = vmul.f32 -1.442695, %v7185_v11 }
 0xd73   : > { %10794 = vpow2.f32 %v9483_v0 }
 0xd7a   : > { %v10789_v6 = vpop.eup %10788 }
 0xd7b   : > { %v7335_v61 = vadd.f32 1.0, %v10789_v6 }
 0xd7c   : > { %v10791_v18 = vpop.eup %10790 }
 0xd7d   : > { %v7333_v46 = vadd.f32 1.0, %v10791_v18 }
 0xd7e   : > { %v10793_v37 = vpop.eup %10792 }
 0xd7f   : > { %v7336_v47 = vadd.f32 1.0, %v10793_v37  ;;  %10796 = vrcp.f32 %v7333_v46 }
 0xd80   : > { %v10795_v10 = vpop.eup %10794 }
 0xd81   : > { %10798 = vrcp.f32 %v7336_v47  ;;  %v7334_v35 = vadd.f32 1.0, %v10795_v10 }
 0xd82   : > { %10800 = vrcp.f32 %v7335_v61 }
 0xd83   : > { %10802 = vrcp.f32 %v7334_v35 }
 0xd8c   : > { %v10797_v33 = vpop.eup %10796 }
 0xd8d   : > { %v7429_v57 = vmul.f32 %v10797_v33, %v7182_v12  ;;  %v4787_v12 = vld [vmem:[%s15860_s7 + $0x4] sm:$0xf] }
 0xd8e   : > { %v10799_v15 = vpop.eup %10798  ;;  %10390 = vmatprep.subr.msk.bf16.mxu0 %vm15956_vm7, %v4787_v12  ;;  %v8149_v56 = vsel %vm15957_vm8, %v4787_v12, 0 }
 0xd8f   : > { %v10801_v55 = vpop.eup %10800  ;;  %v7432_v25 = vmul.f32 %v10799_v15, %v10159_v26  ;;  %10273 = vmatpush3.bf16.msra.mxu0 %v8149_v56 }
 0xd90   : > { %v10803_v58 = vpop.eup %10802  ;;  %v7431_v48 = vmul.f32 %v10801_v55, %v10158_v4 }
 0xd91   : > { %v7430_v16 = vmul.f32 %v10803_v58, %v7185_v11 }
 0xd92   : > { %v7450_v9 = vpack.c.bf16 %v7432_v25, %v7431_v48 }
 0xd93   : > { %v7449_v50 = vpack.c.bf16 %v7430_v16, %v7429_v57 }
 0xd95   : > { %10192 = vmatprep.mubr.msk.bf16.mxu1 %vm3083_vm2, %v7449_v50 }
 0xd96   : > { %10193 = vmatmul.mubr.msk.bf16.gmra.mxu1 %vm3083_vm2, %v7450_v9 }
 0xda6   : > { %v10162_v21 = vpop.f32.mrf.mxu0 }
 0xda7   : > { %v9488_v20 = vmul.f32 -1.442695, %v10162_v21 }
 0xda8   : > { %v7198_v34 = vpop.f32.mrf.mxu0 }
 0xda9   : > { %v9486_v43 = vmul.f32 -1.442695, %v7198_v34  ;;  %10804 = vpow2.f32 %v9488_v20 }
 0xdaa   : > { %v10163_v39 = vpop.f32.mrf.mxu0 }
 0xdab   : > { %10806 = vpow2.f32 %v9486_v43  ;;  %v9489_v22 = vmul.f32 -1.442695, %v10163_v39 }
 0xdac   : > { %v7201_v51 = vpop.f32.mrf.mxu0 }
 0xdad   : > { %10808 = vpow2.f32 %v9489_v22  ;;  %v9487_v63 = vmul.f32 -1.442695, %v7201_v51 }
 0xdae   : > { %v10206_v61 = vpop.f32.mrf.mxu0 }
 0xdaf   : > { %10810 = vpow2.f32 %v9487_v63 }
 0xdb0   : > { %v7720_v10 = vpop.f32.mrf.mxu0 }
 0xdb2   : > { %v10207_v33 = vpop.f32.mrf.mxu0 }
 0xdb4   : > { %v7723_v55 = vpop.f32.mrf.mxu0 }
 0xdb6   : > { %v10805_v36 = vpop.eup %10804  ;;  %v10210_v25 = vpop.f32.mrf.mxu0 }
 0xdb7   : > { %v7339_v53 = vadd.f32 1.0, %v10805_v36 }
 0xdb8   : > { %v10807_v59 = vpop.eup %10806  ;;  %v7736_v16 = vpop.f32.mrf.mxu0 }
 0xdb9   : > { %v7337_v38 = vadd.f32 1.0, %v10807_v59 }
 0xdba   : > { %v10809_v17 = vpop.eup %10808 }
 0xdbb   : > { %v7340_v28 = vadd.f32 1.0, %v10809_v17  ;;  %10812 = vrcp.f32 %v7337_v38 }
 0xdbc   : > { %v10811_v5 = vpop.eup %10810 }
 0xdbd   : > { %10814 = vrcp.f32 %v7340_v28  ;;  %v7338_v14 = vadd.f32 1.0, %v10811_v5 }
 0xdbe   : > { %10816 = vrcp.f32 %v7339_v53 }
 0xdbf   : > { %10818 = vrcp.f32 %v7338_v14 }
 0xdc8   : > { %v10813_v8 = vpop.eup %10812 }
 0xdc9   : > { %v7433_v27 = vmul.f32 %v10813_v8, %v7198_v34 }
 0xdca   : > { %v10815_v41 = vpop.eup %10814 }
 0xdcb   : > { %v10817_v45 = vpop.eup %10816  ;;  %v7436_v40 = vmul.f32 %v10815_v41, %v10163_v39 }
 0xdcc   : > { %v10819_v2 = vpop.eup %10818  ;;  %v7435_v52 = vmul.f32 %v10817_v45, %v10162_v21 }
 0xdcd   : > { %v7434_v31 = vmul.f32 %v10819_v2, %v7201_v51 }
 0xdce   : > { %v7452_v62 = vpack.c.bf16 %v7436_v40, %v7435_v52 }
 0xdcf   : > { %v7451_v4 = vpack.c.bf16 %v7434_v31, %v7433_v27 }
 0xdd1   : > { %10196 = vmatprep.mubr.msk.bf16.mxu1 %vm3083_vm2, %v7451_v4 }
 0xdd2   : > { %10197 = vmatmul.mubr.msk.bf16.gmra.mxu1 %vm3083_vm2, %v7452_v62 }
 0xdd3   : > { %10240 = vmatprep.mubr.msk.bf16.mxu1 %vm3083_vm2, %v14893_v24  ;;  %v4786_v24 = vld [vmem:[%s15860_s7] sm:$0xf] }
 0xdd4   : > { %10391 = vmatprep.subr.msk.bf16.mxu1 %vm15958_vm9, %v4786_v24 }
 0xdda   : > { %10241 = vmatmul.mubr.msk.bf16.vlgmr.msra.gmra.mxu1 %vm3083_vm2, %v14895_v29  ;;  %v8313_v29 = vsel %vm15959_vm10, %v4786_v24, 0 }
 0xddb   : > { %10244 = vmatprep.mubr.msk.bf16.mxu1 %vm3083_vm2, %v14943_v1  ;;  %10307 = vmatpush3.bf16.msra.mxu1 %v8313_v29  ;;  %v15055_v1 = vld [vmem:[%s15860_s7 + $0x8] sm:$0xf] }
 0xddc   : > { %10392 = vmatprep.subr.msk.bf16.mxu0 %vm15960_vm11, %v15055_v1 }
 0xde2   : > { %10245 = vmatmul.mubr.msk.bf16.gmra.mxu1 %vm3083_vm2, %v14945_v44  ;;  %v10170_v44 = vpop.f32.mrf.mxu1 }
 0xde3   : > { %10248 = vmatprep.mubr.msk.bf16.mxu1 %vm3083_vm2, %v14976_v42  ;;  %v7729_v12 = vadd.f32 %v10206_v61, %v10170_v44 }
 0xde4   : > { %v7547_v42 = vpop.f32.mrf.mxu1 }
 0xdea   : > { %10249 = vmatmul.mubr.msk.bf16.gmra.mxu1 %vm3083_vm2, %v14978_v32  ;;  %v10171_v32 = vpop.f32.mrf.mxu1 }
 0xdeb   : > { %10252 = vmatprep.mubr.msk.bf16.mxu1 %vm3083_vm2, %v14998_v23 }
 0xdec   : > { %v7550_v23 = vpop.f32.mrf.mxu1 }
 0xded   : > { %v7724_v24 = vadd.f32 %v7723_v55, %v7550_v23 }
 0xdf2   : > { %10253 = vmatmul.mubr.msk.bf16.gmra.mxu1 %vm3083_vm2, %v15000_v7  ;;  %v15059_v7 = vpop.f32.mrf.mxu1 }
 0xdf3   : > { %10256 = vmatprep.mubr.msk.bf16.mxu1 %vm3083_vm2, %v7449_v50  ;;  %v10211_v50 = vpop.f32.mrf.mxu0  ;;  %v7745_v23 = vadd.f32 %v10210_v25, %v15059_v7 }
 0xdf4   : > { %v15061_v26 = vpop.f32.mrf.mxu1 }
 0xdf5   : > { %v7739_v20 = vpop.f32.mrf.mxu0 }
 0xdf6   : > { %v15063_v13 = vpop.f32.mrf.mxu1 }
 0xdf7   : > { %v15095_v43 = vpop.f32.mrf.mxu0  ;;  %v7748_v44 = vadd.f32 %v10211_v50, %v15063_v13 }
 0xdf8   : > { %v15065_v11 = vpop.f32.mrf.mxu1 }
 0xdf9   : > { %v15099_v22 = vpop.f32.mrf.mxu0 }
 0xdfa   : > { %10257 = vmatmul.mubr.msk.bf16.gmra.mxu1 %vm3083_vm2, %v7450_v9  ;;  %v15067_v0 = vpop.f32.mrf.mxu1 }
 0xdfb   : > { %10260 = vmatprep.mubr.msk.bf16.mxu1 %vm3083_vm2, %v7451_v4  ;;  %v10215_v63 = vpop.f32.mrf.mxu0  ;;  %v7721_v4 = vadd.f32 %v7720_v10, %v7547_v42  ;;  %v7737_v42 = vadd.f32 %v7736_v16, %v15061_v26 }
 0xdfc   : > { %v15069_v6 = vpop.f32.mrf.mxu1 }
 0xdfd   : > { %v15105_v59 = vpop.f32.mrf.mxu0 }
 0xdfe   : > { %v15071_v18 = vpop.f32.mrf.mxu1 }
 0xdff   : > { %v15109_v17 = vpop.f32.mrf.mxu0 }
 0xe00   : > { %v15073_v46 = vpop.f32.mrf.mxu1 }
 0xe01   : > { %v15113_v28 = vpop.f32.mrf.mxu0 }
 0xe02   : > { %10261 = vmatmul.mubr.msk.bf16.gmra.mxu1 %vm3083_vm2, %v7452_v62  ;;  %v15075_v37 = vpop.f32.mrf.mxu1  ;;  %v7732_v62 = vadd.f32 %v10207_v33, %v10171_v32  ;;  %vm15971_vm2 = vmmov %vm15968_vm13 }
 0xe03   : > { %10264 = vmatprep.mubr.bf16.mxu1 %v15946_v30  ;;  %v15119_v8 = vpop.f32.mrf.mxu0  ;;  %vm15972_vm0 = vmmov %vm15971_vm2 }
 0xe04   : > { %v15077_v47 = vpop.f32.mrf.mxu1  ;;  %vm15973_vm3 = vmmov %vm15972_vm0 }
 0xe05   : > { %v15125_v2 = vpop.f32.mrf.mxu0  ;;  %vm15974_vm1 = vmmov %vm15972_vm0 }
 0xe06   : > { %v15079_v35 = vpop.f32.mrf.mxu1  ;;  %vm15975_vm4 = vmmov %vm15972_vm0 }
 0xe07   : > { %v15129_v31 = vpop.f32.mrf.mxu0  ;;  %vm15976_vm5 = vmmov %vm15972_vm0 }
 0xe08   : > { %v15081_v15 = vpop.f32.mrf.mxu1  ;;  %vm15977_vm6 = vmmov %vm15972_vm0 }
 0xe09   : > { %v15131_v60 = vpop.f32.mrf.mxu0  ;;  %vm15978_vm7 = vmmov %vm15972_vm0 }
 0xe0a   : > { %10265 = vmatmul.mubr.bf16.gmra.mxu1 %v15946_v30  ;;  %v15083_v58 = vpop.f32.mrf.mxu1  ;;  %vm15979_vm8 = vmmov %vm15972_vm0 }
 0xe0b   : > { %10268 = vmatprep.mubr.bf16.mxu1 %v15946_v30  ;;  %vm15980_vm9 = vmmov %vm15972_vm0 }
 0xe0c   : > { %v15085_v57 = vpop.f32.mrf.mxu1  ;;  %vm15981_vm10 = vmmov %vm15972_vm0 }
 0xe0d   : > { %vm15982_vm11 = vmmov %vm15972_vm0 }
 0xe0e   : > { %v15087_v48 = vpop.f32.mrf.mxu1 }
 0xe10   : > { %v15089_v9 = vpop.f32.mrf.mxu1 }
 0xe12   : > { %10269 = vmatmul.mubr.bf16.gmra.mxu1 %v15946_v30 }
 0xe13   : > { %10308 = vmatprep.mubr.bf16.mxu1 %v15946_v30 }
 0xe16   : > { %v15091_v21 = vpop.f32.mrf.mxu1 }
 0xe18   : > { %v15093_v34 = vpop.f32.mrf.mxu1 }
 0xe1a   : > { %10309 = vmatmul.mubr.bf16.vlgmr.msra.gmra.mxu1 %v15946_v30  ;;  %v15097_v39 = vpop.f32.mrf.mxu1 }
 0xe1b   : > { %10312 = vmatprep.mubr.bf16.mxu1 %v15946_v30 }
 0xe1c   : > { %v15101_v51 = vpop.f32.mrf.mxu1 }
 0xe22   : > { %10313 = vmatmul.mubr.bf16.gmra.mxu1 %v15946_v30 }
 0xe56   : > { %v15103_v36 = vpop.f32.mrf.mxu1 }
 0xe58   : > { %v15107_v38 = vpop.f32.mrf.mxu1 }
 0xe5a   : > { %v15111_v53 = vpop.f32.mrf.mxu1 }
 0xe5b   : > { %15961 = vst [vmem:[#allocation7_spill] sm:$0xff] %v15111_v53 }
 0xe5c   : > { %v15115_v5 = vpop.f32.mrf.mxu1 }
 0xe5d   : > { %15962 = vst [vmem:[#allocation8_spill] sm:$0xff] %v15115_v5 }
 0xe92   : > { %v15117_v14 = vpop.f32.mrf.mxu1 }
 0xe93   : > { %15963 = vst [vmem:[#allocation9_spill] sm:$0xff] %v15117_v14  ;;  %v15133_v14 = vpop.f32.mrf.mxu0 }
 0xe94   : > { %v15121_v41 = vpop.f32.mrf.mxu1 }
 0xe95   : > { %15964 = vst [vmem:[#allocation13_spill] sm:$0xff] %v15121_v41 }
 0xe96   : > { %v15123_v45 = vpop.f32.mrf.mxu1 }
 0xe97   : > { %15965 = vst [vmem:[#allocation11_spill] sm:$0xff] %v15123_v45 }
 0xe98   : > { %v15127_v40 = vpop.f32.mrf.mxu1 }
 0xe99   : > { %15966 = vst [vmem:[#allocation10_spill] sm:$0xff] %v15127_v40 }
 0xe9a   : > { %v10242_v27 = vpop.f32.mrf.mxu1 }
 0xe9b   : > { %v8022_v54 = vadd.f32 %v10242_v27, %v7729_v12  ;;  %v7756_v27 = vadd.f32 %v15105_v59, %v15073_v46  ;;  %v7777_v46 = vadd.f32 %v15109_v17, %v15075_v37  ;;  %v7772_v37 = vadd.f32 %v15125_v2, %v15081_v15 }
 0xe9c   : > { %v7893_v52 = vpop.f32.mrf.mxu1  ;;  %v7793_v2 = vadd.f32 %v15129_v31, %v15083_v58 }
 0xe9d   : > { %v8020_v29 = vadd.f32 %v7893_v52, %v7721_v4  ;;  %v8054_v5 = vmax.f32 %v8022_v54, 0.0  ;;  %v15143_v54 = vpop.f32.mrf.mxu0 }
 0xe9e   : > { %v10243_v56 = vpop.f32.mrf.mxu1 }
 0xe9f   : > { %v8023_v49 = vadd.f32 %v10243_v56, %v7732_v62  ;;  %v8052_v41 = vmax.f32 %v8020_v29, 0.0  ;;  %v15147_v25 = vpop.f32.mrf.mxu0  ;;  %v7769_v29 = vadd.f32 %v15113_v28, %v15077_v47 }
 0xea0   : > { %v7896_v3 = vpop.f32.mrf.mxu1 }
 0xea1   : > { %v8021_v19 = vadd.f32 %v7896_v3, %v7724_v24  ;;  %v8055_v30 = vmax.f32 %v8023_v49, 0.0  ;;  %v8477_v3 = vsel %vm15967_vm12, %v15055_v1, 0  ;;  %v7740_v49 = vadd.f32 %v7739_v20, %v15065_v11  ;;  %v15158_v62 = vpop.f32.mrf.mxu0  ;;  %vm15983_vm12 = vmmov %vm15972_vm0 }
 0xea2   : > { %v10246_v45 = vpop.f32.mrf.mxu1  ;;  %v7753_v20 = vadd.f32 %v15099_v22, %v15069_v6 }
 0xea3   : > { %v8053_v40 = vmax.f32 %v8021_v19, 0.0  ;;  %v8085_v61 = vpack.c.bf16 %v8055_v30, %v8054_v5  ;;  %v8026_v26 = vadd.f32 %v10246_v45, %v7745_v23  ;;  %v10227_v12 = vpop.f32.mrf.mxu0 }
 0xea4   : > { %v7909_v53 = vpop.f32.mrf.mxu1 }
 0xea5   : > { %v8084_v32 = vpack.c.bf16 %v8053_v40, %v8052_v41  ;;  %v8024_v33 = vadd.f32 %v7909_v53, %v7737_v42  ;;  %v8058_v16 = vmax.f32 %v8026_v26, 0.0  ;;  %v7764_v53 = vadd.f32 %v10215_v63, %v15071_v18  ;;  %v7803_v47 = vpop.f32.mrf.mxu0 }
 0xea6   : > { %v10247_v10 = vpop.f32.mrf.mxu1  ;;  %v7761_v41 = vadd.f32 %v15095_v43, %v15067_v0  ;;  %v7780_v42 = vadd.f32 %v15119_v8, %v15079_v35 }
 0xea7   : > { %v8027_v19 = vadd.f32 %v10247_v10, %v7748_v44  ;;  %10274 = vmatprep.mubr.msk.bf16.mxu0 %vm15968_vm13, %v8084_v32  ;;  %10316 = vmatprep.mubr.msk.bf16.mxu1 %vm15969_vm14, %v8084_v32  ;;  %v8056_v55 = vmax.f32 %v8024_v33, 0.0  ;;  %v10230_v26 = vpop.f32.mrf.mxu0  ;;  %vm15984_vm13 = vmmov %vm15972_vm0 }
 0xea8   : > { %v7912_v13 = vpop.f32.mrf.mxu1  ;;  %10275 = vmatmul.mubr.msk.bf16.vlgmr.msra.gmra.mxu0 %vm15970_vm15, %v8085_v61  ;;  %10317 = vmatmul.mubr.msk.bf16.gmra.mxu1 %vm15971_vm2, %v8085_v61  ;;  %vm15985_vm14 = vmmov %vm15972_vm0 }
 0xea9   : > { %v8025_v30 = vadd.f32 %v7912_v13, %v7740_v49  ;;  %10341 = vmatpush3.bf16.msra.mxu0 %v8477_v3  ;;  %v8059_v7 = vmax.f32 %v8027_v19, 0.0  ;;  %vm15986_vm15 = vmmov %vm15972_vm0 }
 0xeaa   : > { %v10250_v1 = vpop.f32.mrf.mxu1  ;;  %vm15987_vm2 = vmmov %vm15972_vm0 }
 0xeab   : > { %v8057_v11 = vmax.f32 %v8025_v30, 0.0  ;;  %v8087_v45 = vpack.c.bf16 %v8059_v7, %v8058_v16  ;;  %v8030_v6 = vadd.f32 %v10250_v1, %v7761_v41  ;;  %v7785_v30 = vadd.f32 %v15131_v60, %v15085_v57 }
 0xeac   : > { %v7925_v50 = vpop.f32.mrf.mxu1  ;;  %v7796_v7 = vadd.f32 %v15133_v14, %v15087_v48  ;;  %v7788_v16 = vadd.f32 %v15143_v54, %v15089_v9  ;;  %v7809_v54 = vadd.f32 %v15147_v25, %v15091_v21 }
 0xead   : > { %v8086_v5 = vpack.c.bf16 %v8057_v11, %v8056_v55  ;;  %v8028_v52 = vadd.f32 %v7925_v50, %v7753_v20  ;;  %v8062_v56 = vmax.f32 %v8030_v6, 0.0  ;;  %v7816_v50 = vpop.f32.mrf.mxu0 }
 0xeae   : > { %v10251_v40 = vpop.f32.mrf.mxu1 }
 0xeaf   : > { %v8031_v4 = vadd.f32 %v10251_v40, %v7764_v53  ;;  %10278 = vmatprep.mubr.msk.bf16.mxu0 %vm15972_vm0, %v8086_v5  ;;  %10320 = vmatprep.mubr.msk.bf16.mxu1 %vm15973_vm3, %v8086_v5  ;;  %v8060_v63 = vmax.f32 %v8028_v52, 0.0  ;;  %v10231_v41 = vpop.f32.mrf.mxu0  ;;  %v7801_v40 = vadd.f32 %v15158_v62, %v15093_v34  ;;  %vm15990_vm3 = vmmov %vm15972_vm0 }
 0xeb0   : > { %v7928_v22 = vpop.f32.mrf.mxu1  ;;  %10279 = vmatmul.mubr.msk.bf16.gmra.mxu0 %vm15974_vm1, %v8087_v45  ;;  %10321 = vmatmul.mubr.msk.bf16.gmra.mxu1 %vm15975_vm4, %v8087_v45  ;;  %vm15991_vm1 = vmmov %vm15972_vm0 }
 0xeb1   : > { %v8029_v0 = vadd.f32 %v7928_v22, %v7756_v27  ;;  %v8063_v18 = vmax.f32 %v8031_v4, 0.0  ;;  %v7812_v27 = vadd.f32 %v10227_v12, %v15097_v39  ;;  %v7804_v22 = vadd.f32 %v7803_v47, %v15101_v51  ;;  %v7819_v21 = vpop.f32.mrf.mxu0  ;;  %vm15992_vm4 = vmmov %vm15972_vm0 }
 0xeb2   : > { %v10254_v43 = vpop.f32.mrf.mxu1 }
 0xeb3   : > { %v8061_v59 = vmax.f32 %v8029_v0, 0.0  ;;  %v8034_v32 = vadd.f32 %v10254_v43, %v7777_v46  ;;  %v15170_v23 = vpack.c.bf16 %v8063_v18, %v8062_v56  ;;  %v10234_v51 = vpop.f32.mrf.mxu0  ;;  %v7825_v46 = vadd.f32 %v10230_v26, %v15103_v36 }
 0xeb4   : > { %v7941_v24 = vpop.f32.mrf.mxu1 }
 0xeb5   : > { %v15168_v44 = vpack.c.bf16 %v8061_v59, %v8060_v63  ;;  %v8032_v17 = vadd.f32 %v7941_v24, %v7769_v29  ;;  %v8066_v35 = vmax.f32 %v8034_v32, 0.0  ;;  %v7817_v24 = vadd.f32 %v7816_v50, %v15107_v38  ;;  %v15988_v29 = vld [vmem:[#allocation7_spill] sm:$0xff] }
 0xeb6   : > { %v10255_v61 = vpop.f32.mrf.mxu1 }
 0xeb7   : > { %v8035_v10 = vadd.f32 %v10255_v61, %v7780_v42  ;;  %10282 = vmatprep.mubr.msk.bf16.mxu0 %vm15976_vm5, %v15168_v44  ;;  %10324 = vmatprep.mubr.msk.bf16.mxu1 %vm15977_vm6, %v15168_v44  ;;  %v8064_v49 = vmax.f32 %v8032_v17, 0.0  ;;  %v7828_v42 = vadd.f32 %v10231_v41, %v15988_v29  ;;  %vm15997_vm5 = vmmov %vm15972_vm0 }
 0xeb8   : > { %v7944_v28 = vpop.f32.mrf.mxu1  ;;  %10283 = vmatmul.mubr.msk.bf16.gmra.mxu0 %vm15978_vm7, %v15170_v23  ;;  %10325 = vmatmul.mubr.msk.bf16.gmra.mxu1 %vm15979_vm8, %v15170_v23  ;;  %vm15998_vm6 = vmmov %vm15972_vm0 }
 0xeb9   : > { %v8067_v8 = vmax.f32 %v8035_v10, 0.0  ;;  %v8033_v3 = vadd.f32 %v7944_v28, %v7772_v37  ;;  %v7832_v37 = vpop.f32.mrf.mxu0  ;;  %v15989_v10 = vld [vmem:[#allocation8_spill] sm:$0xff]  ;;  %vm15999_vm7 = vmmov %vm15972_vm0 }
 0xeba   : > { %v10258_v15 = vpop.f32.mrf.mxu1  ;;  %v7820_v47 = vadd.f32 %v7819_v21, %v15989_v10  ;;  %vm16000_vm8 = vmmov %vm15972_vm0 }
 0xebb   : > { %v15184_v33 = vpack.c.bf16 %v8067_v8, %v8066_v35  ;;  %v8065_v19 = vmax.f32 %v8033_v3, 0.0  ;;  %v8038_v55 = vadd.f32 %v10258_v15, %v7793_v2  ;;  %v10235_v15 = vpop.f32.mrf.mxu0 }
 0xebc   : > { %v7957_v13 = vpop.f32.mrf.mxu1 }
 0xebd   : > { %v15190_v1 = vpack.c.bf16 %v8065_v19, %v8064_v49  ;;  %v8036_v58 = vadd.f32 %v7957_v13, %v7785_v30  ;;  %v8070_v57 = vmax.f32 %v8038_v55, 0.0  ;;  %v15993_v49 = vld [vmem:[#allocation9_spill] sm:$0xff] }
 0xebe   : > { %v10259_v11 = vpop.f32.mrf.mxu1  ;;  %v7841_v19 = vadd.f32 %v10234_v51, %v15993_v49  ;;  %v15994_v55 = vld [vmem:[#allocation13_spill] sm:$0xff] }
 0xebf   : > { %v8039_v31 = vadd.f32 %v10259_v11, %v7796_v7  ;;  %10286 = vmatprep.mubr.msk.bf16.mxu0 %vm15980_vm9, %v15190_v1  ;;  %10328 = vmatprep.mubr.msk.bf16.mxu1 %vm15981_vm10, %v15190_v1  ;;  %v8068_v20 = vmax.f32 %v8036_v58, 0.0  ;;  %v7833_v11 = vadd.f32 %v7832_v37, %v15994_v55  ;;  %vm16001_vm9 = vmmov %vm15972_vm0 }
 0xec0   : > { %v7960_v60 = vpop.f32.mrf.mxu1  ;;  %10287 = vmatmul.mubr.msk.bf16.gmra.mxu0 %vm15982_vm11, %v15184_v33  ;;  %10329 = vmatmul.mubr.msk.bf16.gmra.mxu1 %vm15983_vm12, %v15184_v33  ;;  %vm16002_vm10 = vmmov %vm15972_vm0 }
 0xec1   : > { %v8071_v48 = vmax.f32 %v8039_v31, 0.0  ;;  %v8037_v14 = vadd.f32 %v7960_v60, %v7788_v16  ;;  %v15995_v16 = vld [vmem:[#allocation11_spill] sm:$0xff]  ;;  %v7835_v60 = vpop.f32.mrf.mxu0  ;;  %vm16003_vm11 = vmmov %vm15972_vm0 }
 0xec2   : > { %v10262_v9 = vpop.f32.mrf.mxu1  ;;  %v7844_v58 = vadd.f32 %v10235_v15, %v15995_v16  ;;  %vm16004_vm12 = vmmov %vm15972_vm0 }
 0xec3   : > { %v15204_v53 = vpack.c.bf16 %v8071_v48, %v8070_v57  ;;  %v8069_v5 = vmax.f32 %v8037_v14, 0.0  ;;  %v8042_v4 = vadd.f32 %v10262_v9, %v7809_v54  ;;  %v15996_v48 = vld [vmem:[#allocation10_spill] sm:$0xff] }
 0xec4   : > { %v7973_v45 = vpop.f32.mrf.mxu1  ;;  %v7836_v14 = vadd.f32 %v7835_v60, %v15996_v48 }
 0xec5   : > { %v15209_v52 = vpack.c.bf16 %v8069_v5, %v8068_v20  ;;  %v8040_v0 = vadd.f32 %v7973_v45, %v7801_v40  ;;  %v8074_v34 = vmax.f32 %v8042_v4, 0.0 }
 0xec6   : > { %v10263_v6 = vpop.f32.mrf.mxu1 }
 0xec7   : > { %v8043_v18 = vadd.f32 %v10263_v6, %v7812_v27  ;;  %10290 = vmatprep.mubr.msk.bf16.mxu0 %vm15984_vm13, %v15209_v52  ;;  %10332 = vmatprep.mubr.msk.bf16.mxu1 %vm15985_vm14, %v15209_v52  ;;  %v8072_v63 = vmax.f32 %v8040_v0, 0.0  ;;  %vm16005_vm13 = vmmov %vm15972_vm0 }
 0xec8   : > { %v7976_v25 = vpop.f32.mrf.mxu1  ;;  %10291 = vmatmul.mubr.msk.bf16.gmra.mxu0 %vm15986_vm15, %v15204_v53  ;;  %10333 = vmatmul.mubr.msk.bf16.gmra.mxu1 %vm15987_vm2, %v15204_v53  ;;  %vm16006_vm14 = vmmov %vm15972_vm0 }
 0xec9   : > { %v8075_v39 = vmax.f32 %v8043_v18, 0.0  ;;  %v8041_v62 = vadd.f32 %v7976_v25, %v7804_v22  ;;  %vm16007_vm15 = vmmov %vm15972_vm0 }
 0xeca   : > { %v10266_v43 = vpop.f32.mrf.mxu1  ;;  %vm16008_vm2 = vmmov %vm15972_vm0 }
 0xecb   : > { %v8095_v59 = vpack.c.bf16 %v8075_v39, %v8074_v34  ;;  %v8073_v12 = vmax.f32 %v8041_v62, 0.0  ;;  %v8046_v61 = vadd.f32 %v10266_v43, %v7825_v46 }
 0xecc   : > { %v7989_v56 = vpop.f32.mrf.mxu1 }
 0xecd   : > { %v8094_v32 = vpack.c.bf16 %v8073_v12, %v8072_v63  ;;  %v8044_v28 = vadd.f32 %v7989_v56, %v7817_v24  ;;  %v8078_v38 = vmax.f32 %v8046_v61, 0.0 }
 0xece   : > { %v10267_v17 = vpop.f32.mrf.mxu1 }
 0xecf   : > { %v8047_v35 = vadd.f32 %v10267_v17, %v7828_v42  ;;  %10294 = vmatprep.mubr.msk.bf16.mxu0 %vm15972_vm0, %v8094_v32  ;;  %10336 = vmatprep.mubr.msk.bf16.mxu1 %vm15990_vm3, %v8094_v32  ;;  %v8076_v26 = vmax.f32 %v8044_v28, 0.0  ;;  %vm16009_vm3 = vmmov %vm15972_vm0 }
 0xed0   : > { %v7992_v36 = vpop.f32.mrf.mxu1  ;;  %10295 = vmatmul.mubr.msk.bf16.gmra.mxu0 %vm15991_vm1, %v8095_v59  ;;  %10337 = vmatmul.mubr.msk.bf16.gmra.mxu1 %vm15992_vm4, %v8095_v59  ;;  %vm16010_vm1 = vmmov %vm15972_vm0 }
 0xed1   : > { %v8079_v8 = vmax.f32 %v8047_v35, 0.0  ;;  %v8045_v3 = vadd.f32 %v7992_v36, %v7820_v47  ;;  %vm16011_vm4 = vmmov %vm15972_vm0 }
 0xed2   : > { %v10270_v2 = vpop.f32.mrf.mxu1 }
 0xed3   : > { %v8097_v13 = vpack.c.bf16 %v8079_v8, %v8078_v38  ;;  %v8077_v30 = vmax.f32 %v8045_v3, 0.0  ;;  %v8050_v50 = vadd.f32 %v10270_v2, %v7841_v19 }
 0xed4   : > { %v8005_v7 = vpop.f32.mrf.mxu1 }
 0xed5   : > { %v8096_v31 = vpack.c.bf16 %v8077_v30, %v8076_v26  ;;  %v8048_v9 = vadd.f32 %v8005_v7, %v7833_v11  ;;  %v8082_v5 = vmax.f32 %v8050_v50, 0.0 }
 0xed6   : > { %v10271_v57 = vpop.f32.mrf.mxu1 }
 0xed7   : > { %v8051_v54 = vadd.f32 %v10271_v57, %v7844_v58  ;;  %10298 = vmatprep.mubr.msk.bf16.mxu0 %vm15997_vm5, %v8096_v31  ;;  %v8080_v40 = vmax.f32 %v8048_v9, 0.0  ;;  %vm16019_vm5 = vmmov %vm15972_vm0 }
 0xed8   : > { %v8008_v20 = vpop.f32.mrf.mxu1  ;;  %10299 = vmatmul.mubr.msk.bf16.gmra.mxu0 %vm15998_vm6, %v8097_v13  ;;  %vm16020_vm6 = vmmov %vm15972_vm0 }
 0xed9   : > { %v8083_v41 = vmax.f32 %v8051_v54, 0.0  ;;  %v8049_v45 = vadd.f32 %v8008_v20, %v7836_v14 }
 0xedb   : > { %v8099_v27 = vpack.c.bf16 %v8083_v41, %v8082_v5  ;;  %v8081_v4 = vmax.f32 %v8049_v45, 0.0 }
 0xedd   : > { %v8098_v6 = vpack.c.bf16 %v8081_v4, %v8080_v40 }
 0xedf   : > { %10302 = vmatprep.mubr.msk.bf16.mxu0 %vm15999_vm7, %v8098_v6  ;;  %vm16021_vm7 = vmmov %vm15972_vm0 }
 0xee0   : > { %10303 = vmatmul.mubr.msk.bf16.gmra.mxu0 %vm16000_vm8, %v8099_v27  ;;  %vm16022_vm8 = vmmov %vm15972_vm0 }
 0xee1   : > { %10342 = vmatprep.mubr.msk.bf16.mxu0 %vm16001_vm9, %v15168_v44  ;;  %v16012_v44 = vmov 0.0|0.0   ;;  %vm16023_vm9 = vmmov %vm15972_vm0 }
 0xee8   : > { %10343 = vmatmul.mubr.msk.bf16.vlgmr.msra.gmra.mxu0 %vm16002_vm10, %v15170_v23  ;;  %v10310_v23 = vpop.f32.mrf.mxu1  ;;  %vm16024_vm10 = vmmov %vm15972_vm0 }
 0xee9   : > { %10346 = vmatprep.mubr.msk.bf16.mxu0 %vm16003_vm11, %v15190_v1  ;;  %vm16025_vm11 = vmmov %vm15972_vm0 }
 0xef0   : > { %10347 = vmatmul.mubr.msk.bf16.gmra.mxu0 %vm16004_vm12, %v15184_v33  ;;  %v8349_v33 = vpop.f32.mrf.mxu1  ;;  %vm16026_vm12 = vmmov %vm15972_vm0 }
 0xef1   : > { %10350 = vmatprep.mubr.msk.bf16.mxu0 %vm16005_vm13, %v15209_v52  ;;  %vm16027_vm13 = vmmov %vm15972_vm0 }
 0xef2   : > { %v10311_v1 = vpop.f32.mrf.mxu1 }
 0xef4   : > { %v8352_v22 = vpop.f32.mrf.mxu1 }
 0xef6   : > { %v10314_v21 = vpop.f32.mrf.mxu1 }
 0xef8   : > { %10351 = vmatmul.mubr.msk.bf16.gmra.mxu0 %vm16006_vm14, %v15204_v53  ;;  %v8365_v39 = vpop.f32.mrf.mxu1  ;;  %vm16028_vm14 = vmmov %vm15972_vm0 }
 0xef9   : > { %10354 = vmatprep.mubr.msk.bf16.mxu0 %vm16007_vm15, %v8094_v32  ;;  %vm16029_vm15 = vmmov %vm15972_vm0 }
 0xefa   : > { %v15264_v43 = vpop.f32.mrf.mxu1 }
 0xf00   : > { %10355 = vmatmul.mubr.msk.bf16.gmra.mxu0 %vm16008_vm2, %v8095_v59  ;;  %v15270_v59 = vpop.f32.mrf.mxu1  ;;  %vm16030_vm2 = vmmov %vm15972_vm0 }
 0xf01   : > { %10358 = vmatprep.mubr.msk.bf16.mxu0 %vm15972_vm0, %v8096_v31 }
 0xf08   : > { %10359 = vmatmul.mubr.msk.bf16.gmra.mxu0 %vm16009_vm3, %v8097_v13  ;;  %vm16031_vm3 = vmmov %vm15972_vm0 }
 0xf09   : > { %10362 = vmatprep.mubr.msk.bf16.mxu0 %vm16010_vm1, %v8098_v6  ;;  %vm16032_vm1 = vmmov %vm15972_vm0 }
 0xf10   : > { %10363 = vmatmul.mubr.msk.bf16.gmra.mxu0 %vm16011_vm4, %v8099_v27  ;;  %vm16034_vm4 = vmmov %vm15972_vm0 }
 0xf11   : > { %10366 = vmatprep.mubr.bf16.mxu0 %v16012_v44 }
 0xf18   : > { %10367 = vmatmul.mubr.bf16.gmra.mxu0 %v16012_v44 }
 0xf19   : > { %10370 = vmatprep.mubr.bf16.mxu0 %v16012_v44 }
 0xf20   : > { %10371 = vmatmul.mubr.bf16.gmra.mxu0 %v16012_v44 }
 0xf68   : > { %v10276_v53 = vpop.f32.mrf.mxu0  ;;  %v15276_v24 = vpop.f32.mrf.mxu1 }
 0xf69   : > { %v8358_v57 = vadd.f32 %v10310_v23, %v10276_v53 }
 0xf6a   : > { %v8185_v52 = vpop.f32.mrf.mxu0  ;;  %v15282_v32 = vpop.f32.mrf.mxu1 }
 0xf6b   : > { %v8350_v9 = vadd.f32 %v8349_v33, %v8185_v52 }
 0xf6c   : > { %v10277_v0 = vpop.f32.mrf.mxu0  ;;  %v15288_v17 = vpop.f32.mrf.mxu1 }
 0xf6d   : > { %v8361_v5 = vadd.f32 %v10311_v1, %v10277_v0 }
 0xf6e   : > { %v8188_v18 = vpop.f32.mrf.mxu0  ;;  %v15294_v28 = vpop.f32.mrf.mxu1 }
 0xf6f   : > { %v8353_v23 = vadd.f32 %v8352_v22, %v8188_v18  ;;  %v4789_v22 = vld [vmem:[%s15861_s8] sm:$0xf] }
 0xf70   : > { %v10280_v25 = vpop.f32.mrf.mxu0  ;;  %v15300_v38 = vpop.f32.mrf.mxu1 }
 0xf72   : > { %v15258_v34 = vpop.f32.mrf.mxu0  ;;  %v15306_v15 = vpop.f32.mrf.mxu1 }
 0xf74   : > { %v15260_v62 = vpop.f32.mrf.mxu0  ;;  %v15312_v19 = vpop.f32.mrf.mxu1 }
 0xf76   : > { %v15262_v51 = vpop.f32.mrf.mxu0  ;;  %v15318_v30 = vpop.f32.mrf.mxu1 }
 0xf78   : > { %v15266_v46 = vpop.f32.mrf.mxu0  ;;  %v15324_v11 = vpop.f32.mrf.mxu1 }
 0xf7a   : > { %v15268_v63 = vpop.f32.mrf.mxu0  ;;  %v15330_v31 = vpop.f32.mrf.mxu1 }
 0xf7c   : > { %v15272_v12 = vpop.f32.mrf.mxu0  ;;  %v15336_v48 = vpop.f32.mrf.mxu1 }
 0xf7e   : > { %v15274_v56 = vpop.f32.mrf.mxu0  ;;  %v15340_v41 = vpop.f32.mrf.mxu1 }
 0xf80   : > { %v15278_v29 = vpop.f32.mrf.mxu0  ;;  %v10330_v33 = vpop.f32.mrf.mxu1 }
 0xf82   : > { %v15280_v42 = vpop.f32.mrf.mxu0 }
 0xf84   : > { %v15284_v61 = vpop.f32.mrf.mxu0 }
 0xf86   : > { %v15286_v37 = vpop.f32.mrf.mxu0 }
 0xf88   : > { %v15290_v10 = vpop.f32.mrf.mxu0 }
 0xf8a   : > { %v15292_v47 = vpop.f32.mrf.mxu0 }
 0xf8c   : > { %v15296_v35 = vpop.f32.mrf.mxu0 }
 0xf8e   : > { %v15298_v36 = vpop.f32.mrf.mxu0 }
 0xf90   : > { %v15302_v8 = vpop.f32.mrf.mxu0 }
 0xf92   : > { %v15304_v3 = vpop.f32.mrf.mxu0 }
 0xf94   : > { %v15308_v2 = vpop.f32.mrf.mxu0 }
 0xf96   : > { %v15310_v49 = vpop.f32.mrf.mxu0 }
 0xf98   : > { %v15314_v26 = vpop.f32.mrf.mxu0 }
 0xf9a   : > { %v15316_v13 = vpop.f32.mrf.mxu0 }
 0xf9c   : > { %v15320_v7 = vpop.f32.mrf.mxu0 }
 0xf9e   : > { %v15322_v55 = vpop.f32.mrf.mxu0 }
 0xfa0   : > { %v15326_v16 = vpop.f32.mrf.mxu0 }
 0xfa2   : > { %v15328_v58 = vpop.f32.mrf.mxu0 }
 0xfa4   : > { %v15332_v50 = vpop.f32.mrf.mxu0 }
 0xfa6   : > { %v15334_v60 = vpop.f32.mrf.mxu0 }
 0xfa7   : > { %16013 = vst [vmem:[#allocation14_spill] sm:$0xff] %v15334_v60  ;;  %v8374_v60 = vadd.f32 %v10314_v21, %v10280_v25  ;;  %v8377_v25 = vadd.f32 %v15264_v43, %v15260_v62  ;;  %v8369_v43 = vadd.f32 %v15270_v59, %v15262_v51  ;;  %v8382_v51 = vadd.f32 %v15282_v32, %v15268_v63 }
 0xfa8   : > { %v10344_v14 = vpop.f32.mrf.mxu0  ;;  %v8393_v59 = vadd.f32 %v15288_v17, %v15272_v12  ;;  %v15403_v63 = vadd.f32 %v15312_v19, %v15284_v61  ;;  %v15407_v12 = vadd.f32 %v15318_v30, %v15286_v37  ;;  %v15419_v61 = vadd.f32 %v15330_v31, %v15292_v47 }
 0xfa9   : > { %v15338_v54 = vadd.f32 %v10344_v14, %v8358_v57  ;;  %v8366_v14 = vadd.f32 %v8365_v39, %v15258_v34  ;;  %v16014_v34 = vld [vmem:[#allocation6_spill] sm:$0xff]  ;;  %v15423_v37 = vadd.f32 %v15336_v48, %v15296_v35  ;;  %v15430_v30 = vadd.f32 %v10330_v33, %v15302_v8 }
 0xfaa   : > { %v8513_v20 = vpop.f32.mrf.mxu0  ;;  %v16015_v39 = vsub.s32 3, %v16014_v34 }
 0xfab   : > { %v9578_v45 = vmul.f32 -2.0, %v15338_v54  ;;  %v15343_v40 = vadd.f32 %v8513_v20, %v8350_v9 }
 0xfac   : > { %v10345_v27 = vpop.f32.mrf.mxu0 }
 0xfad   : > { %v8740_v4 = vmul.f32 1.442695, %v9578_v45  ;;  %v9576_v6 = vmul.f32 -2.0, %v15343_v40  ;;  %v15346_v44 = vadd.f32 %v10345_v27, %v8361_v5  ;;  %v8429_v5 = vpop.f32.mrf.mxu1 }
 0xfae   : > { %v8516_v53 = vpop.f32.mrf.mxu0  ;;  %v15434_v47 = vadd.f32 %v8429_v5, %v15304_v3  ;;  %v8674_v5 = vmul.f32 2.0, %v15338_v54 }
 0xfaf   : > { %10820 = vpow2.f32 %v8740_v4  ;;  %v8736_v52 = vmul.f32 1.442695, %v9576_v6  ;;  %v9579_v1 = vmul.f32 -2.0, %v15346_v44  ;;  %v15349_v0 = vadd.f32 %v8516_v53, %v8353_v23 }
 0xfb0   : > { %v10348_v57 = vpop.f32.mrf.mxu0  ;;  %v16016_v23 = vsub.s32 0, %v16014_v34 }
 0xfb1   : > { %10822 = vpow2.f32 %v8736_v52  ;;  %v8742_v9 = vmul.f32 1.442695, %v9579_v1  ;;  %v15352_v20 = vadd.f32 %v10348_v57, %v8374_v60  ;;  %v9577_v18 = vmul.f32 -2.0, %v15349_v0 }
 0xfb2   : > { %v8529_v21 = vpop.f32.mrf.mxu0  ;;  %v15365_v60 = vrot.slane %v4789_v22, %v16015_v39  ;;  %v15369_v53 = vrot.slane %v4789_v22, %v16016_v23  ;;  %v16017_v57 = vsub.s32 1, %v16014_v34  ;;  %v10331_v39 = vpop.f32.mrf.mxu1  ;;  %v15456_v54 = vmul.f32 2.0, %v15349_v0 }
 0xfb3   : > { %10824 = vpow2.f32 %v8742_v9  ;;  %v9582_v45 = vmul.f32 -2.0, %v15352_v20  ;;  %v15361_v27 = vadd.f32 %v8529_v21, %v8366_v14  ;;  %v8738_v4 = vmul.f32 1.442695, %v9577_v18 }
 0xfb4   : > { %v10349_v6 = vpop.f32.mrf.mxu0  ;;  %v15378_v14 = vrot.slane %v4789_v22, %v16017_v57  ;;  %v16018_v9 = vsub.s32 2, %v16014_v34  ;;  %v8432_v17 = vpop.f32.mrf.mxu1  ;;  %v15437_v35 = vadd.f32 %v10331_v39, %v15308_v2 }
 0xfb5   : > { %v8748_v52 = vmul.f32 1.442695, %v9582_v45  ;;  %v9580_v1 = vmul.f32 -2.0, %v15361_v27  ;;  %v15372_v62 = vadd.f32 %v10349_v6, %v8377_v25  ;;  %10826 = vpow2.f32 %v8738_v4 }
 0xfb6   : > { %v15382_v18 = vrot.slane %v4789_v22, %v16018_v9  ;;  %v8532_v21 = vpop.f32.mrf.mxu0  ;;  %v8390_v45 = vadd.f32 %v15276_v24, %v15266_v46  ;;  %v8385_v22 = vadd.f32 %v15294_v28, %v15274_v56  ;;  %v8406_v46 = vadd.f32 %v15300_v38, %v15278_v29  ;;  %v10334_v48 = vpop.f32.mrf.mxu1 }
 0xfb7   : > { %10828 = vpow2.f32 %v8748_v52  ;;  %v8744_v25 = vmul.f32 1.442695, %v9580_v1  ;;  %v9583_v6 = vmul.f32 -2.0, %v15372_v62  ;;  %v15393_v34 = vadd.f32 %v8532_v21, %v8369_v43 }
 0xfb8   : > { %v10352_v4 = vpop.f32.mrf.mxu0  ;;  %v8398_v52 = vadd.f32 %v15306_v15, %v15280_v42  ;;  %v15412_v29 = vadd.f32 %v15324_v11, %v15290_v10  ;;  %v15427_v15 = vadd.f32 %v15340_v41, %v15298_v36  ;;  %v15442_v21 = vadd.f32 %v8432_v17, %v15310_v49 }
 0xfb9   : > { %10830 = vpow2.f32 %v8744_v25  ;;  %v8750_v24 = vmul.f32 1.442695, %v9583_v6  ;;  %v15397_v23 = vadd.f32 %v10352_v4, %v8390_v45  ;;  %v9581_v56 = vmul.f32 -2.0, %v15393_v34 }
 0xfba   : > { %v8545_v32 = vpop.f32.mrf.mxu0  ;;  %v15445_v45 = vadd.f32 %v10334_v48, %v15314_v26  ;;  %v15450_v6 = vmul.f32 2.0, %v15343_v40  ;;  %v15453_v26 = vmul.f32 2.0, %v15346_v44  ;;  %v15462_v44 = vmul.f32 2.0, %v15361_v27 }
 0xfbb   : > { %10832 = vpow2.f32 %v8750_v24  ;;  %v9586_v28 = vmul.f32 -2.0, %v15397_v23  ;;  %v15415_v42 = vadd.f32 %v8545_v32, %v8382_v51  ;;  %v8746_v10 = vmul.f32 1.442695, %v9581_v56 }
 0xfbc   : > { %v10821_v38 = vpop.eup %10820  ;;  %v10353_v19 = vpop.f32.mrf.mxu0 }
 0xfbd   : > { %v8802_v11 = vadd.f32 1.0, %v10821_v38  ;;  %v8756_v1 = vmul.f32 1.442695, %v9586_v28  ;;  %v9584_v43 = vmul.f32 -2.0, %v15415_v42  ;;  %10834 = vpow2.f32 %v8746_v10 }
 0xfbe   : > { %v10823_v57 = vpop.eup %10822  ;;  %v15439_v31 = vadd.f32 %v10353_v19, %v8393_v59  ;;  %v8548_v36 = vpop.f32.mrf.mxu0  ;;  %v15459_v28 = vmul.f32 2.0, %v15352_v20  ;;  %v15467_v20 = vmul.f32 2.0, %v15372_v62 }
 0xfbf   : > { %10836 = vrcp.f32 %v8802_v11  ;;  %v8800_v41 = vadd.f32 1.0, %v10823_v57  ;;  %v8752_v8 = vmul.f32 1.442695, %v9584_v43  ;;  %v8649_v33 = vadd.f32 %v8548_v36, %v8385_v22 }
 0xfc0   : > { %v10825_v9 = vpop.eup %10824  ;;  %10838 = vpow2.f32 %v8756_v1  ;;  %v9587_v3 = vmul.f32 -2.0, %v15439_v31  ;;  %v10356_v2 = vpop.f32.mrf.mxu0  ;;  %v15470_v36 = vmul.f32 2.0, %v15393_v34 }
 0xfc1   : > { %10840 = vrcp.f32 %v8800_v41  ;;  %v8803_v39 = vadd.f32 1.0, %v10825_v9  ;;  %v9585_v25 = vmul.f32 -2.0, %v8649_v33  ;;  %v8654_v59 = vadd.f32 %v10356_v2, %v8406_v46 }
 0xfc2   : > { %10842 = vpow2.f32 %v8752_v8  ;;  %v8758_v51 = vmul.f32 1.442695, %v9587_v3  ;;  %v8561_v49 = vpop.f32.mrf.mxu0  ;;  %v10827_v22 = vpop.eup %10826  ;;  %v15476_v9 = vmul.f32 2.0, %v15415_v42  ;;  %v15482_v2 = vmul.f32 2.0, %v15439_v31 }
 0xfc3   : > { %10844 = vrcp.f32 %v8803_v39  ;;  %v8754_v4 = vmul.f32 1.442695, %v9585_v25  ;;  %v8652_v24 = vadd.f32 %v8561_v49, %v8398_v52  ;;  %v8801_v32 = vadd.f32 1.0, %v10827_v22 }
 0xfc4   : > { %v10829_v56 = vpop.eup %10828  ;;  %10846 = vpow2.f32 %v8758_v51  ;;  %v9590_v17 = vmul.f32 -2.0, %v8654_v59  ;;  %v10357_v40 = vpop.f32.mrf.mxu0  ;;  %v15487_v49 = vmul.f32 2.0, %v8649_v33  ;;  %v15489_v42 = vmul.f32 2.0, %v8654_v59 }
 0xfc5   : > { %v8806_v46 = vadd.f32 1.0, %v10829_v56  ;;  %10848 = vpow2.f32 %v8754_v4  ;;  %v9588_v38 = vmul.f32 -2.0, %v8652_v24  ;;  %v8655_v19 = vadd.f32 %v10357_v40, %v15403_v63 }
 0xfc6   : > { %v10831_v10 = vpop.eup %10830  ;;  %10850 = vrcp.f32 %v8801_v32  ;;  %v8764_v52 = vmul.f32 1.442695, %v9590_v17  ;;  %v8564_v0 = vpop.f32.mrf.mxu0  ;;  %v15473_v63 = vmul.f32 2.0, %v15397_v23  ;;  %v15492_v32 = vmul.f32 2.0, %v8652_v24 }
 0xfc7   : > { %10852 = vrcp.f32 %v8806_v46  ;;  %v8804_v11 = vadd.f32 1.0, %v10831_v10  ;;  %v8760_v1 = vmul.f32 1.442695, %v9588_v38  ;;  %v8653_v43 = vadd.f32 %v8564_v0, %v15407_v12 }
 0xfc8   : > { %v10833_v57 = vpop.eup %10832  ;;  %10854 = vpow2.f32 %v8764_v52  ;;  %v9591_v48 = vmul.f32 -2.0, %v8655_v19  ;;  %v10360_v27 = vpop.f32.mrf.mxu0  ;;  %v15500_v52 = vmul.f32 2.0, %v8655_v19 }
 0xfc9   : > { %10856 = vrcp.f32 %v8804_v11  ;;  %v8807_v41 = vadd.f32 1.0, %v10833_v57  ;;  %v9589_v8 = vmul.f32 -2.0, %v8653_v43  ;;  %v15479_v62 = vadd.f32 %v10360_v27, %v15412_v29 }
 0xfca   : > { %10858 = vpow2.f32 %v8760_v1  ;;  %v8766_v12 = vmul.f32 1.442695, %v9591_v48  ;;  %v8577_v3 = vpop.f32.mrf.mxu0  ;;  %v10835_v34 = vpop.eup %10834  ;;  %v15509_v27 = vmul.f32 2.0, %v8653_v43 }
 0xfcb   : > { %10860 = vrcp.f32 %v8807_v41  ;;  %v8762_v39 = vmul.f32 1.442695, %v9589_v8  ;;  %v15485_v25 = vadd.f32 %v8577_v3, %v15419_v61  ;;  %v8805_v51 = vadd.f32 1.0, %v10835_v34 }
 0xfcc   : > { %v10837_v23 = vpop.eup %10836  ;;  %v9594_v22 = vmul.f32 -2.0, %v15479_v62  ;;  %v10361_v29 = vpop.f32.mrf.mxu0  ;;  %10862 = vpow2.f32 %v8766_v12 }
 0xfcd   : > { %v10839_v4 = vpop.eup %10838  ;;  %v8898_v56 = vmul.f32 %v10837_v23, %v8674_v5  ;;  %v9592_v31 = vmul.f32 -2.0, %v15485_v25  ;;  %10864 = vrcp.f32 %v8805_v51  ;;  %v15496_v46 = vadd.f32 %v10361_v29, %v15423_v37 }
 0xfce   : > { %v10841_v17 = vpop.eup %10840  ;;  %v8810_v61 = vadd.f32 1.0, %v10839_v4  ;;  %v8772_v40 = vmul.f32 1.442695, %v9594_v22  ;;  %v8580_v33 = vpop.f32.mrf.mxu0  ;;  %10866 = vpow2.f32 %v8762_v39 }
 0xfcf   : > { %v10843_v59 = vpop.eup %10842  ;;  %v8934_v38 = vmul.f32 %v15369_v53, %v8898_v56  ;;  %v8896_v10 = vmul.f32 %v10841_v17, %v15450_v6  ;;  %v9595_v0 = vmul.f32 -2.0, %v15496_v46  ;;  %v15504_v11 = vadd.f32 %v8580_v33, %v15427_v15 }
 0xfd0   : > { %v10845_v5 = vpop.eup %10844  ;;  %10868 = vrcp.f32 %v8810_v61  ;;  %v8808_v24 = vadd.f32 1.0, %v10843_v59  ;;  %v15511_v41 = vmul.f32 1.442695, %v9592_v31  ;;  %v10364_v39 = vpop.f32.mrf.mxu0 }
 0xfd1   : > { %v10847_v1 = vpop.eup %10846  ;;  %v8970_v37 = vadd.f32 %v15378_v14, %v8934_v38  ;;  %v8932_v57 = vmul.f32 %v15369_v53, %v8896_v10  ;;  %v8899_v48 = vmul.f32 %v10845_v5, %v15453_v26  ;;  %10870 = vpow2.f32 %v8772_v40 }
 0xfd2   : > { %v10849_v6 = vpop.eup %10848  ;;  %10872 = vrcp.f32 %v8808_v24  ;;  %v8811_v19 = vadd.f32 1.0, %v10847_v1  ;;  %v15516_v26 = vmul.f32 1.442695, %v9595_v0  ;;  %v15519_v22 = vmul.f32 -2.0, %v15504_v11 }
 0xfd3   : > { %v10851_v8 = vpop.eup %10850  ;;  %v9002_v12 = vmax.f32 %v8970_v37, 0.0  ;;  %v8968_v15 = vadd.f32 %v15378_v14, %v8932_v57  ;;  %v8935_v3 = vmul.f32 %v15369_v53, %v8899_v48  ;;  %v8809_v34 = vadd.f32 1.0, %v10849_v6  ;;  %v10948_v37 = vld [vmem:[%s11065_s14 + $0x10] sm:$0xff] }
 0xfd4   : > { %v10853_v23 = vpop.eup %10852  ;;  %v8897_v51 = vmul.f32 %v10851_v8, %v15456_v54  ;;  %10874 = vrcp.f32 %v8811_v19  ;;  %v15526_v40 = vadd.f32 %v10364_v39, %v15430_v30  ;;  %v10949_v39 = vld [vmem:[%s11065_s14] sm:$0xff] }
 0xfd5   : > { %v10855_v43 = vpop.eup %10854  ;;  %v9038_v29 = vmul.f32 %v15382_v18, %v9002_v12  ;;  %v9000_v4 = vmax.f32 %v8968_v15, 0.0  ;;  %v8971_v56 = vadd.f32 %v15378_v14, %v8935_v3  ;;  %v8902_v31 = vmul.f32 %v10853_v23, %v15459_v28  ;;  %v15546_v15 = vpop.f32.mrf.mxu0 }
 0xfd6   : > { %v10857_v17 = vpop.eup %10856  ;;  %v8933_v61 = vmul.f32 %v15369_v53, %v8897_v51  ;;  %10876 = vrcp.f32 %v8809_v34  ;;  %v8814_v54 = vadd.f32 1.0, %v10855_v43 }
 0xfd7   : > { %v10859_v33 = vpop.eup %10858  ;;  %v9074_v59 = vadd.f32 %v15365_v60, %v9038_v29  ;;  %v9036_v38 = vmul.f32 %v15382_v18, %v9000_v4  ;;  %v9003_v10 = vmax.f32 %v8971_v56, 0.0  ;;  %v8938_v5 = vmul.f32 %v15369_v53, %v8902_v31 }
 0xfd8   : > { %v10861_v24 = vpop.eup %10860  ;;  %v8969_v28 = vadd.f32 %v15378_v14, %v8933_v61  ;;  %v8900_v0 = vmul.f32 %v10857_v17, %v15462_v44  ;;  %10878 = vrcp.f32 %v8814_v54  ;;  %v8812_v1 = vadd.f32 1.0, %v10859_v33  ;;  %v10950_v54 = vld [vmem:[%s11065_s14 + $0x18] sm:$0xff] }
 0xfd9   : > { %v9106_v30 = vadd.f32 %v10948_v37, %v9074_v59  ;;  %v9072_v57 = vadd.f32 %v15365_v60, %v9036_v38  ;;  %v9039_v48 = vmul.f32 %v15382_v18, %v9003_v10  ;;  %v8974_v6 = vadd.f32 %v15378_v14, %v8938_v5  ;;  %v10863_v19 = vpop.eup %10862 }
 0xfda   : > { %v9001_v8 = vmax.f32 %v8969_v28, 0.0  ;;  %v8936_v44 = vmul.f32 %v15369_v53, %v8900_v0  ;;  %v8903_v12 = vmul.f32 %v10861_v24, %v15467_v20  ;;  %10880 = vrcp.f32 %v8812_v1  ;;  %v10865_v3 = vpop.eup %10864  ;;  %v15563_v0 = vpop.f32.mrf.mxu0 }
 0xfdb   : > { %v9138_v34 = vmax.f32 %v9106_v30, 0.0  ;;  %v9104_v23 = vadd.f32 %v10949_v39, %v9072_v57  ;;  %v9075_v51 = vadd.f32 %v15365_v60, %v9039_v48  ;;  %v9006_v43 = vmax.f32 %v8974_v6, 0.0  ;;  %v10867_v29 = vpop.eup %10866  ;;  %v10951_v48 = vld [vmem:[%s11065_s14 + $0x8] sm:$0xff] }
 0xfdc   : > { %v9037_v4 = vmul.f32 %v15382_v18, %v9001_v8  ;;  %v8972_v56 = vadd.f32 %v15378_v14, %v8936_v44  ;;  %v8939_v31 = vmul.f32 %v15369_v53, %v8903_v12  ;;  %v8901_v20 = vmul.f32 %v10865_v3, %v15470_v36  ;;  %v10952_v3 = vld [vmem:[%s11065_s14 + $0x30] sm:$0xff] }
 0xfdd   : > { %v10869_v17 = vpop.eup %10868  ;;  %9170 = vst.msk [vmem:[%s15542_s17 + $0x10] sm:$0xff] %vm16019_vm5, %v9138_v34  ;;  %v9136_v61 = vmax.f32 %v9104_v23, 0.0  ;;  %v9107_v33 = vadd.f32 %v10950_v54, %v9075_v51  ;;  %v9042_v59 = vmul.f32 %v15382_v18, %v9006_v43  ;;  %v8815_v38 = vadd.f32 1.0, %v10863_v19  ;;  %vm16035_vm5 = vmmov %vm15972_vm0 }
 0xfde   : > { %v15558_v10 = vpop.eup %10870  ;;  %v9073_v5 = vadd.f32 %v15365_v60, %v9037_v4  ;;  %v9004_v24 = vmax.f32 %v8972_v56, 0.0  ;;  %v8975_v28 = vadd.f32 %v15378_v14, %v8939_v31  ;;  %v8937_v36 = vmul.f32 %v15369_v53, %v8901_v20  ;;  %v15579_v31 = vpop.f32.mrf.mxu0 }
 0xfdf   : > { %v10873_v1 = vpop.eup %10872  ;;  %9168 = vst.msk [vmem:[%s15542_s17] sm:$0xff] %vm16020_vm6, %v9136_v61  ;;  %v9139_v37 = vmax.f32 %v9107_v33, 0.0  ;;  %v9078_v30 = vadd.f32 %v15365_v60, %v9042_v59  ;;  %v8906_v57 = vmul.f32 %v10869_v17, %v15473_v63  ;;  %10882 = vrcp.f32 %v8815_v38  ;;  %vm16036_vm6 = vmmov %vm15972_vm0 }
 0xfe0   : > { %v9105_v6 = vadd.f32 %v10951_v48, %v9073_v5  ;;  %v9040_v19 = vmul.f32 %v15382_v18, %v9004_v24  ;;  %v9007_v8 = vmax.f32 %v8975_v28, 0.0  ;;  %v8973_v44 = vadd.f32 %v15378_v14, %v8937_v36 }
 0xfe1   : > { %v10875_v12 = vpop.eup %10874  ;;  %9171 = vst.msk [vmem:[%s15542_s17 + $0x18] sm:$0xff] %vm16021_vm7, %v9139_v37  ;;  %v9110_v34 = vadd.f32 %v10952_v3, %v9078_v30  ;;  %v8942_v39 = vmul.f32 %v15369_v53, %v8906_v57  ;;  %v8904_v23 = vmul.f32 %v10873_v1, %v15476_v9  ;;  %v8813_v63 = vadd.f32 1.0, %v10867_v29  ;;  %v10953_v9 = vld [vmem:[%s11065_s14 + $0x20] sm:$0xff]  ;;  %v10954_v37 = vld [vmem:[%s11065_s14 + $0x38] sm:$0xff]  ;;  %vm16037_vm7 = vmmov %vm15972_vm0 }
 0xfe2   : > { %v9137_v51 = vmax.f32 %v9105_v6, 0.0  ;;  %v9076_v43 = vadd.f32 %v15365_v60, %v9040_v19  ;;  %v9043_v4 = vmul.f32 %v15382_v18, %v9007_v8  ;;  %v9005_v56 = vmax.f32 %v8973_v44, 0.0  ;;  %v15597_v6 = vpop.f32.mrf.mxu0 }
 0xfe3   : > { %v10877_v20 = vpop.eup %10876  ;;  %v9142_v17 = vmax.f32 %v9110_v34, 0.0  ;;  %v8978_v61 = vadd.f32 %v15378_v14, %v8942_v39  ;;  %v8940_v54 = vmul.f32 %v15369_v53, %v8904_v23  ;;  %v8907_v33 = vmul.f32 %v10875_v12, %v15482_v2  ;;  %v10955_v34 = vld [vmem:[%s11065_s14 + $0x28] sm:$0xff] }
 0xfe4   : > { %9169 = vst.msk [vmem:[%s15542_s17 + $0x8] sm:$0xff] %vm16022_vm8, %v9137_v51  ;;  %v9108_v29 = vadd.f32 %v10953_v9, %v9076_v43  ;;  %v9079_v59 = vadd.f32 %v15365_v60, %v9043_v4  ;;  %v9041_v38 = vmul.f32 %v15382_v18, %v9005_v56  ;;  %v8905_v5 = vmul.f32 %v10877_v20, %v15487_v49  ;;  %v8445_v20 = vpop.f32.mrf.mxu1  ;;  %vm16038_vm8 = vmmov %vm15972_vm0 }
 0xfe5   : > { %v10879_v24 = vpop.eup %10878  ;;  %9174 = vst.msk [vmem:[%s15542_s17 + $0x30] sm:$0xff] %vm16023_vm9, %v9142_v17  ;;  %v9010_v28 = vmax.f32 %v8978_v61, 0.0  ;;  %v8976_v36 = vadd.f32 %v15378_v14, %v8940_v54  ;;  %v8943_v2 = vmul.f32 %v15369_v53, %v8907_v33  ;;  %10884 = vrcp.f32 %v8813_v63  ;;  %v15614_v33 = vpop.f32.mrf.mxu0  ;;  %vm16039_vm9 = vmmov %vm15972_vm0 }
 0xfe6   : > { %v9140_v1 = vmax.f32 %v9108_v29, 0.0  ;;  %v9111_v30 = vadd.f32 %v10954_v37, %v9079_v59  ;;  %v9077_v57 = vadd.f32 %v15365_v60, %v9041_v38  ;;  %v8941_v48 = vmul.f32 %v15369_v53, %v8905_v5 }
 0xfe7   : > { %v10881_v49 = vpop.eup %10880  ;;  %v9046_v19 = vmul.f32 %v15382_v18, %v9010_v28  ;;  %v9008_v8 = vmax.f32 %v8976_v36, 0.0  ;;  %v8979_v44 = vadd.f32 %v15378_v14, %v8943_v2  ;;  %v8910_v12 = vmul.f32 %v10879_v24, %v15489_v42  ;;  %v10957_v2 = vld [vmem:[%s11065_s14 + $0x40] sm:$0xff] }
 0xfe8   : > { %9172 = vst.msk [vmem:[%s15542_s17 + $0x20] sm:$0xff] %vm16024_vm10, %v9140_v1  ;;  %v9143_v3 = vmax.f32 %v9111_v30, 0.0  ;;  %v9109_v39 = vadd.f32 %v10955_v34, %v9077_v57  ;;  %v8977_v23 = vadd.f32 %v15378_v14, %v8941_v48  ;;  %v8908_v63 = vmul.f32 %v10881_v49, %v15492_v32  ;;  %v10956_v32 = vld [vmem:[%s11065_s14 + $0x50] sm:$0xff]  ;;  %v10335_v57 = vpop.f32.mrf.mxu1  ;;  %v10959_v34 = vld [vmem:[%s11065_s14 + $0x48] sm:$0xff]  ;;  %vm16040_vm10 = vmmov %vm15972_vm0 }
 0xfe9   : > { %v9082_v51 = vadd.f32 %v15365_v60, %v9046_v19  ;;  %v9044_v43 = vmul.f32 %v15382_v18, %v9008_v8  ;;  %v9011_v4 = vmax.f32 %v8979_v44, 0.0  ;;  %v8946_v56 = vmul.f32 %v15369_v53, %v8910_v12  ;;  %v15630_v8 = vpop.f32.mrf.mxu0  ;;  %v10958_v44 = vld [vmem:[%s11065_s14 + $0x58] sm:$0xff] }
 0xfea   : > { %9175 = vst.msk [vmem:[%s15542_s17 + $0x38] sm:$0xff] %vm16025_vm11, %v9143_v3  ;;  %v9141_v42 = vmax.f32 %v9109_v39, 0.0  ;;  %v9009_v17 = vmax.f32 %v8977_v23, 0.0  ;;  %v8944_v61 = vmul.f32 %v15369_v53, %v8908_v63  ;;  %v8818_v54 = vadd.f32 1.0, %v15558_v10  ;;  %vm16041_vm11 = vmmov %vm15972_vm0 }
 0xfeb   : > { %v9114_v9 = vadd.f32 %v10956_v32, %v9082_v51  ;;  %v9080_v29 = vadd.f32 %v15365_v60, %v9044_v43  ;;  %v9047_v59 = vmul.f32 %v15382_v18, %v9011_v4  ;;  %v8982_v38 = vadd.f32 %v15378_v14, %v8946_v56  ;;  %v8448_v4 = vpop.f32.mrf.mxu1 }
 0xfec   : > { %v10883_v5 = vpop.eup %10882  ;;  %9173 = vst.msk [vmem:[%s15542_s17 + $0x28] sm:$0xff] %vm16026_vm12, %v9141_v42  ;;  %v9045_v24 = vmul.f32 %v15382_v18, %v9009_v17  ;;  %v8980_v28 = vadd.f32 %v15378_v14, %v8944_v61  ;;  %10886 = vrcp.f32 %v8818_v54  ;;  %v8770_v10 = vmul.f32 1.442695, %v15519_v22  ;;  %v15654_v54 = vpop.f32.mrf.mxu0  ;;  %vm16042_vm12 = vmmov %vm15972_vm0 }
 0xfed   : > { %v9146_v36 = vmax.f32 %v9114_v9, 0.0  ;;  %v9112_v1 = vadd.f32 %v10957_v2, %v9080_v29  ;;  %v9083_v37 = vadd.f32 %v15365_v60, %v9047_v59  ;;  %v9014_v30 = vmax.f32 %v8982_v38, 0.0  ;;  %v10961_v38 = vld [vmem:[%s11065_s14 + $0x60] sm:$0xff] }
 0xfee   : > { %v9081_v48 = vadd.f32 %v15365_v60, %v9045_v24  ;;  %v9012_v49 = vmax.f32 %v8980_v28, 0.0  ;;  %v8911_v19 = vmul.f32 %v10883_v5, %v15500_v52  ;;  %10888 = vpow2.f32 %v15511_v41  ;;  %v10338_v28 = vpop.f32.mrf.mxu1  ;;  %v10372_v2 = vpop.f32.mrf.mxu0 }
 0xfef   : > { %9178 = vst.msk [vmem:[%s15542_s17 + $0x50] sm:$0xff] %vm16027_vm13, %v9146_v36  ;;  %v9144_v22 = vmax.f32 %v9112_v1, 0.0  ;;  %v9115_v12 = vadd.f32 %v10958_v44, %v9083_v37  ;;  %v9050_v3 = vmul.f32 %v15382_v18, %v9014_v30  ;;  %10890 = vpow2.f32 %v15516_v26  ;;  %v10962_v44 = vld [vmem:[%s11065_s14 + $0x78] sm:$0xff]  ;;  %vm16043_vm13 = vmmov %vm15972_vm0 }
 0xff0   : > { %v9113_v39 = vadd.f32 %v10959_v34, %v9081_v48  ;;  %v9048_v23 = vmul.f32 %v15382_v18, %v9012_v49  ;;  %v8947_v52 = vmul.f32 %v15369_v53, %v8911_v19  ;;  %10892 = vpow2.f32 %v8770_v10 }
 0xff1   : > { %9176 = vst.msk [vmem:[%s15542_s17 + $0x40] sm:$0xff] %vm16028_vm14, %v9144_v22  ;;  %v9147_v41 = vmax.f32 %v9115_v12, 0.0  ;;  %v9086_v63 = vadd.f32 %v15365_v60, %v9050_v3  ;;  %v9598_v51 = vmul.f32 -2.0, %v15526_v40  ;;  %v15646_v26 = vadd.f32 %v15546_v15, %v15434_v47  ;;  %v10960_v47 = vld [vmem:[%s11065_s14 + $0x70] sm:$0xff]  ;;  %vm16044_vm14 = vmmov %vm15972_vm0 }
 0xff2   : > { %v10885_v43 = vpop.eup %10884  ;;  %v9145_v56 = vmax.f32 %v9113_v39, 0.0  ;;  %v9084_v42 = vadd.f32 %v15365_v60, %v9048_v23  ;;  %v8983_v17 = vadd.f32 %v15378_v14, %v8947_v52  ;;  %v15652_v61 = vadd.f32 %v15563_v0, %v15437_v35  ;;  %v8625_v39 = vpop.f32.mrf.mxu0 }
 0xff3   : > { %v8446_v32 = vadd.f32 %v8445_v20, %v15316_v13  ;;  %9179 = vst.msk [vmem:[%s15542_s17 + $0x58] sm:$0xff] %vm16029_vm15, %v9147_v41  ;;  %v9118_v15 = vadd.f32 %v10960_v47, %v9086_v63  ;;  %v8909_v9 = vmul.f32 %v10885_v43, %v15509_v27  ;;  %v8780_v29 = vmul.f32 1.442695, %v9598_v51  ;;  %vm16045_vm15 = vmmov %vm15972_vm0 }
 0xff4   : > { %v8457_v59 = vadd.f32 %v10335_v57, %v15320_v7  ;;  %9177 = vst.msk [vmem:[%s15542_s17 + $0x48] sm:$0xff] %vm16030_vm2, %v9145_v56  ;;  %v9116_v5 = vadd.f32 %v10961_v38, %v9084_v42  ;;  %v9015_v35 = vmax.f32 %v8983_v17, 0.0  ;;  %v9596_v0 = vmul.f32 -2.0, %v15646_v26  ;;  %vm16046_vm2 = vmmov %vm15972_vm0 }
 0xff5   : > { %v9150_v24 = vmax.f32 %v9118_v15, 0.0  ;;  %v8945_v13 = vmul.f32 %v15369_v53, %v8909_v9  ;;  %10894 = vpow2.f32 %v8780_v29  ;;  %v9599_v20 = vmul.f32 -2.0, %v15652_v61  ;;  %v10373_v9 = vpop.f32.mrf.mxu0  ;;  %v10963_v29 = vld [vmem:[%s11065_s14 + $0x68] sm:$0xff] }
 0xff6   : > { %v9148_v27 = vmax.f32 %v9116_v5, 0.0  ;;  %v9051_v10 = vmul.f32 %v15382_v18, %v9015_v35  ;;  %v8776_v7 = vmul.f32 1.442695, %v9596_v0  ;;  %v15671_v36 = vadd.f32 %v15579_v31, %v15442_v21 }
 0xff7   : > { %9182 = vst.msk [vmem:[%s15542_s17 + $0x70] sm:$0xff] %vm15972_vm0, %v9150_v24  ;;  %v8981_v1 = vadd.f32 %v15378_v14, %v8945_v13  ;;  %v8782_v37 = vmul.f32 1.442695, %v9599_v20  ;;  %v15678_v30 = vadd.f32 %v15597_v6, %v15445_v45  ;;  %v15681_v57 = vadd.f32 %v15614_v33, %v8446_v32  ;;  %v8461_v6 = vpop.f32.mrf.mxu1 }
 0xff8   : > { %9180 = vst.msk [vmem:[%s15542_s17 + $0x60] sm:$0xff] %vm16031_vm3, %v9148_v27  ;;  %v9087_v48 = vadd.f32 %v15365_v60, %v9051_v10  ;;  %v8690_v21 = vmul.f32 2.0, %v15479_v62  ;;  %10896 = vpow2.f32 %v8776_v7  ;;  %v9597_v31 = vmul.f32 -2.0, %v15671_v36  ;;  %vm16047_vm3 = vmmov %vm15972_vm0 }
 0xff9   : > { %v10887_v49 = vpop.eup %10886  ;;  %v8449_v19 = vadd.f32 %v8448_v4, %v15322_v55  ;;  %v9013_v22 = vmax.f32 %v8981_v1, 0.0  ;;  %10898 = vpow2.f32 %v8782_v37  ;;  %v9602_v45 = vmul.f32 -2.0, %v15678_v30  ;;  %v10339_v32 = vpop.f32.mrf.mxu1  ;;  %v16033_v37 = vld [vmem:[#allocation14_spill] sm:$0xff] }
 0xffa   : > { %v8470_v33 = vadd.f32 %v10338_v28, %v15326_v16  ;;  %v9119_v12 = vadd.f32 %v10962_v44, %v9087_v48  ;;  %v8914_v3 = vmul.f32 %v10887_v49, %v8690_v21  ;;  %v8778_v34 = vmul.f32 1.442695, %v9597_v31  ;;  %v8628_v1 = vpop.f32.mrf.mxu0 }
 0xffb   : > { %v10889_v23 = vpop.eup %10888  ;;  %v9049_v62 = vmul.f32 %v15382_v18, %v9013_v22  ;;  %v8788_v52 = vmul.f32 1.442695, %v9602_v45  ;;  %v9600_v41 = vmul.f32 -2.0, %v15681_v57  ;;  %v15695_v55 = vadd.f32 %v15630_v8, %v8457_v59  ;;  %v8464_v28 = vpop.f32.mrf.mxu1 }
 0xffc   : > { %v10891_v63 = vpop.eup %10890  ;;  %v9151_v51 = vmax.f32 %v9119_v12, 0.0  ;;  %v8950_v16 = vmul.f32 %v15369_v53, %v8914_v3  ;;  %v8816_v43 = vadd.f32 1.0, %v10889_v23  ;;  %10900 = vpow2.f32 %v8778_v34 }
 0xffd   : > { %v10893_v4 = vpop.eup %10892  ;;  %v9085_v56 = vadd.f32 %v15365_v60, %v9049_v62  ;;  %v8819_v42 = vadd.f32 1.0, %v10891_v63  ;;  %10902 = vpow2.f32 %v8788_v52  ;;  %v8784_v17 = vmul.f32 1.442695, %v9600_v41 }
 0xffe   : > { %v8462_v47 = vadd.f32 %v8461_v6, %v15328_v58  ;;  %9183 = vst.msk [vmem:[%s15542_s17 + $0x78] sm:$0xff] %vm16032_vm1, %v9151_v51  ;;  %v8986_v8 = vadd.f32 %v15378_v14, %v8950_v16  ;;  %10904 = vrcp.f32 %v8816_v43  ;;  %v8817_v15 = vadd.f32 1.0, %v10893_v4  ;;  %vm16048_vm1 = vmmov %vm15972_vm0 }
 0xfff   : > { %v9117_v59 = vadd.f32 %v10963_v29, %v9085_v56  ;;  %10906 = vrcp.f32 %v8819_v42  ;;  %v9603_v38 = vmul.f32 -2.0, %v15695_v55  ;;  %v15706_v5 = vadd.f32 %v15654_v54, %v8449_v19 }
0x1000   : > { %v9018_v35 = vmax.f32 %v8986_v8, 0.0  ;;  %10908 = vrcp.f32 %v8817_v15  ;;  %v15708_v0 = vadd.f32 %v10372_v2, %v8470_v33  ;;  %v15710_v58 = vadd.f32 %v8625_v39, %v8462_v47  ;;  %v10964_v33 = vld [vmem:[%s11065_s14 + $0x90] sm:$0xff] }
0x1001   : > { %v9149_v24 = vmax.f32 %v9117_v59, 0.0  ;;  %10910 = vpow2.f32 %v8784_v17  ;;  %v8790_v13 = vmul.f32 1.442695, %v9603_v38  ;;  %v8473_v27 = vadd.f32 %v10339_v32, %v15332_v50 }
0x1002   : > { %v10895_v20 = vpop.eup %10894  ;;  %v9054_v10 = vmul.f32 %v15382_v18, %v9018_v35  ;;  %v9601_v7 = vmul.f32 -2.0, %v15706_v5  ;;  %v9606_v54 = vmul.f32 -2.0, %v15708_v0  ;;  %v8465_v2 = vadd.f32 %v8464_v28, %v16033_v37 }
0x1003   : > { %9181 = vst.msk [vmem:[%s15542_s17 + $0x68] sm:$0xff] %vm16034_vm4, %v9149_v24  ;;  %v8822_v48 = vadd.f32 1.0, %v10895_v20  ;;  %10912 = vpow2.f32 %v8790_v13  ;;  %v9604_v21 = vmul.f32 -2.0, %v15710_v58  ;;  %v15721_v19 = vadd.f32 %v10373_v9, %v8473_v27  ;;  %vm16049_vm4 = vmmov %vm15972_vm0 }
0x1004   : > { %v9090_v31 = vadd.f32 %v15365_v60, %v9054_v10  ;;  %v8786_v49 = vmul.f32 1.442695, %v9601_v7  ;;  %v8796_v50 = vmul.f32 1.442695, %v9606_v54  ;;  %v15723_v45 = vadd.f32 %v8628_v1, %v8465_v2 }
0x1005   : > { %v10897_v22 = vpop.eup %10896  ;;  %10914 = vrcp.f32 %v8822_v48  ;;  %v8792_v3 = vmul.f32 1.442695, %v9604_v21  ;;  %v9607_v39 = vmul.f32 -2.0, %v15721_v19  ;;  %v8688_v51 = vmul.f32 2.0, %v15485_v25 }
0x1006   : > { %v10899_v6 = vpop.eup %10898  ;;  %v9122_v44 = vadd.f32 %v10964_v33, %v9090_v31  ;;  %v8820_v12 = vadd.f32 1.0, %v10897_v22  ;;  %10916 = vpow2.f32 %v8786_v49  ;;  %v9605_v62 = vmul.f32 -2.0, %v15723_v45 }
0x1007   : > { %v8823_v34 = vadd.f32 1.0, %v10899_v6  ;;  %10918 = vpow2.f32 %v8796_v50  ;;  %v8798_v41 = vmul.f32 1.442695, %v9607_v39  ;;  %v8691_v56 = vmul.f32 2.0, %v15496_v46 }
0x1008   : > { %v9154_v23 = vmax.f32 %v9122_v44, 0.0  ;;  %10920 = vrcp.f32 %v8820_v12  ;;  %v8794_v43 = vmul.f32 1.442695, %v9605_v62  ;;  %v8689_v47 = vmul.f32 2.0, %v15504_v11 }
0x1009   : > { %v10901_v52 = vpop.eup %10900  ;;  %10922 = vrcp.f32 %v8823_v34  ;;  %v8694_v11 = vmul.f32 2.0, %v15526_v40  ;;  %v8692_v7 = vmul.f32 2.0, %v15646_v26  ;;  %v8695_v54 = vmul.f32 2.0, %v15652_v61 }
0x100a   : > { %v10903_v63 = vpop.eup %10902  ;;  %9186 = vst.msk [vmem:[%s15542_s17 + $0x90] sm:$0xff] %vm16035_vm5, %v9154_v23  ;;  %v8821_v16 = vadd.f32 1.0, %v10901_v52  ;;  %10924 = vpow2.f32 %v8792_v3  ;;  %v8693_v48 = vmul.f32 2.0, %v15671_v36  ;;  %v8698_v49 = vmul.f32 2.0, %v15678_v30  ;;  %v10965_v52 = vld [vmem:[%s11065_s14 + $0x80] sm:$0xff] }
0x100b   : > { %v10905_v4 = vpop.eup %10904  ;;  %v8826_v42 = vadd.f32 1.0, %v10903_v63  ;;  %10926 = vpow2.f32 %v8798_v41  ;;  %v8696_v61 = vmul.f32 2.0, %v15681_v57 }
0x100c   : > { %v10907_v17 = vpop.eup %10906  ;;  %v8912_v32 = vmul.f32 %v10905_v4, %v8688_v51  ;;  %10928 = vrcp.f32 %v8821_v16 }
0x100d   : > { %v10909_v8 = vpop.eup %10908  ;;  %v8915_v15 = vmul.f32 %v10907_v17, %v8691_v56  ;;  %10930 = vrcp.f32 %v8826_v42 }
0x100e   : > { %v10911_v9 = vpop.eup %10910  ;;  %v8948_v29 = vmul.f32 %v15369_v53, %v8912_v32  ;;  %v8913_v25 = vmul.f32 %v10909_v8, %v8689_v47  ;;  %10932 = vpow2.f32 %v8794_v43  ;;  %v10966_v43 = vld [vmem:[%s11065_s14 + $0x98] sm:$0xff]  ;;  %v10967_v8 = vld [vmem:[%s11065_s14 + $0x88] sm:$0xff] }
0x100f   : > { %v8951_v59 = vmul.f32 %v15369_v53, %v8915_v15  ;;  %v8824_v38 = vadd.f32 1.0, %v10911_v9 }
0x1010   : > { %v10913_v35 = vpop.eup %10912  ;;  %v8984_v46 = vadd.f32 %v15378_v14, %v8948_v29  ;;  %v8949_v24 = vmul.f32 %v15369_v53, %v8913_v25 }
0x1011   : > { %v8987_v13 = vadd.f32 %v15378_v14, %v8951_v59  ;;  %10934 = vrcp.f32 %v8824_v38  ;;  %v8827_v20 = vadd.f32 1.0, %v10913_v35 }
0x1012   : > { %v10915_v28 = vpop.eup %10914  ;;  %v9016_v27 = vmax.f32 %v8984_v46, 0.0  ;;  %v8985_v10 = vadd.f32 %v15378_v14, %v8949_v24 }
0x1013   : > { %v10917_v1 = vpop.eup %10916  ;;  %v9019_v37 = vmax.f32 %v8987_v13, 0.0  ;;  %v8918_v2 = vmul.f32 %v10915_v28, %v8694_v11  ;;  %10936 = vrcp.f32 %v8827_v20 }
0x1014   : > { %v10919_v21 = vpop.eup %10918  ;;  %v9052_v31 = vmul.f32 %v15382_v18, %v9016_v27  ;;  %v9017_v40 = vmax.f32 %v8985_v10, 0.0  ;;  %v8825_v50 = vadd.f32 1.0, %v10917_v1 }
0x1015   : > { %v10921_v22 = vpop.eup %10920  ;;  %v9055_v6 = vmul.f32 %v15382_v18, %v9019_v37  ;;  %v8954_v26 = vmul.f32 %v15369_v53, %v8918_v2  ;;  %v8830_v33 = vadd.f32 1.0, %v10919_v21  ;;  %v10968_v37 = vld [vmem:[%s11065_s14 + $0xb0] sm:$0xff] }
0x1016   : > { %v10923_v44 = vpop.eup %10922  ;;  %v9088_v36 = vadd.f32 %v15365_v60, %v9052_v31  ;;  %v9053_v12 = vmul.f32 %v15382_v18, %v9017_v40  ;;  %v8916_v3 = vmul.f32 %v10921_v22, %v8692_v7  ;;  %10938 = vrcp.f32 %v8825_v50 }
0x1017   : > { %v10925_v34 = vpop.eup %10924  ;;  %v9091_v30 = vadd.f32 %v15365_v60, %v9055_v6  ;;  %v8990_v39 = vadd.f32 %v15378_v14, %v8954_v26  ;;  %v8919_v23 = vmul.f32 %v10923_v44, %v8695_v54  ;;  %10940 = vrcp.f32 %v8830_v33 }
0x1018   : > { %v10927_v62 = vpop.eup %10926  ;;  %v9120_v57 = vadd.f32 %v10965_v52, %v9088_v36  ;;  %v9089_v41 = vadd.f32 %v15365_v60, %v9053_v12  ;;  %v8952_v63 = vmul.f32 %v15369_v53, %v8916_v3  ;;  %v8828_v51 = vadd.f32 1.0, %v10925_v34  ;;  %v10969_v36 = vld [vmem:[%s11065_s14 + $0xa0] sm:$0xff] }
0x1019   : > { %v10929_v16 = vpop.eup %10928  ;;  %v9123_v4 = vadd.f32 %v10966_v43, %v9091_v30  ;;  %v9022_v56 = vmax.f32 %v8990_v39, 0.0  ;;  %v8955_v42 = vmul.f32 %v15369_v53, %v8919_v23  ;;  %v8831_v17 = vadd.f32 1.0, %v10927_v62 }
0x101a   : > { %v10931_v32 = vpop.eup %10930  ;;  %v9152_v47 = vmax.f32 %v9120_v57, 0.0  ;;  %v9121_v15 = vadd.f32 %v10967_v8, %v9089_v41  ;;  %v8988_v9 = vadd.f32 %v15378_v14, %v8952_v63  ;;  %v8917_v29 = vmul.f32 %v10929_v16, %v8693_v48 }
0x101b   : > { %v10933_v25 = vpop.eup %10932  ;;  %v9155_v59 = vmax.f32 %v9123_v4, 0.0  ;;  %v9058_v38 = vmul.f32 %v15382_v18, %v9022_v56  ;;  %v8991_v35 = vadd.f32 %v15378_v14, %v8955_v42  ;;  %v8922_v46 = vmul.f32 %v10931_v32, %v8698_v49  ;;  %v10971_v42 = vld [vmem:[%s11065_s14 + $0xa8] sm:$0xff] }
0x101c   : > { %9184 = vst.msk [vmem:[%s15542_s17 + $0x80] sm:$0xff] %vm16036_vm6, %v9152_v47  ;;  %v9153_v24 = vmax.f32 %v9121_v15, 0.0  ;;  %v9020_v13 = vmax.f32 %v8988_v9, 0.0  ;;  %v8953_v11 = vmul.f32 %v15369_v53, %v8917_v29  ;;  %10942 = vrcp.f32 %v8828_v51  ;;  %v10972_v47 = vld [vmem:[%s11065_s14 + $0xd0] sm:$0xff] }
0x101d   : > { %9187 = vst.msk [vmem:[%s15542_s17 + $0x98] sm:$0xff] %vm16037_vm7, %v9155_v59  ;;  %v9094_v20 = vadd.f32 %v15365_v60, %v9058_v38  ;;  %v9023_v28 = vmax.f32 %v8991_v35, 0.0  ;;  %v8958_v27 = vmul.f32 %v15369_v53, %v8922_v46  ;;  %10944 = vrcp.f32 %v8831_v17 }
0x101e   : > { %v10935_v10 = vpop.eup %10934  ;;  %9185 = vst.msk [vmem:[%s15542_s17 + $0x88] sm:$0xff] %vm16038_vm8, %v9153_v24  ;;  %v9056_v7 = vmul.f32 %v15382_v18, %v9020_v13  ;;  %v8989_v54 = vadd.f32 %v15378_v14, %v8953_v11  ;;  %v8829_v1 = vadd.f32 1.0, %v10933_v25  ;;  %v8699_v22 = vmul.f32 2.0, %v15695_v55  ;;  %v10970_v55 = vld [vmem:[%s11065_s14 + $0xb8] sm:$0xff] }
0x101f   : > { %v9126_v2 = vadd.f32 %v10968_v37, %v9094_v20  ;;  %v9059_v48 = vmul.f32 %v15382_v18, %v9023_v28  ;;  %v8994_v21 = vadd.f32 %v15378_v14, %v8958_v27  ;;  %v8920_v31 = vmul.f32 %v10935_v10, %v8696_v61 }
0x1020   : > { %v10937_v40 = vpop.eup %10936  ;;  %v9092_v49 = vadd.f32 %v15365_v60, %v9056_v7  ;;  %v9021_v50 = vmax.f32 %v8989_v54, 0.0  ;;  %10946 = vrcp.f32 %v8829_v1  ;;  %v8697_v34 = vmul.f32 2.0, %v15706_v5  ;;  %v10973_v7 = vld [vmem:[%s11065_s14 + $0xc0] sm:$0xff] }
0x1021   : > { %v9158_v6 = vmax.f32 %v9126_v2, 0.0  ;;  %v9095_v26 = vadd.f32 %v15365_v60, %v9059_v48  ;;  %v9026_v33 = vmax.f32 %v8994_v21, 0.0  ;;  %v8956_v44 = vmul.f32 %v15369_v53, %v8920_v31 }
0x1022   : > { %v9124_v12 = vadd.f32 %v10969_v36, %v9092_v49  ;;  %v9057_v3 = vmul.f32 %v15382_v18, %v9021_v50  ;;  %v8923_v61 = vmul.f32 %v10937_v40, %v8699_v22  ;;  %v8702_v52 = vmul.f32 2.0, %v15708_v0  ;;  %v10974_v50 = vld [vmem:[%s11065_s14 + $0xd8] sm:$0xff] }
0x1023   : > { %v10939_v30 = vpop.eup %10938  ;;  %9190 = vst.msk [vmem:[%s15542_s17 + $0xb0] sm:$0xff] %vm16039_vm9, %v9158_v6  ;;  %v9127_v39 = vadd.f32 %v10970_v55, %v9095_v26  ;;  %v9062_v23 = vmul.f32 %v15382_v18, %v9026_v33  ;;  %v8992_v62 = vadd.f32 %v15378_v14, %v8956_v44  ;;  %v8700_v38 = vmul.f32 2.0, %v15710_v58 }
0x1024   : > { %v10941_v57 = vpop.eup %10940  ;;  %v9156_v41 = vmax.f32 %v9124_v12, 0.0  ;;  %v9093_v63 = vadd.f32 %v15365_v60, %v9057_v3  ;;  %v8959_v5 = vmul.f32 %v15369_v53, %v8923_v61  ;;  %v8921_v51 = vmul.f32 %v10939_v30, %v8697_v34  ;;  %v10975_v12 = vld [vmem:[%s11065_s14 + $0xc8] sm:$0xff]  ;;  %v10976_v30 = vld [vmem:[%s11065_s14 + $0xf0] sm:$0xff] }
0x1025   : > { %v9159_v16 = vmax.f32 %v9127_v39, 0.0  ;;  %v9098_v43 = vadd.f32 %v15365_v60, %v9062_v23  ;;  %v9024_v4 = vmax.f32 %v8992_v62, 0.0  ;;  %v8926_v56 = vmul.f32 %v10941_v57, %v8702_v52 }
0x1026   : > { %9188 = vst.msk [vmem:[%s15542_s17 + $0xa0] sm:$0xff] %vm16040_vm10, %v9156_v41  ;;  %v9125_v17 = vadd.f32 %v10971_v42, %v9093_v63  ;;  %v8995_v32 = vadd.f32 %v15378_v14, %v8959_v5  ;;  %v8957_v0 = vmul.f32 %v15369_v53, %v8921_v51  ;;  %v8703_v11 = vmul.f32 2.0, %v15721_v19  ;;  %v10977_v51 = vld [vmem:[%s11065_s14 + $0xe0] sm:$0xff] }
0x1027   : > { %9191 = vst.msk [vmem:[%s15542_s17 + $0xb8] sm:$0xff] %vm16041_vm11, %v9159_v16  ;;  %v9130_v8 = vadd.f32 %v10972_v47, %v9098_v43  ;;  %v9060_v15 = vmul.f32 %v15382_v18, %v9024_v4  ;;  %v8962_v9 = vmul.f32 %v15369_v53, %v8926_v56  ;;  %v8701_v48 = vmul.f32 2.0, %v15723_v45  ;;  %v10978_v43 = vld [vmem:[%s11065_s14 + $0xf8] sm:$0xff] }
0x1028   : > { %v9157_v29 = vmax.f32 %v9125_v17, 0.0  ;;  %v9027_v25 = vmax.f32 %v8995_v32, 0.0  ;;  %v8993_v59 = vadd.f32 %v15378_v14, %v8957_v0  ;;  %v10979_v32 = vld [vmem:[%s11065_s14 + $0xe8] sm:$0xff] }
0x1029   : > { %v10943_v35 = vpop.eup %10942  ;;  %v9162_v46 = vmax.f32 %v9130_v8, 0.0  ;;  %v9096_v24 = vadd.f32 %v15365_v60, %v9060_v15  ;;  %v8998_v13 = vadd.f32 %v15378_v14, %v8962_v9 }
0x102a   : > { %v10945_v20 = vpop.eup %10944  ;;  %9189 = vst.msk [vmem:[%s15542_s17 + $0xa8] sm:$0xff] %vm16042_vm12, %v9157_v29  ;;  %v9063_v28 = vmul.f32 %v15382_v18, %v9027_v25  ;;  %v9025_v27 = vmax.f32 %v8993_v59, 0.0  ;;  %v8924_v10 = vmul.f32 %v10943_v35, %v8700_v38 }
0x102b   : > { %9194 = vst.msk [vmem:[%s15542_s17 + $0xd0] sm:$0xff] %vm16043_vm13, %v9162_v46  ;;  %v9128_v58 = vadd.f32 %v10973_v7, %v9096_v24  ;;  %v9030_v54 = vmax.f32 %v8998_v13, 0.0  ;;  %v8927_v1 = vmul.f32 %v10945_v20, %v8703_v11 }
0x102c   : > { %v9099_v37 = vadd.f32 %v15365_v60, %v9063_v28  ;;  %v9061_v2 = vmul.f32 %v15382_v18, %v9025_v27  ;;  %v8960_v19 = vmul.f32 %v15369_v53, %v8924_v10 }
0x102d   : > { %v10947_v21 = vpop.eup %10946  ;;  %v9160_v31 = vmax.f32 %v9128_v58, 0.0  ;;  %v9066_v40 = vmul.f32 %v15382_v18, %v9030_v54  ;;  %v8963_v49 = vmul.f32 %v15369_v53, %v8927_v1 }
0x102e   : > { %v9131_v22 = vadd.f32 %v10974_v50, %v9099_v37  ;;  %v9097_v6 = vadd.f32 %v15365_v60, %v9061_v2  ;;  %v8996_v26 = vadd.f32 %v15378_v14, %v8960_v19  ;;  %v8925_v33 = vmul.f32 %v10947_v21, %v8701_v48 }
0x102f   : > { %9192 = vst.msk [vmem:[%s15542_s17 + $0xc0] sm:$0xff] %vm16044_vm14, %v9160_v31  ;;  %v9102_v44 = vadd.f32 %v15365_v60, %v9066_v40  ;;  %v8999_v45 = vadd.f32 %v15378_v14, %v8963_v49 }
0x1030   : > { %v9163_v36 = vmax.f32 %v9131_v22, 0.0  ;;  %v9129_v3 = vadd.f32 %v10975_v12, %v9097_v6  ;;  %v9028_v61 = vmax.f32 %v8996_v26, 0.0  ;;  %v8961_v34 = vmul.f32 %v15369_v53, %v8925_v33 }
0x1031   : > { %v9134_v55 = vadd.f32 %v10976_v30, %v9102_v44  ;;  %v9031_v39 = vmax.f32 %v8999_v45, 0.0 }
0x1032   : > { %9195 = vst.msk [vmem:[%s15542_s17 + $0xd8] sm:$0xff] %vm16045_vm15, %v9163_v36  ;;  %v9161_v23 = vmax.f32 %v9129_v3, 0.0  ;;  %v9064_v62 = vmul.f32 %v15382_v18, %v9028_v61  ;;  %v8997_v52 = vadd.f32 %v15378_v14, %v8961_v34 }
0x1033   : > { %v9166_v57 = vmax.f32 %v9134_v55, 0.0  ;;  %v9067_v41 = vmul.f32 %v15382_v18, %v9031_v39 }
0x1034   : > { %9193 = vst.msk [vmem:[%s15542_s17 + $0xc8] sm:$0xff] %vm16046_vm2, %v9161_v23  ;;  %v9100_v53 = vadd.f32 %v15365_v60, %v9064_v62  ;;  %v9029_v63 = vmax.f32 %v8997_v52, 0.0 }
0x1035   : > { %9198 = vst.msk [vmem:[%s15542_s17 + $0xf0] sm:$0xff] %vm15972_vm0, %v9166_v57  ;;  %v9103_v5 = vadd.f32 %v15365_v60, %v9067_v41 }
0x1036   : > { %v9132_v16 = vadd.f32 %v10977_v51, %v9100_v53  ;;  %v9065_v14 = vmul.f32 %v15382_v18, %v9029_v63 }
0x1037   : > { %v9135_v4 = vadd.f32 %v10978_v43, %v9103_v5 }
0x1038   : > { %v9164_v56 = vmax.f32 %v9132_v16, 0.0  ;;  %v9101_v42 = vadd.f32 %v15365_v60, %v9065_v14 }
0x1039   : > { %v9167_v17 = vmax.f32 %v9135_v4, 0.0 }
0x103a   : > { %9196 = vst.msk [vmem:[%s15542_s17 + $0xe0] sm:$0xff] %vm16047_vm3, %v9164_v56  ;;  %v9133_v0 = vadd.f32 %v10979_v32, %v9101_v42 }
0x103b   : > { %9199 = vst.msk [vmem:[%s15542_s17 + $0xf8] sm:$0xff] %vm16048_vm1, %v9167_v17 }
0x103c   : > { %v9165_v47 = vmax.f32 %v9133_v0, 0.0 }
0x103e   : > { %9197 = vst.msk [vmem:[%s15542_s17 + $0xe8] sm:$0xff] %vm16049_vm4, %v9165_v47 }
0x103f PF: > { %s19_s30 = sadd.s32 1, %s10986_s30  }
0x1040   : > { %p16_p4 = scmp.ge.s32.totalorder %s19_s30, 4  }
0x1042   :  { %18 = sbr.rel (!%p16_p4) target bundleno = 1 (0x1), region = 88 }

</bundles_post_ra>
